<compile_context>
chip_gen: v6e
topology: v6e:2x2x1
jax: 0.10.0
libtpu: 0.0.40
codegen_flags: <defaults>
</compile_context>

<pallas_src>
import functools

import jax
import jax.numpy as jnp
from jax.experimental import pallas as pl
from jax.experimental.pallas import tpu as pltpu

_TILE = 256      # square block of the N x N geodesic matrix handled per grid step
_CE_TILE = 128   # row tile for the (off-critical-path) cross-entropy kernel


def _acos(x):
    """acos via Abramowitz & Stegun 4.4.45 (4 terms, |abs err| <= 7e-5 on [-1, 1]).

    Only sqrt / mul / add / select -> guaranteed Mosaic lowering; the short
    polynomial keeps the binding VALU slot light (sqrt goes to the EUP slot).
    """
    ax = jnp.abs(x)
    p = jnp.float32(-0.0187293)
    p = p * ax + jnp.float32(0.0742610)
    p = p * ax + jnp.float32(-0.2121144)
    p = p * ax + jnp.float32(1.5707288)
    r = p * jnp.sqrt(jnp.maximum(1.0 - ax, 0.0))
    return jnp.where(x >= 0, r, jnp.float32(jnp.pi) - r)


def _amc_tile_kernel(row_emb_ref, col_emb_ref, row_lab_ref, col_lab_ref,
                     pos_ref, neg_ref, *, angular_margin, wrap_col, precision):
    j = pl.program_id(1)

    # P3: accumulate straight into the VMEM-resident output blocks
    # (their block index is constant over the reduction axis j).
    @pl.when(j == 0)
    def _init():
        pos_ref[...] = jnp.zeros_like(pos_ref)
        neg_ref[...] = jnp.zeros_like(neg_ref)

    # Wrapped-diagonal weights: j == 0 is the self-pair diagonal block (weight
    # 1); for even n_tiles the wrap column is visited from both ends of each
    # pair, so weight 1 as well; every other off-diagonal block pair is visited
    # exactly once and stands for both directed blocks -> weight 2.
    if wrap_col >= 0:
        once = jnp.logical_or(j == 0, j == wrap_col)
    else:
        once = j == 0
    scale = jnp.where(once, jnp.float32(1.0), jnp.float32(2.0))

    a = row_emb_ref[...]                             # (TILE, D_pad)
    b = col_emb_ref[...]                             # (TILE, D_pad)
    # cos_sim block = A @ B^T on the MXU, f32 accumulation, full-f32 passes.
    cos = jax.lax.dot_general(a, b, (((1,), (1,)), ((), ())),
                              preferred_element_type=jnp.float32,
                              precision=precision)
    geo = _acos(jnp.clip(cos, -0.99999, 0.99999))

    lr = row_lab_ref[...]                            # (TILE, 1) i32, pad rows = -1
    lc = col_lab_ref[...]                            # (1, TILE) i32, pad cols = -2
    eq = lr == lc                                    # pads never match anything

    # Padded rows/cols are all-zero embeddings: cos = 0 -> geo = pi/2 ->
    # hinge = 0 (angular_margin < pi/2 asserted in the wrapper), so padded
    # pairs contribute nothing to the negative term without an explicit mask.
    hinge = jnp.maximum(jnp.float32(angular_margin) - geo, 0.0)
    pos_t = jnp.where(eq, geo * geo, 0.0)
    neg_t = jnp.where(eq, 0.0, hinge * hinge)

    # Lane-axis reduction per tile; the cross-sublane reduce + divides happen
    # once, in the wrapper, over the tiny (N_pad, 1) partials.
    pos_ref[...] += scale * jnp.sum(pos_t, axis=-1, keepdims=True)
    neg_ref[...] += scale * jnp.sum(neg_t, axis=-1, keepdims=True)


def _ce_kernel(logits_ref, labels_ref, nll_ref):
    logits = logits_ref[...].astype(jnp.float32)     # (T, C)
    labels = labels_ref[...]                         # (T, 1) i32, pad rows = -1
    m = jnp.max(logits, axis=1, keepdims=True)
    z = logits - m
    lse = jnp.log(jnp.sum(jnp.exp(z), axis=1, keepdims=True))
    cls = jax.lax.broadcasted_iota(jnp.int32, logits.shape, 1)
    picked = jnp.sum(jnp.where(cls == labels, z, 0.0), axis=1, keepdims=True)
    nll_ref[...] = jnp.where(labels >= 0, lse - picked, 0.0)


def amc_loss(embeddings, logits, labels, *, angular_margin=0.5, lambda_=0.1,
             use_bf16_matmul=False):
    # Padded-pair self-exclusion from the negative term requires hinge(pi/2) == 0.
    assert angular_margin < 1.5707, "angular_margin must be < pi/2"

    n, d = embeddings.shape
    num_classes = logits.shape[1]

    emb = embeddings.astype(jnp.float32)
    # L2-normalize once here (hoisted out of the N^2-tiled kernel); torch eps=1e-12.
    norm = jnp.sqrt(jnp.sum(emb * emb, axis=1, keepdims=True))
    nemb = emb / jnp.maximum(norm, 1e-12)

    # Pad N to a multiple of the tile and D to a multiple of 128. Zero-padded
    # feature lanes / rows do not change any real dot product.
    n_pad = ((n + _TILE - 1) // _TILE) * _TILE
    d_pad = ((d + 127) // 128) * 128
    nemb_p = jnp.pad(nemb, ((0, n_pad - n), (0, d_pad - d)))
    if use_bf16_matmul:
        # TODO(synk): bf16 MXU inputs (~3x matmul throughput; mostly matters on
        # v5e / large D) perturb near-1 cosines -- validate before enabling.
        nemb_p = nemb_p.astype(jnp.bfloat16)

    labels_i32 = labels.astype(jnp.int32)
    # Distinct negative sentinels so padded rows/cols never match anything.
    row_lab = jnp.pad(labels_i32, (0, n_pad - n), constant_values=-1).reshape(n_pad, 1)
    col_lab = jnp.pad(labels_i32, (0, n_pad - n), constant_values=-2).reshape(1, n_pad)

    n_tiles = n_pad // _TILE
    n_half = n_tiles // 2 + 1                        # wrapped-diagonal offsets
    wrap_col = n_tiles // 2 if (n_tiles % 2 == 0 and n_tiles > 1) else -1

    kernel = functools.partial(
        _amc_tile_kernel,
        angular_margin=float(angular_margin),
        wrap_col=wrap_col,
        precision=(jax.lax.Precision.DEFAULT if use_bf16_matmul
                   else jax.lax.Precision.HIGHEST),
    )

    pos_p, neg_p = pl.pallas_call(
        kernel,
        out_shape=(
            jax.ShapeDtypeStruct((n_pad, 1), jnp.float32),
            jax.ShapeDtypeStruct((n_pad, 1), jnp.float32),
        ),
        grid_spec=pltpu.PrefetchScalarGridSpec(
            num_scalar_prefetch=0,
            grid=(n_tiles, n_half),
            in_specs=[
                pl.BlockSpec((_TILE, d_pad), lambda i, j: (i, 0)),                   # row emb
                pl.BlockSpec((_TILE, d_pad), lambda i, j: ((i + j) % n_tiles, 0)),   # col emb
                pl.BlockSpec((_TILE, 1), lambda i, j: (i, 0)),                       # row labels
                pl.BlockSpec((1, _TILE), lambda i, j: (0, (i + j) % n_tiles)),       # col labels
            ],
            out_specs=(
                pl.BlockSpec((_TILE, 1), lambda i, j: (i, 0)),
                pl.BlockSpec((_TILE, 1), lambda i, j: (i, 0)),
            ),
        ),
        compiler_params=pltpu.CompilerParams(
            # Row-tile axis shards across v7x's two TensorCores (now balanced:
            # every i does the same number of real steps); the wrapped-diagonal
            # column axis is the reduction into the resident outputs -> "arbitrary".
            dimension_semantics=("parallel", "arbitrary"),
            # Fits double-buffered (TILE, d_pad) row/col blocks for moderate D on
            # every generation (v7x physical VMEM is 64 MiB).
            # TODO(synk): for very large D add an innermost K grid axis that
            # accumulates `cos` into a (TILE, TILE) VMEM scratch before the
            # acos/mask epilogue instead of widening the blocks further.
            vmem_limit_bytes=48 * 1024 * 1024,
        ),
    )(nemb_p, nemb_p, row_lab, col_lab)

    pos_sum = jnp.sum(pos_p)
    neg_sum = jnp.sum(neg_p)

    # |{(i,j): label_i == label_j}| = sum_c count_c^2, computed O(N + C) here
    # instead of a third accumulator stream inside the N^2 kernel.
    counts = jnp.zeros((num_classes,), jnp.float32).at[labels_i32].add(1.0)
    eq_sum = jnp.sum(counts * counts)
    neq_sum = jnp.float32(n * n) - eq_sum
    amc = pos_sum / eq_sum + neg_sum / neq_sum

    # Cross entropy: O(N*C), off the N^2 critical path, tiled over rows so the
    # full (N, C) logits never need to sit in VMEM at once.
    # TODO(synk): also tile the class dim for extremely large C (>~64k).
    n_ce = ((n + _CE_TILE - 1) // _CE_TILE) * _CE_TILE
    logits_p = jnp.pad(logits.astype(jnp.float32), ((0, n_ce - n), (0, 0)))
    labels_ce = jnp.pad(labels_i32, (0, n_ce - n), constant_values=-1).reshape(n_ce, 1)
    nll = pl.pallas_call(
        _ce_kernel,
        out_shape=jax.ShapeDtypeStruct((n_ce, 1), jnp.float32),
        grid=(n_ce // _CE_TILE,),
        in_specs=[
            pl.BlockSpec((_CE_TILE, num_classes), lambda i: (i, 0)),
            pl.BlockSpec((_CE_TILE, 1), lambda i: (i, 0)),
        ],
        out_specs=pl.BlockSpec((_CE_TILE, 1), lambda i: (i, 0)),
    )(logits_p, labels_ce)
    ce = jnp.sum(nll) / jnp.float32(n)

    return ce + jnp.float32(lambda_) * amc


def amc_loss_reference(embeddings, logits, labels, *, angular_margin=0.5, lambda_=0.1):
    """Pure-JAX reference mirroring the PyTorch forward exactly (f32 matmul)."""
    norm = jnp.sqrt(jnp.sum(embeddings * embeddings, axis=1, keepdims=True))
    nemb = embeddings / jnp.maximum(norm, 1e-12)
    cos_sim = jnp.matmul(nemb, nemb.T, precision=jax.lax.Precision.HIGHEST)
    labels_eq = labels[:, None] == labels[None, :]
    geo = jnp.arccos(jnp.clip(cos_sim, -0.99999, 0.99999))
    pos = jnp.sum(jnp.where(labels_eq, geo ** 2, 0.0)) / jnp.sum(labels_eq)
    hinge = jnp.maximum(angular_margin - geo, 0.0)
    neg = jnp.sum(jnp.where(~labels_eq, hinge ** 2, 0.0)) / jnp.sum(~labels_eq)
    amc = pos + neg
    logp = jax.nn.log_softmax(logits, axis=-1)
    ce = -jnp.mean(jnp.take_along_axis(logp, labels[:, None], axis=1))
    return ce + lambda_ * amc


if __name__ == "__main__":
    key = jax.random.PRNGKey(0)
    k1, k2, k3 = jax.random.split(key, 3)

    N, D, C = 8, 32, 10
    embeddings = jax.random.normal(k1, (N, D), dtype=jnp.float32)
    logits = jax.random.normal(k2, (N, C), dtype=jnp.float32)
    labels = jax.random.randint(k3, (N,), 0, C, dtype=jnp.int32)

    loss = amc_loss(embeddings, logits, labels)
    loss = jax.block_until_ready(loss)

    ref = amc_loss_reference(embeddings, logits, labels)
    assert jnp.isfinite(loss), "kernel produced non-finite loss"
    assert abs(float(loss) - float(ref)) < 1e-3, (float(loss), float(ref))

    print("KERNEL_OK")
</pallas_src>

<mosaic_0001>
module attributes {stable_mosaic.version = 11 : i64} {
  func.func @_amc_tile_kernel(%arg0: i32, %arg1: i32, %arg2: memref<256x128xf32, #tpu.memory_space<vmem>>, %arg3: memref<256x128xf32, #tpu.memory_space<vmem>>, %arg4: memref<256x1xi32, #tpu.memory_space<vmem>>, %arg5: memref<1x256xi32, #tpu.memory_space<vmem>>, %arg6: memref<256x1xf32, #tpu.memory_space<vmem>>, %arg7: memref<256x1xf32, #tpu.memory_space<vmem>>) attributes {dimension_semantics = [#tpu.dimension_semantics<parallel>, #tpu.dimension_semantics<arbitrary>], iteration_bounds = array<i64: 1, 1>, scalar_prefetch = 0 : i64, scratch_operands = 0 : i64, tpu.core_type = #tpu.core_type<tc>, window_params = [{transform_indices = @transform_0, window_bounds = array<i64: 256, 128>}, {transform_indices = @transform_1, window_bounds = array<i64: 256, 128>}, {transform_indices = @transform_2, window_bounds = array<i64: 256, 1>}, {transform_indices = @transform_3, window_bounds = array<i64: 1, 256>}, {transform_indices = @transform_4, window_bounds = array<i64: 256, 1>}, {transform_indices = @transform_5, window_bounds = array<i64: 256, 1>}]} {
    %c0_i32 = arith.constant 0 : i32
    %0 = arith.cmpi eq, %arg1, %c0_i32 : i32
    %1 = arith.extui %0 : i1 to i32
    %c0_i32_0 = arith.constant 0 : i32
    %2 = arith.cmpi ne, %1, %c0_i32_0 : i32
    scf.if %2 {
      %cst_35 = arith.constant 0.000000e+00 : f32
      %63 = vector.broadcast %cst_35 : f32 to vector<256x1xf32>
      %c0_36 = arith.constant 0 : index
      %c0_37 = arith.constant 0 : index
      %64 = vector.load %arg6[%c0_36, %c0_37] : memref<256x1xf32, #tpu.memory_space<vmem>>, vector<256x1xf32>
      tpu.vector_store %arg6[%c0_36, %c0_37], %63 {strides = array<i32>} : memref<256x1xf32, #tpu.memory_space<vmem>>, vector<256x1xf32>,
      %cst_38 = arith.constant 0.000000e+00 : f32
      %65 = vector.broadcast %cst_38 : f32 to vector<256x1xf32>
      %c0_39 = arith.constant 0 : index
      %c0_40 = arith.constant 0 : index
      %66 = vector.load %arg7[%c0_39, %c0_40] : memref<256x1xf32, #tpu.memory_space<vmem>>, vector<256x1xf32>
      tpu.vector_store %arg7[%c0_39, %c0_40], %65 {strides = array<i32>} : memref<256x1xf32, #tpu.memory_space<vmem>>, vector<256x1xf32>,
    } else {
    }
    %c0_i32_1 = arith.constant 0 : i32
    %3 = arith.cmpi eq, %arg1, %c0_i32_1 : i32
    %cst = arith.constant 1.000000e+00 : f32
    %cst_2 = arith.constant 2.000000e+00 : f32
    %4 = arith.select %3, %cst, %cst_2 : f32
    %c0 = arith.constant 0 : index
    %c0_3 = arith.constant 0 : index
    %5 = vector.load %arg2[%c0, %c0_3] : memref<256x128xf32, #tpu.memory_space<vmem>>, vector<256x128xf32>
    %c0_4 = arith.constant 0 : index
    %c0_5 = arith.constant 0 : index
    %6 = vector.load %arg3[%c0_4, %c0_5] : memref<256x128xf32, #tpu.memory_space<vmem>>, vector<256x128xf32>
    %cst_6 = arith.constant dense<0.000000e+00> : vector<256x256xf32>
    %7 = tpu.matmul %5, %6, %cst_6 {dimension_numbers = #tpu.dot_dimension_numbers<[1], [1], [0], [0], [0, 0, 1, 0], [], []>, precision = #tpu.contract_precision<fp32>} : vector<256x128xf32>, vector<256x128xf32>, vector<256x256xf32> -> vector<256x256xf32>
    %cst_7 = arith.constant -0.999989986 : f32
    %cst_8 = arith.constant 0.999989986 : f32
    %8 = vector.broadcast %cst_7 : f32 to vector<256x256xf32>
    %9 = arith.maximumf %8, %7 : vector<256x256xf32>
    %10 = vector.broadcast %cst_8 : f32 to vector<256x256xf32>
    %11 = arith.minimumf %10, %9 : vector<256x256xf32>
    %12 = math.absf %11 : vector<256x256xf32>
    %cst_9 = arith.constant -1.872930e-02 : f32
    %13 = vector.broadcast %cst_9 : f32 to vector<256x256xf32>
    %14 = arith.mulf %13, %12 : vector<256x256xf32>
    %cst_10 = arith.constant 7.426100e-02 : f32
    %15 = vector.broadcast %cst_10 : f32 to vector<256x256xf32>
    %16 = arith.addf %14, %15 : vector<256x256xf32>
    %17 = arith.mulf %16, %12 : vector<256x256xf32>
    %cst_11 = arith.constant -0.212114394 : f32
    %18 = vector.broadcast %cst_11 : f32 to vector<256x256xf32>
    %19 = arith.addf %17, %18 : vector<256x256xf32>
    %20 = arith.mulf %19, %12 : vector<256x256xf32>
    %cst_12 = arith.constant 1.57072878 : f32
    %21 = vector.broadcast %cst_12 : f32 to vector<256x256xf32>
    %22 = arith.addf %20, %21 : vector<256x256xf32>
    %cst_13 = arith.constant 1.000000e+00 : f32
    %23 = vector.broadcast %cst_13 : f32 to vector<256x256xf32>
    %24 = arith.subf %23, %12 : vector<256x256xf32>
    %cst_14 = arith.constant 0.000000e+00 : f32
    %25 = vector.broadcast %cst_14 : f32 to vector<256x256xf32>
    %26 = arith.maximumf %24, %25 : vector<256x256xf32>
    %27 = math.sqrt %26 : vector<256x256xf32>
    %28 = arith.mulf %22, %27 : vector<256x256xf32>
    %cst_15 = arith.constant 0.000000e+00 : f32
    %29 = vector.broadcast %cst_15 : f32 to vector<256x256xf32>
    %30 = arith.cmpf oge, %11, %29 : vector<256x256xf32>
    %cst_16 = arith.constant 3.14159274 : f32
    %31 = vector.broadcast %cst_16 : f32 to vector<256x256xf32>
    %32 = arith.subf %31, %28 : vector<256x256xf32>
    %33 = arith.select %30, %28, %32 : vector<256x256xi1>, vector<256x256xf32>
    %c0_17 = arith.constant 0 : index
    %c0_18 = arith.constant 0 : index
    %34 = vector.load %arg4[%c0_17, %c0_18] : memref<256x1xi32, #tpu.memory_space<vmem>>, vector<256x1xi32>
    %c0_19 = arith.constant 0 : index
    %c0_20 = arith.constant 0 : index
    %35 = vector.load %arg5[%c0_19, %c0_20] : memref<1x256xi32, #tpu.memory_space<vmem>>, vector<1x256xi32>
    %36 = vector.broadcast %34 : vector<256x1xi32> to vector<256x256xi32>
    %37 = vector.broadcast %35 : vector<1x256xi32> to vector<256x256xi32>
    %38 = arith.cmpi eq, %36, %37 : vector<256x256xi32>
    %cst_21 = arith.constant 5.000000e-01 : f32
    %39 = vector.broadcast %cst_21 : f32 to vector<256x256xf32>
    %40 = arith.subf %39, %33 : vector<256x256xf32>
    %cst_22 = arith.constant 0.000000e+00 : f32
    %41 = vector.broadcast %cst_22 : f32 to vector<256x256xf32>
    %42 = arith.maximumf %40, %41 : vector<256x256xf32>
    %43 = arith.mulf %33, %33 : vector<256x256xf32>
    %cst_23 = arith.constant 0.000000e+00 : f32
    %44 = vector.broadcast %cst_23 : f32 to vector<256x256xf32>
    %45 = arith.select %38, %43, %44 : vector<256x256xi1>, vector<256x256xf32>
    %46 = arith.mulf %42, %42 : vector<256x256xf32>
    %cst_24 = arith.constant 0.000000e+00 : f32
    %47 = vector.broadcast %cst_24 : f32 to vector<256x256xf32>
    %48 = arith.select %38, %47, %46 : vector<256x256xi1>, vector<256x256xf32>
    %c0_25 = arith.constant 0 : index
    %c0_26 = arith.constant 0 : index
    %49 = vector.load %arg6[%c0_25, %c0_26] : memref<256x1xf32, #tpu.memory_space<vmem>>, vector<256x1xf32>
    %cst_27 = arith.constant dense<0.000000e+00> : vector<256xf32>
    %50 = vector.multi_reduction <add>, %45, %cst_27 [1] : vector<256x256xf32> to vector<256xf32>
    %51 = vector.shape_cast %50 : vector<256xf32> to vector<256x1xf32>
    %52 = vector.broadcast %4 : f32 to vector<256x1xf32>
    %53 = arith.mulf %52, %51 : vector<256x1xf32>
    %54 = arith.addf %49, %53 : vector<256x1xf32>
    %c0_28 = arith.constant 0 : index
    %c0_29 = arith.constant 0 : index
    %55 = vector.load %arg6[%c0_28, %c0_29] : memref<256x1xf32, #tpu.memory_space<vmem>>, vector<256x1xf32>
    tpu.vector_store %arg6[%c0_28, %c0_29], %54 {strides = array<i32>} : memref<256x1xf32, #tpu.memory_space<vmem>>, vector<256x1xf32>,
    %c0_30 = arith.constant 0 : index
    %c0_31 = arith.constant 0 : index
    %56 = vector.load %arg7[%c0_30, %c0_31] : memref<256x1xf32, #tpu.memory_space<vmem>>, vector<256x1xf32>
    %cst_32 = arith.constant dense<0.000000e+00> : vector<256xf32>
    %57 = vector.multi_reduction <add>, %48, %cst_32 [1] : vector<256x256xf32> to vector<256xf32>
    %58 = vector.shape_cast %57 : vector<256xf32> to vector<256x1xf32>
    %59 = vector.broadcast %4 : f32 to vector<256x1xf32>
    %60 = arith.mulf %59, %58 : vector<256x1xf32>
    %61 = arith.addf %56, %60 : vector<256x1xf32>
    %c0_33 = arith.constant 0 : index
    %c0_34 = arith.constant 0 : index
    %62 = vector.load %arg7[%c0_33, %c0_34] : memref<256x1xf32, #tpu.memory_space<vmem>>, vector<256x1xf32>
    tpu.vector_store %arg7[%c0_33, %c0_34], %61 {strides = array<i32>} : memref<256x1xf32, #tpu.memory_space<vmem>>, vector<256x1xf32>,
    return
  }
  func.func @transform_0(%arg0: i32, %arg1: i32) -> (i32, i32) {
    %c0_i32 = arith.constant 0 : i32
    %c0_i32_0 = arith.constant 0 : i32
    return %arg0, %c0_i32 : i32, i32
  }
  func.func @transform_1(%arg0: i32, %arg1: i32) -> (i32, i32) {
    %0 = arith.addi %arg0, %arg1 : i32
    %c1_i32 = arith.constant 1 : i32
    %c0_i32 = arith.constant 0 : i32
    %1 = arith.cmpi eq, %c1_i32, %c0_i32 : i32
    %c1_i32_0 = arith.constant 1 : i32
    %2 = arith.select %1, %c1_i32_0, %c1_i32 : i32
    %3 = arith.remsi %0, %2 : i32
    %c0_i32_1 = arith.constant 0 : i32
    %4 = arith.cmpi ne, %3, %c0_i32_1 : i32
    %c0_i32_2 = arith.constant 0 : i32
    %5 = arith.cmpi slt, %3, %c0_i32_2 : i32
    %c0_i32_3 = arith.constant 0 : i32
    %6 = arith.cmpi slt, %2, %c0_i32_3 : i32
    %7 = arith.xori %5, %6 : i1
    %8 = arith.andi %7, %4 : i1
    %9 = arith.addi %3, %2 : i32
    %10 = arith.select %8, %9, %3 : i32
    %c0_i32_4 = arith.constant 0 : i32
    %c0_i32_5 = arith.constant 0 : i32
    return %10, %c0_i32_4 : i32, i32
  }
  func.func @transform_2(%arg0: i32, %arg1: i32) -> (i32, i32) {
    %c0_i32 = arith.constant 0 : i32
    %c0_i32_0 = arith.constant 0 : i32
    return %arg0, %c0_i32 : i32, i32
  }
  func.func @transform_3(%arg0: i32, %arg1: i32) -> (i32, i32) {
    %0 = arith.addi %arg0, %arg1 : i32
    %c1_i32 = arith.constant 1 : i32
    %c0_i32 = arith.constant 0 : i32
    %1 = arith.cmpi eq, %c1_i32, %c0_i32 : i32
    %c1_i32_0 = arith.constant 1 : i32
    %2 = arith.select %1, %c1_i32_0, %c1_i32 : i32
    %3 = arith.remsi %0, %2 : i32
    %c0_i32_1 = arith.constant 0 : i32
    %4 = arith.cmpi ne, %3, %c0_i32_1 : i32
    %c0_i32_2 = arith.constant 0 : i32
    %5 = arith.cmpi slt, %3, %c0_i32_2 : i32
    %c0_i32_3 = arith.constant 0 : i32
    %6 = arith.cmpi slt, %2, %c0_i32_3 : i32
    %7 = arith.xori %5, %6 : i1
    %8 = arith.andi %7, %4 : i1
    %9 = arith.addi %3, %2 : i32
    %10 = arith.select %8, %9, %3 : i32
    %c0_i32_4 = arith.constant 0 : i32
    %c0_i32_5 = arith.constant 0 : i32
    return %c0_i32_4, %10 : i32, i32
  }
  func.func @transform_4(%arg0: i32, %arg1: i32) -> (i32, i32) {
    %c0_i32 = arith.constant 0 : i32
    %c0_i32_0 = arith.constant 0 : i32
    return %arg0, %c0_i32 : i32, i32
  }
  func.func @transform_5(%arg0: i32, %arg1: i32) -> (i32, i32) {
    %c0_i32 = arith.constant 0 : i32
    %c0_i32_0 = arith.constant 0 : i32
    return %arg0, %c0_i32 : i32, i32
  }
}

</mosaic_0001>

<bundles_post_ra>
// kernel: tpu_custom_call.1
= control target key start
LH: loop header
LB: loop body
LE: loop exit
PB: predicated region body
PF: predicated region fallthrough
CT: control target
= control target key end

     0   :  { %11 = vsyncpa [#allocation3], 0  ;;  %s5790_s18 = smov [#allocation2]   ;;  %s11379_s0 = inlined_call_operand.vmem [shape: f32[256,128], index: 0, kind: input, shape index: {}]   ;;  %s11380_s1 = inlined_call_operand.hbm [shape: f32[256,128], index: 1, kind: input, shape index: {}]   ;;  %s11381_s2 = inlined_call_operand.vmem [shape: s32[256,1], index: 2, kind: input, shape index: {}]   ;;  %s11382_s3 = inlined_call_operand.vmem [shape: s32[1,256], index: 3, kind: input, shape index: {}]   ;;  %s11383_s4 = inlined_call_operand.vmem [shape: f32[256,1], index: 4, kind: output, shape index: {0}]   ;;  %s11384_s5 = inlined_call_operand.vmem [shape: f32[256,1], index: 5, kind: output, shape index: {1}]  }
   0x1   :  { %s19_s19 = sshll.u32 %s5790_s18, 4  ;;  %s20_s19 = int_to_ptr.vmem [resolvable:$true] %s19_s19 }
   0x2   :  { %s5776_s20 = scalar_lea.vmem %s20_s19, 4096  ;;  %p5781_p1 = scmp.lt.s32.totalorder %s20_s19, %s20_s19 }
   0x3   :  { %p5777_p0 = scmp.ne.s32.totalorder %s20_s19, %s5776_s20  ;;  %p5782_p2 = scmp.lt.s32.totalorder %s5776_s20, %s5776_s20 }
   0x5   :  { %p5783_p3 = por %p5782_p2, %p5781_p1 }
   0x7   :  { %p5784_p4 = pnand %p5783_p3, %p5777_p0 }
   0x9   :  { %5787 = shalt.err (!%p5784_p4)
}
   0xa   :  { %s5791_s21 = smov 128   ;;  %s5792_s22 = smov 8  }
   0xb   :  { %25 = dma.hbm_to_vmem [thread:$0]  %s11380_s1, 4096, %s20_s19, [#allocation3], %s5791_s21, %s5791_s21, %s5792_s22  }
   0xc   :  { %5788 = dma.done.wait [#allocation3], 4096  }
   0xd   :  { %5789 = vsyncadd [#allocation3], 4294963200  ;;  %v166_v0 = vld [vmem:[#allocation2 + $0xf8] sm:$0xff]  ;;  %v165_v2 = vld [vmem:[#allocation2 + $0xf0] sm:$0xff] }
   0xe   :  { %v150_v1 = vld [vmem:[#allocation2 + $0x78] sm:$0xff]  ;;  %v5828_v3 = vand.u32 4294901760, %v166_v0  ;;  %v5832_v5 = vand.u32 4294901760, %v165_v2  ;;  %v149_v6 = vld [vmem:[#allocation2 + $0x70] sm:$0xff]  ;;  %v164_v7 = vld [vmem:[#allocation2 + $0xe8] sm:$0xff] }
   0xf   :  { %v5830_v4 = vand.u32 4294901760, %v150_v1  ;;  %v148_v8 = vld [vmem:[#allocation2 + $0x68] sm:$0xff]  ;;  %v5834_v9 = vand.u32 4294901760, %v149_v6  ;;  %v5836_v10 = vand.u32 4294901760, %v164_v7  ;;  %v163_v12 = vld [vmem:[#allocation2 + $0xe0] sm:$0xff]  ;;  %v162_v14 = vld [vmem:[#allocation2 + $0xd8] sm:$0xff] }
  0x10   :  { %v5838_v11 = vand.u32 4294901760, %v148_v8  ;;  %v147_v13 = vld [vmem:[#allocation2 + $0x60] sm:$0xff]  ;;  %5057 = vmatprep.subr.mxu0 %v5828_v3  ;;  %v5842_v15 = vsub.f32 %v166_v0, %v5828_v3  ;;  %v5847_v17 = vand.u32 4294901760, %v163_v12  ;;  %v5850_v18 = vsub.f32 %v165_v2, %v5832_v5  ;;  %v146_v19 = vld [vmem:[#allocation2 + $0x58] sm:$0xff]  ;;  %v161_v27 = vld [vmem:[#allocation2 + $0xd0] sm:$0xff] }
  0x11   :  { %v5845_v16 = vsub.f32 %v150_v1, %v5830_v4  ;;  %5058 = vmatpush3.xpose.msra.mxu0 %v5830_v4  ;;  %v5853_v20 = vand.u32 4294901760, %v147_v13  ;;  %v5856_v21 = vsub.f32 %v149_v6, %v5834_v9  ;;  %v5859_v22 = vsub.f32 %v164_v7, %v5836_v10  ;;  %v145_v40 = vld [vmem:[#allocation2 + $0x50] sm:$0xff]  ;;  %v160_v46 = vld [vmem:[#allocation2 + $0xc8] sm:$0xff]  ;;  %v159_v58 = vld [vmem:[#allocation2 + $0xc0] sm:$0xff] }
  0x12   :  { %5059 = vmatprep.subr.mxu0 %v5832_v5  ;;  %v11401_v23 = vand.u32 4294901760, %v5842_v15  ;;  %v11398_v25 = vand.u32 4294901760, %v5850_v18  ;;  %v5865_v26 = vand.u32 4294901760, %v162_v14  ;;  %v5869_v30 = vand.u32 4294901760, %v146_v19  ;;  %v144_v53 = vld [vmem:[#allocation2 + $0x48] sm:$0xff]  ;;  %v143_v1 = vld [vmem:[#allocation2 + $0x40] sm:$0xff] }
  0x13   :  { %v11399_v24 = vand.u32 4294901760, %v5845_v16  ;;  %v11397_v28 = vand.u32 4294901760, %v5856_v21  ;;  %v11395_v29 = vand.u32 4294901760, %v5859_v22  ;;  %v5872_v31 = vsub.f32 %v148_v8, %v5838_v11 }
  0x14   :  { %v732_v32 = vsub.f32 %v5842_v15, %v11401_v23  ;;  %v739_v34 = vsub.f32 %v5850_v18, %v11398_v25  ;;  %v5884_v35 = vsub.f32 %v163_v12, %v5847_v17  ;;  %v5894_v39 = vand.u32 4294901760, %v161_v27  ;;  %v158_v12 = vld [vmem:[#allocation2 + $0xb8] sm:$0xff]  ;;  %v153_v23 = vld [vmem:[#allocation2 + $0x90] sm:$0xff] }
  0x15   :  { %v620_v33 = vsub.f32 %v5845_v16, %v11399_v24  ;;  %5060 = vmatpush3.xpose.msra.mxu0 %v5834_v9  ;;  %v627_v36 = vsub.f32 %v5856_v21, %v11397_v28  ;;  %v746_v37 = vsub.f32 %v5859_v22, %v11395_v29  ;;  %v11394_v38 = vand.u32 4294901760, %v5872_v31 }
  0x16   :  { %5061 = vmatprep.subr.mxu0 %v5836_v10  ;;  %v733_v41 = vand.u32 4294901760, %v732_v32  ;;  %v740_v43 = vand.u32 4294901760, %v739_v34  ;;  %v11393_v44 = vand.u32 4294901760, %v5884_v35  ;;  %v5899_v45 = vsub.f32 %v147_v13, %v5853_v20 }
  0x17   :  { %v621_v42 = vand.u32 4294901760, %v620_v33  ;;  %v634_v47 = vsub.f32 %v5872_v31, %v11394_v38  ;;  %v5904_v48 = vand.u32 4294901760, %v145_v40  ;;  %v5907_v49 = vsub.f32 %v162_v14, %v5865_v26 }
  0x18   :  { %5153 = vmatprep.subr.mxu1 %v733_v41  ;;  %v628_v50 = vand.u32 4294901760, %v627_v36  ;;  %v747_v51 = vand.u32 4294901760, %v746_v37  ;;  %v11391_v52 = vand.u32 4294901760, %v5899_v45  ;;  %v5912_v54 = vsub.f32 %v146_v19, %v5869_v30  ;;  %v142_v36 = vld [vmem:[#allocation2 + $0x38] sm:$0xff] }
  0x19   :  { %5062 = vmatpush3.xpose.msra.mxu0 %v5838_v11  ;;  %5154 = vmatpush3.xpose.msra.mxu1 %v621_v42  ;;  %v753_v55 = vsub.f32 %v5884_v35, %v11393_v44  ;;  %v5918_v56 = vand.u32 4294901760, %v160_v46  ;;  %v11390_v57 = vand.u32 4294901760, %v5907_v49  ;;  %v5922_v59 = vsub.f32 %v161_v27, %v5894_v39  ;;  %v157_v42 = vld [vmem:[#allocation2 + $0xb0] sm:$0xff]  ;;  %v154_v44 = vld [vmem:[#allocation2 + $0x98] sm:$0xff] }
  0x1a   :  { %5063 = vmatprep.subr.mxu0 %v5847_v17  ;;  %5155 = vmatprep.subr.mxu1 %v740_v43  ;;  %v635_v60 = vand.u32 4294901760, %v634_v47  ;;  %v5924_v61 = vand.u32 4294901760, %v144_v53  ;;  %v641_v62 = vsub.f32 %v5899_v45, %v11391_v52  ;;  %v11389_v63 = vand.u32 4294901760, %v5912_v54 }
  0x1b   :  { %v5931_v0 = vand.u32 4294901760, %v159_v58  ;;  %v5934_v2 = vsub.f32 %v145_v40, %v5904_v48  ;;  %v754_v6 = vand.u32 4294901760, %v753_v55  ;;  %v760_v7 = vsub.f32 %v5907_v49, %v11390_v57  ;;  %v141_v55 = vld [vmem:[#allocation2 + $0x30] sm:$0xff] }
  0x1c   :  { %v11387_v8 = vand.u32 4294901760, %v5922_v59  ;;  %v5942_v13 = vsub.f32 %v160_v46, %v5918_v56  ;;  %v5944_v14 = vand.u32 4294901760, %v143_v1  ;;  %v5947_v19 = vsub.f32 %v144_v53, %v5924_v61 }
  0x1d   :  { %5064 = vmatpush3.xpose.msra.mxu0 %v5853_v20  ;;  %5156 = vmatpush3.xpose.msra.mxu1 %v628_v50  ;;  %11675 = vst [vmem:[#allocation5_spill] sm:$0xff] %v5931_v0  ;;  %v642_v27 = vand.u32 4294901760, %v641_v62  ;;  %v648_v32 = vsub.f32 %v5912_v54, %v11389_v63  ;;  %v11385_v33 = vand.u32 4294901760, %v5934_v2  ;;  %v5954_v34 = vand.u32 4294901760, %v158_v12 }
  0x1e   :  { %5065 = vmatprep.subr.mxu0 %v5865_v26  ;;  %5157 = vmatprep.subr.mxu1 %v747_v51  ;;  %11676 = vst [vmem:[#allocation6_spill] sm:$0xff] %v5944_v14  ;;  %v761_v37 = vand.u32 4294901760, %v760_v7  ;;  %v767_v40 = vsub.f32 %v5922_v59, %v11387_v8  ;;  %v11386_v41 = vand.u32 4294901760, %v5942_v13  ;;  %v5962_v43 = vsub.f32 %v159_v58, %v5931_v0  ;;  %v156_v7 = vld [vmem:[#allocation2 + $0xa8] sm:$0xff] }
  0x1f   :  { %11677 = vst [vmem:[#allocation7_spill] sm:$0xff] %v5954_v34  ;;  %v5964_v46 = vand.u32 4294901760, %v142_v36  ;;  %v11388_v47 = vand.u32 4294901760, %v5947_v19  ;;  %v649_v50 = vand.u32 4294901760, %v648_v32  ;;  %v655_v51 = vsub.f32 %v5934_v2, %v11385_v33 }
  0x20   :  { %v5971_v53 = vand.u32 4294901760, %v157_v42  ;;  %v768_v58 = vand.u32 4294901760, %v767_v40  ;;  %v774_v62 = vsub.f32 %v5942_v13, %v11386_v41  ;;  %v5991_v33 = vand.u32 4294901760, %v156_v7  ;;  %v140_v41 = vld [vmem:[#allocation2 + $0x28] sm:$0xff] }
  0x21   :  { %5066 = vmatpush3.xpose.msra.mxu0 %v5869_v30  ;;  %5158 = vmatpush3.xpose.msra.mxu1 %v635_v60  ;;  %11678 = vst [vmem:[#allocation8_spill] sm:$0xff] %v5964_v46  ;;  %v5974_v60 = vsub.f32 %v143_v1, %v5944_v14  ;;  %v662_v32 = vsub.f32 %v5947_v19, %v11388_v47  ;;  %v5987_v1 = vand.u32 4294901760, %v141_v55  ;;  %v6004_v52 = vand.u32 4294901760, %v140_v41 }
  0x22   :  { %5067 = vmatprep.subr.mxu0 %v5894_v39  ;;  %5159 = vmatprep.subr.mxu1 %v754_v6  ;;  %11679 = vst [vmem:[#allocation9_spill] sm:$0xff] %v5971_v53  ;;  %v11392_v6 = vand.u32 4294901760, %v5962_v43  ;;  %11681 = vst [vmem:[#allocation11_spill] sm:$0xff] %v5991_v33  ;;  %v5994_v8 = vsub.f32 %v142_v36, %v5964_v46  ;;  %v103_v36 = vld [vmem:[%s11379_s0] sm:$0xff] }
  0x23   :  { %11680 = vst [vmem:[#allocation10_spill] sm:$0xff] %v5987_v1  ;;  %v11396_v40 = vand.u32 4294901760, %v5974_v60  ;;  %v663_v57 = vand.u32 4294901760, %v662_v32  ;;  %11684 = vst [vmem:[#allocation14_spill] sm:$0xff] %v6004_v52  ;;  %v6017_v32 = vsub.f32 %v141_v55, %v5987_v1  ;;  %v6027_v28 = vand.u32 4294901760, %v103_v36 }
  0x24   :  { %11682 = vst [vmem:[#allocation12_spill] sm:$0xff] %v5994_v8  ;;  %v781_v47 = vsub.f32 %v5962_v43, %v11392_v6  ;;  %v6031_v55 = vand.u32 4294901760, %v154_v44  ;;  %v6034_v24 = vsub.f32 %v140_v41, %v6004_v52 }
  0x25   :  { %5068 = vmatpush3.xpose.msra.mxu0 %v5904_v48  ;;  %5160 = vmatpush3.xpose.msra.mxu1 %v642_v27  ;;  %v5982_v27 = vsub.f32 %v158_v12, %v5954_v34  ;;  %v775_v12 = vand.u32 4294901760, %v774_v62  ;;  %v11406_v62 = vand.u32 4294901760, %v5994_v8  ;;  %11686 = vst [vmem:[#allocation16_spill] sm:$0xff] %v6017_v32  ;;  %11688 = vst [vmem:[#allocation18_spill] sm:$0xff] %v6027_v28 }
  0x26   :  { %5069 = vmatprep.subr.mxu0 %v5918_v56  ;;  %5161 = vmatprep.subr.mxu1 %v761_v37  ;;  %v656_v37 = vand.u32 4294901760, %v655_v51  ;;  %v6002_v51 = vsub.f32 %v157_v42, %v5971_v53  ;;  %v139_v42 = vld [vmem:[#allocation2 + $0x20] sm:$0xff]  ;;  %v782_v38 = vand.u32 4294901760, %v781_v47  ;;  %11690 = vst [vmem:[#allocation20_spill] sm:$0xff] %v6031_v55  ;;  %11691 = vst [vmem:[#allocation21_spill] sm:$0xff] %v6034_v24 }
  0x27   :  { %v11400_v63 = vand.u32 4294901760, %v5982_v27  ;;  %v6029_v25 = vand.u32 4294901760, %v139_v42  ;;  %v6042_v29 = vsub.f32 %v103_v36, %v6027_v28  ;;  %5185 = vmatprep.mubr.f32.mxu1 %v6027_v28 }
  0x28   :  { %11683 = vst [vmem:[#allocation13_spill] sm:$0xff] %v6002_v51 }
  0x29   :  { %5070 = vmatpush3.xpose.msra.mxu0 %v5924_v61  ;;  %5162 = vmatpush3.xpose.msra.mxu1 %v649_v50  ;;  %v155_v50 = vld [vmem:[#allocation2 + $0xa0] sm:$0xff]  ;;  %11689 = vst [vmem:[#allocation19_spill] sm:$0xff] %v6029_v25  ;;  %11692 = vst [vmem:[#allocation22_spill] sm:$0xff] %v6042_v29 }
  0x2a   :  { %5071 = vmatprep.subr.mxu0 %v5931_v0  ;;  %5163 = vmatprep.subr.mxu1 %v768_v58  ;;  %v669_v58 = vsub.f32 %v5974_v60, %v11396_v40  ;;  %v6014_v6 = vand.u32 4294901760, %v155_v50  ;;  %v6025_v40 = vsub.f32 %v156_v7, %v5991_v33 }
  0x2c   :  { %11685 = vst [vmem:[#allocation15_spill] sm:$0xff] %v6014_v6  ;;  %11687 = vst [vmem:[#allocation17_spill] sm:$0xff] %v6025_v40  ;;  %v670_v47 = vand.u32 4294901760, %v669_v58  ;;  %v137_v58 = vld [vmem:[#allocation2 + $0x10] sm:$0xff] }
  0x2d   :  { %5072 = vmatpush3.xpose.msra.mxu0 %v5944_v14  ;;  %5164 = vmatpush3.xpose.msra.mxu1 %v656_v37  ;;  %v788_v37 = vsub.f32 %v5982_v27, %v11400_v63  ;;  %v138_v63 = vld [vmem:[#allocation2 + $0x18] sm:$0xff]  ;;  %v11700_v14 = vand.u32 4294901760, %v6025_v40 }
  0x2e   :  { %5073 = vmatprep.subr.mxu0 %v5954_v34  ;;  %5165 = vmatprep.subr.mxu1 %v775_v12  ;;  %v676_v12 = vsub.f32 %v5994_v8, %v11406_v62  ;;  %v11693_v34 = vand.u32 4294901760, %v6002_v51  ;;  %v6053_v62 = vand.u32 4294901760, %v6042_v29  ;;  %v6056_v36 = vand.u32 4294901760, %v138_v63 }
  0x2f   :  { %v789_v41 = vand.u32 4294901760, %v788_v37  ;;  %v11698_v37 = vand.u32 4294901760, %v6017_v32 }
  0x30   :  { %11695 = vst [vmem:[#allocation24_spill] sm:$0xff] %v6053_v62  ;;  %11696 = vst [vmem:[#allocation25_spill] sm:$0xff] %v6056_v36 }
  0x31   :  { %5074 = vmatpush3.xpose.msra.mxu0 %v5964_v46  ;;  %5166 = vmatpush3.xpose.msra.mxu1 %v663_v57  ;;  %v795_v57 = vsub.f32 %v6002_v51, %v11693_v34  ;;  %v6050_v46 = vsub.f32 %v155_v50, %v6014_v6  ;;  %v677_v34 = vand.u32 4294901760, %v676_v12  ;;  %v683_v50 = vsub.f32 %v6017_v32, %v11698_v37  ;;  %v136_v12 = vld [vmem:[#allocation2 + $0x8] sm:$0xff] }
  0x32   :  { %5075 = vmatprep.subr.mxu0 %v5971_v53  ;;  %5167 = vmatprep.subr.mxu1 %v782_v38  ;;  %v6059_v38 = vand.u32 4294901760, %v153_v23  ;;  %v6066_v53 = vsub.f32 %v139_v42, %v6029_v25  ;;  %v267_v51 = vsub.f32 %v6042_v29, %v6053_v62  ;;  %v6076_v37 = vsub.f32 %v154_v44, %v6031_v55 }
  0x33   :  { %11694 = vst [vmem:[#allocation23_spill] sm:$0xff] %v6050_v46  ;;  %v796_v7 = vand.u32 4294901760, %v795_v57  ;;  %v11702_v42 = vand.u32 4294901760, %v6034_v24  ;;  %v6083_v29 = vand.u32 4294901760, %v137_v58  ;;  %v6090_v44 = vsub.f32 %v138_v63, %v6056_v36 }
  0x34   :  { %11697 = vst [vmem:[#allocation26_spill] sm:$0xff] %v6059_v38  ;;  %11699 = vst [vmem:[#allocation27_spill] sm:$0xff] %v6066_v53  ;;  %v6078_v32 = vand.u32 4294901760, %v267_v51 }
  0x35   :  { %5076 = vmatpush3.xpose.msra.mxu0 %v5987_v1  ;;  %5168 = vmatpush3.xpose.msra.mxu1 %v670_v47  ;;  %v802_v47 = vsub.f32 %v6025_v40, %v11700_v14  ;;  %v152_v1 = vld [vmem:[#allocation2 + $0x88] sm:$0xff]  ;;  %11701 = vst [vmem:[#allocation28_spill] sm:$0xff] %v6076_v37  ;;  %v690_v62 = vsub.f32 %v6034_v24, %v11702_v42  ;;  %11703 = vst [vmem:[#allocation29_spill] sm:$0xff] %v6083_v29  ;;  %v11706_v42 = vand.u32 4294901760, %v6050_v46 }
  0x36   :  { %5077 = vmatprep.subr.mxu0 %v5991_v33  ;;  %5169 = vmatprep.subr.mxu1 %v789_v41  ;;  %v684_v41 = vand.u32 4294901760, %v683_v50  ;;  %v6087_v57 = vand.u32 4294901760, %v152_v1  ;;  %11705 = vst [vmem:[#allocation31_spill] sm:$0xff] %v6090_v44  ;;  %v6098_v50 = vsub.f32 %v153_v23, %v6059_v38  ;;  %v104_v14 = vld [vmem:[%s11379_s0 + $0x8] sm:$0xff] }
  0x37   :  { %v803_v51 = vand.u32 4294901760, %v802_v47  ;;  %v809_v33 = vsub.f32 %v6050_v46, %v11706_v42  ;;  %5089 = vmatprep.mubr.f32.mxu0 %v6078_v32  ;;  %v691_v63 = vand.u32 4294901760, %v690_v62  ;;  %v11710_v47 = vand.u32 4294901760, %v6066_v53  ;;  %v135_v46 = vld [vmem:[#allocation2] sm:$0xff] }
  0x38   :  { %11704 = vst [vmem:[#allocation30_spill] sm:$0xff] %v6087_v57  ;;  %11707 = vst [vmem:[#allocation32_spill] sm:$0xff] %v6098_v50  ;;  %v6116_v24 = vand.u32 4294901760, %v104_v14  ;;  %v6124_v40 = vsub.f32 %v152_v1, %v6087_v57  ;;  %v6129_v42 = vand.u32 4294901760, %v135_v46 }
  0x39   :  { %5078 = vmatpush3.xpose.msra.mxu0 %v6004_v52  ;;  %5170 = vmatpush3.xpose.msra.mxu1 %v677_v34  ;;  %v151_v34 = vld [vmem:[#allocation2 + $0x80] sm:$0xff]  ;;  %v697_v23 = vsub.f32 %v6066_v53, %v11710_v47  ;;  %v810_v62 = vand.u32 4294901760, %v809_v33  ;;  %v105_v47 = vld [vmem:[%s11379_s0 + $0x10] sm:$0xff] }
  0x3a   :  { %5079 = vmatprep.subr.mxu0 %v6014_v6  ;;  %5171 = vmatprep.subr.mxu1 %v796_v7  ;;  %v6104_v6 = vand.u32 4294901760, %v136_v12  ;;  %v6107_v7 = vsub.f32 %v137_v58, %v6083_v29  ;;  %v6114_v52 = vand.u32 4294901760, %v151_v34  ;;  %11712 = vst [vmem:[#allocation36_spill] sm:$0xff] %v6116_v24  ;;  %v11713_v58 = vand.u32 4294901760, %v6076_v37  ;;  %11714 = vst [vmem:[#allocation37_spill] sm:$0xff] %v6124_v40 }
  0x3b   :  { %v698_v33 = vand.u32 4294901760, %v697_v23 }
  0x3c   :  { %11708 = vst [vmem:[#allocation33_spill] sm:$0xff] %v6104_v6  ;;  %11709 = vst [vmem:[#allocation34_spill] sm:$0xff] %v6107_v7  ;;  %v6150_v23 = vsub.f32 %v151_v34, %v6114_v52 }
  0x3d   :  { %5080 = vmatpush3.xpose.msra.mxu0 %v6029_v25  ;;  %5172 = vmatpush3.xpose.msra.mxu1 %v684_v41  ;;  %11711 = vst [vmem:[#allocation35_spill] sm:$0xff] %v6114_v52  ;;  %v816_v25 = vsub.f32 %v6076_v37, %v11713_v58  ;;  %v11716_v58 = vand.u32 4294901760, %v6090_v44  ;;  %v6140_v41 = vsub.f32 %v104_v14, %v6116_v24  ;;  %v106_v14 = vld [vmem:[%s11379_s0 + $0x18] sm:$0xff] }
  0x3e   :  { %5081 = vmatprep.subr.mxu0 %v6031_v55  ;;  %5173 = vmatprep.subr.mxu1 %v803_v51  ;;  %v6133_v51 = vsub.f32 %v136_v12, %v6104_v6  ;;  %v6142_v55 = vand.u32 4294901760, %v105_v47  ;;  %v11719_v12 = vand.u32 4294901760, %v6098_v50  ;;  %11720 = vst [vmem:[#allocation41_spill] sm:$0xff] %v6150_v23 }
  0x3f   :  { %v704_v1 = vsub.f32 %v6090_v44, %v11716_v58  ;;  %11717 = vst [vmem:[#allocation39_spill] sm:$0xff] %v6140_v41  ;;  %v817_v53 = vand.u32 4294901760, %v816_v25  ;;  %v11721_v58 = vand.u32 4294901760, %v6107_v7  ;;  %v6160_v25 = vsub.f32 %v135_v46, %v6129_v42 }
  0x40   :  { %11715 = vst [vmem:[#allocation38_spill] sm:$0xff] %v6133_v51  ;;  %11718 = vst [vmem:[#allocation40_spill] sm:$0xff] %v6142_v55  ;;  %v823_v37 = vsub.f32 %v6098_v50, %v11719_v12  ;;  %v6164_v34 = vand.u32 4294901760, %v6140_v41 }
  0x41   :  { %5082 = vmatpush3.xpose.msra.mxu0 %v6056_v36  ;;  %5174 = vmatpush3.xpose.msra.mxu1 %v691_v63  ;;  %v711_v36 = vsub.f32 %v6107_v7, %v11721_v58  ;;  %11722 = vst [vmem:[#allocation42_spill] sm:$0xff] %v6160_v25  ;;  %v705_v12 = vand.u32 4294901760, %v704_v1  ;;  %v6167_v63 = vsub.f32 %v105_v47, %v6142_v55  ;;  %v11727_v47 = vand.u32 4294901760, %v6133_v51 }
  0x42   :  { %5083 = vmatprep.subr.mxu0 %v6059_v38  ;;  %5175 = vmatprep.subr.mxu1 %v810_v62  ;;  %11723 = vst [vmem:[#allocation43_spill] sm:$0xff] %v6164_v34  ;;  %v6169_v38 = vand.u32 4294901760, %v106_v14  ;;  %v824_v58 = vand.u32 4294901760, %v823_v37  ;;  %v11726_v62 = vand.u32 4294901760, %v6124_v40 }
  0x43   :  { %11724 = vst [vmem:[#allocation44_spill] sm:$0xff] %v6167_v63  ;;  %v712_v1 = vand.u32 4294901760, %v711_v36  ;;  %v718_v7 = vsub.f32 %v6133_v51, %v11727_v47  ;;  %v6187_v37 = vand.u32 4294901760, %v6167_v63  ;;  %v108_v36 = vld [vmem:[%s11379_s0 + $0x28] sm:$0xff] }
  0x44   :  { %11725 = vst [vmem:[#allocation45_spill] sm:$0xff] %v6169_v38  ;;  %v830_v46 = vsub.f32 %v6124_v40, %v11726_v62  ;;  %v6190_v62 = vsub.f32 %v106_v14, %v6169_v38 }
  0x45   :  { %5084 = vmatpush3.xpose.msra.mxu0 %v6083_v29  ;;  %5176 = vmatpush3.xpose.msra.mxu1 %v698_v33  ;;  %v107_v33 = vld [vmem:[%s11379_s0 + $0x20] sm:$0xff]  ;;  %11728 = vst [vmem:[#allocation46_spill] sm:$0xff] %v6187_v37 }
  0x46   :  { %5085 = vmatprep.subr.mxu0 %v6087_v57  ;;  %5177 = vmatprep.subr.mxu1 %v817_v53  ;;  %v278_v53 = vsub.f32 %v6140_v41, %v6164_v34  ;;  %v6192_v29 = vand.u32 4294901760, %v107_v33  ;;  %v831_v47 = vand.u32 4294901760, %v830_v46  ;;  %v719_v34 = vand.u32 4294901760, %v718_v7  ;;  %v109_v7 = vld [vmem:[%s11379_s0 + $0x30] sm:$0xff] }
  0x47   :  { %v11731_v41 = vand.u32 4294901760, %v6160_v25 }
  0x48   :  { %11729 = vst [vmem:[#allocation47_spill] sm:$0xff] %v6192_v29  ;;  %v279_v57 = vand.u32 4294901760, %v278_v53  ;;  %v6213_v46 = vsub.f32 %v107_v33, %v6192_v29  ;;  %v6220_v53 = vand.u32 4294901760, %v109_v7 }
  0x49   :  { %5086 = vmatpush3.xpose.msra.mxu0 %v6104_v6  ;;  %5178 = vmatpush3.xpose.msra.mxu1 %v705_v12  ;;  %v11730_v12 = vand.u32 4294901760, %v6150_v23  ;;  %v725_v14 = vsub.f32 %v6160_v25, %v11731_v41  ;;  %v6204_v6 = vand.u32 4294901760, %v108_v36 }
  0x4a   :  { %5087 = vmatprep.subr.mxu0 %v6114_v52  ;;  %5179 = vmatprep.subr.mxu1 %v824_v58  ;;  %v289_v52 = vsub.f32 %v6167_v63, %v6187_v37  ;;  %v6210_v58 = vand.u32 4294901760, %v6190_v62  ;;  %11733 = vst [vmem:[#allocation49_spill] sm:$0xff] %v6220_v53  ;;  %v6225_v37 = vand.u32 4294901760, %v6213_v46 }
  0x4b   :  { %v837_v50 = vsub.f32 %v6150_v23, %v11730_v12  ;;  %11732 = vst [vmem:[#allocation48_spill] sm:$0xff] %v6204_v6  ;;  %v6228_v63 = vsub.f32 %v108_v36, %v6204_v6 }
  0x4c   :  { %v290_v12 = vand.u32 4294901760, %v289_v52  ;;  %v300_v33 = vsub.f32 %v6190_v62, %v6210_v58  ;;  %11734 = vst [vmem:[#allocation50_spill] sm:$0xff] %v6225_v37  ;;  %v6236_v52 = vsub.f32 %v109_v7, %v6220_v53 }
  0x4d   :  { %5088 = vmatpush3.xpose.msra.mxu0 %v6129_v42  ;;  %5180 = vmatpush3.xpose.msra.mxu1 %v712_v1  ;;  %v838_v41 = vand.u32 4294901760, %v837_v50  ;;  %v726_v1 = vand.u32 4294901760, %v725_v14  ;;  %v6241_v36 = vand.u32 4294901760, %v6228_v63  ;;  %v111_v14 = vld [vmem:[%s11379_s0 + $0x40] sm:$0xff] }
  0x4e   :  { %5181 = vmatprep.subr.mxu1 %v831_v47  ;;  %5249 = vmatprep.subr.mxu0 %v5842_v15  ;;  %11735 = vst [vmem:[#allocation51_spill] sm:$0xff] %v6236_v52  ;;  %v301_v50 = vand.u32 4294901760, %v300_v33 }
  0x4f   :  { %11736 = vst [vmem:[#allocation52_spill] sm:$0xff] %v6241_v36 }
  0x50   :  { %5090 = vmatmul.mubr.f32.vlgmr.msra.gmra.mxu0 %v6078_v32  ;;  %v110_v32 = vld [vmem:[%s11379_s0 + $0x38] sm:$0xff] }
  0x51   :  { %5182 = vmatpush3.xpose.msra.mxu1 %v719_v34  ;;  %5091 = vmatprep.mubr.f32.mxu0 %v279_v57  ;;  %v311_v34 = vsub.f32 %v6213_v46, %v6225_v37  ;;  %v6243_v47 = vand.u32 4294901760, %v110_v32 }
  0x52   :  { %5183 = vmatprep.subr.mxu1 %v838_v41  ;;  %5250 = vmatpush3.xpose.msra.mxu0 %v5845_v16  ;;  %v322_v41 = vsub.f32 %v6228_v63, %v6241_v36 }
  0x53   :  { %5251 = vmatprep.subr.mxu0 %v5850_v18  ;;  %11737 = vst [vmem:[#allocation53_spill] sm:$0xff] %v6243_v47  ;;  %v312_v7 = vand.u32 4294901760, %v311_v34  ;;  %v6261_v33 = vsub.f32 %v110_v32, %v6243_v47 }
  0x54   :  { %5092 = vmatmul.mubr.f32.gmra.mxu0 %v279_v57  ;;  %v6252_v57 = vand.u32 4294901760, %v111_v14  ;;  %v323_v32 = vand.u32 4294901760, %v322_v41 }
  0x55   :  { %5184 = vmatpush3.xpose.msra.mxu1 %v726_v1  ;;  %5093 = vmatprep.mubr.f32.mxu0 %v290_v12  ;;  %v6258_v1 = vand.u32 4294901760, %v6236_v52  ;;  %11740 = vst [vmem:[#allocation56_spill] sm:$0xff] %v6261_v33  ;;  %v6276_v36 = vand.u32 4294901760, %v6261_v33 }
  0x56   :  { %5345 = vmatprep.subr.mxu1 %v5828_v3  ;;  %5252 = vmatpush3.xpose.msra.mxu0 %v5856_v21  ;;  %11738 = vst [vmem:[#allocation54_spill] sm:$0xff] %v6252_v57  ;;  %v6279_v37 = vsub.f32 %v111_v14, %v6252_v57 }
  0x57   :  { %5253 = vmatprep.subr.mxu0 %v5859_v22  ;;  %11739 = vst [vmem:[#allocation55_spill] sm:$0xff] %v6258_v1  ;;  %11742 = vst [vmem:[#allocation58_spill] sm:$0xff] %v6276_v36 }
  0x58   :  { %5094 = vmatmul.mubr.f32.gmra.mxu0 %v290_v12  ;;  %5186 = vmatmul.mubr.f32.vlgmr.msra.gmra.mxu1 %v6027_v28  ;;  %v112_v12 = vld [vmem:[%s11379_s0 + $0x48] sm:$0xff]  ;;  %v333_v28 = vsub.f32 %v6236_v52, %v6258_v1  ;;  %11743 = vst [vmem:[#allocation59_spill] sm:$0xff] %v6279_v37  ;;  %v6296_v1 = vand.u32 4294901760, %v6279_v37 }
  0x59   :  { %5346 = vmatpush3.xpose.msra.mxu1 %v5830_v4  ;;  %5095 = vmatprep.mubr.f32.mxu0 %v301_v50  ;;  %v6270_v34 = vand.u32 4294901760, %v112_v12 }
  0x5a   :  { %5187 = vmatprep.mubr.f32.mxu1 %v6116_v24  ;;  %5347 = vmatprep.subr.mxu1 %v5832_v5  ;;  %v334_v14 = vand.u32 4294901760, %v333_v28  ;;  %11745 = vst [vmem:[#allocation61_spill] sm:$0xff] %v6296_v1 }
  0x5b   :  { %5254 = vmatpush3.xpose.msra.mxu0 %v5872_v31  ;;  %11741 = vst [vmem:[#allocation57_spill] sm:$0xff] %v6270_v34  ;;  %v6290_v41 = vsub.f32 %v112_v12, %v6270_v34 }
  0x5c   :  { %5096 = vmatmul.mubr.f32.gmra.mxu0 %v301_v50  ;;  %5188 = vmatmul.mubr.f32.gmra.mxu1 %v6116_v24  ;;  %v113_v50 = vld [vmem:[%s11379_s0 + $0x50] sm:$0xff]  ;;  %v344_v24 = vsub.f32 %v6261_v33, %v6276_v36 }
  0x5d   :  { %5097 = vmatprep.mubr.f32.mxu0 %v312_v7  ;;  %5189 = vmatprep.mubr.f32.mxu1 %v6142_v55  ;;  %11744 = vst [vmem:[#allocation60_spill] sm:$0xff] %v6290_v41  ;;  %v6298_v52 = vand.u32 4294901760, %v113_v50  ;;  %v6309_v28 = vand.u32 4294901760, %v6290_v41 }
  0x5e   :  { %5348 = vmatpush3.xpose.msra.mxu1 %v5834_v9  ;;  %5255 = vmatprep.subr.mxu0 %v5884_v35  ;;  %v345_v12 = vand.u32 4294901760, %v344_v24 }
  0x5f   :  { %5349 = vmatprep.subr.mxu1 %v5836_v10  ;;  %5256 = vmatpush3.xpose.msra.mxu0 %v5899_v45  ;;  %11746 = vst [vmem:[#allocation62_spill] sm:$0xff] %v6298_v52  ;;  %11747 = vst [vmem:[#allocation63_spill] sm:$0xff] %v6309_v28  ;;  %v6315_v36 = vsub.f32 %v113_v50, %v6298_v52 }
  0x60   :  { %5098 = vmatmul.mubr.f32.gmra.mxu0 %v312_v7  ;;  %5190 = vmatmul.mubr.f32.gmra.mxu1 %v6142_v55  ;;  %v114_v7 = vld [vmem:[%s11379_s0 + $0x58] sm:$0xff]  ;;  %v355_v55 = vsub.f32 %v6279_v37, %v6296_v1 }
  0x61   :  { %5099 = vmatprep.mubr.f32.mxu0 %v323_v32  ;;  %5191 = vmatprep.mubr.f32.mxu1 %v6169_v38  ;;  %11748 = vst [vmem:[#allocation64_spill] sm:$0xff] %v6315_v36  ;;  %v6317_v33 = vand.u32 4294901760, %v114_v7  ;;  %v6333_v1 = vand.u32 4294901760, %v6315_v36 }
  0x62   :  { %5350 = vmatpush3.xpose.msra.mxu1 %v5838_v11  ;;  %5257 = vmatprep.subr.mxu0 %v5907_v49  ;;  %v356_v50 = vand.u32 4294901760, %v355_v55 }
  0x63   :  { %5351 = vmatprep.subr.mxu1 %v5847_v17  ;;  %5258 = vmatpush3.xpose.msra.mxu0 %v5912_v54  ;;  %11749 = vst [vmem:[#allocation65_spill] sm:$0xff] %v6317_v33  ;;  %11751 = vst [vmem:[#allocation67_spill] sm:$0xff] %v6333_v1  ;;  %v6336_v37 = vsub.f32 %v114_v7, %v6317_v33 }
  0x64   :  { %5100 = vmatmul.mubr.f32.gmra.mxu0 %v323_v32  ;;  %5192 = vmatmul.mubr.f32.gmra.mxu1 %v6169_v38  ;;  %v115_v32 = vld [vmem:[%s11379_s0 + $0x60] sm:$0xff]  ;;  %v366_v38 = vsub.f32 %v6290_v41, %v6309_v28 }
  0x65   :  { %5101 = vmatprep.mubr.f32.mxu0 %v334_v14  ;;  %5193 = vmatprep.mubr.f32.mxu1 %v6192_v29  ;;  %v6327_v24 = vand.u32 4294901760, %v115_v32  ;;  %11752 = vst [vmem:[#allocation68_spill] sm:$0xff] %v6336_v37  ;;  %v6352_v28 = vand.u32 4294901760, %v6336_v37 }
  0x66   :  { %5352 = vmatpush3.xpose.msra.mxu1 %v5853_v20  ;;  %5259 = vmatprep.subr.mxu0 %v5922_v59  ;;  %v367_v7 = vand.u32 4294901760, %v366_v38 }
  0x67   :  { %5353 = vmatprep.subr.mxu1 %v5865_v26  ;;  %5260 = vmatpush3.xpose.msra.mxu0 %v5934_v2  ;;  %11750 = vst [vmem:[#allocation66_spill] sm:$0xff] %v6327_v24  ;;  %11754 = vst [vmem:[#allocation70_spill] sm:$0xff] %v6352_v28  ;;  %v6355_v41 = vsub.f32 %v115_v32, %v6327_v24 }
  0x68   :  { %5102 = vmatmul.mubr.f32.gmra.mxu0 %v334_v14  ;;  %5194 = vmatmul.mubr.f32.gmra.mxu1 %v6192_v29  ;;  %v116_v14 = vld [vmem:[%s11379_s0 + $0x68] sm:$0xff]  ;;  %v377_v29 = vsub.f32 %v6315_v36, %v6333_v1 }
  0x69   :  { %5103 = vmatprep.mubr.f32.mxu0 %v345_v12  ;;  %5195 = vmatprep.mubr.f32.mxu1 %v6204_v6  ;;  %v6346_v55 = vand.u32 4294901760, %v116_v14  ;;  %11755 = vst [vmem:[#allocation71_spill] sm:$0xff] %v6355_v41  ;;  %v6371_v1 = vand.u32 4294901760, %v6355_v41 }
  0x6a   :  { %5354 = vmatpush3.xpose.msra.mxu1 %v5869_v30  ;;  %5261 = vmatprep.subr.mxu0 %v5942_v13  ;;  %v378_v32 = vand.u32 4294901760, %v377_v29 }
  0x6b   :  { %5355 = vmatprep.subr.mxu1 %v5894_v39  ;;  %5262 = vmatpush3.xpose.msra.mxu0 %v5947_v19  ;;  %11753 = vst [vmem:[#allocation69_spill] sm:$0xff] %v6346_v55  ;;  %11757 = vst [vmem:[#allocation73_spill] sm:$0xff] %v6371_v1  ;;  %v6374_v36 = vsub.f32 %v116_v14, %v6346_v55 }
  0x6c   :  { %5104 = vmatmul.mubr.f32.gmra.mxu0 %v345_v12  ;;  %5196 = vmatmul.mubr.f32.gmra.mxu1 %v6204_v6  ;;  %v117_v12 = vld [vmem:[%s11379_s0 + $0x70] sm:$0xff]  ;;  %v388_v6 = vsub.f32 %v6336_v37, %v6352_v28 }
  0x6d   :  { %5105 = vmatprep.mubr.f32.mxu0 %v356_v50  ;;  %5197 = vmatprep.mubr.f32.mxu1 %v6220_v53  ;;  %v6365_v38 = vand.u32 4294901760, %v117_v12  ;;  %11758 = vst [vmem:[#allocation74_spill] sm:$0xff] %v6374_v36  ;;  %v6391_v28 = vand.u32 4294901760, %v6374_v36 }
  0x6e   :  { %5356 = vmatpush3.xpose.msra.mxu1 %v5904_v48  ;;  %5263 = vmatprep.subr.mxu0 %v5962_v43  ;;  %v389_v14 = vand.u32 4294901760, %v388_v6 }
  0x6f   :  { %5357 = vmatprep.subr.mxu1 %v5918_v56  ;;  %5264 = vmatpush3.xpose.msra.mxu0 %v5974_v60  ;;  %11756 = vst [vmem:[#allocation72_spill] sm:$0xff] %v6365_v38  ;;  %v6385_v29 = vsub.f32 %v117_v12, %v6365_v38  ;;  %11760 = vst [vmem:[#allocation76_spill] sm:$0xff] %v6391_v28  ;;  %v11763_v12 = vld [vmem:[#allocation13_spill] sm:$0xff] }
  0x70   :  { %5106 = vmatmul.mubr.f32.gmra.mxu0 %v356_v50  ;;  %5198 = vmatmul.mubr.f32.gmra.mxu1 %v6220_v53  ;;  %v118_v50 = vld [vmem:[%s11379_s0 + $0x78] sm:$0xff]  ;;  %v399_v53 = vsub.f32 %v6355_v41, %v6371_v1  ;;  %v410_v41 = vsub.f32 %v6374_v36, %v6391_v28 }
  0x71   :  { %5107 = vmatprep.mubr.f32.mxu0 %v367_v7  ;;  %5199 = vmatprep.mubr.f32.mxu1 %v6243_v47  ;;  %11759 = vst [vmem:[#allocation75_spill] sm:$0xff] %v6385_v29  ;;  %v6393_v37 = vand.u32 4294901760, %v118_v50 }
  0x72   :  { %5358 = vmatpush3.xpose.msra.mxu1 %v5924_v61  ;;  %5265 = vmatprep.subr.mxu0 %v5982_v27  ;;  %v400_v1 = vand.u32 4294901760, %v399_v53  ;;  %v11772_v53 = vld [vmem:[#allocation21_spill] sm:$0xff] }
  0x73   :  { %5359 = vmatprep.subr.mxu1 %v5931_v0  ;;  %5266 = vmatpush3.xpose.msra.mxu0 %v5994_v8  ;;  %11761 = vst [vmem:[#allocation77_spill] sm:$0xff] %v6393_v37  ;;  %v11764_v8 = vld [vmem:[#allocation7_spill] sm:$0xff]  ;;  %v11765_v0 = vld [vmem:[#allocation16_spill] sm:$0xff] }
  0x74   :  { %5108 = vmatmul.mubr.f32.gmra.mxu0 %v367_v7  ;;  %5200 = vmatmul.mubr.f32.gmra.mxu1 %v6243_v47  ;;  %v119_v7 = vld [vmem:[%s11379_s0 + $0x80] sm:$0xff]  ;;  %v11762_v47 = vld [vmem:[#allocation6_spill] sm:$0xff] }
  0x75   :  { %5109 = vmatprep.mubr.f32.mxu0 %v378_v32  ;;  %5201 = vmatprep.mubr.f32.mxu1 %v6252_v57  ;;  %v6403_v6 = vand.u32 4294901760, %v119_v7 }
  0x76   :  { %5360 = vmatpush3.xpose.msra.mxu1 %v11762_v47  ;;  %5267 = vmatprep.subr.mxu0 %v11763_v12  ;;  %v6409_v47 = vand.u32 4294901760, %v6385_v29  ;;  %v6412_v12 = vsub.f32 %v118_v50, %v6393_v37  ;;  %v411_v50 = vand.u32 4294901760, %v410_v41  ;;  %v11779_v41 = vld [vmem:[#allocation27_spill] sm:$0xff] }
  0x77   :  { %5361 = vmatprep.subr.mxu1 %v11764_v8  ;;  %5268 = vmatpush3.xpose.msra.mxu0 %v11765_v0  ;;  %11766 = vst [vmem:[#allocation78_spill] sm:$0xff] %v6403_v6  ;;  %v11770_v0 = vld [vmem:[#allocation17_spill] sm:$0xff] }
  0x78   :  { %5110 = vmatmul.mubr.f32.gmra.mxu0 %v378_v32  ;;  %5202 = vmatmul.mubr.f32.gmra.mxu1 %v6252_v57  ;;  %11767 = vst [vmem:[#allocation79_spill] sm:$0xff] %v6409_v47  ;;  %11768 = vst [vmem:[#allocation80_spill] sm:$0xff] %v6412_v12  ;;  %v120_v32 = vld [vmem:[%s11379_s0 + $0x88] sm:$0xff]  ;;  %v11769_v57 = vld [vmem:[#allocation8_spill] sm:$0xff]  ;;  %v421_v36 = vsub.f32 %v6385_v29, %v6409_v47 }
  0x79   :  { %5111 = vmatprep.mubr.f32.mxu0 %v389_v14  ;;  %5203 = vmatprep.mubr.f32.mxu1 %v6270_v34  ;;  %v11771_v8 = vld [vmem:[#allocation9_spill] sm:$0xff]  ;;  %v6422_v28 = vand.u32 4294901760, %v120_v32 }
  0x7a   :  { %5362 = vmatpush3.xpose.msra.mxu1 %v11769_v57  ;;  %5269 = vmatprep.subr.mxu0 %v11770_v0  ;;  %v6428_v57 = vand.u32 4294901760, %v6412_v12  ;;  %v6431_v0 = vsub.f32 %v119_v7, %v6403_v6  ;;  %v422_v7 = vand.u32 4294901760, %v421_v36 }
  0x7b   :  { %5363 = vmatprep.subr.mxu1 %v11771_v8  ;;  %5270 = vmatpush3.xpose.msra.mxu0 %v11772_v53  ;;  %11773 = vst [vmem:[#allocation81_spill] sm:$0xff] %v6422_v28  ;;  %v11777_v53 = vld [vmem:[#allocation23_spill] sm:$0xff]  ;;  %v6442_v47 = vsub.f32 %v120_v32, %v6422_v28  ;;  %v11784_v32 = vld [vmem:[#allocation28_spill] sm:$0xff] }
  0x7c   :  { %5112 = vmatmul.mubr.f32.gmra.mxu0 %v389_v14  ;;  %5204 = vmatmul.mubr.f32.gmra.mxu1 %v6270_v34  ;;  %11774 = vst [vmem:[#allocation82_spill] sm:$0xff] %v6428_v57  ;;  %11775 = vst [vmem:[#allocation83_spill] sm:$0xff] %v6431_v0  ;;  %v121_v14 = vld [vmem:[%s11379_s0 + $0x90] sm:$0xff]  ;;  %v11776_v34 = vld [vmem:[#allocation10_spill] sm:$0xff]  ;;  %v432_v29 = vsub.f32 %v6412_v12, %v6428_v57 }
  0x7d   :  { %5113 = vmatprep.mubr.f32.mxu0 %v400_v1  ;;  %5205 = vmatprep.mubr.f32.mxu1 %v6298_v52  ;;  %v11778_v8 = vld [vmem:[#allocation11_spill] sm:$0xff]  ;;  %11780 = vst [vmem:[#allocation84_spill] sm:$0xff] %v6442_v47  ;;  %v6461_v36 = vand.u32 4294901760, %v6442_v47 }
  0x7e   :  { %5364 = vmatpush3.xpose.msra.mxu1 %v11776_v34  ;;  %5271 = vmatprep.subr.mxu0 %v11777_v53  ;;  %v6448_v34 = vand.u32 4294901760, %v6431_v0  ;;  %v6450_v53 = vand.u32 4294901760, %v121_v14  ;;  %v433_v57 = vand.u32 4294901760, %v432_v29 }
  0x7f   :  { %5365 = vmatprep.subr.mxu1 %v11778_v8  ;;  %5272 = vmatpush3.xpose.msra.mxu0 %v11779_v41  ;;  %v11785_v41 = vld [vmem:[#allocation15_spill] sm:$0xff]  ;;  %11786 = vst [vmem:[#allocation87_spill] sm:$0xff] %v6461_v36  ;;  %v11792_v8 = vld [vmem:[#allocation34_spill] sm:$0xff] }
  0x80   :  { %5114 = vmatmul.mubr.f32.gmra.mxu0 %v400_v1  ;;  %5206 = vmatmul.mubr.f32.gmra.mxu1 %v6298_v52  ;;  %11781 = vst [vmem:[#allocation85_spill] sm:$0xff] %v6448_v34  ;;  %11782 = vst [vmem:[#allocation86_spill] sm:$0xff] %v6450_v53  ;;  %v122_v1 = vld [vmem:[%s11379_s0 + $0x98] sm:$0xff]  ;;  %v11783_v52 = vld [vmem:[#allocation14_spill] sm:$0xff]  ;;  %v443_v12 = vsub.f32 %v6431_v0, %v6448_v34  ;;  %v454_v34 = vsub.f32 %v6442_v47, %v6461_v36 }
  0x81   :  { %5115 = vmatprep.mubr.f32.mxu0 %v411_v50  ;;  %5207 = vmatprep.mubr.f32.mxu1 %v6317_v33 }
  0x82   :  { %5366 = vmatpush3.xpose.msra.mxu1 %v11783_v52  ;;  %5273 = vmatprep.subr.mxu0 %v11784_v32  ;;  %v6467_v52 = vsub.f32 %v121_v14, %v6450_v53  ;;  %v6469_v32 = vand.u32 4294901760, %v122_v1  ;;  %v444_v14 = vand.u32 4294901760, %v443_v12 }
  0x83   :  { %5367 = vmatprep.subr.mxu1 %v11785_v41  ;;  %5274 = vmatpush3.xpose.msra.mxu0 %v6090_v44  ;;  %v11790_v44 = vld [vmem:[#allocation32_spill] sm:$0xff] }
  0x84   :  { %5116 = vmatmul.mubr.f32.gmra.mxu0 %v411_v50  ;;  %5208 = vmatmul.mubr.f32.gmra.mxu1 %v6317_v33  ;;  %11787 = vst [vmem:[#allocation88_spill] sm:$0xff] %v6467_v52  ;;  %11788 = vst [vmem:[#allocation89_spill] sm:$0xff] %v6469_v32  ;;  %v123_v50 = vld [vmem:[%s11379_s0 + $0xa0] sm:$0xff]  ;;  %v11789_v33 = vld [vmem:[#allocation19_spill] sm:$0xff]  ;;  %v6485_v0 = vand.u32 4294901760, %v6467_v52 }
  0x85   :  { %5117 = vmatprep.mubr.f32.mxu0 %v422_v7  ;;  %5209 = vmatprep.mubr.f32.mxu1 %v6327_v24  ;;  %v11791_v41 = vld [vmem:[#allocation20_spill] sm:$0xff]  ;;  %v6479_v29 = vand.u32 4294901760, %v123_v50 }
  0x86   :  { %5368 = vmatpush3.xpose.msra.mxu1 %v11789_v33  ;;  %5275 = vmatprep.subr.mxu0 %v11790_v44  ;;  %11794 = vst [vmem:[#allocation20_spill] sm:$0xff] %v6485_v0  ;;  %v6488_v44 = vsub.f32 %v122_v1, %v6469_v32  ;;  %v455_v1 = vand.u32 4294901760, %v454_v34  ;;  %v465_v36 = vsub.f32 %v6467_v52, %v6485_v0 }
  0x87   :  { %5369 = vmatprep.subr.mxu1 %v11791_v41  ;;  %5276 = vmatpush3.xpose.msra.mxu0 %v11792_v8  ;;  %11793 = vst [vmem:[#allocation19_spill] sm:$0xff] %v6479_v29  ;;  %v11797_v8 = vld [vmem:[#allocation26_spill] sm:$0xff] }
  0x88   :  { %5118 = vmatmul.mubr.f32.gmra.mxu0 %v422_v7  ;;  %5210 = vmatmul.mubr.f32.gmra.mxu1 %v6327_v24  ;;  %11795 = vst [vmem:[#allocation90_spill] sm:$0xff] %v6488_v44  ;;  %v124_v7 = vld [vmem:[%s11379_s0 + $0xa8] sm:$0xff]  ;;  %v11796_v24 = vld [vmem:[#allocation25_spill] sm:$0xff]  ;;  %v6504_v47 = vand.u32 4294901760, %v6488_v44 }
  0x89   :  { %5119 = vmatprep.mubr.f32.mxu0 %v433_v57  ;;  %5211 = vmatprep.mubr.f32.mxu1 %v6346_v55  ;;  %v6498_v12 = vand.u32 4294901760, %v124_v7 }
  0x8a   :  { %5370 = vmatpush3.xpose.msra.mxu1 %v11796_v24  ;;  %5277 = vmatprep.subr.mxu0 %v6124_v40  ;;  %11799 = vst [vmem:[#allocation26_spill] sm:$0xff] %v6504_v47  ;;  %v6507_v40 = vsub.f32 %v123_v50, %v6479_v29  ;;  %v466_v50 = vand.u32 4294901760, %v465_v36  ;;  %v476_v0 = vsub.f32 %v6488_v44, %v6504_v47 }
  0x8b   :  { %5371 = vmatprep.subr.mxu1 %v11797_v8  ;;  %5278 = vmatpush3.xpose.msra.mxu0 %v6133_v51  ;;  %11798 = vst [vmem:[#allocation25_spill] sm:$0xff] %v6498_v12  ;;  %v11801_v51 = vld [vmem:[#allocation30_spill] sm:$0xff] }
  0x8c   :  { %5120 = vmatmul.mubr.f32.gmra.mxu0 %v433_v57  ;;  %5212 = vmatmul.mubr.f32.gmra.mxu1 %v6346_v55  ;;  %v125_v57 = vld [vmem:[%s11379_s0 + $0xb0] sm:$0xff]  ;;  %v11800_v55 = vld [vmem:[#allocation29_spill] sm:$0xff]  ;;  %v6523_v52 = vand.u32 4294901760, %v6507_v40 }
  0x8d   :  { %5121 = vmatprep.mubr.f32.mxu0 %v444_v14  ;;  %5213 = vmatprep.mubr.f32.mxu1 %v6365_v38  ;;  %v6517_v34 = vand.u32 4294901760, %v125_v57 }
  0x8e   :  { %5372 = vmatpush3.xpose.msra.mxu1 %v11800_v55  ;;  %5279 = vmatprep.subr.mxu0 %v6150_v23  ;;  %11803 = vst [vmem:[#allocation91_spill] sm:$0xff] %v6523_v52  ;;  %v6526_v23 = vsub.f32 %v124_v7, %v6498_v12  ;;  %v477_v7 = vand.u32 4294901760, %v476_v0  ;;  %v487_v47 = vsub.f32 %v6507_v40, %v6523_v52 }
  0x8f   :  { %5373 = vmatprep.subr.mxu1 %v11801_v51  ;;  %5280 = vmatpush3.xpose.msra.mxu0 %v6160_v25  ;;  %11802 = vst [vmem:[#allocation29_spill] sm:$0xff] %v6517_v34  ;;  %v11805_v25 = vand.u32 4294901760, %v5842_v15  ;;  %v11806_v51 = vld [vmem:[#allocation35_spill] sm:$0xff]  ;;  %v6537_v36 = vsub.f32 %v125_v57, %v6517_v34 }
  0x90   :  { %5122 = vmatmul.mubr.f32.gmra.mxu0 %v444_v14  ;;  %5214 = vmatmul.mubr.f32.gmra.mxu1 %v6365_v38  ;;  %v126_v14 = vld [vmem:[%s11379_s0 + $0xb8] sm:$0xff]  ;;  %v11804_v38 = vld [vmem:[#allocation33_spill] sm:$0xff]  ;;  %v6543_v44 = vand.u32 4294901760, %v6526_v23 }
  0x91   :  { %5123 = vmatprep.mubr.f32.mxu0 %v455_v1  ;;  %5215 = vmatprep.mubr.f32.mxu1 %v6393_v37  ;;  %11807 = vst [vmem:[#allocation33_spill] sm:$0xff] %v6537_v36  ;;  %v6545_v15 = vand.u32 4294901760, %v126_v14 }
  0x92   :  { %5374 = vmatpush3.xpose.msra.mxu1 %v11804_v38  ;;  %5441 = vmatprep.subr.mxu0 %v11805_v25  ;;  %11808 = vst [vmem:[#allocation35_spill] sm:$0xff] %v6543_v44  ;;  %v127_v25 = vld [vmem:[%s11379_s0 + $0xc0] sm:$0xff]  ;;  %v498_v57 = vsub.f32 %v6526_v23, %v6543_v44 }
  0x93   :  { %5375 = vmatprep.subr.mxu1 %v11806_v51  ;;  %11809 = vst [vmem:[#allocation92_spill] sm:$0xff] %v6545_v15  ;;  %v6553_v0 = vand.u32 4294901760, %v127_v25  ;;  %v6562_v52 = vsub.f32 %v126_v14, %v6545_v15 }
  0x94   :  { %5124 = vmatmul.mubr.f32.gmra.mxu0 %v455_v1  ;;  %5216 = vmatmul.mubr.f32.gmra.mxu1 %v6393_v37  ;;  %v488_v1 = vand.u32 4294901760, %v487_v47  ;;  %v6559_v37 = vand.u32 4294901760, %v6537_v36  ;;  %v499_v47 = vand.u32 4294901760, %v498_v57 }
  0x95   :  { %5125 = vmatprep.mubr.f32.mxu0 %v466_v50  ;;  %5217 = vmatprep.mubr.f32.mxu1 %v6403_v6  ;;  %11810 = vst [vmem:[#allocation93_spill] sm:$0xff] %v6553_v0  ;;  %11812 = vst [vmem:[#allocation95_spill] sm:$0xff] %v6562_v52  ;;  %v6574_v44 = vand.u32 4294901760, %v6562_v52  ;;  %v6577_v14 = vsub.f32 %v127_v25, %v6553_v0 }
  0x96   :  { %5376 = vmatpush3.xpose.msra.mxu1 %v6129_v42  ;;  %11811 = vst [vmem:[#allocation94_spill] sm:$0xff] %v6559_v37 }
  0x97   :  { %5537 = vmatprep.subr.mxu1 %v5828_v3  ;;  %v128_v3 = vld [vmem:[%s11379_s0 + $0xc8] sm:$0xff]  ;;  %11813 = vst [vmem:[#allocation96_spill] sm:$0xff] %v6574_v44  ;;  %11814 = vst [vmem:[#allocation97_spill] sm:$0xff] %v6577_v14  ;;  %v6590_v25 = vand.u32 4294901760, %v6577_v14 }
  0x98   :  { %5126 = vmatmul.mubr.f32.gmra.mxu0 %v466_v50  ;;  %5218 = vmatmul.mubr.f32.gmra.mxu1 %v6403_v6  ;;  %v6568_v50 = vand.u32 4294901760, %v128_v3  ;;  %v509_v6 = vsub.f32 %v6537_v36, %v6559_v37  ;;  %v520_v37 = vsub.f32 %v6562_v52, %v6574_v44 }
  0x99   :  { %5127 = vmatprep.mubr.f32.mxu0 %v477_v7  ;;  %5219 = vmatprep.mubr.f32.mxu1 %v6422_v28  ;;  %11816 = vst [vmem:[#allocation99_spill] sm:$0xff] %v6590_v25 }
  0x9a   :  { %v510_v57 = vand.u32 4294901760, %v509_v6  ;;  %v521_v6 = vand.u32 4294901760, %v520_v37 }
  0x9c   :  { %5128 = vmatmul.mubr.f32.gmra.mxu0 %v477_v7  ;;  %5220 = vmatmul.mubr.f32.gmra.mxu1 %v6422_v28  ;;  %v129_v7 = vld [vmem:[%s11379_s0 + $0xd0] sm:$0xff]  ;;  %v6584_v28 = vsub.f32 %v128_v3, %v6568_v50 }
  0x9d   :  { %5129 = vmatprep.mubr.f32.mxu0 %v488_v1  ;;  %5221 = vmatprep.mubr.f32.mxu1 %v6450_v53  ;;  %v6592_v36 = vand.u32 4294901760, %v129_v7 }
  0x9e   :  { %11815 = vst [vmem:[#allocation98_spill] sm:$0xff] %v6584_v28  ;;  %v6599_v3 = vand.u32 4294901760, %v6584_v28 }
  0x9f   :  { %v6605_v44 = vsub.f32 %v129_v7, %v6592_v36 }
  0xa0   :  { %5130 = vmatmul.mubr.f32.gmra.mxu0 %v488_v1  ;;  %5222 = vmatmul.mubr.f32.gmra.mxu1 %v6450_v53  ;;  %v130_v1 = vld [vmem:[%s11379_s0 + $0xd8] sm:$0xff]  ;;  %11817 = vst [vmem:[#allocation100_spill] sm:$0xff] %v6599_v3  ;;  %v531_v53 = vsub.f32 %v6577_v14, %v6590_v25  ;;  %v542_v25 = vsub.f32 %v6584_v28, %v6599_v3 }
  0xa1   :  { %5131 = vmatprep.mubr.f32.mxu0 %v499_v47  ;;  %5223 = vmatprep.mubr.f32.mxu1 %v6469_v32  ;;  %11818 = vst [vmem:[#allocation101_spill] sm:$0xff] %v6605_v44  ;;  %v6607_v52 = vand.u32 4294901760, %v130_v1  ;;  %v6619_v7 = vand.u32 4294901760, %v6605_v44 }
  0xa2   :  { %v532_v37 = vand.u32 4294901760, %v531_v53  ;;  %v543_v53 = vand.u32 4294901760, %v542_v25 }
  0xa3   :  { %11819 = vst [vmem:[#allocation102_spill] sm:$0xff] %v6619_v7  ;;  %v6622_v14 = vsub.f32 %v130_v1, %v6607_v52  ;;  %v553_v3 = vsub.f32 %v6605_v44, %v6619_v7 }
  0xa4   :  { %5132 = vmatmul.mubr.f32.gmra.mxu0 %v499_v47  ;;  %5224 = vmatmul.mubr.f32.gmra.mxu1 %v6469_v32  ;;  %v131_v47 = vld [vmem:[%s11379_s0 + $0xe0] sm:$0xff] }
  0xa5   :  { %5133 = vmatprep.mubr.f32.mxu0 %v510_v57  ;;  %5225 = vmatprep.mubr.f32.mxu1 %v6479_v29  ;;  %v6613_v32 = vand.u32 4294901760, %v131_v47  ;;  %11820 = vst [vmem:[#allocation103_spill] sm:$0xff] %v6622_v14  ;;  %v6634_v28 = vand.u32 4294901760, %v6622_v14  ;;  %v554_v25 = vand.u32 4294901760, %v553_v3 }
  0xa7   :  { %11821 = vst [vmem:[#allocation104_spill] sm:$0xff] %v6634_v28  ;;  %v6637_v1 = vsub.f32 %v131_v47, %v6613_v32  ;;  %v564_v7 = vsub.f32 %v6622_v14, %v6634_v28 }
  0xa8   :  { %5134 = vmatmul.mubr.f32.gmra.mxu0 %v510_v57  ;;  %5226 = vmatmul.mubr.f32.gmra.mxu1 %v6479_v29  ;;  %v132_v57 = vld [vmem:[%s11379_s0 + $0xe8] sm:$0xff] }
  0xa9   :  { %5135 = vmatprep.mubr.f32.mxu0 %v521_v6  ;;  %5227 = vmatprep.mubr.f32.mxu1 %v6498_v12  ;;  %v6628_v29 = vand.u32 4294901760, %v132_v57  ;;  %v6649_v44 = vand.u32 4294901760, %v6637_v1  ;;  %v565_v3 = vand.u32 4294901760, %v564_v7 }
  0xab   :  { %v6652_v47 = vsub.f32 %v132_v57, %v6628_v29  ;;  %v575_v28 = vsub.f32 %v6637_v1, %v6649_v44 }
  0xac   :  { %5136 = vmatmul.mubr.f32.gmra.mxu0 %v521_v6  ;;  %5228 = vmatmul.mubr.f32.gmra.mxu1 %v6498_v12  ;;  %v133_v6 = vld [vmem:[%s11379_s0 + $0xf0] sm:$0xff] }
  0xad   :  { %5137 = vmatprep.mubr.f32.mxu0 %v532_v37  ;;  %5229 = vmatprep.mubr.f32.mxu1 %v6517_v34  ;;  %v6643_v12 = vand.u32 4294901760, %v133_v6  ;;  %v6665_v57 = vand.u32 4294901760, %v6652_v47 }
  0xaf   :  { %11822 = vst [vmem:[#allocation105_spill] sm:$0xff] %v6643_v12 }
  0xb0   :  { %5138 = vmatmul.mubr.f32.gmra.mxu0 %v532_v37  ;;  %5230 = vmatmul.mubr.f32.gmra.mxu1 %v6517_v34  ;;  %v134_v37 = vld [vmem:[%s11379_s0 + $0xf8] sm:$0xff]  ;;  %v6659_v34 = vsub.f32 %v133_v6, %v6643_v12  ;;  %v586_v6 = vsub.f32 %v6652_v47, %v6665_v57 }
  0xb1   :  { %5139 = vmatprep.mubr.f32.mxu0 %v543_v53  ;;  %5231 = vmatprep.mubr.f32.mxu1 %v6545_v15  ;;  %v6667_v14 = vand.u32 4294901760, %v134_v37 }
  0xb2   :  { %v6674_v7 = vand.u32 4294901760, %v6659_v34 }
  0xb4   :  { %5140 = vmatmul.mubr.f32.gmra.mxu0 %v543_v53  ;;  %5232 = vmatmul.mubr.f32.gmra.mxu1 %v6545_v15  ;;  %v576_v53 = vand.u32 4294901760, %v575_v28  ;;  %v6677_v15 = vsub.f32 %v134_v37, %v6667_v14 }
  0xb5   :  { %5141 = vmatprep.mubr.f32.mxu0 %v554_v25  ;;  %5233 = vmatprep.mubr.f32.mxu1 %v6553_v0 }
  0xb6   :  { %v6684_v28 = vand.u32 4294901760, %v6677_v15 }
  0xb8   :  { %5142 = vmatmul.mubr.f32.gmra.mxu0 %v554_v25  ;;  %5234 = vmatmul.mubr.f32.gmra.mxu1 %v6553_v0  ;;  %v587_v25 = vand.u32 4294901760, %v586_v6  ;;  %v597_v0 = vsub.f32 %v6659_v34, %v6674_v7 }
  0xb9   :  { %5143 = vmatprep.mubr.f32.mxu0 %v565_v3  ;;  %5235 = vmatprep.mubr.f32.mxu1 %v6568_v50 }
  0xba   :  { %v598_v37 = vand.u32 4294901760, %v597_v0  ;;  %v11823_v0 = vld [vmem:[#allocation22_spill] sm:$0xff] }
  0xbc   :  { %5144 = vmatmul.mubr.f32.gmra.mxu0 %v565_v3  ;;  %5236 = vmatmul.mubr.f32.gmra.mxu1 %v6568_v50  ;;  %v608_v3 = vsub.f32 %v6677_v15, %v6684_v28 }
  0xbd   :  { %5145 = vmatprep.mubr.f32.mxu0 %v576_v53  ;;  %5237 = vmatprep.mubr.f32.mxu1 %v6592_v36 }
  0xbe   :  { %v609_v6 = vand.u32 4294901760, %v608_v3  ;;  %v11827_v3 = vld [vmem:[#allocation44_spill] sm:$0xff] }
  0xc0   :  { %5146 = vmatmul.mubr.f32.gmra.mxu0 %v576_v53  ;;  %5238 = vmatmul.mubr.f32.gmra.mxu1 %v6592_v36  ;;  %v11824_v53 = vld [vmem:[#allocation39_spill] sm:$0xff] }
  0xc1   :  { %5147 = vmatprep.mubr.f32.mxu0 %v587_v25  ;;  %5239 = vmatprep.mubr.f32.mxu1 %v6607_v52 }
  0xc4   :  { %5148 = vmatmul.mubr.f32.gmra.mxu0 %v587_v25  ;;  %5240 = vmatmul.mubr.f32.gmra.mxu1 %v6607_v52  ;;  %v11825_v25 = vand.u32 4294901760, %v5845_v16  ;;  %v11831_v16 = vld [vmem:[#allocation43_spill] sm:$0xff] }
  0xc5   :  { %5149 = vmatprep.mubr.f32.mxu0 %v598_v37  ;;  %5241 = vmatprep.mubr.f32.mxu1 %v6613_v32 }
  0xc8   :  { %5150 = vmatmul.mubr.f32.gmra.mxu0 %v598_v37  ;;  %5242 = vmatmul.mubr.f32.gmra.mxu1 %v6613_v32  ;;  %v11826_v37 = vand.u32 4294901760, %v5850_v18  ;;  %v11832_v18 = vand.u32 4294901760, %v5872_v31  ;;  %v11839_v31 = vld [vmem:[#allocation50_spill] sm:$0xff] }
  0xc9   :  { %5151 = vmatprep.mubr.f32.mxu0 %v609_v6  ;;  %5243 = vmatprep.mubr.f32.mxu1 %v6628_v29 }
  0xcc   :  { %5152 = vmatmul.mubr.f32.gmra.mxu0 %v609_v6  ;;  %5244 = vmatmul.mubr.f32.gmra.mxu1 %v6628_v29  ;;  %v11828_v6 = vld [vmem:[#allocation24_spill] sm:$0xff] }
  0xcd   :  { %5245 = vmatprep.mubr.f32.mxu1 %v6643_v12  ;;  %5281 = vmatprep.mubr.f32.mxu0 %v11823_v0 }
  0xd0   :  { %5246 = vmatmul.mubr.f32.gmra.mxu1 %v6643_v12  ;;  %5282 = vmatmul.mubr.f32.vlgmr.msra.gmra.mxu0 %v11823_v0  ;;  %v11829_v0 = vand.u32 4294901760, %v5856_v21  ;;  %v11830_v12 = vand.u32 4294901760, %v5859_v22  ;;  %v11833_v21 = vld [vmem:[#allocation46_spill] sm:$0xff]  ;;  %v11838_v22 = vld [vmem:[#allocation51_spill] sm:$0xff] }
  0xd1   :  { %5247 = vmatprep.mubr.f32.mxu1 %v6667_v14  ;;  %5283 = vmatprep.mubr.f32.mxu0 %v11824_v53 }
  0xd2   :  { %5442 = vmatpush3.xpose.msra.mxu0 %v11825_v25  ;;  %v11866_v25 = vld [vmem:[#allocation8_spill] sm:$0xff] }
  0xd3   :  { %5443 = vmatprep.subr.mxu0 %v11826_v37  ;;  %v11867_v37 = vld [vmem:[#allocation17_spill] sm:$0xff] }
  0xd4   :  { %5248 = vmatmul.mubr.f32.gmra.mxu1 %v6667_v14  ;;  %5284 = vmatmul.mubr.f32.gmra.mxu0 %v11824_v53  ;;  %v11865_v53 = vld [vmem:[#allocation63_spill] sm:$0xff] }
  0xd5   :  { %5285 = vmatprep.mubr.f32.mxu0 %v11827_v3  ;;  %5377 = vmatprep.mubr.f32.mxu1 %v11828_v6 }
  0xd6   :  { %5444 = vmatpush3.xpose.msra.mxu0 %v11829_v0  ;;  %v11870_v0 = vld [vmem:[#allocation21_spill] sm:$0xff] }
  0xd7   :  { %5445 = vmatprep.subr.mxu0 %v11830_v12  ;;  %v11864_v12 = vld [vmem:[#allocation68_spill] sm:$0xff] }
  0xd8   :  { %5286 = vmatmul.mubr.f32.gmra.mxu0 %v11827_v3  ;;  %5378 = vmatmul.mubr.f32.vlgmr.msra.gmra.mxu1 %v11828_v6  ;;  %v11868_v3 = vand.u32 4294901760, %v11867_v37  ;;  %v11869_v6 = vld [vmem:[#allocation9_spill] sm:$0xff]  ;;  %v5793_v37 = vmov 0  }
  0xd9   :  { %5538 = vmatpush3.xpose.msra.mxu1 %v5830_v4  ;;  %5287 = vmatprep.mubr.f32.mxu0 %v6190_v62  ;;  %v11834_v4 = vand.u32 4294901760, %v5884_v35  ;;  %v11842_v35 = vld [vmem:[#allocation56_spill] sm:$0xff] }
  0xda   :  { %5379 = vmatprep.mubr.f32.mxu1 %v11831_v16  ;;  %5539 = vmatprep.subr.mxu1 %v5832_v5  ;;  %v11835_v5 = vand.u32 4294901760, %v5899_v45  ;;  %v11843_v45 = vld [vmem:[#allocation52_spill] sm:$0xff] }
  0xdb   :  { %5446 = vmatpush3.xpose.msra.mxu0 %v11832_v18  ;;  %v11872_v18 = vld [vmem:[#allocation71_spill] sm:$0xff]  ;;  %5638 = vset.pattern.permute.xlu0 %v5793_v37 }
  0xdc   :  { %5288 = vmatmul.mubr.f32.gmra.mxu0 %v6190_v62  ;;  %5380 = vmatmul.mubr.f32.gmra.mxu1 %v11831_v16  ;;  %v11859_v62 = vld [vmem:[#allocation13_spill] sm:$0xff]  ;;  %v11871_v16 = vand.u32 4294901760, %v11870_v0  ;;  %v3950_v0 = vld [vmem:[%s11381_s2 + $0x8] sm:$0xff] }
  0xdd   :  { %5289 = vmatprep.mubr.f32.mxu0 %v6213_v46  ;;  %5381 = vmatprep.mubr.f32.mxu1 %v11833_v21 }
  0xde   :  { %5540 = vmatpush3.xpose.msra.mxu1 %v5834_v9  ;;  %5447 = vmatprep.subr.mxu0 %v11834_v4  ;;  %v11836_v9 = vand.u32 4294901760, %v5907_v49  ;;  %v11846_v49 = vld [vmem:[#allocation59_spill] sm:$0xff]  ;;  %v11874_v4 = vld [vmem:[#allocation10_spill] sm:$0xff] }
  0xdf   :  { %5541 = vmatprep.subr.mxu1 %v5836_v10  ;;  %5448 = vmatpush3.xpose.msra.mxu0 %v11835_v5  ;;  %v11837_v10 = vand.u32 4294901760, %v5912_v54  ;;  %v11847_v54 = vld [vmem:[#allocation55_spill] sm:$0xff] }
  0xe0   :  { %5290 = vmatmul.mubr.f32.gmra.mxu0 %v6213_v46  ;;  %5382 = vmatmul.mubr.f32.gmra.mxu1 %v11833_v21  ;;  %v11873_v21 = vld [vmem:[#allocation67_spill] sm:$0xff] }
  0xe1   :  { %5291 = vmatprep.mubr.f32.mxu0 %v6228_v63  ;;  %5383 = vmatprep.mubr.f32.mxu1 %v6210_v58  ;;  %v11875_v5 = vld [vmem:[#allocation23_spill] sm:$0xff] }
  0xe2   :  { %5542 = vmatpush3.xpose.msra.mxu1 %v5838_v11  ;;  %5449 = vmatprep.subr.mxu0 %v11836_v9  ;;  %v11840_v11 = vand.u32 4294901760, %v5922_v59  ;;  %v11850_v59 = vld [vmem:[#allocation60_spill] sm:$0xff]  ;;  %v11876_v9 = vand.u32 4294901760, %v11875_v5  ;;  %v3953_v5 = vld [vmem:[%s11381_s2 + $0x20] sm:$0xff] }
  0xe3   :  { %5543 = vmatprep.subr.mxu1 %v5847_v17  ;;  %5450 = vmatpush3.xpose.msra.mxu0 %v11837_v10  ;;  %v11841_v17 = vand.u32 4294901760, %v5934_v2  ;;  %v11851_v2 = vld [vmem:[#allocation58_spill] sm:$0xff]  ;;  %v11877_v10 = vld [vmem:[#allocation11_spill] sm:$0xff] }
  0xe4   :  { %5292 = vmatmul.mubr.f32.gmra.mxu0 %v6228_v63  ;;  %5384 = vmatmul.mubr.f32.gmra.mxu1 %v6210_v58  ;;  %v11858_v63 = vld [vmem:[#allocation6_spill] sm:$0xff]  ;;  %v11862_v58 = vld [vmem:[#allocation16_spill] sm:$0xff] }
  0xe5   :  { %5293 = vmatprep.mubr.f32.mxu0 %v11838_v22  ;;  %5385 = vmatprep.mubr.f32.mxu1 %v11839_v31  ;;  %v11863_v46 = vand.u32 4294901760, %v11862_v58  ;;  %v11905_v58 = vld [vmem:[#allocation42_spill] sm:$0xff] }
  0xe6   :  { %5544 = vmatpush3.xpose.msra.mxu1 %v5853_v20  ;;  %5451 = vmatprep.subr.mxu0 %v11840_v11  ;;  %v11844_v20 = vand.u32 4294901760, %v5942_v13  ;;  %v11853_v13 = vld [vmem:[#allocation5_spill] sm:$0xff]  ;;  %v11880_v11 = vld [vmem:[#allocation74_spill] sm:$0xff] }
  0xe7   :  { %5545 = vmatprep.subr.mxu1 %v5865_v26  ;;  %5452 = vmatpush3.xpose.msra.mxu0 %v11841_v17  ;;  %v11845_v26 = vand.u32 4294901760, %v5947_v19  ;;  %v11854_v19 = vld [vmem:[#allocation12_spill] sm:$0xff]  ;;  %v11881_v17 = vld [vmem:[#allocation70_spill] sm:$0xff] }
  0xe8   :  { %5294 = vmatmul.mubr.f32.gmra.mxu0 %v11838_v22  ;;  %5386 = vmatmul.mubr.f32.gmra.mxu1 %v11839_v31  ;;  %v11878_v22 = vld [vmem:[#allocation27_spill] sm:$0xff] }
  0xe9   :  { %5295 = vmatprep.mubr.f32.mxu0 %v11842_v35  ;;  %5387 = vmatprep.mubr.f32.mxu1 %v11843_v45  ;;  %v11879_v31 = vand.u32 4294901760, %v11878_v22 }
  0xea   :  { %5546 = vmatpush3.xpose.msra.mxu1 %v5869_v30  ;;  %5453 = vmatprep.subr.mxu0 %v11844_v20  ;;  %v11848_v30 = vand.u32 4294901760, %v5962_v43  ;;  %v11856_v43 = vld [vmem:[#allocation64_spill] sm:$0xff] }
  0xeb   :  { %5547 = vmatprep.subr.mxu1 %v5894_v39  ;;  %5454 = vmatpush3.xpose.msra.mxu0 %v11845_v26  ;;  %v11849_v39 = vand.u32 4294901760, %v5974_v60  ;;  %v11857_v60 = vld [vmem:[#allocation61_spill] sm:$0xff]  ;;  %v11885_v26 = vld [vmem:[#allocation15_spill] sm:$0xff] }
  0xec   :  { %5296 = vmatmul.mubr.f32.gmra.mxu0 %v11842_v35  ;;  %5388 = vmatmul.mubr.f32.gmra.mxu1 %v11843_v45  ;;  %v11882_v35 = vld [vmem:[#allocation14_spill] sm:$0xff]  ;;  %v11883_v45 = vld [vmem:[#allocation28_spill] sm:$0xff] }
  0xed   :  { %5297 = vmatprep.mubr.f32.mxu0 %v11846_v49  ;;  %5389 = vmatprep.mubr.f32.mxu1 %v11847_v54  ;;  %v11884_v20 = vand.u32 4294901760, %v11883_v45  ;;  %v3954_v45 = vld [vmem:[%s11381_s2 + $0x28] sm:$0xff] }
  0xee   :  { %5548 = vmatpush3.xpose.msra.mxu1 %v5904_v48  ;;  %5455 = vmatprep.subr.mxu0 %v11848_v30  ;;  %v11852_v48 = vand.u32 4294901760, %v5982_v27  ;;  %v11861_v27 = vld [vmem:[#allocation7_spill] sm:$0xff] }
  0xef   :  { %5549 = vmatprep.subr.mxu1 %v5918_v56  ;;  %5456 = vmatpush3.xpose.msra.mxu0 %v11849_v39  ;;  %v11855_v56 = vand.u32 4294901760, %v11854_v19  ;;  %v11888_v30 = vld [vmem:[#allocation75_spill] sm:$0xff]  ;;  %v11889_v39 = vld [vmem:[#allocation73_spill] sm:$0xff]  ;;  %v11894_v19 = vld [vmem:[#allocation80_spill] sm:$0xff] }
  0xf0   :  { %5298 = vmatmul.mubr.f32.gmra.mxu0 %v11846_v49  ;;  %5390 = vmatmul.mubr.f32.gmra.mxu1 %v11847_v54  ;;  %v11886_v49 = vld [vmem:[#allocation31_spill] sm:$0xff] }
  0xf1   :  { %5299 = vmatprep.mubr.f32.mxu0 %v11850_v59  ;;  %5391 = vmatprep.mubr.f32.mxu1 %v11851_v2  ;;  %v11887_v54 = vand.u32 4294901760, %v11886_v49  ;;  %v11913_v49 = vld [vmem:[#allocation20_spill] sm:$0xff] }
  0xf2   :  { %5550 = vmatpush3.xpose.msra.mxu1 %v5924_v61  ;;  %5457 = vmatprep.subr.mxu0 %v11852_v48  ;;  %v11860_v61 = vand.u32 4294901760, %v11859_v62  ;;  %v11892_v48 = vld [vmem:[#allocation34_spill] sm:$0xff]  ;;  %v11901_v62 = vld [vmem:[#allocation79_spill] sm:$0xff] }
  0xf3   :  { %5551 = vmatprep.subr.mxu1 %v11853_v13  ;;  %5458 = vmatpush3.xpose.msra.mxu0 %v11855_v56  ;;  %v11893_v13 = vand.u32 4294901760, %v11892_v48  ;;  %v11895_v56 = vld [vmem:[#allocation76_spill] sm:$0xff] }
  0xf4   :  { %5300 = vmatmul.mubr.f32.gmra.mxu0 %v11850_v59  ;;  %5392 = vmatmul.mubr.f32.gmra.mxu1 %v11851_v2  ;;  %v11890_v59 = vld [vmem:[#allocation32_spill] sm:$0xff] }
  0xf5   :  { %5301 = vmatprep.mubr.f32.mxu0 %v11856_v43  ;;  %5393 = vmatprep.mubr.f32.mxu1 %v11857_v60  ;;  %v11891_v2 = vand.u32 4294901760, %v11890_v59  ;;  %v3956_v48 = vld [vmem:[%s11381_s2 + $0x38] sm:$0xff] }
  0xf6   :  { %5552 = vmatpush3.xpose.msra.mxu1 %v11858_v63  ;;  %5459 = vmatprep.subr.mxu0 %v11860_v61  ;;  %v11900_v63 = vld [vmem:[#allocation83_spill] sm:$0xff]  ;;  %v11902_v61 = vld [vmem:[#allocation41_spill] sm:$0xff] }
  0xf7   :  { %5553 = vmatprep.subr.mxu1 %v11861_v27  ;;  %5460 = vmatpush3.xpose.msra.mxu0 %v11863_v46  ;;  %v11904_v27 = vld [vmem:[#allocation30_spill] sm:$0xff] }
  0xf8   :  { %5302 = vmatmul.mubr.f32.gmra.mxu0 %v11856_v43  ;;  %5394 = vmatmul.mubr.f32.gmra.mxu1 %v11857_v60  ;;  %v11896_v43 = vld [vmem:[#allocation37_spill] sm:$0xff]  ;;  %v11898_v60 = vld [vmem:[#allocation38_spill] sm:$0xff] }
  0xf9   :  { %5303 = vmatprep.mubr.f32.mxu0 %v11864_v12  ;;  %5395 = vmatprep.mubr.f32.mxu1 %v11865_v53 }
  0xfa   :  { %5554 = vmatpush3.xpose.msra.mxu1 %v11866_v25  ;;  %5461 = vmatprep.subr.mxu0 %v11868_v3 }
  0xfb   :  { %5555 = vmatprep.subr.mxu1 %v11869_v6  ;;  %5462 = vmatpush3.xpose.msra.mxu0 %v11871_v16  ;;  %v3951_v6 = vld [vmem:[%s11381_s2 + $0x10] sm:$0xff]  ;;  %v11909_v16 = vld [vmem:[#allocation88_spill] sm:$0xff] }
  0xfc   :  { %5304 = vmatmul.mubr.f32.gmra.mxu0 %v11864_v12  ;;  %5396 = vmatmul.mubr.f32.gmra.mxu1 %v11865_v53  ;;  %v3949_v12 = vld [vmem:[%s11381_s2] sm:$0xff]  ;;  %v11907_v53 = vld [vmem:[#allocation84_spill] sm:$0xff] }
  0xfd   :  { %5305 = vmatprep.mubr.f32.mxu0 %v11872_v18  ;;  %5397 = vmatprep.mubr.f32.mxu1 %v11873_v21 }
  0xfe   :  { %5556 = vmatpush3.xpose.msra.mxu1 %v11874_v4  ;;  %5463 = vmatprep.subr.mxu0 %v11876_v9  ;;  %v3952_v4 = vld [vmem:[%s11381_s2 + $0x18] sm:$0xff] }
  0xff   :  { %5557 = vmatprep.subr.mxu1 %v11877_v10  ;;  %5464 = vmatpush3.xpose.msra.mxu0 %v11879_v31  ;;  %v11912_v10 = vld [vmem:[#allocation87_spill] sm:$0xff] }
 0x100   :  { %5306 = vmatmul.mubr.f32.gmra.mxu0 %v11872_v18  ;;  %5398 = vmatmul.mubr.f32.gmra.mxu1 %v11873_v21 }
 0x101   :  { %5307 = vmatprep.mubr.f32.mxu0 %v11880_v11  ;;  %5399 = vmatprep.mubr.f32.mxu1 %v11881_v17 }
 0x102   :  { %5558 = vmatpush3.xpose.msra.mxu1 %v11882_v35  ;;  %5465 = vmatprep.subr.mxu0 %v11884_v20  ;;  %v3955_v20 = vld [vmem:[%s11381_s2 + $0x30] sm:$0xff] }
 0x103   :  { %5559 = vmatprep.subr.mxu1 %v11885_v26  ;;  %5466 = vmatpush3.xpose.msra.mxu0 %v11887_v54 }
 0x104   :  { %5308 = vmatmul.mubr.f32.gmra.mxu0 %v11880_v11  ;;  %5400 = vmatmul.mubr.f32.gmra.mxu1 %v11881_v17 }
 0x105   :  { %5309 = vmatprep.mubr.f32.mxu0 %v11888_v30  ;;  %5401 = vmatprep.mubr.f32.mxu1 %v11889_v39 }
 0x106   :  { %5560 = vmatpush3.xpose.msra.mxu1 %v11789_v33  ;;  %5467 = vmatprep.subr.mxu0 %v11891_v2  ;;  %v11897_v33 = vand.u32 4294901760, %v11896_v43 }
 0x107   :  { %5561 = vmatprep.subr.mxu1 %v11791_v41  ;;  %5468 = vmatpush3.xpose.msra.mxu0 %v11893_v13  ;;  %v11899_v41 = vand.u32 4294901760, %v11898_v60  ;;  %v3957_v13 = vld [vmem:[%s11381_s2 + $0x40] sm:$0xff] }
 0x108   :  { %5310 = vmatmul.mubr.f32.gmra.mxu0 %v11888_v30  ;;  %5402 = vmatmul.mubr.f32.gmra.mxu1 %v11889_v39 }
 0x109   :  { %5311 = vmatprep.mubr.f32.mxu0 %v11894_v19  ;;  %5403 = vmatprep.mubr.f32.mxu1 %v11895_v56 }
 0x10a   :  { %5562 = vmatpush3.xpose.msra.mxu1 %v11796_v24  ;;  %5469 = vmatprep.subr.mxu0 %v11897_v33  ;;  %v11903_v24 = vand.u32 4294901760, %v11902_v61 }
 0x10b   :  { %5563 = vmatprep.subr.mxu1 %v11797_v8  ;;  %5470 = vmatpush3.xpose.msra.mxu0 %v11899_v41  ;;  %v11906_v8 = vand.u32 4294901760, %v11905_v58 }
 0x10c   :  { %5312 = vmatmul.mubr.f32.gmra.mxu0 %v11894_v19  ;;  %5404 = vmatmul.mubr.f32.gmra.mxu1 %v11895_v56  ;;  %v11914_v56 = vld [vmem:[#allocation26_spill] sm:$0xff] }
 0x10d   :  { %5313 = vmatprep.mubr.f32.mxu0 %v11900_v63  ;;  %5405 = vmatprep.mubr.f32.mxu1 %v11901_v62 }
 0x10e   :  { %5564 = vmatpush3.xpose.msra.mxu1 %v11800_v55  ;;  %5471 = vmatprep.subr.mxu0 %v11903_v24  ;;  %v11908_v55 = vld [vmem:[#allocation82_spill] sm:$0xff]  ;;  %v11915_v24 = vld [vmem:[#allocation33_spill] sm:$0xff] }
 0x10f   :  { %5565 = vmatprep.subr.mxu1 %v11904_v27  ;;  %5472 = vmatpush3.xpose.msra.mxu0 %v11906_v8  ;;  %v11916_v27 = vld [vmem:[#allocation91_spill] sm:$0xff] }
 0x110   :  { %v270_v46 = vpop.f32.mrf.mxu0  ;;  %5314 = vmatmul.mubr.f32.gmra.mxu0 %v11900_v63  ;;  %5406 = vmatmul.mubr.f32.gmra.mxu1 %v11901_v62  ;;  %v3958_v63 = vld [vmem:[%s11381_s2 + $0x48] sm:$0xff]  ;;  %v3959_v62 = vld [vmem:[%s11381_s2 + $0x50] sm:$0xff] }
 0x111   :  { %5315 = vmatprep.mubr.f32.mxu0 %v11907_v53  ;;  %5407 = vmatprep.mubr.f32.mxu1 %v11908_v55 }
 0x112   :  { %v272_v25 = vpop.f32.mrf.mxu0  ;;  %5566 = vmatpush3.xpose.msra.mxu1 %v11804_v38  ;;  %3983 = vperm.xlu0 %5638, %v3949_v12   ;;  %v11910_v38 = vld [vmem:[#allocation85_spill] sm:$0xff] }
 0x113   :  { %5567 = vmatprep.subr.mxu1 %v11806_v51  ;;  %5639 = vset.pattern.permute.xlu1 %v5793_v37  ;;  %v11917_v37 = vld [vmem:[#allocation95_spill] sm:$0xff] }
 0x114   :  { %v281_v3 = vpop.f32.mrf.mxu0  ;;  %5316 = vmatmul.mubr.f32.gmra.mxu0 %v11907_v53  ;;  %5408 = vmatmul.mubr.f32.gmra.mxu1 %v11908_v55  ;;  %v3960_v53 = vld [vmem:[%s11381_s2 + $0x58] sm:$0xff]  ;;  %v3961_v55 = vld [vmem:[%s11381_s2 + $0x60] sm:$0xff] }
 0x115   :  { %5317 = vmatprep.mubr.f32.mxu0 %v11909_v16  ;;  %5409 = vmatprep.mubr.f32.mxu1 %v11910_v38 }
 0x116   :  { %v283_v18 = vpop.f32.mrf.mxu0  ;;  %5568 = vmatpush3.xpose.msra.mxu1 %v6129_v42  ;;  %3989 = vperm.xlu1 %5639, %v3951_v6   ;;  %v11911_v42 = vld [vmem:[#allocation90_spill] sm:$0xff] }
 0x117   :  { %3986 = vperm.xlu0 %5638, %v3950_v0  }
 0x118   :  { %v292_v51 = vpop.f32.mrf.mxu0  ;;  %v843_v21 = vpop.f32.mrf.mxu1  ;;  %5318 = vmatmul.mubr.f32.gmra.mxu0 %v11909_v16  ;;  %5410 = vmatmul.mubr.f32.gmra.mxu1 %v11910_v38 }
 0x119   :  { %v6879_v9 = vadd.f32 %v843_v21, %v270_v46  ;;  %5319 = vmatprep.mubr.f32.mxu0 %v11911_v42  ;;  %5411 = vmatprep.mubr.f32.mxu1 %v11912_v10  ;;  %v3963_v21 = vld [vmem:[%s11381_s2 + $0x70] sm:$0xff] }
 0x11a   :  { %v294_v22 = vpop.f32.mrf.mxu0  ;;  %v845_v31 = vpop.f32.mrf.mxu1  ;;  %3992 = vperm.xlu1 %5639, %v3952_v4  }
 0x11b   :  { %v6883_v11 = vadd.f32 %v845_v31, %v272_v25  ;;  %3995 = vperm.xlu0 %5638, %v3953_v5   ;;  %v11919_v5 = vld [vmem:[#allocation97_spill] sm:$0xff] }
 0x11c   :  { %v303_v17 = vpop.f32.mrf.mxu0  ;;  %v850_v35 = vpop.f32.mrf.mxu1  ;;  %5320 = vmatmul.mubr.f32.gmra.mxu0 %v11911_v42  ;;  %5412 = vmatmul.mubr.f32.gmra.mxu1 %v11912_v10  ;;  %v11920_v42 = vld [vmem:[#allocation94_spill] sm:$0xff] }
 0x11d   :  { %v6893_v26 = vadd.f32 %v850_v35, %v281_v3  ;;  %5321 = vmatprep.mubr.f32.mxu0 %v6507_v40  ;;  %5413 = vmatprep.mubr.f32.mxu1 %v11913_v49  ;;  %v11918_v3 = vld [vmem:[#allocation35_spill] sm:$0xff] }
 0x11e   :  { %v305_v54 = vpop.f32.mrf.mxu0  ;;  %v852_v30 = vpop.f32.mrf.mxu1  ;;  %3998 = vperm.xlu1 %5639, %v3954_v45   ;;  %v3964_v45 = vld [vmem:[%s11381_s2 + $0x78] sm:$0xff] }
 0x11f   :  { %v6897_v39 = vadd.f32 %v852_v30, %v283_v18  ;;  %4001 = vperm.xlu0 %5638, %v3955_v20   ;;  %v3965_v20 = vld [vmem:[%s11381_s2 + $0x80] sm:$0xff]  ;;  %v11922_v30 = vld [vmem:[#allocation96_spill] sm:$0xff] }
 0x120   :  { %v314_v59 = vpop.f32.mrf.mxu0  ;;  %v857_v2 = vpop.f32.mrf.mxu1  ;;  %5322 = vmatmul.mubr.f32.gmra.mxu0 %v6507_v40  ;;  %5414 = vmatmul.mubr.f32.gmra.mxu1 %v11913_v49 }
 0x121   :  { %v6907_v19 = vadd.f32 %v857_v2, %v292_v51  ;;  %5323 = vmatprep.mubr.f32.mxu0 %v6526_v23  ;;  %5415 = vmatprep.mubr.f32.mxu1 %v11914_v56  ;;  %v3962_v51 = vld [vmem:[%s11381_s2 + $0x68] sm:$0xff] }
 0x122   :  { %v316_v43 = vpop.f32.mrf.mxu0  ;;  %v859_v33 = vpop.f32.mrf.mxu1  ;;  %4004 = vperm.xlu1 %5639, %v3956_v48  }
 0x123   :  { %v6911_v60 = vadd.f32 %v859_v33, %v294_v22  ;;  %4007 = vperm.xlu0 %5638, %v3957_v13   ;;  %v3967_v33 = vld [vmem:[%s11381_s2 + $0x90] sm:$0xff] }
 0x124   :  { %v325_v40 = vpop.f32.mrf.mxu0  ;;  %v864_v41 = vpop.f32.mrf.mxu1  ;;  %5324 = vmatmul.mubr.f32.gmra.mxu0 %v6526_v23  ;;  %5416 = vmatmul.mubr.f32.gmra.mxu1 %v11914_v56 }
 0x125   :  { %v6921_v61 = vadd.f32 %v864_v41, %v303_v17  ;;  %5325 = vmatprep.mubr.f32.mxu0 %v11915_v24  ;;  %5417 = vmatprep.mubr.f32.mxu1 %v11916_v27  ;;  %v11923_v41 = vld [vmem:[#allocation101_spill] sm:$0xff] }
 0x126   :  { %v327_v58 = vpop.f32.mrf.mxu0  ;;  %v866_v8 = vpop.f32.mrf.mxu1  ;;  %4010 = vperm.xlu1 %5639, %v3958_v63   ;;  %v11924_v63 = vld [vmem:[#allocation99_spill] sm:$0xff] }
 0x127   :  { %v6925_v46 = vadd.f32 %v866_v8, %v305_v54  ;;  %4013 = vperm.xlu0 %5638, %v3959_v62   ;;  %v11921_v54 = vld [vmem:[#allocation98_spill] sm:$0xff] }
 0x128   :  { %v336_v23 = vpop.f32.mrf.mxu0  ;;  %v871_v12 = vpop.f32.mrf.mxu1  ;;  %5326 = vmatmul.mubr.f32.gmra.mxu0 %v11915_v24  ;;  %5418 = vmatmul.mubr.f32.gmra.mxu1 %v11916_v27 }
 0x129   :  { %v6935_v25 = vadd.f32 %v871_v12, %v314_v59  ;;  %5327 = vmatprep.mubr.f32.mxu0 %v11917_v37  ;;  %5419 = vmatprep.mubr.f32.mxu1 %v11918_v3  ;;  %v3969_v12 = vld [vmem:[%s11381_s2 + $0xa0] sm:$0xff] }
 0x12a   :  { %v338_v6 = vpop.f32.mrf.mxu0  ;;  %v873_v0 = vpop.f32.mrf.mxu1  ;;  %4016 = vperm.xlu1 %5639, %v3960_v53  }
 0x12b   :  { %v6939_v16 = vadd.f32 %v873_v0, %v316_v43  ;;  %4019 = vperm.xlu0 %5638, %v3961_v55   ;;  %v3966_v43 = vld [vmem:[%s11381_s2 + $0x88] sm:$0xff]  ;;  %v11925_v55 = vld [vmem:[#allocation103_spill] sm:$0xff] }
 0x12c   :  { %v347_v38 = vpop.f32.mrf.mxu0  ;;  %v878_v18 = vpop.f32.mrf.mxu1  ;;  %5328 = vmatmul.mubr.f32.gmra.mxu0 %v11917_v37  ;;  %5420 = vmatmul.mubr.f32.gmra.mxu1 %v11918_v3  ;;  %v11926_v37 = vld [vmem:[#allocation100_spill] sm:$0xff] }
 0x12d   :  { %v6949_v4 = vadd.f32 %v878_v18, %v325_v40  ;;  %5329 = vmatprep.mubr.f32.mxu0 %v11919_v5  ;;  %5421 = vmatprep.mubr.f32.mxu1 %v11920_v42 }
 0x12e   :  { %v349_v10 = vpop.f32.mrf.mxu0  ;;  %v880_v22 = vpop.f32.mrf.mxu1  ;;  %4022 = vperm.xlu1 %5639, %v3962_v51   ;;  %v3970_v51 = vld [vmem:[%s11381_s2 + $0xa8] sm:$0xff] }
 0x12f   :  { %v6953_v31 = vadd.f32 %v880_v22, %v327_v58  ;;  %4025 = vperm.xlu0 %5638, %v3963_v21   ;;  %v3971_v21 = vld [vmem:[%s11381_s2 + $0xb0] sm:$0xff] }
 0x130   :  { %v358_v17 = vpop.f32.mrf.mxu0  ;;  %v885_v35 = vpop.f32.mrf.mxu1  ;;  %5330 = vmatmul.mubr.f32.gmra.mxu0 %v11919_v5  ;;  %5422 = vmatmul.mubr.f32.gmra.mxu1 %v11920_v42  ;;  %v11927_v42 = vld [vmem:[#allocation102_spill] sm:$0xff] }
 0x131   :  { %v6963_v49 = vadd.f32 %v885_v35, %v336_v23  ;;  %5331 = vmatprep.mubr.f32.mxu0 %v11921_v54  ;;  %5423 = vmatprep.mubr.f32.mxu1 %v11922_v30  ;;  %v3968_v23 = vld [vmem:[%s11381_s2 + $0x98] sm:$0xff] }
 0x132   :  { %v360_v59 = vpop.f32.mrf.mxu0  ;;  %v887_v2 = vpop.f32.mrf.mxu1  ;;  %4028 = vperm.xlu1 %5639, %v3964_v45  }
 0x133   :  { %v6967_v48 = vadd.f32 %v887_v2, %v338_v6  ;;  %4031 = vperm.xlu0 %5638, %v3965_v20   ;;  %v3972_v20 = vld [vmem:[%s11381_s2 + $0xb8] sm:$0xff] }
 0x134   :  { %v369_v13 = vpop.f32.mrf.mxu0  ;;  %v892_v56 = vpop.f32.mrf.mxu1  ;;  %5332 = vmatmul.mubr.f32.gmra.mxu0 %v11921_v54  ;;  %5424 = vmatmul.mubr.f32.gmra.mxu1 %v11922_v30  ;;  %v3973_v54 = vld [vmem:[%s11381_s2 + $0xc0] sm:$0xff] }
 0x135   :  { %v6977_v40 = vadd.f32 %v892_v56, %v347_v38  ;;  %5333 = vmatprep.mubr.f32.mxu0 %v11923_v41  ;;  %5425 = vmatprep.mubr.f32.mxu1 %v11924_v63 }
 0x136   :  { %v371_v62 = vpop.f32.mrf.mxu0  ;;  %v894_v24 = vpop.f32.mrf.mxu1  ;;  %4034 = vperm.xlu1 %5639, %v3966_v43  }
 0x137   :  { %v6981_v27 = vadd.f32 %v894_v24, %v349_v10  ;;  %4037 = vperm.xlu0 %5638, %v3967_v33   ;;  %v3974_v33 = vld [vmem:[%s11381_s2 + $0xc8] sm:$0xff] }
 0x138   :  { %v380_v58 = vpop.f32.mrf.mxu0  ;;  %v899_v8 = vpop.f32.mrf.mxu1  ;;  %5334 = vmatmul.mubr.f32.gmra.mxu0 %v11923_v41  ;;  %5426 = vmatmul.mubr.f32.gmra.mxu1 %v11924_v63  ;;  %v3975_v41 = vld [vmem:[%s11381_s2 + $0xd0] sm:$0xff] }
 0x139   :  { %v6991_v53 = vadd.f32 %v899_v8, %v358_v17  ;;  %5335 = vmatprep.mubr.f32.mxu0 %v11925_v55  ;;  %5427 = vmatprep.mubr.f32.mxu1 %v11926_v37 }
 0x13a   :  { %v382_v3 = vpop.f32.mrf.mxu0  ;;  %v901_v6 = vpop.f32.mrf.mxu1  ;;  %4040 = vperm.xlu1 %5639, %v3968_v23   ;;  %v3976_v23 = vld [vmem:[%s11381_s2 + $0xd8] sm:$0xff] }
 0x13b   :  { %v6995_v0 = vadd.f32 %v901_v6, %v360_v59  ;;  %4043 = vperm.xlu0 %5638, %v3969_v12   ;;  %v11928_v59 = vld [vmem:[#allocation104_spill] sm:$0xff]  ;;  %v3977_v12 = vld [vmem:[%s11381_s2 + $0xe0] sm:$0xff] }
 0x13c   :  { %v391_v38 = vpop.f32.mrf.mxu0  ;;  %v906_v18 = vpop.f32.mrf.mxu1  ;;  %5336 = vmatmul.mubr.f32.gmra.mxu0 %v11925_v55  ;;  %5428 = vmatmul.mubr.f32.gmra.mxu1 %v11926_v37 }
 0x13d   :  { %v7005_v5 = vadd.f32 %v906_v18, %v369_v13  ;;  %5337 = vmatprep.mubr.f32.mxu0 %v6637_v1  ;;  %5429 = vmatprep.mubr.f32.mxu1 %v11927_v42  ;;  %v3979_v18 = vld [vmem:[%s11381_s2 + $0xf0] sm:$0xff] }
 0x13e   :  { %v393_v10 = vpop.f32.mrf.mxu0  ;;  %v908_v22 = vpop.f32.mrf.mxu1  ;;  %4046 = vperm.xlu1 %5639, %v3970_v51  }
 0x13f   :  { %v7009_v17 = vadd.f32 %v908_v22, %v371_v62  ;;  %4049 = vperm.xlu0 %5638, %v3971_v21   ;;  %v11929_v21 = vld [vmem:[#allocation18_spill] sm:$0xff] }
 0x140   :  { %v402_v35 = vpop.f32.mrf.mxu0  ;;  %v913_v45 = vpop.f32.mrf.mxu1  ;;  %5338 = vmatmul.mubr.f32.gmra.mxu0 %v6637_v1  ;;  %5430 = vmatmul.mubr.f32.gmra.mxu1 %v11927_v42 }
 0x141   :  { %v7019_v30 = vadd.f32 %v913_v45, %v380_v58  ;;  %5339 = vmatprep.mubr.f32.mxu0 %v6652_v47  ;;  %5431 = vmatprep.mubr.f32.mxu1 %v11928_v59 }
 0x142   :  { %v404_v2 = vpop.f32.mrf.mxu0  ;;  %v915_v13 = vpop.f32.mrf.mxu1  ;;  %4052 = vperm.xlu1 %5639, %v3972_v20   ;;  %v11930_v20 = vld [vmem:[#allocation36_spill] sm:$0xff] }
 0x143   :  { %v7023_v56 = vadd.f32 %v915_v13, %v382_v3  ;;  %4055 = vperm.xlu0 %5638, %v3973_v54  }
 0x144   :  { %v413_v1 = vpop.f32.mrf.mxu0  ;;  %v920_v43 = vpop.f32.mrf.mxu1  ;;  %5340 = vmatmul.mubr.f32.gmra.mxu0 %v6652_v47  ;;  %5432 = vmatmul.mubr.f32.gmra.mxu1 %v11928_v59 }
 0x145   :  { %v7033_v63 = vadd.f32 %v920_v43, %v391_v38  ;;  %5341 = vmatprep.mubr.f32.mxu0 %v6659_v34  ;;  %5433 = vmatprep.mubr.f32.mxu1 %v6649_v44  ;;  %v3978_v38 = vld [vmem:[%s11381_s2 + $0xe8] sm:$0xff]  ;;  %v11931_v43 = vld [vmem:[#allocation40_spill] sm:$0xff] }
 0x146   :  { %v415_v62 = vpop.f32.mrf.mxu0  ;;  %v922_v24 = vpop.f32.mrf.mxu1  ;;  %4058 = vperm.xlu1 %5639, %v3974_v33  }
 0x147   :  { %v7037_v58 = vadd.f32 %v922_v24, %v393_v10  ;;  %4061 = vperm.xlu0 %5638, %v3975_v41  }
 0x148   :  { %v424_v47 = vpop.f32.mrf.mxu0  ;;  %v927_v8 = vpop.f32.mrf.mxu1  ;;  %5342 = vmatmul.mubr.f32.gmra.mxu0 %v6659_v34  ;;  %5434 = vmatmul.mubr.f32.gmra.mxu1 %v6649_v44 }
 0x149   :  { %v7047_v55 = vadd.f32 %v927_v8, %v402_v35  ;;  %5343 = vmatprep.mubr.f32.mxu0 %v6677_v15  ;;  %5435 = vmatprep.mubr.f32.mxu1 %v6665_v57  ;;  %v3980_v35 = vld [vmem:[%s11381_s2 + $0xf8] sm:$0xff] }
 0x14a   :  { %v426_v37 = vpop.f32.mrf.mxu0  ;;  %v929_v3 = vpop.f32.mrf.mxu1  ;;  %4064 = vperm.xlu1 %5639, %v3976_v23  }
 0x14b   :  { %v7051_v6 = vadd.f32 %v929_v3, %v404_v2  ;;  %4067 = vperm.xlu0 %5638, %v3977_v12  }
 0x14c   :  { %v435_v44 = vpop.f32.mrf.mxu0  ;;  %v934_v34 = vpop.f32.mrf.mxu1  ;;  %5344 = vmatmul.mubr.f32.gmra.mxu0 %v6677_v15  ;;  %5436 = vmatmul.mubr.f32.gmra.mxu1 %v6665_v57 }
 0x14d   :  { %v7061_v51 = vadd.f32 %v934_v34, %v413_v1  ;;  %5437 = vmatprep.mubr.f32.mxu1 %v6674_v7  ;;  %5473 = vmatprep.mubr.f32.mxu0 %v11929_v21 }
 0x14e   :  { %v437_v42 = vpop.f32.mrf.mxu0  ;;  %v936_v10 = vpop.f32.mrf.mxu1  ;;  %4070 = vperm.xlu1 %5639, %v3978_v38   ;;  %v11933_v38 = vld [vmem:[#allocation47_spill] sm:$0xff] }
 0x14f   :  { %v7065_v22 = vadd.f32 %v936_v10, %v415_v62  ;;  %4073 = vperm.xlu0 %5638, %v3979_v18  }
 0x150   :  { %v446_v15 = vpop.f32.mrf.mxu0  ;;  %v941_v57 = vpop.f32.mrf.mxu1  ;;  %5438 = vmatmul.mubr.f32.gmra.mxu1 %v6674_v7  ;;  %5474 = vmatmul.mubr.f32.vlgmr.msra.gmra.mxu0 %v11929_v21 }
 0x151   :  { %v7072_v45 = vadd.f32 %v941_v57, %v424_v47  ;;  %5439 = vmatprep.mubr.f32.mxu1 %v6684_v28  ;;  %5475 = vmatprep.mubr.f32.mxu0 %v11930_v20 }
 0x152   :  { %v448_v54 = vpop.f32.mrf.mxu0  ;;  %v943_v59 = vpop.f32.mrf.mxu1  ;;  %4076 = vperm.xlu1 %5639, %v3980_v35   ;;  %v11934_v35 = vld [vmem:[#allocation48_spill] sm:$0xff] }
 0x153   :  { %v7076_v2 = vadd.f32 %v943_v59, %v426_v37 }
 0x154   :  { %v457_v13 = vpop.f32.mrf.mxu0  ;;  %v948_v1 = vpop.f32.mrf.mxu1  ;;  %5440 = vmatmul.mubr.f32.gmra.mxu1 %v6684_v28  ;;  %5476 = vmatmul.mubr.f32.gmra.mxu0 %v11930_v20  ;;  %v11932_v28 = vld [vmem:[#allocation45_spill] sm:$0xff] }
 0x155   :  { %v7080_v7 = vadd.f32 %v948_v1, %v435_v44  ;;  %5477 = vmatprep.mubr.f32.mxu0 %v11931_v43  ;;  %5569 = vmatprep.mubr.f32.mxu1 %v11929_v21 }
 0x156   :  { %v459_v33 = vpop.f32.mrf.mxu0  ;;  %v950_v41 = vpop.f32.mrf.mxu1 }
 0x157   :  { %v7084_v62 = vadd.f32 %v950_v41, %v437_v42  ;;  %v11935_v41 = vld [vmem:[#allocation49_spill] sm:$0xff] }
 0x158   :  { %v468_v24 = vpop.f32.mrf.mxu0  ;;  %v955_v47 = vpop.f32.mrf.mxu1  ;;  %5478 = vmatmul.mubr.f32.gmra.mxu0 %v11931_v43  ;;  %5570 = vmatmul.mubr.f32.vlgmr.msra.gmra.mxu1 %v11929_v21 }
 0x159   :  { %v7088_v8 = vadd.f32 %v955_v47, %v446_v15  ;;  %5479 = vmatprep.mubr.f32.mxu0 %v11932_v28  ;;  %5571 = vmatprep.mubr.f32.mxu1 %v11930_v20 }
 0x15a   :  { %v470_v23 = vpop.f32.mrf.mxu0  ;;  %v957_v12 = vpop.f32.mrf.mxu1 }
 0x15b   :  { %v7092_v37 = vadd.f32 %v957_v12, %v448_v54 }
 0x15c   :  { %v479_v3 = vpop.f32.mrf.mxu0  ;;  %v962_v44 = vpop.f32.mrf.mxu1  ;;  %5480 = vmatmul.mubr.f32.gmra.mxu0 %v11932_v28  ;;  %5572 = vmatmul.mubr.f32.gmra.mxu1 %v11930_v20 }
 0x15d   :  { %v7096_v34 = vadd.f32 %v962_v44, %v457_v13  ;;  %5481 = vmatprep.mubr.f32.mxu0 %v11933_v38  ;;  %5573 = vmatprep.mubr.f32.mxu1 %v11931_v43 }
 0x15e   :  { %v481_v18 = vpop.f32.mrf.mxu0  ;;  %v964_v21 = vpop.f32.mrf.mxu1 }
 0x15f   :  { %v7100_v42 = vadd.f32 %v964_v21, %v459_v33  ;;  %v11938_v21 = vld [vmem:[#allocation53_spill] sm:$0xff] }
 0x160   :  { %v490_v10 = vpop.f32.mrf.mxu0  ;;  %v969_v15 = vpop.f32.mrf.mxu1  ;;  %5482 = vmatmul.mubr.f32.gmra.mxu0 %v11933_v38  ;;  %5574 = vmatmul.mubr.f32.gmra.mxu1 %v11931_v43 }
 0x161   :  { %v7104_v57 = vadd.f32 %v969_v15, %v468_v24  ;;  %5483 = vmatprep.mubr.f32.mxu0 %v11934_v35  ;;  %5575 = vmatprep.mubr.f32.mxu1 %v11932_v28 }
 0x162   :  { %v492_v20 = vpop.f32.mrf.mxu0  ;;  %v971_v54 = vpop.f32.mrf.mxu1 }
 0x163   :  { %v7108_v59 = vadd.f32 %v971_v54, %v470_v23 }
 0x164   :  { %v501_v13 = vpop.f32.mrf.mxu0  ;;  %v976_v1 = vpop.f32.mrf.mxu1  ;;  %5484 = vmatmul.mubr.f32.gmra.mxu0 %v11934_v35  ;;  %5576 = vmatmul.mubr.f32.gmra.mxu1 %v11932_v28 }
 0x165   :  { %v7112_v33 = vadd.f32 %v976_v1, %v479_v3  ;;  %5485 = vmatprep.mubr.f32.mxu0 %v11935_v41  ;;  %5577 = vmatprep.mubr.f32.mxu1 %v11933_v38 }
 0x166   :  { %v503_v43 = vpop.f32.mrf.mxu0  ;;  %v978_v24 = vpop.f32.mrf.mxu1 }
 0x167   :  { %v7116_v47 = vadd.f32 %v978_v24, %v481_v18  ;;  %v11941_v24 = vld [vmem:[#allocation54_spill] sm:$0xff] }
 0x168   :  { %v512_v12 = vpop.f32.mrf.mxu0  ;;  %v983_v44 = vpop.f32.mrf.mxu1  ;;  %5486 = vmatmul.mubr.f32.gmra.mxu0 %v11935_v41  ;;  %5578 = vmatmul.mubr.f32.gmra.mxu1 %v11933_v38 }
 0x169   :  { %11936 = vst [vmem:[#allocation22_spill] sm:$0xff] %v7116_v47  ;;  %v7120_v23 = vadd.f32 %v983_v44, %v490_v10  ;;  %5487 = vmatprep.mubr.f32.mxu0 %v11938_v21  ;;  %5579 = vmatprep.mubr.f32.mxu1 %v11934_v35 }
 0x16a   :  { %v514_v28 = vpop.f32.mrf.mxu0  ;;  %v985_v3 = vpop.f32.mrf.mxu1 }
 0x16b   :  { %11937 = vst [vmem:[#allocation39_spill] sm:$0xff] %v7120_v23  ;;  %v7124_v15 = vadd.f32 %v985_v3, %v492_v20  ;;  %v11944_v3 = vld [vmem:[#allocation57_spill] sm:$0xff] }
 0x16c   :  { %v523_v54 = vpop.f32.mrf.mxu0  ;;  %v990_v1 = vpop.f32.mrf.mxu1  ;;  %5488 = vmatmul.mubr.f32.gmra.mxu0 %v11938_v21  ;;  %5580 = vmatmul.mubr.f32.gmra.mxu1 %v11934_v35 }
 0x16d   :  { %11939 = vst [vmem:[#allocation44_spill] sm:$0xff] %v7124_v15  ;;  %v7128_v18 = vadd.f32 %v990_v1, %v501_v13  ;;  %5489 = vmatprep.mubr.f32.mxu0 %v11941_v24  ;;  %5581 = vmatprep.mubr.f32.mxu1 %v11935_v41 }
 0x16e   :  { %v525_v38 = vpop.f32.mrf.mxu0  ;;  %v992_v10 = vpop.f32.mrf.mxu1 }
 0x16f   :  { %11940 = vst [vmem:[#allocation24_spill] sm:$0xff] %v7128_v18  ;;  %v7132_v44 = vadd.f32 %v992_v10, %v503_v43  ;;  %v11947_v10 = vld [vmem:[#allocation62_spill] sm:$0xff] }
 0x170   :  { %v534_v23 = vpop.f32.mrf.mxu0  ;;  %v997_v47 = vpop.f32.mrf.mxu1  ;;  %5490 = vmatmul.mubr.f32.gmra.mxu0 %v11941_v24  ;;  %5582 = vmatmul.mubr.f32.gmra.mxu1 %v11935_v41 }
 0x171   :  { %11942 = vst [vmem:[#allocation43_spill] sm:$0xff] %v7132_v44  ;;  %v7136_v20 = vadd.f32 %v997_v47, %v512_v12  ;;  %5491 = vmatprep.mubr.f32.mxu0 %v11944_v3  ;;  %5583 = vmatprep.mubr.f32.mxu1 %v11938_v21 }
 0x172   :  { %v536_v35 = vpop.f32.mrf.mxu0  ;;  %v999_v13 = vpop.f32.mrf.mxu1 }
 0x173   :  { %11943 = vst [vmem:[#allocation46_spill] sm:$0xff] %v7136_v20  ;;  %v7140_v1 = vadd.f32 %v999_v13, %v514_v28  ;;  %v11950_v13 = vld [vmem:[#allocation65_spill] sm:$0xff] }
 0x174   :  { %v545_v18 = vpop.f32.mrf.mxu0  ;;  %v1004_v15 = vpop.f32.mrf.mxu1  ;;  %5492 = vmatmul.mubr.f32.gmra.mxu0 %v11944_v3  ;;  %5584 = vmatmul.mubr.f32.gmra.mxu1 %v11938_v21 }
 0x175   :  { %11945 = vst [vmem:[#allocation51_spill] sm:$0xff] %v7140_v1  ;;  %v7144_v43 = vadd.f32 %v1004_v15, %v523_v54  ;;  %5493 = vmatprep.mubr.f32.mxu0 %v11947_v10  ;;  %5585 = vmatprep.mubr.f32.mxu1 %v11941_v24 }
 0x176   :  { %v547_v41 = vpop.f32.mrf.mxu0  ;;  %v1006_v47 = vpop.f32.mrf.mxu1 }
 0x177   :  { %11946 = vst [vmem:[#allocation50_spill] sm:$0xff] %v7144_v43  ;;  %v7148_v12 = vadd.f32 %v1006_v47, %v525_v38  ;;  %v11953_v47 = vld [vmem:[#allocation66_spill] sm:$0xff] }
 0x178   :  { %v556_v20 = vpop.f32.mrf.mxu0  ;;  %v1011_v44 = vpop.f32.mrf.mxu1  ;;  %5494 = vmatmul.mubr.f32.gmra.mxu0 %v11947_v10  ;;  %5586 = vmatmul.mubr.f32.gmra.mxu1 %v11941_v24 }
 0x179   :  { %11948 = vst [vmem:[#allocation56_spill] sm:$0xff] %v7148_v12  ;;  %v7152_v28 = vadd.f32 %v1011_v44, %v534_v23  ;;  %5495 = vmatprep.mubr.f32.mxu0 %v11950_v13  ;;  %5587 = vmatprep.mubr.f32.mxu1 %v11944_v3 }
 0x17a   :  { %v558_v21 = vpop.f32.mrf.mxu0  ;;  %v1013_v15 = vpop.f32.mrf.mxu1 }
 0x17b   :  { %11949 = vst [vmem:[#allocation52_spill] sm:$0xff] %v7152_v28  ;;  %v7156_v54 = vadd.f32 %v1013_v15, %v536_v35  ;;  %v11956_v15 = vld [vmem:[#allocation69_spill] sm:$0xff] }
 0x17c   :  { %v567_v43 = vpop.f32.mrf.mxu0  ;;  %v1018_v1 = vpop.f32.mrf.mxu1  ;;  %5496 = vmatmul.mubr.f32.gmra.mxu0 %v11950_v13  ;;  %5588 = vmatmul.mubr.f32.gmra.mxu1 %v11944_v3 }
 0x17d   :  { %11951 = vst [vmem:[#allocation59_spill] sm:$0xff] %v7156_v54  ;;  %v7160_v38 = vadd.f32 %v1018_v1, %v545_v18  ;;  %5497 = vmatprep.mubr.f32.mxu0 %v11953_v47  ;;  %5589 = vmatprep.mubr.f32.mxu1 %v11947_v10 }
 0x17e   :  { %v569_v23 = vpop.f32.mrf.mxu0  ;;  %v1020_v24 = vpop.f32.mrf.mxu1 }
 0x17f   :  { %11952 = vst [vmem:[#allocation55_spill] sm:$0xff] %v7160_v38  ;;  %v7164_v44 = vadd.f32 %v1020_v24, %v547_v41  ;;  %v11959_v24 = vld [vmem:[#allocation72_spill] sm:$0xff] }
 0x180   :  { %v578_v28 = vpop.f32.mrf.mxu0  ;;  %v1025_v12 = vpop.f32.mrf.mxu1  ;;  %5498 = vmatmul.mubr.f32.gmra.mxu0 %v11953_v47  ;;  %5590 = vmatmul.mubr.f32.gmra.mxu1 %v11947_v10 }
 0x181   :  { %11954 = vst [vmem:[#allocation60_spill] sm:$0xff] %v7164_v44  ;;  %v7168_v35 = vadd.f32 %v1025_v12, %v556_v20  ;;  %5499 = vmatprep.mubr.f32.mxu0 %v11956_v15  ;;  %5591 = vmatprep.mubr.f32.mxu1 %v11950_v13 }
 0x182   :  { %v580_v18 = vpop.f32.mrf.mxu0  ;;  %v1027_v3 = vpop.f32.mrf.mxu1 }
 0x183   :  { %11955 = vst [vmem:[#allocation58_spill] sm:$0xff] %v7168_v35  ;;  %v7172_v1 = vadd.f32 %v1027_v3, %v558_v21  ;;  %v11962_v3 = vld [vmem:[#allocation77_spill] sm:$0xff] }
 0x184   :  { %v589_v38 = vpop.f32.mrf.mxu0  ;;  %v1032_v54 = vpop.f32.mrf.mxu1  ;;  %5500 = vmatmul.mubr.f32.gmra.mxu0 %v11956_v15  ;;  %5592 = vmatmul.mubr.f32.gmra.mxu1 %v11950_v13 }
 0x185   :  { %11957 = vst [vmem:[#allocation5_spill] sm:$0xff] %v7172_v1  ;;  %v7176_v41 = vadd.f32 %v1032_v54, %v567_v43  ;;  %5501 = vmatprep.mubr.f32.mxu0 %v11959_v24  ;;  %5593 = vmatprep.mubr.f32.mxu1 %v11953_v47 }
 0x186   :  { %v591_v20 = vpop.f32.mrf.mxu0  ;;  %v1034_v10 = vpop.f32.mrf.mxu1 }
 0x187   :  { %11958 = vst [vmem:[#allocation12_spill] sm:$0xff] %v7176_v41  ;;  %v7180_v12 = vadd.f32 %v1034_v10, %v569_v23  ;;  %v11964_v10 = vld [vmem:[#allocation78_spill] sm:$0xff] }
 0x188   :  { %v600_v35 = vpop.f32.mrf.mxu0  ;;  %v1039_v44 = vpop.f32.mrf.mxu1  ;;  %5502 = vmatmul.mubr.f32.gmra.mxu0 %v11959_v24  ;;  %5594 = vmatmul.mubr.f32.gmra.mxu1 %v11953_v47 }
 0x189   :  { %11960 = vst [vmem:[#allocation64_spill] sm:$0xff] %v7180_v12  ;;  %v7184_v21 = vadd.f32 %v1039_v44, %v578_v28  ;;  %5503 = vmatprep.mubr.f32.mxu0 %v11962_v3  ;;  %5595 = vmatprep.mubr.f32.mxu1 %v11956_v15 }
 0x18a   :  { %v602_v43 = vpop.f32.mrf.mxu0  ;;  %v1041_v13 = vpop.f32.mrf.mxu1 }
 0x18b   :  { %11961 = vst [vmem:[#allocation61_spill] sm:$0xff] %v7184_v21  ;;  %v7188_v54 = vadd.f32 %v1041_v13, %v580_v18 }
 0x18c   :  { %v611_v41 = vpop.f32.mrf.mxu0  ;;  %v1046_v1 = vpop.f32.mrf.mxu1  ;;  %5504 = vmatmul.mubr.f32.gmra.mxu0 %v11962_v3  ;;  %5596 = vmatmul.mubr.f32.gmra.mxu1 %v11956_v15 }
 0x18d   :  { %v7192_v23 = vadd.f32 %v1046_v1, %v589_v38  ;;  %5505 = vmatprep.mubr.f32.mxu0 %v11964_v10  ;;  %5597 = vmatprep.mubr.f32.mxu1 %v11959_v24  ;;  %v11966_v38 = vld [vmem:[#allocation81_spill] sm:$0xff] }
 0x18e   :  { %v613_v28 = vpop.f32.mrf.mxu0  ;;  %v1048_v47 = vpop.f32.mrf.mxu1 }
 0x18f   :  { %11963 = vst [vmem:[#allocation6_spill] sm:$0xff] %v7192_v23  ;;  %v7196_v44 = vadd.f32 %v1048_v47, %v591_v20 }
 0x190   :  { %v1053_v21 = vpop.f32.mrf.mxu1  ;;  %v1197_v12 = vpop.f32.mrf.mxu0  ;;  %5506 = vmatmul.mubr.f32.gmra.mxu0 %v11964_v10  ;;  %5598 = vmatmul.mubr.f32.gmra.mxu1 %v11959_v24  ;;  %v11967_v24 = vld [vmem:[#allocation86_spill] sm:$0xff] }
 0x191   :  { %11965 = vst [vmem:[#allocation13_spill] sm:$0xff] %v7196_v44  ;;  %v7200_v18 = vadd.f32 %v1053_v21, %v600_v35  ;;  %v1198_v15 = vadd.f32 %v1197_v12, %v6879_v9  ;;  %5507 = vmatprep.mubr.f32.mxu0 %v11966_v38  ;;  %5599 = vmatprep.mubr.f32.mxu1 %v11962_v3 }
 0x192   :  { %v1055_v1 = vpop.f32.mrf.mxu1  ;;  %v1199_v13 = vpop.f32.mrf.mxu0 }
 0x193   :  { %v7205_v23 = vadd.f32 %v1055_v1, %v602_v43  ;;  %v1200_v20 = vadd.f32 %v1199_v13, %v6883_v11 }
 0x194   :  { %v1060_v47 = vpop.f32.mrf.mxu1  ;;  %v1205_v44 = vpop.f32.mrf.mxu0  ;;  %5508 = vmatmul.mubr.f32.gmra.mxu0 %v11966_v38  ;;  %5600 = vmatmul.mubr.f32.gmra.mxu1 %v11962_v3 }
 0x195   :  { %v7210_v35 = vadd.f32 %v1060_v47, %v611_v41  ;;  %v1206_v9 = vadd.f32 %v1205_v44, %v6893_v26  ;;  %5509 = vmatprep.mubr.f32.mxu0 %v11967_v24  ;;  %5601 = vmatprep.mubr.f32.mxu1 %v11964_v10  ;;  %v11968_v26 = vld [vmem:[#allocation89_spill] sm:$0xff] }
 0x196   :  { %v1062_v12 = vpop.f32.mrf.mxu1  ;;  %v1207_v21 = vpop.f32.mrf.mxu0 }
 0x197   :  { %v7215_v43 = vadd.f32 %v1062_v12, %v613_v28  ;;  %v1208_v11 = vadd.f32 %v1207_v21, %v6897_v39 }
 0x198   :  { %v1213_v1 = vpop.f32.mrf.mxu0  ;;  %v1551_v13 = vpop.f32.mrf.mxu1  ;;  %5510 = vmatmul.mubr.f32.gmra.mxu0 %v11967_v24  ;;  %5602 = vmatmul.mubr.f32.gmra.mxu1 %v11964_v10 }
 0x199   :  { %v1214_v41 = vadd.f32 %v1213_v1, %v6907_v19  ;;  %v7221_v3 = vadd.f32 %v1551_v13, %v1198_v15  ;;  %5511 = vmatprep.mubr.f32.mxu0 %v11968_v26  ;;  %5603 = vmatprep.mubr.f32.mxu1 %v11966_v38  ;;  %v11969_v15 = vld [vmem:[#allocation19_spill] sm:$0xff] }
 0x19a   :  { %v1215_v44 = vpop.f32.mrf.mxu0  ;;  %v1553_v47 = vpop.f32.mrf.mxu1 }
 0x19b   :  { %v1216_v28 = vadd.f32 %v1215_v44, %v6911_v60  ;;  %v7226_v12 = vadd.f32 %v1553_v47, %v1200_v20 }
 0x19c   :  { %v1221_v39 = vpop.f32.mrf.mxu0  ;;  %v1560_v21 = vpop.f32.mrf.mxu1  ;;  %5512 = vmatmul.mubr.f32.gmra.mxu0 %v11968_v26  ;;  %5604 = vmatmul.mubr.f32.gmra.mxu1 %v11966_v38 }
 0x19d   :  { %v1222_v19 = vadd.f32 %v1221_v39, %v6921_v61  ;;  %v7231_v10 = vadd.f32 %v1560_v21, %v1206_v9  ;;  %5513 = vmatprep.mubr.f32.mxu0 %v11969_v15  ;;  %5605 = vmatprep.mubr.f32.mxu1 %v11967_v24  ;;  %v11970_v9 = vld [vmem:[#allocation25_spill] sm:$0xff] }
 0x19e   :  { %v1223_v1 = vpop.f32.mrf.mxu0  ;;  %v1562_v13 = vpop.f32.mrf.mxu1 }
 0x19f   :  { %v1224_v60 = vadd.f32 %v1223_v1, %v6925_v46  ;;  %v7236_v20 = vadd.f32 %v1562_v13, %v1208_v11 }
 0x1a0   :  { %v1229_v44 = vpop.f32.mrf.mxu0  ;;  %v1569_v47 = vpop.f32.mrf.mxu1  ;;  %5514 = vmatmul.mubr.f32.gmra.mxu0 %v11969_v15  ;;  %5606 = vmatmul.mubr.f32.gmra.mxu1 %v11967_v24 }
 0x1a1   :  { %v1230_v61 = vadd.f32 %v1229_v44, %v6935_v25  ;;  %v7241_v38 = vadd.f32 %v1569_v47, %v1214_v41  ;;  %5515 = vmatprep.mubr.f32.mxu0 %v11970_v9  ;;  %5607 = vmatprep.mubr.f32.mxu1 %v11968_v26  ;;  %v11971_v41 = vld [vmem:[#allocation29_spill] sm:$0xff] }
 0x1a2   :  { %v1231_v39 = vpop.f32.mrf.mxu0  ;;  %v1571_v21 = vpop.f32.mrf.mxu1 }
 0x1a3   :  { %v1232_v46 = vadd.f32 %v1231_v39, %v6939_v16  ;;  %v7246_v11 = vadd.f32 %v1571_v21, %v1216_v28 }
 0x1a4   :  { %v1237_v1 = vpop.f32.mrf.mxu0  ;;  %v1578_v13 = vpop.f32.mrf.mxu1  ;;  %5516 = vmatmul.mubr.f32.gmra.mxu0 %v11970_v9  ;;  %5608 = vmatmul.mubr.f32.gmra.mxu1 %v11968_v26 }
 0x1a5   :  { %v1238_v25 = vadd.f32 %v1237_v1, %v6949_v4  ;;  %v7251_v24 = vadd.f32 %v1578_v13, %v1222_v19  ;;  %5517 = vmatprep.mubr.f32.mxu0 %v11971_v41  ;;  %5609 = vmatprep.mubr.f32.mxu1 %v11969_v15  ;;  %v11972_v19 = vld [vmem:[#allocation92_spill] sm:$0xff] }
 0x1a6   :  { %v1239_v44 = vpop.f32.mrf.mxu0  ;;  %v1580_v47 = vpop.f32.mrf.mxu1 }
 0x1a7   :  { %v1240_v16 = vadd.f32 %v1239_v44, %v6953_v31  ;;  %v7256_v28 = vadd.f32 %v1580_v47, %v1224_v60 }
 0x1a8   :  { %v1245_v39 = vpop.f32.mrf.mxu0  ;;  %v1587_v21 = vpop.f32.mrf.mxu1  ;;  %5518 = vmatmul.mubr.f32.gmra.mxu0 %v11971_v41  ;;  %5610 = vmatmul.mubr.f32.gmra.mxu1 %v11969_v15 }
 0x1a9   :  { %v1246_v4 = vadd.f32 %v1245_v39, %v6963_v49  ;;  %v7261_v26 = vadd.f32 %v1587_v21, %v1230_v61  ;;  %5519 = vmatprep.mubr.f32.mxu0 %v11972_v19  ;;  %5611 = vmatprep.mubr.f32.mxu1 %v11970_v9  ;;  %v11973_v61 = vld [vmem:[#allocation93_spill] sm:$0xff] }
 0x1aa   :  { %v1247_v1 = vpop.f32.mrf.mxu0  ;;  %v1589_v13 = vpop.f32.mrf.mxu1 }
 0x1ab   :  { %v1248_v31 = vadd.f32 %v1247_v1, %v6967_v48  ;;  %v7266_v60 = vadd.f32 %v1589_v13, %v1232_v46 }
 0x1ac   :  { %v1253_v44 = vpop.f32.mrf.mxu0  ;;  %v1596_v47 = vpop.f32.mrf.mxu1  ;;  %5520 = vmatmul.mubr.f32.gmra.mxu0 %v11972_v19  ;;  %5612 = vmatmul.mubr.f32.gmra.mxu1 %v11970_v9 }
 0x1ad   :  { %v1254_v49 = vadd.f32 %v1253_v44, %v6977_v40  ;;  %v7271_v15 = vadd.f32 %v1596_v47, %v1238_v25  ;;  %5521 = vmatprep.mubr.f32.mxu0 %v11973_v61  ;;  %5613 = vmatprep.mubr.f32.mxu1 %v11971_v41 }
 0x1ae   :  { %v1255_v39 = vpop.f32.mrf.mxu0  ;;  %v1598_v21 = vpop.f32.mrf.mxu1 }
 0x1af   :  { %v1256_v48 = vadd.f32 %v1255_v39, %v6981_v27  ;;  %v7276_v46 = vadd.f32 %v1598_v21, %v1240_v16 }
 0x1b0   :  { %v1261_v1 = vpop.f32.mrf.mxu0  ;;  %v1605_v13 = vpop.f32.mrf.mxu1  ;;  %5522 = vmatmul.mubr.f32.gmra.mxu0 %v11973_v61  ;;  %5614 = vmatmul.mubr.f32.gmra.mxu1 %v11971_v41 }
 0x1b1   :  { %v1262_v40 = vadd.f32 %v1261_v1, %v6991_v53  ;;  %v7281_v9 = vadd.f32 %v1605_v13, %v1246_v4  ;;  %5523 = vmatprep.mubr.f32.mxu0 %v6568_v50  ;;  %5615 = vmatprep.mubr.f32.mxu1 %v11972_v19 }
 0x1b2   :  { %v1263_v25 = vpop.f32.mrf.mxu0  ;;  %v1607_v44 = vpop.f32.mrf.mxu1 }
 0x1b3   :  { %v1264_v27 = vadd.f32 %v1263_v25, %v6995_v0  ;;  %v7286_v16 = vadd.f32 %v1607_v44, %v1248_v31 }
 0x1b4   :  { %v1269_v47 = vpop.f32.mrf.mxu0  ;;  %v1614_v39 = vpop.f32.mrf.mxu1  ;;  %5524 = vmatmul.mubr.f32.gmra.mxu0 %v6568_v50  ;;  %5616 = vmatmul.mubr.f32.gmra.mxu1 %v11972_v19 }
 0x1b5   :  { %v1270_v53 = vadd.f32 %v1269_v47, %v7005_v5  ;;  %v7291_v41 = vadd.f32 %v1614_v39, %v1254_v49  ;;  %5525 = vmatprep.mubr.f32.mxu0 %v6592_v36  ;;  %5617 = vmatprep.mubr.f32.mxu1 %v11973_v61 }
 0x1b6   :  { %v1271_v4 = vpop.f32.mrf.mxu0  ;;  %v1616_v21 = vpop.f32.mrf.mxu1 }
 0x1b7   :  { %v1272_v0 = vadd.f32 %v1271_v4, %v7009_v17  ;;  %v7296_v31 = vadd.f32 %v1616_v21, %v1256_v48 }
 0x1b8   :  { %v1277_v1 = vpop.f32.mrf.mxu0  ;;  %v1623_v13 = vpop.f32.mrf.mxu1  ;;  %5526 = vmatmul.mubr.f32.gmra.mxu0 %v6592_v36  ;;  %5618 = vmatmul.mubr.f32.gmra.mxu1 %v11973_v61 }
 0x1b9   :  { %v1278_v5 = vadd.f32 %v1277_v1, %v7019_v30  ;;  %v7301_v19 = vadd.f32 %v1623_v13, %v1262_v40  ;;  %5527 = vmatprep.mubr.f32.mxu0 %v6607_v52  ;;  %5619 = vmatprep.mubr.f32.mxu1 %v6568_v50 }
 0x1ba   :  { %v1279_v49 = vpop.f32.mrf.mxu0  ;;  %v1625_v25 = vpop.f32.mrf.mxu1 }
 0x1bb   :  { %v1280_v17 = vadd.f32 %v1279_v49, %v7023_v56  ;;  %v7306_v48 = vadd.f32 %v1625_v25, %v1264_v27 }
 0x1bc   :  { %v1285_v44 = vpop.f32.mrf.mxu0  ;;  %v1632_v47 = vpop.f32.mrf.mxu1  ;;  %5528 = vmatmul.mubr.f32.gmra.mxu0 %v6607_v52  ;;  %5620 = vmatmul.mubr.f32.gmra.mxu1 %v6568_v50 }
 0x1bd   :  { %v1286_v30 = vadd.f32 %v1285_v44, %v7033_v63  ;;  %v7311_v61 = vadd.f32 %v1632_v47, %v1270_v53  ;;  %5529 = vmatprep.mubr.f32.mxu0 %v6613_v32  ;;  %5621 = vmatprep.mubr.f32.mxu1 %v6592_v36 }
 0x1be   :  { %v1287_v40 = vpop.f32.mrf.mxu0  ;;  %v1634_v39 = vpop.f32.mrf.mxu1 }
 0x1bf   :  { %v1288_v56 = vadd.f32 %v1287_v40, %v7037_v58  ;;  %v7316_v27 = vadd.f32 %v1634_v39, %v1272_v0 }
 0x1c0   :  { %v1293_v4 = vpop.f32.mrf.mxu0  ;;  %v1641_v21 = vpop.f32.mrf.mxu1  ;;  %5530 = vmatmul.mubr.f32.gmra.mxu0 %v6613_v32  ;;  %5622 = vmatmul.mubr.f32.gmra.mxu1 %v6592_v36 }
 0x1c1   :  { %v1294_v50 = vadd.f32 %v1293_v4, %v7047_v55  ;;  %v7321_v63 = vadd.f32 %v1641_v21, %v1278_v5  ;;  %5531 = vmatprep.mubr.f32.mxu0 %v6628_v29  ;;  %5623 = vmatprep.mubr.f32.mxu1 %v6607_v52  ;;  %v11974_v5 = vld [vmem:[#allocation105_spill] sm:$0xff] }
 0x1c2   :  { %v1295_v53 = vpop.f32.mrf.mxu0  ;;  %v1643_v1 = vpop.f32.mrf.mxu1 }
 0x1c3   :  { %v1296_v58 = vadd.f32 %v1295_v53, %v7051_v6  ;;  %v7326_v0 = vadd.f32 %v1643_v1, %v1280_v17 }
 0x1c4   :  { %v1301_v13 = vpop.f32.mrf.mxu0  ;;  %v1650_v49 = vpop.f32.mrf.mxu1  ;;  %5532 = vmatmul.mubr.f32.gmra.mxu0 %v6628_v29  ;;  %5624 = vmatmul.mubr.f32.gmra.mxu1 %v6607_v52 }
 0x1c5   :  { %v1302_v36 = vadd.f32 %v1301_v13, %v7061_v51  ;;  %v7331_v55 = vadd.f32 %v1650_v49, %v1286_v30  ;;  %5533 = vmatprep.mubr.f32.mxu0 %v11974_v5  ;;  %5625 = vmatprep.mubr.f32.mxu1 %v6613_v32 }
 0x1c6   :  { %v1303_v25 = vpop.f32.mrf.mxu0  ;;  %v1652_v44 = vpop.f32.mrf.mxu1 }
 0x1c7   :  { %v1304_v6 = vadd.f32 %v1303_v25, %v7065_v22  ;;  %v7336_v17 = vadd.f32 %v1652_v44, %v1288_v56 }
 0x1c8   :  { %v1309_v47 = vpop.f32.mrf.mxu0  ;;  %v1659_v40 = vpop.f32.mrf.mxu1  ;;  %5534 = vmatmul.mubr.f32.gmra.mxu0 %v11974_v5  ;;  %5626 = vmatmul.mubr.f32.gmra.mxu1 %v6613_v32 }
 0x1c9   :  { %v1310_v52 = vadd.f32 %v1309_v47, %v7072_v45  ;;  %v7341_v51 = vadd.f32 %v1659_v40, %v1294_v50  ;;  %5535 = vmatprep.mubr.f32.mxu0 %v6667_v14  ;;  %5627 = vmatprep.mubr.f32.mxu1 %v6628_v29 }
 0x1ca   :  { %v1311_v30 = vpop.f32.mrf.mxu0  ;;  %v1661_v39 = vpop.f32.mrf.mxu1 }
 0x1cb   :  { %v1312_v22 = vadd.f32 %v1311_v30, %v7076_v2  ;;  %v7346_v56 = vadd.f32 %v1661_v39, %v1296_v58 }
 0x1cc   :  { %v1317_v4 = vpop.f32.mrf.mxu0  ;;  %v1668_v21 = vpop.f32.mrf.mxu1  ;;  %5536 = vmatmul.mubr.f32.gmra.mxu0 %v6667_v14  ;;  %5628 = vmatmul.mubr.f32.gmra.mxu1 %v6628_v29 }
 0x1cd   :  { %11975 = vst [vmem:[#allocation7_spill] sm:$0xff] %v7346_v56  ;;  %v1318_v32 = vadd.f32 %v1317_v4, %v7080_v7  ;;  %v7351_v45 = vadd.f32 %v1668_v21, %v1302_v36  ;;  %5629 = vmatprep.mubr.f32.mxu1 %v11974_v5 }
 0x1ce   :  { %v1319_v50 = vpop.f32.mrf.mxu0  ;;  %v1670_v53 = vpop.f32.mrf.mxu1 }
 0x1cf   :  { %11976 = vst [vmem:[#allocation16_spill] sm:$0xff] %v7351_v45  ;;  %v1320_v1 = vadd.f32 %v1319_v50, %v7084_v62  ;;  %v7355_v13 = vadd.f32 %v1670_v53, %v1304_v6 }
 0x1d0   :  { %v1325_v2 = vpop.f32.mrf.mxu0  ;;  %v1677_v58 = vpop.f32.mrf.mxu1  ;;  %5630 = vmatmul.mubr.f32.gmra.mxu1 %v11974_v5 }
 0x1d1   :  { %11977 = vst [vmem:[#allocation68_spill] sm:$0xff] %v7355_v13  ;;  %v1326_v49 = vadd.f32 %v1325_v2, %v7088_v8  ;;  %v7359_v25 = vadd.f32 %v1677_v58, %v1310_v52  ;;  %5631 = vmatprep.mubr.f32.mxu1 %v6667_v14 }
 0x1d2   :  { %v1327_v29 = vpop.f32.mrf.mxu0  ;;  %v1679_v7 = vpop.f32.mrf.mxu1 }
 0x1d3   :  { %11978 = vst [vmem:[#allocation63_spill] sm:$0xff] %v7359_v25  ;;  %v1328_v36 = vadd.f32 %v1327_v29, %v7092_v37  ;;  %v7363_v44 = vadd.f32 %v1679_v7, %v1312_v22  ;;  %v11985_v29 = vld [vmem:[#allocation22_spill] sm:$0xff] }
 0x1d4   :  { %v1333_v47 = vpop.f32.mrf.mxu0  ;;  %v1686_v62 = vpop.f32.mrf.mxu1  ;;  %5632 = vmatmul.mubr.f32.gmra.mxu1 %v6667_v14 }
 0x1d5   :  { %11979 = vst [vmem:[#allocation8_spill] sm:$0xff] %v7363_v44  ;;  %v1334_v6 = vadd.f32 %v1333_v47, %v7096_v34  ;;  %v7367_v40 = vadd.f32 %v1686_v62, %v1318_v32  ;;  %v11987_v62 = vld [vmem:[#allocation39_spill] sm:$0xff] }
 0x1d6   :  { %v1335_v5 = vpop.f32.mrf.mxu0  ;;  %v1688_v8 = vpop.f32.mrf.mxu1 }
 0x1d7   :  { %11980 = vst [vmem:[#allocation17_spill] sm:$0xff] %v7367_v40  ;;  %v1336_v52 = vadd.f32 %v1335_v5, %v7100_v42  ;;  %v7370_v30 = vadd.f32 %v1688_v8, %v1320_v1 }
 0x1d8   :  { %v1341_v39 = vpop.f32.mrf.mxu0  ;;  %v1695_v4 = vpop.f32.mrf.mxu1 }
 0x1d9   :  { %11981 = vst [vmem:[#allocation9_spill] sm:$0xff] %v7370_v30  ;;  %v1342_v37 = vadd.f32 %v1341_v39, %v7104_v57  ;;  %v7373_v22 = vadd.f32 %v1695_v4, %v1326_v49  ;;  %v11989_v39 = vld [vmem:[#allocation44_spill] sm:$0xff] }
 0x1da   :  { %v1343_v21 = vpop.f32.mrf.mxu0  ;;  %v1697_v50 = vpop.f32.mrf.mxu1 }
 0x1db   :  { %11982 = vst [vmem:[#allocation21_spill] sm:$0xff] %v7373_v22  ;;  %v1344_v14 = vadd.f32 %v1343_v21, %v7108_v59  ;;  %v7376_v53 = vadd.f32 %v1697_v50, %v1328_v36  ;;  %v11991_v50 = vld [vmem:[#allocation24_spill] sm:$0xff] }
 0x1dc   :  { %v1349_v34 = vpop.f32.mrf.mxu0  ;;  %v1704_v32 = vpop.f32.mrf.mxu1 }
 0x1dd   :  { %11983 = vst [vmem:[#allocation71_spill] sm:$0xff] %v7376_v53  ;;  %v1350_v2 = vadd.f32 %v1349_v34, %v7112_v33  ;;  %v7379_v58 = vadd.f32 %v1704_v32, %v1334_v6 }
 0x1de   :  { %v1351_v42 = vpop.f32.mrf.mxu0  ;;  %v1706_v1 = vpop.f32.mrf.mxu1 }
 0x1df   :  { %11984 = vst [vmem:[#allocation67_spill] sm:$0xff] %v7379_v58  ;;  %v1352_v7 = vadd.f32 %v1351_v42, %v11985_v29  ;;  %v7382_v47 = vadd.f32 %v1706_v1, %v1336_v52  ;;  %v11993_v1 = vld [vmem:[#allocation43_spill] sm:$0xff] }
 0x1e0   :  { %v1357_v57 = vpop.f32.mrf.mxu0  ;;  %v1713_v49 = vpop.f32.mrf.mxu1 }
 0x1e1   :  { %11986 = vst [vmem:[#allocation10_spill] sm:$0xff] %v7382_v47  ;;  %v1358_v5 = vadd.f32 %v1357_v57, %v11987_v62  ;;  %v7385_v8 = vadd.f32 %v1713_v49, %v1342_v37  ;;  %v11995_v49 = vld [vmem:[#allocation46_spill] sm:$0xff] }
 0x1e2   :  { %v1359_v59 = vpop.f32.mrf.mxu0  ;;  %v1715_v36 = vpop.f32.mrf.mxu1 }
 0x1e3   :  { %11988 = vst [vmem:[#allocation23_spill] sm:$0xff] %v7385_v8  ;;  %v1360_v4 = vadd.f32 %v1359_v59, %v11989_v39  ;;  %v7388_v21 = vadd.f32 %v1715_v36, %v1344_v14  ;;  %v11997_v36 = vld [vmem:[#allocation51_spill] sm:$0xff] }
 0x1e4   :  { %v1365_v33 = vpop.f32.mrf.mxu0  ;;  %v1722_v6 = vpop.f32.mrf.mxu1 }
 0x1e5   :  { %11990 = vst [vmem:[#allocation11_spill] sm:$0xff] %v7388_v21  ;;  %v1366_v34 = vadd.f32 %v1365_v33, %v11991_v50  ;;  %v7391_v32 = vadd.f32 %v1722_v6, %v1350_v2  ;;  %v11999_v6 = vld [vmem:[#allocation50_spill] sm:$0xff] }
 0x1e6   :  { %v1367_v52 = vpop.f32.mrf.mxu0  ;;  %v1724_v42 = vpop.f32.mrf.mxu1 }
 0x1e7   :  { %11992 = vst [vmem:[#allocation27_spill] sm:$0xff] %v7391_v32  ;;  %v1368_v29 = vadd.f32 %v1367_v52, %v11993_v1  ;;  %v7394_v47 = vadd.f32 %v1724_v42, %v1352_v7  ;;  %v12001_v42 = vld [vmem:[#allocation56_spill] sm:$0xff] }
 0x1e8   :  { %v1373_v37 = vpop.f32.mrf.mxu0  ;;  %v1731_v57 = vpop.f32.mrf.mxu1 }
 0x1e9   :  { %11994 = vst [vmem:[#allocation74_spill] sm:$0xff] %v7394_v47  ;;  %v1374_v62 = vadd.f32 %v1373_v37, %v11995_v49  ;;  %v7397_v8 = vadd.f32 %v1731_v57, %v1358_v5  ;;  %v12003_v57 = vld [vmem:[#allocation52_spill] sm:$0xff] }
 0x1ea   :  { %v1375_v14 = vpop.f32.mrf.mxu0  ;;  %v1733_v59 = vpop.f32.mrf.mxu1 }
 0x1eb   :  { %11996 = vst [vmem:[#allocation70_spill] sm:$0xff] %v7397_v8  ;;  %v1376_v39 = vadd.f32 %v1375_v14, %v11997_v36  ;;  %v7400_v21 = vadd.f32 %v1733_v59, %v1360_v4  ;;  %v12005_v59 = vld [vmem:[#allocation59_spill] sm:$0xff] }
 0x1ec   :  { %v1381_v2 = vpop.f32.mrf.mxu0  ;;  %v1740_v33 = vpop.f32.mrf.mxu1 }
 0x1ed   :  { %11998 = vst [vmem:[#allocation14_spill] sm:$0xff] %v7400_v21  ;;  %v1382_v50 = vadd.f32 %v1381_v2, %v11999_v6  ;;  %v7403_v32 = vadd.f32 %v1740_v33, %v1366_v34  ;;  %v12007_v33 = vld [vmem:[#allocation55_spill] sm:$0xff] }
 0x1ee   :  { %v1383_v7 = vpop.f32.mrf.mxu0  ;;  %v1742_v52 = vpop.f32.mrf.mxu1 }
 0x1ef   :  { %12000 = vst [vmem:[#allocation28_spill] sm:$0xff] %v7403_v32  ;;  %v1384_v1 = vadd.f32 %v1383_v7, %v12001_v42  ;;  %v7406_v47 = vadd.f32 %v1742_v52, %v1368_v29  ;;  %v12009_v52 = vld [vmem:[#allocation60_spill] sm:$0xff] }
 0x1f0   :  { %v1389_v5 = vpop.f32.mrf.mxu0  ;;  %v1749_v37 = vpop.f32.mrf.mxu1 }
 0x1f1   :  { %12002 = vst [vmem:[#allocation15_spill] sm:$0xff] %v7406_v47  ;;  %v1390_v49 = vadd.f32 %v1389_v5, %v12003_v57  ;;  %v7409_v8 = vadd.f32 %v1749_v37, %v1374_v62  ;;  %v12011_v37 = vld [vmem:[#allocation58_spill] sm:$0xff] }
 0x1f2   :  { %v1391_v4 = vpop.f32.mrf.mxu0  ;;  %v1751_v14 = vpop.f32.mrf.mxu1 }
 0x1f3   :  { %12004 = vst [vmem:[#allocation31_spill] sm:$0xff] %v7409_v8  ;;  %v1392_v36 = vadd.f32 %v1391_v4, %v12005_v59  ;;  %v7412_v21 = vadd.f32 %v1751_v14, %v1376_v39  ;;  %v12013_v14 = vld [vmem:[#allocation5_spill] sm:$0xff] }
 0x1f4   :  { %v1397_v34 = vpop.f32.mrf.mxu0  ;;  %v1758_v2 = vpop.f32.mrf.mxu1 }
 0x1f5   :  { %12006 = vst [vmem:[#allocation75_spill] sm:$0xff] %v7412_v21  ;;  %v1398_v6 = vadd.f32 %v1397_v34, %v12007_v33  ;;  %v7415_v32 = vadd.f32 %v1758_v2, %v1382_v50  ;;  %v12015_v2 = vld [vmem:[#allocation12_spill] sm:$0xff] }
 0x1f6   :  { %v1399_v29 = vpop.f32.mrf.mxu0  ;;  %v1760_v7 = vpop.f32.mrf.mxu1 }
 0x1f7   :  { %12008 = vst [vmem:[#allocation73_spill] sm:$0xff] %v7415_v32  ;;  %v1400_v42 = vadd.f32 %v1399_v29, %v12009_v52  ;;  %v7418_v47 = vadd.f32 %v1760_v7, %v1384_v1  ;;  %v12017_v7 = vld [vmem:[#allocation64_spill] sm:$0xff] }
 0x1f8   :  { %v1405_v62 = vpop.f32.mrf.mxu0  ;;  %v1767_v5 = vpop.f32.mrf.mxu1 }
 0x1f9   :  { %12010 = vst [vmem:[#allocation32_spill] sm:$0xff] %v7418_v47  ;;  %v1406_v57 = vadd.f32 %v1405_v62, %v12011_v37  ;;  %v7421_v8 = vadd.f32 %v1767_v5, %v1390_v49  ;;  %v12019_v5 = vld [vmem:[#allocation61_spill] sm:$0xff] }
 0x1fa   :  { %v1407_v39 = vpop.f32.mrf.mxu0  ;;  %v1769_v4 = vpop.f32.mrf.mxu1 }
 0x1fb   :  { %12012 = vst [vmem:[#allocation34_spill] sm:$0xff] %v7421_v8  ;;  %v1408_v59 = vadd.f32 %v1407_v39, %v12013_v14  ;;  %v7424_v21 = vadd.f32 %v1769_v4, %v1392_v36 }
 0x1fc   :  { %v1413_v50 = vpop.f32.mrf.mxu0  ;;  %v1776_v34 = vpop.f32.mrf.mxu1 }
 0x1fd   :  { %12014 = vst [vmem:[#allocation80_spill] sm:$0xff] %v7424_v21  ;;  %v1414_v33 = vadd.f32 %v1413_v50, %v12015_v2  ;;  %v7427_v32 = vadd.f32 %v1776_v34, %v1398_v6  ;;  %v12022_v34 = vld [vmem:[#allocation6_spill] sm:$0xff] }
 0x1fe   :  { %v1415_v1 = vpop.f32.mrf.mxu0  ;;  %v1778_v29 = vpop.f32.mrf.mxu1 }
 0x1ff   :  { %12016 = vst [vmem:[#allocation76_spill] sm:$0xff] %v7427_v32  ;;  %v1416_v52 = vadd.f32 %v1415_v1, %v12017_v7  ;;  %v7430_v47 = vadd.f32 %v1778_v29, %v1400_v42  ;;  %v12024_v29 = vld [vmem:[#allocation13_spill] sm:$0xff] }
 0x200   :  { %v1421_v49 = vpop.f32.mrf.mxu0  ;;  %v1785_v62 = vpop.f32.mrf.mxu1 }
 0x201   :  { %12018 = vst [vmem:[#allocation37_spill] sm:$0xff] %v7430_v47  ;;  %v1422_v37 = vadd.f32 %v1421_v49, %v12019_v5  ;;  %v7433_v8 = vadd.f32 %v1785_v62, %v1406_v57 }
 0x202   :  { %v1423_v36 = vpop.f32.mrf.mxu0  ;;  %v1787_v39 = vpop.f32.mrf.mxu1 }
 0x203   :  { %12020 = vst [vmem:[#allocation38_spill] sm:$0xff] %v7433_v8  ;;  %v1424_v4 = vadd.f32 %v1423_v36, %v7188_v54  ;;  %v7436_v14 = vadd.f32 %v1787_v39, %v1408_v59 }
 0x204   :  { %v1429_v6 = vpop.f32.mrf.mxu0  ;;  %v1794_v50 = vpop.f32.mrf.mxu1 }
 0x205   :  { %12021 = vst [vmem:[#allocation83_spill] sm:$0xff] %v7436_v14  ;;  %v1430_v2 = vadd.f32 %v1429_v6, %v12022_v34  ;;  %v7439_v32 = vadd.f32 %v1794_v50, %v1414_v33 }
 0x206   :  { %v1431_v42 = vpop.f32.mrf.mxu0  ;;  %v1796_v1 = vpop.f32.mrf.mxu1 }
 0x207   :  { %12023 = vst [vmem:[#allocation79_spill] sm:$0xff] %v7439_v32  ;;  %v1432_v7 = vadd.f32 %v1431_v42, %v12024_v29  ;;  %v7442_v47 = vadd.f32 %v1796_v1, %v1416_v52 }
 0x208   :  { %v1437_v57 = vpop.f32.mrf.mxu0  ;;  %v1803_v49 = vpop.f32.mrf.mxu1 }
 0x209   :  { %12025 = vst [vmem:[#allocation41_spill] sm:$0xff] %v7442_v47  ;;  %v1438_v62 = vadd.f32 %v1437_v57, %v7200_v18  ;;  %v7445_v5 = vadd.f32 %v1803_v49, %v1422_v37 }
 0x20a   :  { %v1439_v54 = vpop.f32.mrf.mxu0  ;;  %v1805_v59 = vpop.f32.mrf.mxu1 }
 0x20b   :  { %12026 = vst [vmem:[#allocation30_spill] sm:$0xff] %v7445_v5  ;;  %v1440_v36 = vadd.f32 %v1439_v54, %v7205_v23  ;;  %v7448_v39 = vadd.f32 %v1805_v59, %v1424_v4 }
 0x20c   :  { %v1445_v33 = vpop.f32.mrf.mxu0  ;;  %v1812_v6 = vpop.f32.mrf.mxu1 }
 0x20d   :  { %12027 = vst [vmem:[#allocation42_spill] sm:$0xff] %v7448_v39  ;;  %v1446_v50 = vadd.f32 %v1445_v33, %v7210_v35  ;;  %v7451_v34 = vadd.f32 %v1812_v6, %v1430_v2 }
 0x20e   :  { %v1447_v52 = vpop.f32.mrf.mxu0  ;;  %v1814_v42 = vpop.f32.mrf.mxu1 }
 0x20f   :  { %12028 = vst [vmem:[#allocation84_spill] sm:$0xff] %v7451_v34  ;;  %v1448_v1 = vadd.f32 %v1447_v52, %v7215_v43  ;;  %v7454_v29 = vadd.f32 %v1814_v42, %v1432_v7 }
 0x210   :  { %v1821_v18 = vpop.f32.mrf.mxu1  ;;  %v1998_v35 = vpop.f32.mrf.mxu0 }
 0x211   :  { %12029 = vst [vmem:[#allocation82_spill] sm:$0xff] %v7454_v29  ;;  %v7456_v37 = vadd.f32 %v1821_v18, %v1438_v62  ;;  %v1999_v33 = vadd.f32 %v1998_v35, %v7221_v3 }
 0x212   :  { %v1823_v57 = vpop.f32.mrf.mxu1  ;;  %v2000_v6 = vpop.f32.mrf.mxu0 }
 0x213   :  { %12030 = vst [vmem:[#allocation88_spill] sm:$0xff] %v7456_v37  ;;  %v7458_v49 = vadd.f32 %v1823_v57, %v1440_v36  ;;  %v2001_v62 = vadd.f32 %v2000_v6, %v7226_v12 }
 0x214   :  { %v1830_v23 = vpop.f32.mrf.mxu1  ;;  %v2005_v52 = vpop.f32.mrf.mxu0 }
 0x215   :  { %12031 = vst [vmem:[#allocation85_spill] sm:$0xff] %v7458_v49  ;;  %v7460_v4 = vadd.f32 %v1830_v23, %v1446_v50  ;;  %v2006_v50 = vadd.f32 %v2005_v52, %v7231_v10 }
 0x216   :  { %v1832_v54 = vpop.f32.mrf.mxu1 }
 0x217   :  { %12032 = vst [vmem:[#allocation90_spill] sm:$0xff] %v7460_v4  ;;  %v7462_v59 = vadd.f32 %v1832_v54, %v1448_v1  ;;  %v2007_v1 = vpop.f32.mrf.mxu0 }
 0x218   :  { %v2319_v2 = vpop.f32.mrf.mxu1  ;;  %v2008_v35 = vadd.f32 %v2007_v1, %v7236_v20 }
 0x219   :  { %12033 = vst [vmem:[#allocation87_spill] sm:$0xff] %v7462_v59  ;;  %v7465_v43 = vadd.f32 %v2319_v2, %v1999_v33  ;;  %v2012_v2 = vpop.f32.mrf.mxu0 }
 0x21a   :  { %v2321_v7 = vpop.f32.mrf.mxu1  ;;  %v2013_v52 = vadd.f32 %v2012_v2, %v7241_v38 }
 0x21b   :  { %v11613_v36 = vclamps-f32 %v7465_v43, 0.99999  ;;  %v7470_v18 = vadd.f32 %v2321_v7, %v2001_v62  ;;  %v12036_v56 = vclamps-f32 %v7465_v43, 0.99999 }
 0x21c   :  { %v2326_v42 = vpop.f32.mrf.mxu1 }
 0x21d   :  { %v7472_v57 = vadd.f32 %v2326_v42, %v2006_v50  ;;  %v7476_v3 = vand.u32 2147483647, %v11613_v36  ;;  %v11612_v23 = vclamps-f32 %v7470_v18, 0.99999  ;;  %v2014_v50 = vpop.f32.mrf.mxu0  ;;  %vm7602_vm7 = vcmp.ge.f32.partialorder %v12036_v56, 0.0 }
 0x21e   :  { %v2328_v54 = vpop.f32.mrf.mxu1  ;;  %v2015_v38 = vadd.f32 %v2014_v50, %v7246_v11 }
 0x21f   :  { %v11614_v12 = vclamps-f32 %v7472_v57, 0.99999  ;;  %v3117_v33 = vsub.f32 1.0, %v7476_v3  ;;  %v7482_v10 = vadd.f32 %v2328_v54, %v2008_v35  ;;  %v7486_v6 = vand.u32 2147483647, %v11612_v23 }
 0x220   :  { %v2333_v7 = vpop.f32.mrf.mxu1  ;;  %v2733_v35 = vmul.f32 -0.0187293, %v7476_v3 }
 0x221   :  { %v7491_v62 = vand.u32 2147483647, %v11614_v12  ;;  %v7493_v42 = vmax.f32 %v3117_v33, 0.0  ;;  %v11615_v20 = vclamps-f32 %v7482_v10, 0.99999  ;;  %v3118_v1 = vsub.f32 1.0, %v7486_v6  ;;  %v2019_v12 = vpop.f32.mrf.mxu0 }
 0x222   :  { %v7497_v54 = vadd.f32 %v2333_v7, %v2013_v52  ;;  %v2335_v36 = vpop.f32.mrf.mxu1  ;;  %v4078_v7 = vlaneseq  ;;  %v2797_v4 = vadd.f32 0.074261, %v2733_v35  ;;  %v2734_v49 = vmul.f32 -0.0187293, %v7486_v6 }
 0x223   :  { %v3119_v23 = vsub.f32 1.0, %v7491_v62  ;;  %5640 = vrsqrt.f32 %v7493_v42  ;;  %v7505_v2 = vand.u32 2147483647, %v11615_v20  ;;  %v7507_v33 = vmax.f32 %v3118_v1, 0.0 }
 0x224   :  { %v11616_v59 = vclamps-f32 %v7497_v54, 0.99999  ;;  %v7510_v52 = vadd.f32 %v2335_v36, %v2015_v38  ;;  %v2340_v29 = vpop.f32.mrf.mxu1  ;;  %v2020_v11 = vadd.f32 %v2019_v12, %v7251_v24  ;;  %v2735_v1 = vmul.f32 -0.0187293, %v7491_v62  ;;  %v2021_v38 = vpop.f32.mrf.mxu0 }
 0x225   :  { %v7513_v37 = vmax.f32 %v3119_v23, 0.0  ;;  %v3120_v50 = vsub.f32 1.0, %v7505_v2  ;;  %5642 = vrsqrt.f32 %v7507_v33  ;;  %v4079_v36 = vshrl.u32 %v4078_v7, 7 }
 0x226   :  { %v7521_v20 = vand.u32 2147483647, %v11616_v59  ;;  %v11617_v35 = vclamps-f32 %v7510_v52, 0.99999  ;;  %v7524_v34 = vadd.f32 %v2340_v29, %v2020_v11  ;;  %v2861_v23 = vmul.f32 %v2797_v4, %v7476_v3  ;;  %v2026_v32 = vpop.f32.mrf.mxu0 }
 0x227   :  { %v2798_v39 = vadd.f32 0.074261, %v2734_v49  ;;  %5644 = vrsqrt.f32 %v7513_v37  ;;  %v7528_v24 = vmax.f32 %v3120_v50, 0.0  ;;  %v2799_v12 = vadd.f32 0.074261, %v2735_v1  ;;  %v2342_v1 = vpop.f32.mrf.mxu1 }
 0x228   :  { %v2736_v5 = vmul.f32 -0.0187293, %v7505_v2  ;;  %v3121_v47 = vsub.f32 1.0, %v7521_v20  ;;  %v4080_v59 = vsub.s32 0, %v4079_v36  ;;  %v7534_v7 = vand.u32 2147483647, %v11617_v35  ;;  %v2028_v53 = vpop.f32.mrf.mxu0 }
 0x229   :  { %v3981_v49 = vld [vmem:[%s11382_s3] sm:$0x3]  ;;  %v4084_v4 = vsub.s32 1, %v4079_v36  ;;  %v2925_v11 = vadd.f32 -0.2121144, %v2861_v23  ;;  %v2862_v50 = vmul.f32 %v2798_v39, %v7486_v6  ;;  %v2022_v14 = vadd.f32 %v2021_v38, %v7256_v28 }
 0x22a   :  { %5646 = vrsqrt.f32 %v7528_v24  ;;  %v2863_v21 = vmul.f32 %v2799_v12, %v7491_v62  ;;  %v2800_v35 = vadd.f32 0.074261, %v2736_v5  ;;  %v7544_v58 = vmax.f32 %v3121_v47, 0.0  ;;  %v2347_v12 = vpop.f32.mrf.mxu1 }
 0x22b   :  { %v7546_v29 = vrot.slane %v3981_v49, %v4080_v59  ;;  %v3122_v22 = vsub.f32 1.0, %v7534_v7  ;;  %v12034_v36 = vclamps-f32 %v7524_v34, 0.99999  ;;  %v7553_v39 = vadd.f32 %v2342_v1, %v2022_v14 }
 0x22c   :  { %v7555_v28 = vrot.slane %v3981_v49, %v4084_v4  ;;  %v2989_v38 = vmul.f32 %v2925_v11, %v7476_v3  ;;  %v2926_v30 = vadd.f32 -0.2121144, %v2862_v50  ;;  %v2027_v5 = vadd.f32 %v2026_v32, %v7261_v26 }
 0x22d   :  { %v7551_v23 = vand.u32 2147483647, %v12034_v36  ;;  %vm3247_vm0 = vcmp.eq.f32.partialorder %v7493_v42, inf  ;;  %vm3249_vm1 = vcmp.eq.f32.partialorder %v7493_v42, 0.0  ;;  %v3250_v59 = vand.u32 2147483648, %v7493_v42 }
 0x22e   :  { %vm3254_vm2 = vcmp.eq.f32.partialorder %v7507_v33, inf  ;;  %v2927_v14 = vadd.f32 -0.2121144, %v2863_v21  ;;  %v2864_v49 = vmul.f32 %v2800_v35, %v7505_v2  ;;  %5648 = vrsqrt.f32 %v7544_v58 }
 0x22f   :  { %v2737_v4 = vmul.f32 -0.0187293, %v7521_v20  ;;  %v7567_v26 = vmax.f32 %v3122_v22, 0.0  ;;  %v3123_v32 = vsub.f32 1.0, %v7551_v23  ;;  %v3053_v50 = vadd.f32 1.5707288, %v2989_v38 }
 0x230   :  { %v5641_v8 = vpop.eup %5640  ;;  %v2990_v1 = vmul.f32 %v2926_v30, %v7486_v6  ;;  %vm3256_vm3 = vcmp.eq.f32.partialorder %v7507_v33, 0.0  ;;  %v3257_v21 = vand.u32 2147483648, %v7507_v33  ;;  %v7574_v35 = vadd.f32 %v2347_v12, %v2027_v5  ;;  %v2349_v12 = vpop.f32.mrf.mxu1 }
 0x231   :  { %v3246_v47 = vmul.f32 %v5641_v8, %v7493_v42  ;;  %v2033_v8 = vpop.f32.mrf.mxu0  ;;  %vm3261_vm4 = vcmp.eq.f32.partialorder %v7513_v37, inf  ;;  %v3264_v40 = vand.u32 2147483648, %v7513_v37  ;;  %v2738_v11 = vmul.f32 -0.0187293, %v7534_v7 }
 0x232   :  { %v5643_v3 = vpop.eup %5642  ;;  %v2991_v30 = vmul.f32 %v2927_v14, %v7491_v62  ;;  %vm3263_vm5 = vcmp.eq.f32.partialorder %v7513_v37, 0.0  ;;  %v2928_v6 = vadd.f32 -0.2121144, %v2864_v49  ;;  %v2029_v5 = vadd.f32 %v2028_v53, %v7266_v60 }
 0x233   :  { %v3248_v22 = vsel %vm3247_vm0, %v7493_v42, %v3246_v47  ;;  %v3253_v38 = vmul.f32 %v5643_v3, %v7507_v33  ;;  %v2801_v44 = vadd.f32 0.074261, %v2737_v4  ;;  %5650 = vrsqrt.f32 %v7567_v26  ;;  %v2035_v25 = vpop.f32.mrf.mxu0 }
 0x234   :  { %v5645_v36 = vpop.eup %5644  ;;  %v7587_v47 = vmax.f32 %v3123_v32, 0.0  ;;  %v12035_v13 = vclamps-f32 %v7553_v39, 0.99999  ;;  %v3251_v3 = vsel %vm3249_vm1, %v3250_v59, %v3248_v22  ;;  %v3054_v62 = vadd.f32 1.5707288, %v2990_v1  ;;  %v2354_v22 = vpop.f32.mrf.mxu1 }
 0x235   :  { %v3260_v14 = vmul.f32 %v5645_v36, %v7513_v37  ;;  %v11618_v49 = vclamps-f32 %v7574_v35, 0.99999  ;;  %vm3268_vm6 = vcmp.eq.f32.partialorder %v7528_v24, inf  ;;  %v3271_v60 = vand.u32 2147483648, %v7528_v24  ;;  %v2040_v43 = vpop.f32.mrf.mxu0 }
 0x236   :  { %v7591_v45 = vand.u32 2147483647, %v12035_v13  ;;  %v2802_v53 = vadd.f32 0.074261, %v2738_v11  ;;  %v2034_v4 = vadd.f32 %v2033_v8, %v7271_v15  ;;  %v3255_v42 = vsel %vm3254_vm2, %v7507_v33, %v3253_v38 }
 0x237   :  { %v5647_v32 = vpop.eup %5646  ;;  %v3055_v59 = vadd.f32 1.5707288, %v2991_v30  ;;  %v2992_v1 = vmul.f32 %v2928_v6, %v7505_v2  ;;  %v7610_v36 = vadd.f32 %v2349_v12, %v2029_v5  ;;  %v3693_v11 = vmul.f32 %v3251_v3, %v3053_v50  ;;  %v2042_v33 = vpop.f32.mrf.mxu0 }
 0x238   :  { %vm3270_vm8 = vcmp.eq.f32.partialorder %v7528_v24, 0.0  ;;  %v2865_v15 = vmul.f32 %v2801_v44, %v7521_v20  ;;  %5652 = vrsqrt.f32 %v7587_v47  ;;  %v3124_v56 = vsub.f32 1.0, %v7591_v45 }
 0x239   :  { %v3262_v8 = vsel %vm3261_vm4, %v7513_v37, %v3260_v14  ;;  %v2739_v38 = vmul.f32 -0.0187293, %v7551_v23  ;;  %v2036_v2 = vadd.f32 %v2035_v25, %v7276_v46  ;;  %v7623_v50 = vand.u32 2147483647, %v11618_v49 }
 0x23a   :  { %v3258_v44 = vsel %vm3256_vm3, %v3257_v21, %v3255_v42  ;;  %v3267_v30 = vmul.f32 %v5647_v32, %v7528_v24  ;;  %v2866_v6 = vmul.f32 %v2802_v53, %v7534_v7  ;;  %v7629_v5 = vadd.f32 %v2354_v22, %v2034_v4  ;;  %v2356_v32 = vpop.f32.mrf.mxu1 }
 0x23b   :  { %v3056_v12 = vadd.f32 1.5707288, %v2992_v1  ;;  %vm3275_vm9 = vcmp.eq.f32.partialorder %v7544_v58, inf  ;;  %v7633_v3 = vadd.f32 %v2040_v43, %v7281_v9  ;;  %v5002_v46 = vclamps-f32 %v7610_v36, 0.99999  ;;  %v5649_v25 = vpop.eup %5648  ;;  %v7908_v36 = vpop.permute.xlu0 %3983 }
 0x23c   :  { %v3821_v14 = vsub.f32 3.1415927, %v3693_v11  ;;  %v12039_v49 = vclamps-f32 %v7470_v18, 0.99999  ;;  %v3265_v21 = vsel %vm3263_vm5, %v3264_v40, %v3262_v8  ;;  %v2929_v53 = vadd.f32 -0.2121144, %v2865_v15 }
 0x23d   :  { %v7644_v4 = vmax.f32 %v3124_v56, 0.0  ;;  %v3694_v42 = vmul.f32 %v3258_v44, %v3054_v62  ;;  %vm3277_vm11 = vcmp.eq.f32.partialorder %v7544_v58, 0.0  ;;  %v3278_v9 = vand.u32 2147483648, %v7544_v58 }
 0x23e   :  { %vm7638_vm10 = vcmp.ge.f32.partialorder %v12039_v49, 0.0  ;;  %v2803_v1 = vadd.f32 0.074261, %v2739_v38  ;;  %v3125_v22 = vsub.f32 1.0, %v7623_v50  ;;  %v12042_v18 = vclamps-f32 %v7472_v57, 0.99999 }
 0x23f   :  { %v3269_v40 = vsel %vm3268_vm6, %v7528_v24, %v3267_v30  ;;  %v2930_v37 = vadd.f32 -0.2121144, %v2866_v6  ;;  %v2740_v62 = vmul.f32 -0.0187293, %v7591_v45  ;;  %v11620_v15 = vclamps-f32 %v7629_v5, 0.99999 }
 0x240   :  { %vm7651_vm12 = vcmp.ge.f32.partialorder %v12042_v18, 0.0  ;;  %v3695_v56 = vmul.f32 %v3265_v21, %v3055_v59  ;;  %v3274_v43 = vmul.f32 %v5649_v25, %v7544_v58  ;;  %v7663_v8 = vand.u32 2147483647, %v5002_v46  ;;  %v5651_v30 = vpop.eup %5650 }
 0x241   :  { %v7665_v57 = vadd.f32 %v2356_v32, %v2036_v2  ;;  %v7669_v38 = vsel %vm7602_vm7, %v3693_v11, %v3821_v14  ;;  %v2993_v44 = vmul.f32 %v2929_v53, %v7521_v20  ;;  %vm3282_vm13 = vcmp.eq.f32.partialorder %v7567_v26, inf }
 0x242   :  { %5654 = vrsqrt.f32 %v7644_v4  ;;  %v3822_v59 = vsub.f32 3.1415927, %v3694_v42  ;;  %v3272_v6 = vsel %vm3270_vm8, %v3271_v60, %v3269_v40  ;;  %v2867_v25 = vmul.f32 %v2803_v1, %v7551_v23 }
 0x243   :  { %v7677_v21 = vmax.f32 %v3125_v22, 0.0  ;;  %v2994_v2 = vmul.f32 %v2930_v37, %v7534_v7  ;;  %vm3284_vm14 = vcmp.eq.f32.partialorder %v7567_v26, 0.0  ;;  %v2804_v13 = vadd.f32 0.074261, %v2740_v62 }
 0x244   :  { %v7683_v20 = vand.u32 2147483647, %v11620_v15  ;;  %v3823_v11 = vsub.f32 3.1415927, %v3695_v56  ;;  %v12045_v14 = vclamps-f32 %v7482_v10, 0.99999  ;;  %v3276_v24 = vsel %vm3275_vm9, %v7544_v58, %v3274_v43 }
 0x245   :  { %v3126_v7 = vsub.f32 1.0, %v7663_v8  ;;  %v11619_v60 = vclamps-f32 %v7665_v57, 0.99999  ;;  %v3696_v32 = vmul.f32 %v3272_v6, %v3056_v12  ;;  %v3057_v1 = vadd.f32 1.5707288, %v2993_v44  ;;  %v5653_v40 = vpop.eup %5652 }
 0x246   :  { %vm7687_vm15 = vcmp.ge.f32.partialorder %v12045_v14, 0.0  ;;  %v3281_v22 = vmul.f32 %v5651_v30, %v7567_v26  ;;  %v2741_v18 = vmul.f32 -0.0187293, %v7623_v50  ;;  %v7700_v10 = vsel %vm7638_vm10, %v3694_v42, %v3822_v59  ;;  %v2361_v30 = vpop.f32.mrf.mxu1 }
 0x247   :  { %v3285_v37 = vand.u32 2147483648, %v7567_v26  ;;  %v2931_v62 = vadd.f32 -0.2121144, %v2867_v25  ;;  %5656 = vrsqrt.f32 %v7677_v21  ;;  %v3279_v43 = vsel %vm3277_vm11, %v3278_v9, %v3276_v24 }
 0x248   :  { %v3058_v14 = vadd.f32 1.5707288, %v2994_v2  ;;  %v2868_v12 = vmul.f32 %v2804_v13, %v7591_v45  ;;  %v3127_v44 = vsub.f32 1.0, %v7683_v20  ;;  %v7710_v6 = vsel %vm7651_vm12, %v3695_v56, %v3823_v11  ;;  %v2363_v15 = vpop.f32.mrf.mxu1 }
 0x249   :  { %v2742_v42 = vmul.f32 -0.0187293, %v7663_v8  ;;  %v7713_v59 = vmax.f32 %v3126_v7, 0.0  ;;  %v7717_v25 = vand.u32 2147483647, %v11619_v60  ;;  %v3283_v49 = vsel %vm3282_vm13, %v7567_v26, %v3281_v22 }
 0x24a   :  { %v3824_v58 = vsub.f32 3.1415927, %v3696_v32  ;;  %v12048_v9 = vclamps-f32 %v7497_v54, 0.99999  ;;  %v3288_v56 = vmul.f32 %v5653_v40, %v7587_v47  ;;  %v2805_v13 = vadd.f32 0.074261, %v2741_v18 }
 0x24b   :  { %v3697_v11 = vmul.f32 %v3279_v43, %v3057_v1  ;;  %v2995_v24 = vmul.f32 %v2931_v62, %v7551_v23  ;;  %vm3289_vm1 = vcmp.eq.f32.partialorder %v7587_v47, inf  ;;  %v7732_v7 = vadd.f32 %v2361_v30, %v7633_v3  ;;  %v2047_v62 = vpop.f32.mrf.mxu0 }
 0x24c   :  { %vm7721_vm0 = vcmp.ge.f32.partialorder %v12048_v9, 0.0  ;;  %vm3291_vm2 = vcmp.eq.f32.partialorder %v7587_v47, 0.0  ;;  %v2932_v54 = vadd.f32 -0.2121144, %v2868_v12  ;;  %v2043_v9 = vadd.f32 %v2042_v33, %v7286_v16 }
 0x24d   :  { %v7736_v60 = vmax.f32 %v3127_v44, 0.0  ;;  %v3286_v22 = vsel %vm3284_vm14, %v3285_v37, %v3283_v49  ;;  %v2806_v18 = vadd.f32 0.074261, %v2742_v42  ;;  %5658 = vrsqrt.f32 %v7713_v59  ;;  %v2368_v42 = vpop.f32.mrf.mxu1 }
 0x24e   :  { %v3128_v23 = vsub.f32 1.0, %v7717_v25  ;;  %v7744_v3 = vsel %vm7687_vm15, %v3696_v32, %v3824_v58  ;;  %v3290_v1 = vsel %vm3289_vm1, %v7587_v47, %v3288_v56  ;;  %v3292_v40 = vand.u32 2147483648, %v7587_v47 }
 0x24f   :  { %v2869_v16 = vmul.f32 %v2805_v13, %v7623_v50  ;;  %v5655_v43 = vpop.eup %5654  ;;  %v3825_v12 = vsub.f32 3.1415927, %v3697_v11  ;;  %v3059_v26 = vadd.f32 1.5707288, %v2995_v24  ;;  %v11624_v37 = vclamps-f32 %v7732_v7, 0.99999  ;;  %v2049_v13 = vpop.f32.mrf.mxu0 }
 0x250   :  { %v7750_v44 = vadd.f32 %v2363_v15, %v2043_v9  ;;  %v3698_v30 = vmul.f32 %v3286_v22, %v3058_v14  ;;  %v12051_v33 = vclamps-f32 %v7510_v52, 0.99999  ;;  %v2996_v32 = vmul.f32 %v2932_v54, %v7591_v45 }
 0x251   :  { %vm3296_vm4 = vcmp.eq.f32.partialorder %v7644_v4, inf  ;;  %5660 = vrsqrt.f32 %v7736_v60  ;;  %v3293_v58 = vsel %vm3291_vm2, %v3292_v40, %v3290_v1  ;;  %vm3298_vm5 = vcmp.eq.f32.partialorder %v7644_v4, 0.0  ;;  %v2370_v40 = vpop.f32.mrf.mxu1 }
 0x252   :  { %vm7754_vm3 = vcmp.ge.f32.partialorder %v12051_v33, 0.0  ;;  %v2870_v15 = vmul.f32 %v2806_v18, %v7663_v8  ;;  %v7765_v14 = vmax.f32 %v3128_v23, 0.0  ;;  %v3295_v52 = vmul.f32 %v5655_v43, %v7644_v4  ;;  %v2054_v33 = vpop.f32.mrf.mxu0 }
 0x253   :  { %v2933_v49 = vadd.f32 -0.2121144, %v2869_v16  ;;  %v2048_v56 = vadd.f32 %v2047_v62, %v7291_v41  ;;  %v2743_v45 = vmul.f32 -0.0187293, %v7683_v20  ;;  %v7772_v24 = vsel %vm7721_vm0, %v3697_v11, %v3825_v12 }
 0x254   :  { %v12054_v47 = vclamps-f32 %v7524_v34, 0.99999  ;;  %v3299_v9 = vand.u32 2147483648, %v7644_v4  ;;  %v7783_v22 = vand.u32 2147483647, %v11624_v37  ;;  %v5657_v18 = vpop.eup %5656  ;;  %v3699_v1 = vmul.f32 %v3293_v58, %v3059_v26 }
 0x255   :  { %v11623_v41 = vclamps-f32 %v7750_v44, 0.99999  ;;  %v3826_v23 = vsub.f32 3.1415927, %v3698_v30  ;;  %v3060_v2 = vadd.f32 1.5707288, %v2996_v32  ;;  %v7786_v11 = vadd.f32 %v2368_v42, %v2048_v56 }
 0x256   :  { %vm7776_vm6 = vcmp.ge.f32.partialorder %v12054_v47, 0.0  ;;  %v2934_v34 = vadd.f32 -0.2121144, %v2870_v15  ;;  %v2050_v16 = vadd.f32 %v2049_v13, %v7296_v31  ;;  %v2744_v62 = vmul.f32 -0.0187293, %v7717_v25 }
 0x257   :  { %5662 = vrsqrt.f32 %v7765_v14  ;;  %v3297_v43 = vsel %vm3296_vm4, %v7644_v4, %v3295_v52  ;;  %v2997_v12 = vmul.f32 %v2933_v49, %v7623_v50  ;;  %vm3303_vm7 = vcmp.eq.f32.partialorder %v7677_v21, inf }
 0x258   :  { %v2807_v26 = vadd.f32 0.074261, %v2743_v45  ;;  %v3302_v32 = vmul.f32 %v5657_v18, %v7677_v21  ;;  %v3129_v42 = vsub.f32 1.0, %v7783_v22  ;;  %v7800_v31 = vand.u32 2147483647, %v11623_v41 }
 0x259   :  { %v7802_v58 = vadd.f32 %v2370_v40, %v2050_v16  ;;  %v3827_v15 = vsub.f32 3.1415927, %v3699_v1  ;;  %vm3305_vm8 = vcmp.eq.f32.partialorder %v7677_v21, 0.0  ;;  %v3306_v52 = vand.u32 2147483648, %v7677_v21 }
 0x25a   :  { %v11621_v50 = vclamps-f32 %v7786_v11, 0.99999  ;;  %v7809_v49 = vsel %vm7754_vm3, %v3698_v30, %v3826_v23  ;;  %v2998_v56 = vmul.f32 %v2934_v34, %v7663_v8  ;;  %v2808_v45 = vadd.f32 0.074261, %v2744_v62  ;;  %v5659_v47 = vpop.eup %5658  ;;  %v2375_v23 = vpop.f32.mrf.mxu1 }
 0x25b   :  { %v2055_v13 = vadd.f32 %v2054_v33, %v7301_v19  ;;  %v3300_v18 = vsel %vm3298_vm5, %v3299_v9, %v3297_v43  ;;  %v3061_v40 = vadd.f32 1.5707288, %v2997_v12  ;;  %vm3310_vm9 = vcmp.eq.f32.partialorder %v7713_v59, inf }
 0x25c   :  { %v2871_v16 = vmul.f32 %v2807_v26, %v7683_v20  ;;  %v3304_v53 = vsel %vm3303_vm7, %v7677_v21, %v3302_v32  ;;  %vm3312_vm10 = vcmp.eq.f32.partialorder %v7713_v59, 0.0  ;;  %v7821_v30 = vmax.f32 %v3129_v42, 0.0  ;;  %v2377_v41 = vpop.f32.mrf.mxu1 }
 0x25d   :  { %v3130_v8 = vsub.f32 1.0, %v7800_v31  ;;  %v11622_v19 = vclamps-f32 %v7802_v58, 0.99999  ;;  %v7827_v4 = vsel %vm7776_vm6, %v3699_v1, %v3827_v15  ;;  %v3313_v9 = vand.u32 2147483648, %v7713_v59 }
 0x25e   :  { %v2745_v34 = vmul.f32 -0.0187293, %v7783_v22  ;;  %v7833_v62 = vand.u32 2147483647, %v11621_v50  ;;  %v5661_v43 = vpop.eup %5660  ;;  %v3700_v12 = vmul.f32 %v3300_v18, %v3060_v2  ;;  %v12057_v26 = vclamps-f32 %v7553_v39, 0.99999  ;;  %v2056_v39 = vpop.f32.mrf.mxu0 }
 0x25f   :  { %v3062_v32 = vadd.f32 1.5707288, %v2998_v56  ;;  %v3309_v54 = vmul.f32 %v5659_v47, %v7713_v59  ;;  %v2872_v1 = vmul.f32 %v2808_v45, %v7717_v25  ;;  %v3307_v42 = vsel %vm3305_vm8, %v3306_v52, %v3304_v53 }
 0x260   :  { %vm7837_vm11 = vcmp.ge.f32.partialorder %v12057_v26, 0.0  ;;  %v2935_v15 = vadd.f32 -0.2121144, %v2871_v16  ;;  %vm3317_vm12 = vcmp.eq.f32.partialorder %v7736_v60, inf  ;;  %v7846_v50 = vadd.f32 %v2375_v23, %v2055_v13 }
 0x261   :  { %5664 = vrsqrt.f32 %v7821_v30  ;;  %v2746_v2 = vmul.f32 -0.0187293, %v7800_v31  ;;  %v7850_v18 = vmax.f32 %v3130_v8, 0.0  ;;  %v7854_v56 = vand.u32 2147483647, %v11622_v19 }
 0x262   :  { %v3316_v45 = vmul.f32 %v5661_v43, %v7736_v60  ;;  %vm3319_vm13 = vcmp.eq.f32.partialorder %v7736_v60, 0.0  ;;  %v2809_v21 = vadd.f32 0.074261, %v2745_v34  ;;  %v3131_v52 = vsub.f32 1.0, %v7833_v62 }
 0x263   :  { %v3828_v13 = vsub.f32 3.1415927, %v3700_v12  ;;  %v3311_v47 = vsel %vm3310_vm9, %v7713_v59, %v3309_v54  ;;  %v3320_v16 = vand.u32 2147483648, %v7736_v60  ;;  %v2936_v53 = vadd.f32 -0.2121144, %v2872_v1  ;;  %v2061_v1 = vpop.f32.mrf.mxu0 }
 0x264   :  { %v5663_v8 = vpop.eup %5662  ;;  %v3701_v23 = vmul.f32 %v3307_v42, %v3061_v40  ;;  %v12060_v26 = vclamps-f32 %v7574_v35, 0.99999  ;;  %v2999_v34 = vmul.f32 %v2935_v15, %v7683_v20  ;;  %vm3324_vm15 = vcmp.eq.f32.partialorder %v7765_v14, inf }
 0x265   :  { %v11627_v43 = vclamps-f32 %v7846_v50, 0.99999  ;;  %v2057_v54 = vadd.f32 %v2056_v39, %v7306_v48  ;;  %v2810_v37 = vadd.f32 0.074261, %v2746_v2  ;;  %5666 = vrsqrt.f32 %v7850_v18  ;;  %v2063_v33 = vpop.f32.mrf.mxu0 }
 0x266   :  { %vm7865_vm14 = vcmp.ge.f32.partialorder %v12060_v26, 0.0  ;;  %v3132_v40 = vsub.f32 1.0, %v7854_v56  ;;  %v3314_v35 = vsel %vm3312_vm10, %v3313_v9, %v3311_v47  ;;  %v3318_v20 = vsel %vm3317_vm12, %v7736_v60, %v3316_v45 }
 0x267   :  { %v2873_v42 = vmul.f32 %v2809_v21, %v7783_v22  ;;  %v7881_v15 = vmax.f32 %v3131_v52, 0.0  ;;  %v3000_v26 = vmul.f32 %v2936_v53, %v7717_v25  ;;  %v3323_v48 = vmul.f32 %v5663_v8, %v7765_v14 }
 0x268   :  { %vm3326_vm0 = vcmp.eq.f32.partialorder %v7765_v14, 0.0  ;;  %v7886_v39 = vadd.f32 %v2377_v41, %v2057_v54  ;;  %v7890_v59 = vsel %vm7837_vm11, %v3700_v12, %v3828_v13  ;;  %v3829_v9 = vsub.f32 3.1415927, %v3701_v23 }
 0x269   :  { %vm7894_vm1 = vcmp.ge.f32.partialorder %v5002_v46, 0.0  ;;  %v3327_v45 = vand.u32 2147483648, %v7765_v14  ;;  %v7901_v25 = vand.u32 2147483647, %v11627_v43  ;;  %v3702_v21 = vmul.f32 %v3314_v35, %v3062_v32 }
 0x26a   :  { %v3321_v41 = vsel %vm3319_vm13, %v3320_v16, %v3318_v20  ;;  %v2874_v12 = vmul.f32 %v2810_v37, %v7800_v31  ;;  %v7906_v52 = vmax.f32 %v3132_v40, 0.0  ;;  %v3063_v46 = vadd.f32 1.5707288, %v2999_v34  ;;  %v2382_v34 = vpop.f32.mrf.mxu1 }
 0x26b   :  { %v2937_v13 = vadd.f32 -0.2121144, %v2873_v42  ;;  %v2747_v47 = vmul.f32 -0.0187293, %v7833_v62  ;;  %5668 = vrsqrt.f32 %v7881_v15  ;;  %vm4087_vm2 = vcmp.eq.s32.totalorder %v7908_v36, %v7555_v28 }
 0x26c   :  { %v12065_v32 = vclamps-f32 %v7629_v5, 0.99999  ;;  %v3064_v37 = vadd.f32 1.5707288, %v3000_v26  ;;  %v3325_v16 = vsel %vm3324_vm15, %v7765_v14, %v3323_v48  ;;  %v2062_v53 = vadd.f32 %v2061_v1, %v7311_v61  ;;  %v2068_v61 = vpop.f32.mrf.mxu0 }
 0x26d   :  { %v11625_v8 = vclamps-f32 %v7886_v39, 0.99999  ;;  %vm4086_vm4 = vcmp.eq.s32.totalorder %v7908_v36, %v7546_v29  ;;  %v3703_v54 = vmul.f32 %v3321_v41, %v3063_v46  ;;  %v2064_v5 = vadd.f32 %v2063_v33, %v7316_v27 }
 0x26e   :  { %vm7916_vm3 = vcmp.ge.f32.partialorder %v12065_v32, 0.0  ;;  %v2748_v40 = vmul.f32 -0.0187293, %v7854_v56  ;;  %v3133_v35 = vsub.f32 1.0, %v7901_v25  ;;  %v7932_v20 = vsel %vm7865_vm14, %v3701_v23, %v3829_v9  ;;  %v5665_v1 = vpop.eup %5664  ;;  %v2070_v60 = vpop.f32.mrf.mxu0 }
 0x26f   :  { %v3830_v42 = vsub.f32 3.1415927, %v3702_v21  ;;  %v2938_v26 = vadd.f32 -0.2121144, %v2874_v12  ;;  %5670 = vrsqrt.f32 %v7906_v52  ;;  %v3328_v48 = vsel %vm3326_vm0, %v3327_v45, %v3325_v16  ;;  %v2384_v12 = vpop.f32.mrf.mxu1 }
 0x270   :  { %v3001_v41 = vmul.f32 %v2937_v13, %v7783_v22  ;;  %vm3331_vm5 = vcmp.eq.f32.partialorder %v7821_v30, inf  ;;  %v2811_v27 = vadd.f32 0.074261, %v2747_v47  ;;  %vm3333_vm6 = vcmp.eq.f32.partialorder %v7821_v30, 0.0 }
 0x271   :  { %v3334_v19 = vand.u32 2147483648, %v7821_v30  ;;  %v7943_v23 = vand.u32 2147483647, %v11625_v8  ;;  %v7945_v9 = vadd.f32 %v2382_v34, %v2062_v53  ;;  %v3831_v33 = vsub.f32 3.1415927, %v3703_v54 }
 0x272   :  { %v12068_v14 = vclamps-f32 %v7665_v57, 0.99999  ;;  %v2812_v22 = vadd.f32 0.074261, %v2748_v40  ;;  %v2069_v46 = vadd.f32 %v2068_v61, %v7321_v63  ;;  %v7954_v13 = vmax.f32 %v3133_v35, 0.0  ;;  %v5667_v34 = vpop.eup %5666 }
 0x273   :  { %v7958_v47 = vsel %vm7894_vm1, %v3702_v21, %v3830_v42  ;;  %v3704_v32 = vmul.f32 %v3328_v48, %v3064_v37  ;;  %v3330_v16 = vmul.f32 %v5665_v1, %v7821_v30  ;;  %v3002_v53 = vmul.f32 %v2938_v26, %v7800_v31 }
 0x274   :  { %vm7949_vm7 = vcmp.ge.f32.partialorder %v12068_v14, 0.0  ;;  %v3065_v57 = vadd.f32 1.5707288, %v3001_v41  ;;  %vm3338_vm8 = vcmp.eq.f32.partialorder %v7850_v18, inf  ;;  %v2875_v14 = vmul.f32 %v2811_v27, %v7833_v62 }
 0x275   :  { %v7964_v40 = vadd.f32 %v2384_v12, %v2064_v5  ;;  %vm3340_vm9 = vcmp.eq.f32.partialorder %v7850_v18, 0.0  ;;  %v3134_v63 = vsub.f32 1.0, %v7943_v23  ;;  %v11626_v2 = vclamps-f32 %v7945_v9, 0.99999 }
 0x276   :  { %v4278_v21 = vmul.f32 %v7669_v38, %v7669_v38  ;;  %v4279_v31 = vmul.f32 %v7700_v10, %v7700_v10  ;;  %v7975_v37 = vsel %vm7916_vm3, %v3703_v54, %v3831_v33  ;;  %v3341_v35 = vand.u32 2147483648, %v7850_v18 }
 0x277   :  { %12071 = vst [vmem:[#allocation20_spill] sm:$0xff] %v7975_v37  ;;  %v2876_v5 = vmul.f32 %v2812_v22, %v7854_v56  ;;  %5672 = vrsqrt.f32 %v7954_v13  ;;  %v3832_v42 = vsub.f32 3.1415927, %v3704_v32  ;;  %v3332_v26 = vsel %vm3331_vm5, %v7821_v30, %v3330_v16  ;;  %v2389_v16 = vpop.f32.mrf.mxu1 }
 0x278   :  { %v3066_v61 = vadd.f32 1.5707288, %v3002_v53  ;;  %v3337_v1 = vmul.f32 %v5667_v34, %v7850_v18  ;;  %v2939_v48 = vadd.f32 -0.2121144, %v2875_v14  ;;  %vm3345_vm10 = vcmp.eq.f32.partialorder %v7881_v15, inf  ;;  %v5669_v27 = vpop.eup %5668 }
 0x279   :  { %v11628_v54 = vclamps-f32 %v7964_v40, 0.99999  ;;  %v4343_v41 = vsel %vm4087_vm2, %v4279_v31, 0.0  ;;  %v2749_v12 = vmul.f32 -0.0187293, %v7901_v25  ;;  %v7990_v33 = vmax.f32 %v3134_v63, 0.0  ;;  %v8003_v63 = vpop.permute.xlu0 %3986 }
 0x27a   :  { %v7994_v22 = vand.u32 2147483647, %v11626_v2  ;;  %v4342_v53 = vsel %vm4086_vm4, %v4278_v21, 0.0  ;;  %v3335_v34 = vsel %vm3333_vm6, %v3334_v19, %v3332_v26  ;;  %vm3347_vm11 = vcmp.eq.f32.partialorder %v7881_v15, 0.0 }
 0x27b   :  { %v2940_v14 = vadd.f32 -0.2121144, %v2876_v5  ;;  %v2750_v31 = vmul.f32 -0.0187293, %v7943_v23  ;;  %v4566_v8 = vadd.f32 %v4343_v41, %v4342_v53  ;;  %v8007_v2 = vsel %vm7949_vm7, %v3704_v32, %v3832_v42  ;;  %v2075_v42 = vpop.f32.mrf.mxu0 }
 0x27c   :  { %12072 = vst [vmem:[#allocation26_spill] sm:$0xff] %v8007_v2  ;;  %v3339_v43 = vsel %vm3338_vm8, %v7850_v18, %v3337_v1  ;;  %v3348_v21 = vand.u32 2147483648, %v7881_v15  ;;  %vm3352_vm12 = vcmp.eq.f32.partialorder %v7906_v52, inf  ;;  %v5671_v30 = vpop.eup %5670  ;;  %vm4088_vm13 = vcmp.eq.s32.totalorder %v8003_v63, %v7546_v29 }
 0x27d   :  { %vm4089_vm14 = vcmp.eq.s32.totalorder %v8003_v63, %v7555_v28  ;;  %v12073_v19 = vclamps-f32 %v7732_v7, 0.99999  ;;  %v3003_v32 = vmul.f32 %v2939_v48, %v7833_v62  ;;  %v3344_v5 = vmul.f32 %v5669_v27, %v7881_v15  ;;  %4567 = vadd.xlane.f32.xlu0 %v4566_v8 }
 0x27e   :  { %v8028_v26 = vand.u32 2147483647, %v11628_v54  ;;  %v8030_v1 = vadd.f32 %v2389_v16, %v2069_v46  ;;  %v3705_v41 = vmul.f32 %v3335_v34, %v3065_v57  ;;  %v2813_v53 = vadd.f32 0.074261, %v2749_v12  ;;  %v2391_v12 = vpop.f32.mrf.mxu1 }
 0x27f   :  { %vm8020_vm15 = vcmp.ge.f32.partialorder %v12073_v19, 0.0  ;;  %5674 = vrsqrt.f32 %v7990_v33  ;;  %v3135_v7 = vsub.f32 1.0, %v7994_v22  ;;  %v3342_v19 = vsel %vm3340_vm9, %v3341_v35, %v3339_v43  ;;  %v2077_v43 = vpop.f32.mrf.mxu0 }
 0x280   :  { %v3004_v62 = vmul.f32 %v2940_v14, %v7854_v56  ;;  %vm3354_vm0 = vcmp.eq.f32.partialorder %v7906_v52, 0.0  ;;  %v2814_v48 = vadd.f32 0.074261, %v2750_v31  ;;  %v3351_v27 = vmul.f32 %v5671_v30, %v7906_v52 }
 0x281   :  { %v3355_v46 = vand.u32 2147483648, %v7906_v52  ;;  %v2071_v8 = vadd.f32 %v2070_v60, %v7326_v0  ;;  %v2751_v57 = vmul.f32 -0.0187293, %v7994_v22  ;;  %v3067_v16 = vadd.f32 1.5707288, %v3003_v32 }
 0x282   :  { %v3346_v18 = vsel %vm3345_vm10, %v7881_v15, %v3344_v5  ;;  %v3136_v56 = vsub.f32 1.0, %v8028_v26  ;;  %v11633_v35 = vclamps-f32 %v8030_v1, 0.99999  ;;  %v3833_v34 = vsub.f32 3.1415927, %v3705_v41 }
 0x283   :  { %v3706_v14 = vmul.f32 %v3342_v19, %v3066_v61  ;;  %v2877_v31 = vmul.f32 %v2813_v53, %v7901_v25  ;;  %v8048_v30 = vmax.f32 %v3135_v7, 0.0  ;;  %v3068_v0 = vadd.f32 1.5707288, %v3004_v62 }
 0x284   :  { %v2878_v60 = vmul.f32 %v2814_v48, %v7943_v23  ;;  %v2076_v32 = vadd.f32 %v2075_v42, %v7331_v55  ;;  %v8052_v54 = vadd.f32 %v2391_v12, %v2071_v8  ;;  %v5673_v2 = vpop.eup %5672  ;;  %v12076_v5 = vclamps-f32 %v7750_v44, 0.99999  ;;  %v2396_v55 = vpop.f32.mrf.mxu1 }
 0x285   :  { %v3349_v61 = vsel %vm3347_vm11, %v3348_v21, %v3346_v18  ;;  %v3353_v53 = vsel %vm3352_vm12, %v7906_v52, %v3351_v27  ;;  %v2815_v7 = vadd.f32 0.074261, %v2751_v57  ;;  %v8066_v19 = vadd.f32 %v2077_v43, %v7336_v17 }
 0x286   :  { %vm8056_vm1 = vcmp.ge.f32.partialorder %v12076_v5, 0.0  ;;  %v8068_v42 = vmax.f32 %v3136_v56, 0.0  ;;  %v8072_v44 = vand.u32 2147483647, %v11633_v35  ;;  %v4280_v62 = vmul.f32 %v7710_v6, %v7710_v6 }
 0x287   :  { %v4281_v15 = vmul.f32 %v7744_v3, %v7744_v3  ;;  %v8080_v21 = vsel %vm8020_vm15, %v3705_v41, %v3833_v34  ;;  %v3834_v48 = vsub.f32 3.1415927, %v3706_v14  ;;  %v2941_v17 = vadd.f32 -0.2121144, %v2877_v31 }
 0x288   :  { %5676 = vrsqrt.f32 %v8048_v30  ;;  %v12079_v27 = vclamps-f32 %v7786_v11, 0.99999  ;;  %v3358_v57 = vmul.f32 %v5673_v2, %v7954_v13  ;;  %v2942_v12 = vadd.f32 -0.2121144, %v2878_v60  ;;  %v8108_v60 = vpop.permute.xlu1 %3989 }
 0x289   :  { %v11632_v18 = vclamps-f32 %v8052_v54, 0.99999  ;;  %v8091_v43 = vadd.f32 %v2396_v55, %v2076_v32  ;;  %v3707_v45 = vmul.f32 %v3349_v61, %v3067_v16  ;;  %v3356_v41 = vsel %vm3354_vm0, %v3355_v46, %v3353_v53 }
 0x28a   :  { %vm8085_vm3 = vcmp.ge.f32.partialorder %v12079_v27, 0.0  ;;  %v4344_v56 = vsel %vm4088_vm13, %v4280_v62, 0.0  ;;  %v4345_v11 = vsel %vm4089_vm14, %v4281_v15, 0.0  ;;  %v2879_v34 = vmul.f32 %v2815_v7, %v7994_v22  ;;  %v2082_v27 = vpop.f32.mrf.mxu0 }
 0x28b   :  { %5678 = vrsqrt.f32 %v8068_v42  ;;  %v3137_v2 = vsub.f32 1.0, %v8072_v44  ;;  %v4569_v31 = vadd.f32 %v4345_v11, %v4344_v56  ;;  %vm3359_vm5 = vcmp.eq.f32.partialorder %v7954_v13, inf }
 0x28c   :  { %vm3361_vm6 = vcmp.eq.f32.partialorder %v7954_v13, 0.0  ;;  %v3362_v52 = vand.u32 2147483648, %v7954_v13  ;;  %v2752_v46 = vmul.f32 -0.0187293, %v8028_v26  ;;  %v5675_v16 = vpop.eup %5674  ;;  %v12082_v32 = vclamps-f32 %v7802_v58, 0.99999  ;;  %v2084_v8 = vpop.f32.mrf.mxu0 }
 0x28d   :  { %v3005_v61 = vmul.f32 %v2941_v17, %v7901_v25  ;;  %v3360_v53 = vsel %vm3359_vm5, %v7954_v13, %v3358_v57  ;;  %v8120_v7 = vand.u32 2147483647, %v11632_v18  ;;  %v11631_v55 = vclamps-f32 %v8091_v43, 0.99999  ;;  %4570 = vadd.xlane.f32.xlu1 %v4569_v31 }
 0x28e   :  { %vm8112_vm7 = vcmp.ge.f32.partialorder %v12082_v32, 0.0  ;;  %vm4090_vm8 = vcmp.eq.s32.totalorder %v8108_v60, %v7546_v29  ;;  %vm4091_vm9 = vcmp.eq.s32.totalorder %v8108_v60, %v7555_v28  ;;  %v3835_v58 = vsub.f32 3.1415927, %v3707_v45 }
 0x28f   :  { %v3708_v62 = vmul.f32 %v3356_v41, %v3068_v0  ;;  %v3006_v15 = vmul.f32 %v2942_v12, %v7943_v23  ;;  %vm3366_vm10 = vcmp.eq.f32.partialorder %v7990_v33, inf  ;;  %v8131_v25 = vsel %vm8056_vm1, %v3706_v14, %v3834_v48 }
 0x290   :  { %vm3368_vm11 = vcmp.eq.f32.partialorder %v7990_v33, 0.0  ;;  %v2943_v17 = vadd.f32 -0.2121144, %v2879_v34  ;;  %v8134_v57 = vmax.f32 %v3137_v2, 0.0  ;;  %v3363_v56 = vsel %vm3361_vm6, %v3362_v52, %v3360_v53  ;;  %v2398_v53 = vpop.f32.mrf.mxu1 }
 0x291   :  { %v3365_v11 = vmul.f32 %v5675_v16, %v7990_v33  ;;  %v2816_v0 = vadd.f32 0.074261, %v2752_v46  ;;  %v2753_v23 = vmul.f32 -0.0187293, %v8072_v44  ;;  %v3069_v12 = vadd.f32 1.5707288, %v3005_v61 }
 0x292   :  { %v3369_v41 = vand.u32 2147483648, %v7990_v33  ;;  %v3138_v37 = vsub.f32 1.0, %v8120_v7  ;;  %v8144_v14 = vand.u32 2147483647, %v11631_v55  ;;  %v8148_v48 = vsel %vm8085_vm3, %v3707_v45, %v3835_v58 }
 0x293   :  { %v3836_v13 = vsub.f32 3.1415927, %v3708_v62  ;;  %v12085_v34 = vclamps-f32 %v7846_v50, 0.99999  ;;  %v3070_v31 = vadd.f32 1.5707288, %v3006_v15  ;;  %v2083_v52 = vadd.f32 %v2082_v27, %v7341_v51 }
 0x294   :  { %v3709_v46 = vmul.f32 %v3363_v56, %v3069_v12  ;;  %v3007_v16 = vmul.f32 %v2943_v17, %v7994_v22  ;;  %vm3373_vm15 = vcmp.eq.f32.partialorder %v8048_v30, inf  ;;  %5680 = vrsqrt.f32 %v8134_v57 }
 0x295   :  { %vm8152_vm12 = vcmp.ge.f32.partialorder %v12085_v34, 0.0  ;;  %v3367_v45 = vsel %vm3366_vm10, %v7990_v33, %v3365_v11  ;;  %v2880_v50 = vmul.f32 %v2816_v0, %v8028_v26  ;;  %v2817_v32 = vadd.f32 0.074261, %v2753_v23  ;;  %v5677_v58 = vpop.eup %5676  ;;  %v12088_v11 = vld [vmem:[#allocation7_spill] sm:$0xff] }
 0x296   :  { %v2754_v61 = vmul.f32 -0.0187293, %v8120_v7  ;;  %v8165_v51 = vmax.f32 %v3138_v37, 0.0  ;;  %v3139_v22 = vsub.f32 1.0, %v8144_v14  ;;  %v4282_v15 = vmul.f32 %v7772_v24, %v7772_v24 }
 0x297   :  { %v4283_v17 = vmul.f32 %v7809_v49, %v7809_v49  ;;  %v8174_v27 = vsel %vm8112_vm7, %v3708_v62, %v3836_v13  ;;  %vm3375_vm0 = vcmp.eq.f32.partialorder %v8048_v30, 0.0  ;;  %v3376_v56 = vand.u32 2147483648, %v8048_v30 }
 0x298   :  { %v2085_v0 = vadd.f32 %v2084_v8, %v12088_v11  ;;  %v3837_v23 = vsub.f32 3.1415927, %v3709_v46  ;;  %v3370_v12 = vsel %vm3368_vm11, %v3369_v41, %v3367_v45  ;;  %v3071_v37 = vadd.f32 1.5707288, %v3007_v16  ;;  %v5679_v55 = vpop.eup %5678  ;;  %v2403_v8 = vpop.f32.mrf.mxu1  ;;  %v12089_v11 = vld [vmem:[#allocation16_spill] sm:$0xff] }
 0x299   :  { %v8182_v34 = vadd.f32 %v2398_v53, %v8066_v19  ;;  %v3372_v18 = vmul.f32 %v5677_v58, %v8048_v30  ;;  %v2944_v5 = vadd.f32 -0.2121144, %v2880_v50  ;;  %v2881_v62 = vmul.f32 %v2817_v32, %v8072_v44 }
 0x29a   :  { %v2818_v13 = vadd.f32 0.074261, %v2754_v61  ;;  %5682 = vrsqrt.f32 %v8165_v51  ;;  %v8187_v35 = vmax.f32 %v3139_v22, 0.0  ;;  %v4346_v33 = vsel %vm4090_vm8, %v4282_v15, 0.0  ;;  %v2089_v61 = vpop.f32.mrf.mxu0 }
 0x29b   :  { %v4347_v19 = vsel %vm4091_vm9, %v4283_v17, 0.0  ;;  %v8195_v41 = vmul.f32 %v3370_v12, %v3070_v31  ;;  %vm3380_vm1 = vcmp.eq.f32.partialorder %v8068_v42, inf  ;;  %vm3382_vm3 = vcmp.eq.f32.partialorder %v8068_v42, 0.0 }
 0x29c   :  { %v4572_v16 = vadd.f32 %v4347_v19, %v4346_v33  ;;  %v8201_v45 = vsel %vm8152_vm12, %v3709_v46, %v3837_v23  ;;  %v3379_v50 = vmul.f32 %v5679_v55, %v8068_v42  ;;  %v3383_v32 = vand.u32 2147483648, %v8068_v42 }
 0x29d   :  { %v11636_v53 = vclamps-f32 %v8182_v34, 0.99999  ;;  %v3374_v31 = vsel %vm3373_vm15, %v8048_v30, %v3372_v18  ;;  %v3008_v58 = vmul.f32 %v2944_v5, %v8028_v26  ;;  %v8210_v22 = vadd.f32 %v2403_v8, %v2083_v52  ;;  %v2405_v26 = vpop.f32.mrf.mxu1  ;;  %v2091_v8 = vpop.f32.mrf.mxu0 }
 0x29e   :  { %4573 = vadd.xlane.f32.xlu0 %v4572_v16  ;;  %v4150_v2 = vsub.f32 0.5, %v7669_v38  ;;  %v2945_v46 = vadd.f32 -0.2121144, %v2881_v62  ;;  %v2882_v15 = vmul.f32 %v2818_v13, %v8120_v7  ;;  %5684 = vrsqrt.f32 %v8187_v35 }
 0x29f   :  { %v4151_v55 = vsub.f32 0.5, %v7700_v10  ;;  %v3838_v17 = vsub.f32 3.1415927, %v8195_v41  ;;  %v2090_v23 = vadd.f32 %v2089_v61, %v12089_v11  ;;  %v2755_v18 = vmul.f32 -0.0187293, %v8144_v14 }
 0x2a0   :  { %v4214_v12 = vmax.f32 %v4150_v2, 0.0  ;;  %v3377_v52 = vsel %vm3375_vm0, %v3376_v56, %v3374_v31  ;;  %v3381_v38 = vsel %vm3380_vm1, %v8068_v42, %v3379_v50  ;;  %v8226_v5 = vand.u32 2147483647, %v11636_v53  ;;  %v2096_v42 = vpop.f32.mrf.mxu0 }
 0x2a1   :  { %v4215_v10 = vmax.f32 %v4151_v55, 0.0  ;;  %v5681_v62 = vpop.eup %5680  ;;  %v3072_v13 = vadd.f32 1.5707288, %v3008_v58  ;;  %vm3387_vm5 = vcmp.eq.f32.partialorder %v8134_v57, inf  ;;  %v11635_v33 = vclamps-f32 %v8210_v22, 0.99999 }
 0x2a2   :  { %v4406_v19 = vmul.f32 %v4214_v12, %v4214_v12  ;;  %v3009_v30 = vmul.f32 %v2945_v46, %v8072_v44  ;;  %v2946_v56 = vadd.f32 -0.2121144, %v2882_v15  ;;  %v8231_v61 = vadd.f32 %v2405_v26, %v2085_v0  ;;  %v2410_v46 = vpop.f32.mrf.mxu1 }
 0x2a3   :  { %v4407_v16 = vmul.f32 %v4215_v10, %v4215_v10  ;;  %v8233_v50 = vmul.f32 %v3377_v52, %v3071_v37  ;;  %v3384_v31 = vsel %vm3382_vm3, %v3383_v32, %v3381_v38  ;;  %vm3389_vm6 = vcmp.eq.f32.partialorder %v8134_v57, 0.0 }
 0x2a4   :  { %v3390_v58 = vand.u32 2147483648, %v8134_v57  ;;  %v2819_v2 = vadd.f32 0.074261, %v2755_v18  ;;  %v3386_v55 = vmul.f32 %v5681_v62, %v8134_v57  ;;  %v3140_v11 = vsub.f32 1.0, %v8226_v5  ;;  %v2412_v63 = vpop.f32.mrf.mxu1 }
 0x2a5   :  { %v4470_v44 = vsel %vm4086_vm4, 0.0, %v4406_v19  ;;  %v4471_v0 = vsel %vm4087_vm2, 0.0, %v4407_v16  ;;  %vm3394_vm7 = vcmp.eq.f32.partialorder %v8165_v51, inf  ;;  %v8250_v37 = vand.u32 2147483647, %v11635_v33  ;;  %v12090_v16 = vld [vmem:[#allocation68_spill] sm:$0xff] }
 0x2a6   :  { %v4792_v32 = vadd.f32 %v4471_v0, %v4470_v44  ;;  %v4152_v15 = vsub.f32 0.5, %v7710_v6  ;;  %v4153_v18 = vsub.f32 0.5, %v7744_v3  ;;  %v3073_v12 = vadd.f32 1.5707288, %v3009_v30  ;;  %v8277_v0 = vpop.permute.xlu1 %3992 }
 0x2a7   :  { %v3010_v26 = vmul.f32 %v2946_v56, %v8120_v7  ;;  %v3397_v52 = vand.u32 2147483648, %v8165_v51  ;;  %v11634_v36 = vclamps-f32 %v8231_v61, 0.99999  ;;  %v5683_v38 = vpop.eup %5682  ;;  %v8258_v62 = vmul.f32 %v3384_v31, %v3072_v13  ;;  %v12091_v7 = vld [vmem:[#allocation63_spill] sm:$0xff] }
 0x2a8   :  { %v2883_v19 = vmul.f32 %v2819_v2, %v8144_v14  ;;  %v8262_v44 = vadd.f32 %v2091_v8, %v12090_v16  ;;  %4793 = vadd.xlane.f32.xlu1 %v4792_v32  ;;  %v2756_v6 = vmul.f32 -0.0187293, %v8226_v5  ;;  %v8265_v3 = vmax.f32 %v3140_v11, 0.0 }
 0x2a9   :  { %v8268_v30 = vadd.f32 %v2096_v42, %v12091_v7  ;;  %v8270_v56 = vadd.f32 %v2410_v46, %v2090_v23  ;;  %v3388_v13 = vsel %vm3387_vm5, %v8134_v57, %v3386_v55  ;;  %vm3396_vm2 = vcmp.eq.f32.partialorder %v8165_v51, 0.0  ;;  %v8296_v7 = vpop.permute.xlu0 %3995 }
 0x2aa   :  { %v3141_v31 = vsub.f32 1.0, %v8250_v37  ;;  %v4216_v8 = vmax.f32 %v4152_v15, 0.0  ;;  %v4217_v2 = vmax.f32 %v4153_v18, 0.0  ;;  %v3074_v32 = vadd.f32 1.5707288, %v3010_v26 }
 0x2ab   :  { %v3393_v11 = vmul.f32 %v5683_v38, %v8165_v51  ;;  %v2757_v42 = vmul.f32 -0.0187293, %v8250_v37  ;;  %v8283_v23 = vand.u32 2147483647, %v11634_v36  ;;  %v5685_v46 = vpop.eup %5684  ;;  %vm4092_vm4 = vcmp.eq.s32.totalorder %v8277_v0, %v7546_v29 }
 0x2ac   :  { %vm4093_vm10 = vcmp.eq.s32.totalorder %v8277_v0, %v7555_v28  ;;  %v2947_v15 = vadd.f32 -0.2121144, %v2883_v19  ;;  %vm3401_vm11 = vcmp.eq.f32.partialorder %v8187_v35, inf  ;;  %v3404_v18 = vand.u32 2147483648, %v8187_v35  ;;  %v8506_v0 = vpop.permute.xlu1 %3998 }
 0x2ad   :  { %v3391_v26 = vsel %vm3389_vm6, %v3390_v58, %v3388_v13  ;;  %v2820_v38 = vadd.f32 0.074261, %v2756_v6  ;;  %5686 = vrsqrt.f32 %v8265_v3  ;;  %v11637_v16 = vclamps-f32 %v8270_v56, 0.99999 }
 0x2ae   :  { %vm3403_vm12 = vcmp.eq.f32.partialorder %v8187_v35, 0.0  ;;  %v8299_v36 = vmax.f32 %v3141_v31, 0.0  ;;  %v4408_v33 = vmul.f32 %v4216_v8, %v4216_v8  ;;  %v4409_v19 = vmul.f32 %v4217_v2, %v4217_v2 }
 0x2af   :  { %v4154_v53 = vsub.f32 0.5, %v7772_v24  ;;  %vm4094_vm15 = vcmp.eq.s32.totalorder %v8296_v7, %v7546_v29  ;;  %vm4095_vm0 = vcmp.eq.s32.totalorder %v8296_v7, %v7555_v28  ;;  %v3395_v57 = vsel %vm3394_vm7, %v8165_v51, %v3393_v11  ;;  %v12122_v7 = vld [vmem:[#allocation20_spill] sm:$0xff] }
 0x2b0   :  { %v3400_v58 = vmul.f32 %v5685_v46, %v8187_v35  ;;  %v2821_v6 = vadd.f32 0.074261, %v2757_v42  ;;  %v3142_v13 = vsub.f32 1.0, %v8283_v23  ;;  %v4472_v31 = vsel %vm4088_vm13, 0.0, %v4408_v33 }
 0x2b1   :  { %v4473_v24 = vsel %vm4089_vm14, 0.0, %v4409_v19  ;;  %v4155_v8 = vsub.f32 0.5, %v7809_v49  ;;  %v4218_v2 = vmax.f32 %v4154_v53, 0.0  ;;  %v12092_v55 = vclamps-f32 %v7886_v39, 0.99999 }
 0x2b2   :  { %v8324_v42 = vmul.f32 %v3391_v26, %v3073_v12  ;;  %v3011_v46 = vmul.f32 %v2947_v15, %v8144_v14  ;;  %v8329_v33 = vand.u32 2147483647, %v11637_v16  ;;  %v4795_v10 = vadd.f32 %v4473_v24, %v4472_v31 }
 0x2b3   :  { %vm8320_vm1 = vcmp.ge.f32.partialorder %v12092_v55, 0.0  ;;  %v12095_v19 = vclamps-f32 %v7945_v9, 0.99999  ;;  %v2884_v39 = vmul.f32 %v2820_v38, %v8226_v5  ;;  %5688 = vrsqrt.f32 %v8299_v36 }
 0x2b4   :  { %v4219_v53 = vmax.f32 %v4155_v8, 0.0  ;;  %v4410_v12 = vmul.f32 %v4218_v2, %v4218_v2  ;;  %v12098_v14 = vclamps-f32 %v7964_v40, 0.99999  ;;  %v3398_v15 = vsel %vm3396_vm2, %v3397_v52, %v3395_v57  ;;  %4796 = vadd.xlane.f32.xlu0 %v4795_v10 }
 0x2b5   :  { %vm8333_vm13 = vcmp.ge.f32.partialorder %v12095_v19, 0.0  ;;  %v2885_v9 = vmul.f32 %v2821_v6, %v8250_v37  ;;  %v4284_v26 = vmul.f32 %v7827_v4, %v7827_v4  ;;  %v4285_v38 = vmul.f32 %v7890_v59, %v7890_v59  ;;  %v2417_v6 = vpop.f32.mrf.mxu1 }
 0x2b6   :  { %vm8341_vm14 = vcmp.ge.f32.partialorder %v12098_v14, 0.0  ;;  %v3402_v40 = vsel %vm3401_vm11, %v8187_v35, %v3400_v58  ;;  %v8355_v31 = vmax.f32 %v3142_v13, 0.0  ;;  %v4411_v24 = vmul.f32 %v4219_v53, %v4219_v53 }
 0x2b7   :  { %v4286_v51 = vmul.f32 %v7932_v20, %v7932_v20  ;;  %v12101_v52 = vclamps-f32 %v8030_v1, 0.99999  ;;  %v3143_v57 = vsub.f32 1.0, %v8329_v33  ;;  %v4348_v8 = vsel %vm4092_vm4, %v4284_v26, 0.0 }
 0x2b8   :  { %v4349_v58 = vsel %vm4093_vm10, %v4285_v38, 0.0  ;;  %v4287_v13 = vmul.f32 %v7958_v47, %v7958_v47  ;;  %v4474_v1 = vsel %vm4090_vm8, 0.0, %v4410_v12  ;;  %v4475_v2 = vsel %vm4091_vm9, 0.0, %v4411_v24 }
 0x2b9   :  { %vm8361_vm3 = vcmp.ge.f32.partialorder %v12101_v52, 0.0  ;;  %v8381_v19 = vadd.f32 %v2412_v63, %v8262_v44  ;;  %v4575_v53 = vadd.f32 %v4349_v58, %v4348_v8  ;;  %v3714_v14 = vmul.f32 %v3398_v15, %v3074_v32 }
 0x2ba   :  { %v12104_v26 = vclamps-f32 %v8052_v54, 0.99999  ;;  %v3405_v52 = vsel %vm3403_vm12, %v3404_v18, %v3402_v40  ;;  %v2948_v16 = vadd.f32 -0.2121144, %v2884_v39  ;;  %v4798_v12 = vadd.f32 %v4475_v2, %v4474_v1  ;;  %v5687_v39 = vpop.eup %5686 }
 0x2bb   :  { %5690 = vrsqrt.f32 %v8355_v31  ;;  %v8393_v60 = vadd.f32 %v2417_v6, %v8268_v30  ;;  %4576 = vadd.xlane.f32.xlu0 %v4575_v53  ;;  %v4350_v44 = vsel %vm4094_vm15, %v4286_v51, 0.0  ;;  %v4351_v54 = vsel %vm4095_vm0, %v4287_v13, 0.0 }
 0x2bc   :  { %vm8385_vm5 = vcmp.ge.f32.partialorder %v12104_v26, 0.0  ;;  %v3841_v32 = vsub.f32 3.1415927, %v8324_v42  ;;  %v3075_v35 = vadd.f32 1.5707288, %v3011_v46  ;;  %v8402_v18 = vmax.f32 %v3143_v57, 0.0  ;;  %4799 = vadd.xlane.f32.xlu1 %v4798_v12  ;;  %v2098_v46 = vpop.f32.mrf.mxu0  ;;  %v2419_v12 = vpop.f32.mrf.mxu1 }
 0x2bd   :  { %v4578_v63 = vadd.f32 %v4351_v54, %v4350_v44  ;;  %v8409_v30 = vsel %vm8320_vm1, %v8195_v41, %v3838_v17  ;;  %v12107_v15 = vclamps-f32 %v8091_v43, 0.99999  ;;  %v2949_v24 = vadd.f32 -0.2121144, %v2885_v9 }
 0x2be   :  { %v2758_v51 = vmul.f32 -0.0187293, %v8283_v23  ;;  %v5020_v57 = vclamps-f32 %v8381_v19, 0.99999  ;;  %v12110_v6 = vsub.f32 3.1415927, %v8233_v50  ;;  %v3715_v41 = vmul.f32 %v3405_v52, %v3075_v35  ;;  %v2103_v55 = vpop.f32.mrf.mxu0 }
 0x2bf   :  { %vm8413_vm8 = vcmp.ge.f32.partialorder %v12107_v15, 0.0  ;;  %v3012_v43 = vmul.f32 %v2948_v16, %v8226_v5  ;;  %vm3408_vm9 = vcmp.eq.f32.partialorder %v8265_v3, inf  ;;  %v12111_v17 = vsub.f32 3.1415927, %v8258_v62  ;;  %v12113_v35 = vld [vmem:[#allocation17_spill] sm:$0xff] }
 0x2c0   :  { %v8424_v11 = vsel %vm8333_vm13, %v8233_v50, %v12110_v6  ;;  %v3842_v8 = vsub.f32 3.1415927, %v3714_v14  ;;  %v2759_v58 = vmul.f32 -0.0187293, %v8329_v33  ;;  %v5021_v13 = vclamps-f32 %v8393_v60, 0.99999  ;;  %4579 = vadd.xlane.f32.xlu1 %v4578_v63  ;;  %v5689_v2 = vpop.eup %5688  ;;  %v2424_v6 = vpop.f32.mrf.mxu1 }
 0x2c1   :  { %v8433_v9 = vsel %vm8341_vm14, %v8258_v62, %v12111_v17  ;;  %v3407_v50 = vmul.f32 %v5687_v39, %v8265_v3  ;;  %vm3410_vm6 = vcmp.eq.f32.partialorder %v8265_v3, 0.0  ;;  %v3411_v5 = vand.u32 2147483648, %v8265_v3 }
 0x2c2   :  { %5692 = vrsqrt.f32 %v8402_v18  ;;  %v8444_v16 = vsel %vm8361_vm3, %v8324_v42, %v3841_v32  ;;  %v3013_v62 = vmul.f32 %v2949_v24, %v8250_v37  ;;  %v2822_v49 = vadd.f32 0.074261, %v2758_v51  ;;  %v12112_v37 = vld [vmem:[#allocation8_spill] sm:$0xff] }
 0x2c3   :  { %v8449_v1 = vand.u32 2147483647, %v5020_v57  ;;  %v3843_v53 = vsub.f32 3.1415927, %v3715_v41  ;;  %v3076_v26 = vadd.f32 1.5707288, %v3012_v43  ;;  %v8455_v42 = vsel %vm8385_vm5, %v3714_v14, %v3842_v8 }
 0x2c4   :  { %vm3415_vm7 = vcmp.eq.f32.partialorder %v8299_v36, inf  ;;  %v3418_v52 = vand.u32 2147483648, %v8299_v36  ;;  %vm3417_vm2 = vcmp.eq.f32.partialorder %v8299_v36, 0.0  ;;  %v2099_v10 = vadd.f32 %v2098_v46, %v12112_v37 }
 0x2c5   :  { %v2823_v44 = vadd.f32 0.074261, %v2759_v58  ;;  %v8461_v54 = vand.u32 2147483647, %v5021_v13  ;;  %v3409_v32 = vsel %vm3408_vm9, %v8265_v3, %v3407_v50  ;;  %v2104_v63 = vadd.f32 %v2103_v55, %v12113_v35 }
 0x2c6   :  { %v4156_v39 = vsub.f32 0.5, %v7827_v4  ;;  %v4157_v14 = vsub.f32 0.5, %v7890_v59  ;;  %v3077_v38 = vadd.f32 1.5707288, %v3013_v62  ;;  %v3414_v15 = vmul.f32 %v5689_v2, %v8299_v36 }
 0x2c7   :  { %v2886_v24 = vmul.f32 %v2822_v49, %v8283_v23  ;;  %v3144_v46 = vsub.f32 1.0, %v8449_v1  ;;  %v8474_v51 = vsel %vm8413_vm8, %v3715_v41, %v3843_v53  ;;  %v4158_v8 = vsub.f32 0.5, %v7932_v20 }
 0x2c8   :  { %v4220_v43 = vmax.f32 %v4156_v39, 0.0  ;;  %v4221_v17 = vmax.f32 %v4157_v14, 0.0  ;;  %v3412_v4 = vsel %vm3410_vm6, %v3411_v5, %v3409_v32  ;;  %v2887_v59 = vmul.f32 %v2823_v44, %v8329_v33  ;;  %v5691_v62 = vpop.eup %5690 }
 0x2c9   :  { %v3145_v58 = vsub.f32 1.0, %v8461_v54  ;;  %v4159_v50 = vsub.f32 0.5, %v7958_v47  ;;  %vm3422_vm11 = vcmp.eq.f32.partialorder %v8355_v31, inf  ;;  %v8483_v40 = vadd.f32 %v2419_v12, %v2099_v10 }
 0x2ca   :  { %v4412_v41 = vmul.f32 %v4220_v43, %v4220_v43  ;;  %v4413_v49 = vmul.f32 %v4221_v17, %v4221_v17  ;;  %v3416_v20 = vsel %vm3415_vm7, %v8299_v36, %v3414_v15  ;;  %v2950_v55 = vadd.f32 -0.2121144, %v2886_v24  ;;  %v2105_v24 = vpop.f32.mrf.mxu0 }
 0x2cb   :  { %v8488_v3 = vmax.f32 %v3144_v46, 0.0  ;;  %v8490_v5 = vadd.f32 %v2424_v6, %v2104_v63  ;;  %v4222_v53 = vmax.f32 %v4158_v8, 0.0  ;;  %v4223_v12 = vmax.f32 %v4159_v50, 0.0 }
 0x2cc   :  { %v4476_v47 = vsel %vm4092_vm4, 0.0, %v4412_v41  ;;  %v4477_v2 = vsel %vm4093_vm10, 0.0, %v4413_v49  ;;  %v3421_v37 = vmul.f32 %v5691_v62, %v8355_v31  ;;  %v2951_v10 = vadd.f32 -0.2121144, %v2887_v59  ;;  %v2426_v59 = vpop.f32.mrf.mxu1  ;;  %v2110_v49 = vpop.f32.mrf.mxu0 }
 0x2cd   :  { %v8499_v44 = vmax.f32 %v3145_v58, 0.0  ;;  %v4801_v32 = vadd.f32 %v4477_v2, %v4476_v47  ;;  %v3419_v35 = vsel %vm3417_vm2, %v3418_v52, %v3416_v20  ;;  %vm3424_vm12 = vcmp.eq.f32.partialorder %v8355_v31, 0.0 }
 0x2ce   :  { %v3425_v63 = vand.u32 2147483648, %v8355_v31  ;;  %v5022_v39 = vclamps-f32 %v8483_v40, 0.99999  ;;  %v8508_v15 = vmul.f32 %v3412_v4, %v3076_v26  ;;  %vm3429_vm4 = vcmp.eq.f32.partialorder %v8402_v18, inf  ;;  %v8519_v26 = vpop.permute.xlu0 %4001 }
 0x2cf   :  { %v5693_v14 = vpop.eup %5692  ;;  %5694 = vrsqrt.f32 %v8488_v3  ;;  %v11640_v46 = vclamps-f32 %v8490_v5, 0.99999  ;;  %4802 = vadd.xlane.f32.xlu0 %v4801_v32  ;;  %vm4097_vm10 = vcmp.eq.s32.totalorder %v8506_v0, %v7555_v28  ;;  %v3014_v36 = vmul.f32 %v2950_v55, %v8283_v23 }
 0x2d0   :  { %v2760_v52 = vmul.f32 -0.0187293, %v8449_v1  ;;  %v4414_v6 = vmul.f32 %v4222_v53, %v4222_v53  ;;  %v4415_v43 = vmul.f32 %v4223_v12, %v4223_v12  ;;  %vm4096_vm1 = vcmp.eq.s32.totalorder %v8506_v0, %v7546_v29 }
 0x2d1   :  { %v3717_v17 = vmul.f32 %v3419_v35, %v3077_v38  ;;  %v3423_v8 = vsel %vm3422_vm11, %v8355_v31, %v3421_v37  ;;  %v3015_v4 = vmul.f32 %v2951_v10, %v8329_v33  ;;  %5696 = vrsqrt.f32 %v8499_v44  ;;  %v12121_v31 = vld [vmem:[#allocation21_spill] sm:$0xff] }
 0x2d2   :  { %vm4099_vm13 = vcmp.eq.s32.totalorder %v8519_v26, %v7555_v28  ;;  %v12114_v23 = vclamps-f32 %v8182_v34, 0.99999  ;;  %v3428_v38 = vmul.f32 %v5693_v14, %v8402_v18  ;;  %vm3431_vm3 = vcmp.eq.f32.partialorder %v8402_v18, 0.0  ;;  %v12117_v34 = vld [vmem:[#allocation9_spill] sm:$0xff] }
 0x2d3   :  { %v3432_v50 = vand.u32 2147483648, %v8402_v18  ;;  %v8539_v33 = vand.u32 2147483647, %v5022_v39  ;;  %vm4098_vm5 = vcmp.eq.s32.totalorder %v8519_v26, %v7546_v29  ;;  %v3844_v62 = vsub.f32 3.1415927, %v8508_v15 }
 0x2d4   :  { %vm8530_vm14 = vcmp.ge.f32.partialorder %v12114_v23, 0.0  ;;  %v2106_v41 = vadd.f32 %v2105_v24, %v12117_v34  ;;  %v2761_v20 = vmul.f32 -0.0187293, %v8461_v54  ;;  %v8548_v55 = vand.u32 2147483647, %v11640_v46  ;;  %v2431_v24 = vpop.f32.mrf.mxu1 }
 0x2d5   :  { %v12118_v47 = vclamps-f32 %v8210_v22, 0.99999  ;;  %v3426_v53 = vsel %vm3424_vm12, %v3425_v63, %v3423_v8  ;;  %v2824_v12 = vadd.f32 0.074261, %v2760_v52  ;;  %v4478_v37 = vsel %vm4094_vm15, 0.0, %v4414_v6 }
 0x2d6   :  { %v4479_v10 = vsel %vm4095_vm0, 0.0, %v4415_v43  ;;  %v3845_v32 = vsub.f32 3.1415927, %v3717_v17  ;;  %v3078_v35 = vadd.f32 1.5707288, %v3014_v36  ;;  %v3430_v23 = vsel %vm3429_vm4, %v8402_v18, %v3428_v38  ;;  %v12123_v43 = vld [vmem:[#allocation26_spill] sm:$0xff] }
 0x2d7   :  { %vm8552_vm8 = vcmp.ge.f32.partialorder %v12118_v47, 0.0  ;;  %v3079_v14 = vadd.f32 1.5707288, %v3015_v4  ;;  %v4804_v22 = vadd.f32 %v4479_v10, %v4478_v37  ;;  %v2111_v63 = vadd.f32 %v2110_v49, %v12121_v31 }
 0x2d8   :  { %v3146_v52 = vsub.f32 1.0, %v8539_v33  ;;  %v8569_v8 = vadd.f32 %v2426_v59, %v2106_v41  ;;  %v3718_v6 = vmul.f32 %v3426_v53, %v3078_v35  ;;  %v3147_v34 = vsub.f32 1.0, %v8548_v55 }
 0x2d9   :  { %4805 = vadd.xlane.f32.xlu1 %v4804_v22  ;;  %v4288_v36 = vmul.f32 %v12122_v7, %v12122_v7  ;;  %v4289_v4 = vmul.f32 %v12123_v43, %v12123_v43  ;;  %v2888_v47 = vmul.f32 %v2824_v12, %v8449_v1  ;;  %v2825_v37 = vadd.f32 0.074261, %v2761_v20 }
 0x2da   :  { %v8577_v38 = vadd.f32 %v2431_v24, %v2111_v63  ;;  %v4290_v49 = vmul.f32 %v8080_v21, %v8080_v21  ;;  %v12124_v59 = vclamps-f32 %v8231_v61, 0.99999  ;;  %v3433_v53 = vsel %vm3431_vm3, %v3432_v50, %v3430_v23 }
 0x2db   :  { %v2762_v10 = vmul.f32 -0.0187293, %v8539_v33  ;;  %v4353_v20 = vsel %vm4097_vm10, %v4289_v4, 0.0  ;;  %v4291_v12 = vmul.f32 %v8131_v25, %v8131_v25  ;;  %v8595_v35 = vmax.f32 %v3146_v52, 0.0 }
 0x2dc   :  { %vm8583_vm15 = vcmp.ge.f32.partialorder %v12124_v59, 0.0  ;;  %v2763_v61 = vmul.f32 -0.0187293, %v8548_v55  ;;  %v11639_v22 = vclamps-f32 %v8569_v8, 0.99999  ;;  %v4352_v18 = vsel %vm4096_vm1, %v4288_v36, 0.0  ;;  %v5695_v4 = vpop.eup %5694 }
 0x2dd   :  { %v8605_v50 = vsel %vm8530_vm14, %v8508_v15, %v3844_v62  ;;  %v12127_v24 = vclamps-f32 %v8270_v56, 0.99999  ;;  %v8613_v31 = vmax.f32 %v3147_v34, 0.0  ;;  %v4581_v63 = vadd.f32 %v4353_v20, %v4352_v18  ;;  %v2112_v34 = vpop.f32.mrf.mxu0 }
 0x2de   :  { %v4355_v52 = vsel %vm4099_vm13, %v4291_v12, 0.0  ;;  %v3719_v36 = vmul.f32 %v3433_v53, %v3079_v14  ;;  %v2889_v59 = vmul.f32 %v2825_v37, %v8461_v54  ;;  %v11638_v15 = vclamps-f32 %v8577_v38, 0.99999  ;;  %v5697_v12 = vpop.eup %5696 }
 0x2df   :  { %vm8609_vm0 = vcmp.ge.f32.partialorder %v12127_v24, 0.0  ;;  %v4354_v56 = vsel %vm4098_vm5, %v4290_v49, 0.0  ;;  %v8625_v58 = vsel %vm8552_vm8, %v3717_v17, %v3845_v32  ;;  %v2952_v62 = vadd.f32 -0.2121144, %v2888_v47  ;;  %4582 = vadd.xlane.f32.xlu0 %v4581_v63  ;;  %v2433_v17 = vpop.f32.mrf.mxu1  ;;  %v12130_v47 = vld [vmem:[#allocation71_spill] sm:$0xff] }
 0x2e0   :  { %v2826_v20 = vadd.f32 0.074261, %v2762_v10  ;;  %v4584_v18 = vadd.f32 %v4355_v52, %v4354_v56  ;;  %v3846_v24 = vsub.f32 3.1415927, %v3718_v6  ;;  %5698 = vrsqrt.f32 %v8595_v35  ;;  %v2117_v56 = vpop.f32.mrf.mxu0 }
 0x2e1   :  { %v2827_v14 = vadd.f32 0.074261, %v2763_v61  ;;  %v8630_v37 = vand.u32 2147483647, %v11639_v22  ;;  %v3435_v49 = vmul.f32 %v5695_v4, %v8488_v3  ;;  %vm3436_vm9 = vcmp.eq.f32.partialorder %v8488_v3, inf }
 0x2e2   :  { %vm3438_vm6 = vcmp.eq.f32.partialorder %v8488_v3, 0.0  ;;  %5700 = vrsqrt.f32 %v8613_v31  ;;  %4585 = vadd.xlane.f32.xlu1 %v4584_v18  ;;  %v3847_v2 = vsub.f32 3.1415927, %v3719_v36  ;;  %v2953_v32 = vadd.f32 -0.2121144, %v2889_v59 }
 0x2e3   :  { %v2113_v53 = vadd.f32 %v2112_v34, %v12130_v47  ;;  %v8639_v10 = vand.u32 2147483647, %v11638_v15  ;;  %v3016_v61 = vmul.f32 %v2952_v62, %v8449_v1  ;;  %v3439_v63 = vand.u32 2147483648, %v8488_v3 }
 0x2e4   :  { %v3442_v52 = vmul.f32 %v5697_v12, %v8499_v44  ;;  %v2890_v4 = vmul.f32 %v2826_v20, %v8539_v33  ;;  %v8647_v18 = vsel %vm8583_vm15, %v3718_v6, %v3846_v24  ;;  %v2891_v59 = vmul.f32 %v2827_v14, %v8548_v55  ;;  %v12131_v20 = vld [vmem:[#allocation67_spill] sm:$0xff]  ;;  %v2438_v14 = vpop.f32.mrf.mxu1 }
 0x2e5   :  { %v3148_v34 = vsub.f32 1.0, %v8630_v37  ;;  %v8651_v47 = vadd.f32 %v2433_v17, %v2113_v53  ;;  %v3437_v1 = vsel %vm3436_vm9, %v8488_v3, %v3435_v49  ;;  %vm3443_vm7 = vcmp.eq.f32.partialorder %v8499_v44, inf }
 0x2e6   :  { %vm3445_vm2 = vcmp.eq.f32.partialorder %v8499_v44, 0.0  ;;  %v3446_v62 = vand.u32 2147483648, %v8499_v44  ;;  %v8661_v6 = vsel %vm8609_vm0, %v3719_v36, %v3847_v2  ;;  %v3017_v41 = vmul.f32 %v2953_v32, %v8461_v54 }
 0x2e7   :  { %v2118_v12 = vadd.f32 %v2117_v56, %v12131_v20  ;;  %v3149_v24 = vsub.f32 1.0, %v8639_v10  ;;  %v3080_v17 = vadd.f32 1.5707288, %v3016_v61  ;;  %v3444_v49 = vsel %vm3443_vm7, %v8499_v44, %v3442_v52 }
 0x2e8   :  { %v2954_v53 = vadd.f32 -0.2121144, %v2890_v4  ;;  %v4160_v15 = vsub.f32 0.5, %v12122_v7  ;;  %v3440_v22 = vsel %vm3438_vm6, %v3439_v63, %v3437_v1  ;;  %v2955_v46 = vadd.f32 -0.2121144, %v2891_v59 }
 0x2e9   :  { %v8670_v23 = vmax.f32 %v3148_v34, 0.0  ;;  %v11642_v36 = vclamps-f32 %v8651_v47, 0.99999  ;;  %v8673_v54 = vadd.f32 %v2438_v14, %v2118_v12  ;;  %v4161_v2 = vsub.f32 0.5, %v12123_v43  ;;  %v2440_v14 = vpop.f32.mrf.mxu1 }
 0x2ea   :  { %v4224_v32 = vmax.f32 %v4160_v15, 0.0  ;;  %v4162_v61 = vsub.f32 0.5, %v8080_v21  ;;  %v3081_v56 = vadd.f32 1.5707288, %v3017_v41  ;;  %v3447_v52 = vsel %vm3445_vm2, %v3446_v62, %v3444_v49  ;;  %v2119_v21 = vpop.f32.mrf.mxu0 }
 0x2eb   :  { %v3453_v7 = vand.u32 2147483648, %v8595_v35  ;;  %v8680_v3 = vmax.f32 %v3149_v24, 0.0  ;;  %vm3450_vm11 = vcmp.eq.f32.partialorder %v8595_v35, inf  ;;  %v4225_v63 = vmax.f32 %v4161_v2, 0.0 }
 0x2ec   :  { %v4416_v4 = vmul.f32 %v4224_v32, %v4224_v32  ;;  %v4163_v59 = vsub.f32 0.5, %v8131_v25  ;;  %v4226_v34 = vmax.f32 %v4162_v61, 0.0  ;;  %v3720_v1 = vmul.f32 %v3440_v22, %v3080_v17  ;;  %v2124_v49 = vpop.f32.mrf.mxu0  ;;  %v8724_v61 = vpop.permute.xlu0 %4007 }
 0x2ed   :  { %v3018_v43 = vmul.f32 %v2954_v53, %v8539_v33  ;;  %vm3457_vm12 = vcmp.eq.f32.partialorder %v8613_v31, inf  ;;  %v8688_v44 = vand.u32 2147483647, %v11642_v36  ;;  %v5699_v15 = vpop.eup %5698  ;;  %vm8692_vm4 = vcmp.ge.f32.partialorder %v5020_v57, 0.0  ;;  %v2445_v36 = vpop.f32.mrf.mxu1 }
 0x2ee   :  { %v3019_v25 = vmul.f32 %v2955_v46, %v8548_v55  ;;  %5702 = vrsqrt.f32 %v8670_v23  ;;  %v11641_v33 = vclamps-f32 %v8673_v54, 0.99999  ;;  %v4417_v22 = vmul.f32 %v4225_v63, %v4225_v63  ;;  %v8708_v55 = vpop.permute.xlu1 %4004  ;;  %v2126_v62 = vpop.f32.mrf.mxu0 }
 0x2ef   :  { %v5701_v41 = vpop.eup %5700  ;;  %v3721_v20 = vmul.f32 %v3447_v52, %v3081_v56  ;;  %vm8701_vm14 = vcmp.ge.f32.partialorder %v5021_v13, 0.0  ;;  %vm3452_vm3 = vcmp.eq.f32.partialorder %v8595_v35, 0.0  ;;  %v2764_v19 = vmul.f32 -0.0187293, %v8630_v37 }
 0x2f0   :  { %v2765_v57 = vmul.f32 -0.0187293, %v8639_v10  ;;  %v4227_v46 = vmax.f32 %v4163_v59, 0.0  ;;  %vm3459_vm8 = vcmp.eq.f32.partialorder %v8613_v31, 0.0  ;;  %5704 = vrsqrt.f32 %v8680_v3 }
 0x2f1   :  { %v4480_v60 = vsel %vm4096_vm1, 0.0, %v4416_v4  ;;  %v4481_v13 = vsel %vm4097_vm10, 0.0, %v4417_v22  ;;  %v4418_v24 = vmul.f32 %v4226_v34, %v4226_v34  ;;  %vm4101_vm15 = vcmp.eq.s32.totalorder %v8708_v55, %v7555_v28  ;;  %v12136_v34 = vld [vmem:[#allocation10_spill] sm:$0xff] }
 0x2f2   :  { %v3449_v17 = vmul.f32 %v5699_v15, %v8595_v35  ;;  %v3150_v53 = vsub.f32 1.0, %v8688_v44  ;;  %v4807_v2 = vadd.f32 %v4481_v13, %v4480_v60  ;;  %v4419_v32 = vmul.f32 %v4227_v46, %v4227_v46 }
 0x2f3   :  { %vm4100_vm0 = vcmp.eq.s32.totalorder %v8708_v55, %v7546_v29  ;;  %v3848_v56 = vsub.f32 3.1415927, %v3720_v1  ;;  %v3456_v0 = vmul.f32 %v5701_v41, %v8613_v31  ;;  %v3460_v52 = vand.u32 2147483648, %v8613_v31  ;;  %v12137_v41 = vld [vmem:[#allocation23_spill] sm:$0xff] }
 0x2f4   :  { %v8730_v63 = vand.u32 2147483647, %v11641_v33  ;;  %vm4102_vm10 = vcmp.eq.s32.totalorder %v8724_v61, %v7546_v29  ;;  %vm4103_vm1 = vcmp.eq.s32.totalorder %v8724_v61, %v7555_v28  ;;  %v3082_v4 = vadd.f32 1.5707288, %v3018_v43  ;;  %4808 = vadd.xlane.f32.xlu0 %v4807_v2 }
 0x2f5   :  { %v3083_v59 = vadd.f32 1.5707288, %v3019_v25  ;;  %v2120_v15 = vadd.f32 %v2119_v21, %v12136_v34  ;;  %v2828_v22 = vadd.f32 0.074261, %v2764_v19  ;;  %v3849_v46 = vsub.f32 3.1415927, %v3721_v20 }
 0x2f6   :  { %v2125_v60 = vadd.f32 %v2124_v49, %v12137_v41  ;;  %v4482_v13 = vsel %vm4098_vm5, 0.0, %v4418_v24  ;;  %v4483_v33 = vsel %vm4099_vm13, 0.0, %v4419_v32  ;;  %v3451_v43 = vsel %vm3450_vm11, %v8595_v35, %v3449_v17 }
 0x2f7   :  { %v2829_v25 = vadd.f32 0.074261, %v2765_v57  ;;  %v8747_v21 = vmax.f32 %v3150_v53, 0.0  ;;  %v4810_v19 = vadd.f32 %v4483_v33, %v4482_v13  ;;  %v3458_v49 = vsel %vm3457_vm12, %v8613_v31, %v3456_v0 }
 0x2f8   :  { %v2766_v2 = vmul.f32 -0.0187293, %v8688_v44  ;;  %v3151_v24 = vsub.f32 1.0, %v8730_v63  ;;  %v8754_v34 = vadd.f32 %v2440_v14, %v2120_v15  ;;  %v8758_v26 = vsel %vm8692_vm4, %v3720_v1, %v3848_v56 }
 0x2f9   :  { %v2892_v17 = vmul.f32 %v2828_v22, %v8630_v37  ;;  %4811 = vadd.xlane.f32.xlu1 %v4810_v19  ;;  %v8761_v57 = vadd.f32 %v2445_v36, %v2125_v60  ;;  %v4292_v33 = vmul.f32 %v8148_v48, %v8148_v48  ;;  %v8767_v53 = vsel %vm8701_vm14, %v3721_v20, %v3849_v46 }
 0x2fa   :  { %v3454_v14 = vsel %vm3452_vm3, %v3453_v7, %v3451_v43  ;;  %v4293_v1 = vmul.f32 %v8174_v27, %v8174_v27  ;;  %v4294_v36 = vmul.f32 %v8201_v45, %v8201_v45  ;;  %v3461_v32 = vsel %vm3459_vm8, %v3460_v52, %v3458_v49  ;;  %v2131_v43 = vpop.f32.mrf.mxu0  ;;  %v12143_v49 = vld [vmem:[#allocation11_spill] sm:$0xff] }
 0x2fb   :  { %v2893_v56 = vmul.f32 %v2829_v25, %v8639_v10  ;;  %5706 = vrsqrt.f32 %v8747_v21  ;;  %v4295_v20 = vmul.f32 %v8409_v30, %v8409_v30  ;;  %v2830_v12 = vadd.f32 0.074261, %v2766_v2  ;;  %v5703_v15 = vpop.eup %5702 }
 0x2fc   :  { %v8783_v35 = vmax.f32 %v3151_v24, 0.0  ;;  %v11645_v7 = vclamps-f32 %v8754_v34, 0.99999  ;;  %v4357_v0 = vsel %vm4101_vm15, %v4293_v1, 0.0  ;;  %v3722_v22 = vmul.f32 %v3454_v14, %v3082_v4  ;;  %v2447_v14 = vpop.f32.mrf.mxu1 }
 0x2fd   :  { %vm8791_vm13 = vcmp.ge.f32.partialorder %v5022_v39, 0.0  ;;  %v12140_v52 = vclamps-f32 %v8490_v5, 0.99999  ;;  %v2956_v41 = vadd.f32 -0.2121144, %v2892_v17  ;;  %v4356_v13 = vsel %vm4100_vm0, %v4292_v33, 0.0  ;;  %v5705_v25 = vpop.eup %5704 }
 0x2fe   :  { %v11644_v60 = vclamps-f32 %v8761_v57, 0.99999  ;;  %v3723_v4 = vmul.f32 %v3461_v32, %v3083_v59  ;;  %v4587_v40 = vadd.f32 %v4357_v0, %v4356_v13  ;;  %v4358_v39 = vsel %vm4102_vm10, %v4294_v36, 0.0 }
 0x2ff   :  { %vm8797_vm5 = vcmp.ge.f32.partialorder %v12140_v52, 0.0  ;;  %v4359_v5 = vsel %vm4103_vm1, %v4295_v20, 0.0  ;;  %v2957_v19 = vadd.f32 -0.2121144, %v2893_v56  ;;  %v2127_v2 = vadd.f32 %v2126_v62, %v12143_v49  ;;  %v12144_v62 = vld [vmem:[#allocation27_spill] sm:$0xff] }
 0x300   :  { %v2767_v24 = vmul.f32 -0.0187293, %v8730_v63  ;;  %v4590_v17 = vadd.f32 %v4359_v5, %v4358_v39  ;;  %v3463_v59 = vmul.f32 %v5703_v15, %v8670_v23  ;;  %v2894_v33 = vmul.f32 %v2830_v12, %v8688_v44  ;;  %4588 = vadd.xlane.f32.xlu0 %v4587_v40 }
 0x301   :  { %5708 = vrsqrt.f32 %v8783_v35  ;;  %v8818_v1 = vand.u32 2147483647, %v11645_v7  ;;  %v3020_v36 = vmul.f32 %v2956_v41, %v8630_v37  ;;  %vm3464_vm9 = vcmp.eq.f32.partialorder %v8670_v23, inf }
 0x302   :  { %v2132_v32 = vadd.f32 %v2131_v43, %v12144_v62  ;;  %v8825_v56 = vand.u32 2147483647, %v11644_v60  ;;  %4591 = vadd.xlane.f32.xlu1 %v4590_v17  ;;  %v3850_v20 = vsub.f32 3.1415927, %v3722_v22  ;;  %v3851_v12 = vsub.f32 3.1415927, %v3723_v4 }
 0x303   :  { %v3470_v0 = vmul.f32 %v5705_v25, %v8680_v3  ;;  %v8828_v15 = vadd.f32 %v2447_v14, %v2127_v2  ;;  %vm3466_vm6 = vcmp.eq.f32.partialorder %v8670_v23, 0.0  ;;  %v3467_v52 = vand.u32 2147483648, %v8670_v23 }
 0x304   :  { %v3021_v37 = vmul.f32 %v2957_v19, %v8639_v10  ;;  %v2831_v41 = vadd.f32 0.074261, %v2767_v24  ;;  %v3465_v13 = vsel %vm3464_vm9, %v8670_v23, %v3463_v59  ;;  %vm3471_vm7 = vcmp.eq.f32.partialorder %v8680_v3, inf  ;;  %v2452_v59 = vpop.f32.mrf.mxu1  ;;  %v2133_v23 = vpop.f32.mrf.mxu0 }
 0x305   :  { %v2958_v43 = vadd.f32 -0.2121144, %v2894_v33  ;;  %v3152_v40 = vsub.f32 1.0, %v8818_v1  ;;  %v3084_v39 = vadd.f32 1.5707288, %v3020_v36  ;;  %vm3473_vm2 = vcmp.eq.f32.partialorder %v8680_v3, 0.0 }
 0x306   :  { %v3474_v5 = vand.u32 2147483648, %v8680_v3  ;;  %v3153_v25 = vsub.f32 1.0, %v8825_v56  ;;  %v8841_v49 = vsel %vm8791_vm13, %v3722_v22, %v3850_v20  ;;  %v8845_v10 = vsel %vm8797_vm5, %v3723_v4, %v3851_v12 }
 0x307   :  { %12145 = vst [vmem:[#allocation33_spill] sm:$0xff] %v8845_v10  ;;  %v3472_v19 = vsel %vm3471_vm7, %v8680_v3, %v3470_v0  ;;  %v11643_v2 = vclamps-f32 %v8828_v15, 0.99999  ;;  %v3468_v24 = vsel %vm3466_vm6, %v3467_v52, %v3465_v13  ;;  %v3085_v17 = vadd.f32 1.5707288, %v3021_v37 }
 0x308   :  { %v2895_v14 = vmul.f32 %v2831_v41, %v8730_v63  ;;  %v4164_v33 = vsub.f32 0.5, %v8148_v48  ;;  %v5707_v31 = vpop.eup %5706  ;;  %v3022_v22 = vmul.f32 %v2958_v43, %v8688_v44  ;;  %vm3478_vm11 = vcmp.eq.f32.partialorder %v8747_v21, inf }
 0x309   :  { %v3481_v46 = vand.u32 2147483648, %v8747_v21  ;;  %v8856_v4 = vmax.f32 %v3152_v40, 0.0  ;;  %v3475_v36 = vsel %vm3473_vm2, %v3474_v5, %v3472_v19  ;;  %vm3480_vm12 = vcmp.eq.f32.partialorder %v8747_v21, 0.0 }
 0x30a   :  { %v8861_v62 = vmax.f32 %v3153_v25, 0.0  ;;  %v8865_v48 = vand.u32 2147483647, %v11643_v2  ;;  %v4165_v44 = vsub.f32 0.5, %v8174_v27  ;;  %v3724_v20 = vmul.f32 %v3468_v24, %v3084_v39  ;;  %v2454_v2 = vpop.f32.mrf.mxu1 }
 0x30b   :  { %v12146_v12 = vclamps-f32 %v8569_v8, 0.99999  ;;  %v2768_v3 = vmul.f32 -0.0187293, %v8818_v1  ;;  %v8875_v52 = vadd.f32 %v2452_v59, %v2132_v32  ;;  %v4228_v37 = vmax.f32 %v4164_v33, 0.0 }
 0x30c   :  { %v12149_v41 = vclamps-f32 %v8577_v38, 0.99999  ;;  %v3477_v27 = vmul.f32 %v5707_v31, %v8747_v21  ;;  %v2959_v43 = vadd.f32 -0.2121144, %v2895_v14  ;;  %vm3485_vm3 = vcmp.eq.f32.partialorder %v8783_v35, inf  ;;  %v2138_v38 = vpop.f32.mrf.mxu0  ;;  %v2459_v0 = vpop.f32.mrf.mxu1 }
 0x30d   :  { %vm8870_vm4 = vcmp.ge.f32.partialorder %v12146_v12, 0.0  ;;  %v4229_v8 = vmax.f32 %v4165_v44, 0.0  ;;  %v4166_v40 = vsub.f32 0.5, %v8201_v45  ;;  %v3725_v39 = vmul.f32 %v3475_v36, %v3085_v17  ;;  %v8898_v44 = vpop.permute.xlu1 %4010 }
 0x30e   :  { %vm8879_vm14 = vcmp.ge.f32.partialorder %v12149_v41, 0.0  ;;  %v3086_v5 = vadd.f32 1.5707288, %v3022_v22  ;;  %5710 = vrsqrt.f32 %v8856_v4  ;;  %v4167_v32 = vsub.f32 0.5, %v8409_v30  ;;  %v5709_v25 = vpop.eup %5708 }
 0x30f   :  { %v2769_v19 = vmul.f32 -0.0187293, %v8825_v56  ;;  %5712 = vrsqrt.f32 %v8861_v62  ;;  %v3154_v24 = vsub.f32 1.0, %v8865_v48  ;;  %v4421_v14 = vmul.f32 %v4229_v8, %v4229_v8 }
 0x310   :  { %vm3487_vm8 = vcmp.eq.f32.partialorder %v8783_v35, 0.0  ;;  %v3488_v59 = vand.u32 2147483648, %v8783_v35  ;;  %v2832_v45 = vadd.f32 0.074261, %v2768_v3  ;;  %v5031_v17 = vclamps-f32 %v8875_v52, 0.99999 }
 0x311   :  { %v4420_v33 = vmul.f32 %v4228_v37, %v4228_v37  ;;  %v3852_v31 = vsub.f32 3.1415927, %v3724_v20  ;;  %v3479_v30 = vsel %vm3478_vm11, %v8747_v21, %v3477_v27  ;;  %v3023_v22 = vmul.f32 %v2959_v43, %v8730_v63  ;;  %v12152_v37 = vld [vmem:[#allocation74_spill] sm:$0xff]  ;;  %v2140_v43 = vpop.f32.mrf.mxu0 }
 0x312   :  { %v4230_v36 = vmax.f32 %v4166_v40, 0.0  ;;  %v3853_v12 = vsub.f32 3.1415927, %v3725_v39  ;;  %v3484_v41 = vmul.f32 %v5709_v25, %v8783_v35  ;;  %v4485_v3 = vsel %vm4101_vm15, 0.0, %v4421_v14  ;;  %v12153_v27 = vld [vmem:[#allocation70_spill] sm:$0xff]  ;;  %v8912_v25 = vpop.permute.xlu0 %4013 }
 0x313   :  { %v4231_v8 = vmax.f32 %v4167_v32, 0.0  ;;  %vm4105_vm13 = vcmp.eq.s32.totalorder %v8898_v44, %v7555_v28  ;;  %v2134_v60 = vadd.f32 %v2133_v23, %v12152_v37  ;;  %v2139_v7 = vadd.f32 %v2138_v38, %v12153_v27 }
 0x314   :  { %v2833_v63 = vadd.f32 0.074261, %v2769_v19  ;;  %v8908_v40 = vmax.f32 %v3154_v24, 0.0  ;;  %vm4104_vm5 = vcmp.eq.s32.totalorder %v8898_v44, %v7546_v29  ;;  %v3482_v32 = vsel %vm3480_vm12, %v3481_v46, %v3479_v30 }
 0x315   :  { %v2896_v14 = vmul.f32 %v2832_v45, %v8818_v1  ;;  %v8919_v10 = vand.u32 2147483647, %v5031_v17  ;;  %v4484_v23 = vsel %vm4100_vm0, 0.0, %v4420_v33  ;;  %vm4107_vm15 = vcmp.eq.s32.totalorder %v8912_v25, %v7555_v28  ;;  %v12154_v45 = vld [vmem:[#allocation14_spill] sm:$0xff] }
 0x316   :  { %v8928_v38 = vsel %vm8870_vm4, %v3724_v20, %v3852_v31  ;;  %v3087_v19 = vadd.f32 1.5707288, %v3023_v22  ;;  %v4813_v21 = vadd.f32 %v4485_v3, %v4484_v23  ;;  %v4422_v46 = vmul.f32 %v4230_v36, %v4230_v36 }
 0x317   :  { %vm4106_vm9 = vcmp.eq.s32.totalorder %v8912_v25, %v7546_v29  ;;  %v8934_v24 = vsel %vm8879_vm14, %v3725_v39, %v3853_v12  ;;  %v3486_v55 = vsel %vm3485_vm3, %v8783_v35, %v3484_v41  ;;  %v2141_v33 = vadd.f32 %v2140_v43, %v12154_v45 }
 0x318   :  { %v4423_v30 = vmul.f32 %v4231_v8, %v4231_v8  ;;  %v3726_v20 = vmul.f32 %v3482_v32, %v3086_v5  ;;  %v2897_v31 = vmul.f32 %v2833_v63, %v8825_v56  ;;  %5714 = vrsqrt.f32 %v8908_v40  ;;  %4814 = vadd.xlane.f32.xlu0 %v4813_v21 }
 0x319   :  { %v8942_v22 = vadd.f32 %v2454_v2, %v2134_v60  ;;  %v12155_v13 = vclamps-f32 %v8651_v47, 0.99999  ;;  %v2960_v36 = vadd.f32 -0.2121144, %v2896_v14  ;;  %v3155_v12 = vsub.f32 1.0, %v8919_v10 }
 0x31a   :  { %v4486_v5 = vsel %vm4102_vm10, 0.0, %v4422_v46  ;;  %v4487_v41 = vsel %vm4103_vm1, 0.0, %v4423_v30  ;;  %v3489_v60 = vsel %vm3487_vm8, %v3488_v59, %v3486_v55  ;;  %v8960_v3 = vadd.f32 %v2459_v0, %v2139_v7  ;;  %v2461_v0 = vpop.f32.mrf.mxu1 }
 0x31b   :  { %vm8946_vm0 = vcmp.ge.f32.partialorder %v12155_v13, 0.0  ;;  %v4816_v2 = vadd.f32 %v4487_v41, %v4486_v5  ;;  %v11650_v47 = vclamps-f32 %v8942_v22, 0.99999  ;;  %v2770_v8 = vmul.f32 -0.0187293, %v8865_v48  ;;  %v5711_v61 = vpop.eup %5710 }
 0x31c   :  { %v2771_v37 = vmul.f32 -0.0187293, %v8919_v10  ;;  %v4296_v27 = vmul.f32 %v8424_v11, %v8424_v11  ;;  %v4297_v63 = vmul.f32 %v8433_v9, %v8433_v9  ;;  %v3854_v43 = vsub.f32 3.1415927, %v3726_v20  ;;  %v5713_v59 = vpop.eup %5712 }
 0x31d   :  { %vm3492_vm10 = vcmp.eq.f32.partialorder %v8856_v4, inf  ;;  %4817 = vadd.xlane.f32.xlu1 %v4816_v2  ;;  %v8971_v35 = vand.u32 2147483647, %v11650_v47  ;;  %v4298_v7 = vmul.f32 %v8444_v16, %v8444_v16  ;;  %v8975_v32 = vmax.f32 %v3155_v12, 0.0  ;;  %v2145_v12 = vpop.f32.mrf.mxu0 }
 0x31e   :  { %v11647_v14 = vclamps-f32 %v8960_v3, 0.99999  ;;  %v4361_v23 = vsel %vm4105_vm13, %v4297_v63, 0.0  ;;  %v4299_v21 = vmul.f32 %v8455_v42, %v8455_v42  ;;  %v8983_v46 = vmul.f32 %v3489_v60, %v3087_v19 }
 0x31f   :  { %v3024_v55 = vmul.f32 %v2960_v36, %v8818_v1  ;;  %vm3494_vm1 = vcmp.eq.f32.partialorder %v8856_v4, 0.0  ;;  %v2961_v45 = vadd.f32 -0.2121144, %v2897_v31  ;;  %v4360_v30 = vsel %vm4104_vm5, %v4296_v27, 0.0 }
 0x320   :  { %v2834_v13 = vadd.f32 0.074261, %v2770_v8  ;;  %v2835_v5 = vadd.f32 0.074261, %v2771_v37  ;;  %v4593_v41 = vadd.f32 %v4361_v23, %v4360_v30  ;;  %v4363_v2 = vsel %vm4107_vm15, %v4299_v21, 0.0  ;;  %v12169_v30 = vld [vmem:[#allocation31_spill] sm:$0xff] }
 0x321   :  { %v3491_v19 = vmul.f32 %v5711_v61, %v8856_v4  ;;  %v3498_v1 = vmul.f32 %v5713_v59, %v8861_v62  ;;  %v3156_v36 = vsub.f32 1.0, %v8971_v35  ;;  %v4362_v31 = vsel %vm4106_vm9, %v4298_v7, 0.0 }
 0x322   :  { %5716 = vrsqrt.f32 %v8975_v32  ;;  %v9002_v60 = vand.u32 2147483647, %v11647_v14  ;;  %4594 = vadd.xlane.f32.xlu0 %v4593_v41  ;;  %v4596_v8 = vadd.f32 %v4363_v2, %v4362_v31  ;;  %v9004_v37 = vadd.f32 %v2461_v0, %v2141_v33  ;;  %v2147_v33 = vpop.f32.mrf.mxu0  ;;  %v2466_v31 = vpop.f32.mrf.mxu1 }
 0x323   :  { %v9008_v27 = vsel %vm8946_vm0, %v3726_v20, %v3854_v43  ;;  %v3495_v63 = vand.u32 2147483648, %v8856_v4  ;;  %v3025_v61 = vmul.f32 %v2961_v45, %v8825_v56  ;;  %vm3499_vm6 = vcmp.eq.f32.partialorder %v8861_v62, inf }
 0x324   :  { %vm3501_vm7 = vcmp.eq.f32.partialorder %v8861_v62, 0.0  ;;  %v3502_v7 = vand.u32 2147483648, %v8861_v62  ;;  %v2898_v59 = vmul.f32 %v2834_v13, %v8865_v48  ;;  %v2899_v23 = vmul.f32 %v2835_v5, %v8919_v10  ;;  %4597 = vadd.xlane.f32.xlu1 %v4596_v8  ;;  %v12161_v13 = vld [vmem:[#allocation28_spill] sm:$0xff] }
 0x325   :  { %v3855_v39 = vsub.f32 3.1415927, %v8983_v46  ;;  %v3493_v20 = vsel %vm3492_vm10, %v8856_v4, %v3491_v19  ;;  %v3500_v56 = vsel %vm3499_vm6, %v8861_v62, %v3498_v1  ;;  %v9022_v43 = vmax.f32 %v3156_v36, 0.0  ;;  %v5715_v21 = vpop.eup %5714  ;;  %v12162_v1 = vld [vmem:[#allocation15_spill] sm:$0xff] }
 0x326   :  { %v12158_v45 = vclamps-f32 %v8673_v54, 0.99999  ;;  %v3088_v0 = vadd.f32 1.5707288, %v3024_v55  ;;  %v2146_v5 = vadd.f32 %v2145_v12, %v12161_v13  ;;  %v3157_v41 = vsub.f32 1.0, %v9002_v60 }
 0x327   :  { %v11648_v2 = vclamps-f32 %v9004_v37, 0.99999  ;;  %v3089_v19 = vadd.f32 1.5707288, %v3025_v61  ;;  %vm3506_vm11 = vcmp.eq.f32.partialorder %v8908_v40, inf  ;;  %vm3508_vm12 = vcmp.eq.f32.partialorder %v8908_v40, 0.0 }
 0x328   :  { %vm9026_vm2 = vcmp.ge.f32.partialorder %v12158_v45, 0.0  ;;  %v9036_v36 = vadd.f32 %v2147_v33, %v12162_v1  ;;  %v3496_v54 = vsel %vm3494_vm1, %v3495_v63, %v3493_v20  ;;  %v3503_v55 = vsel %vm3501_vm7, %v3502_v7, %v3500_v56  ;;  %v2152_v1 = vpop.f32.mrf.mxu0 }
 0x329   :  { %v2962_v12 = vadd.f32 -0.2121144, %v2898_v59  ;;  %v2963_v8 = vadd.f32 -0.2121144, %v2899_v23  ;;  %v3505_v45 = vmul.f32 %v5715_v21, %v8908_v40  ;;  %v2772_v13 = vmul.f32 -0.0187293, %v8971_v35 }
 0x32a   :  { %5718 = vrsqrt.f32 %v9022_v43  ;;  %v9045_v61 = vadd.f32 %v2466_v31, %v2146_v5  ;;  %v12163_v14 = vclamps-f32 %v8754_v34, 0.99999  ;;  %v9053_v4 = vmax.f32 %v3157_v41, 0.0  ;;  %v2154_v47 = vpop.f32.mrf.mxu0 }
 0x32b   :  { %v9057_v62 = vand.u32 2147483647, %v11648_v2  ;;  %v4168_v63 = vsub.f32 0.5, %v8424_v11  ;;  %v4169_v7 = vsub.f32 0.5, %v8433_v9  ;;  %v3728_v59 = vmul.f32 %v3496_v54, %v3088_v0 }
 0x32c   :  { %vm9049_vm4 = vcmp.ge.f32.partialorder %v12163_v14, 0.0  ;;  %v3729_v23 = vmul.f32 %v3503_v55, %v3089_v19  ;;  %v12166_v20 = vclamps-f32 %v8761_v57, 0.99999  ;;  %v3509_v14 = vand.u32 2147483648, %v8908_v40 }
 0x32d   :  { %v11649_v56 = vclamps-f32 %v9045_v61, 0.99999  ;;  %v3026_v21 = vmul.f32 %v2962_v12, %v8865_v48  ;;  %v4232_v5 = vmax.f32 %v4168_v63, 0.0  ;;  %v4233_v41 = vmax.f32 %v4169_v7, 0.0 }
 0x32e   :  { %vm9063_vm14 = vcmp.ge.f32.partialorder %v12166_v20, 0.0  ;;  %v4170_v11 = vsub.f32 0.5, %v8444_v16  ;;  %v3507_v9 = vsel %vm3506_vm11, %v8908_v40, %v3505_v45  ;;  %v3027_v57 = vmul.f32 %v2963_v8, %v8919_v10 }
 0x32f   :  { %vm3513_vm3 = vcmp.eq.f32.partialorder %v8975_v32, inf  ;;  %v3516_v0 = vand.u32 2147483648, %v8975_v32  ;;  %v3158_v31 = vsub.f32 1.0, %v9057_v62  ;;  %v2836_v19 = vadd.f32 0.074261, %v2772_v13  ;;  %v5717_v16 = vpop.eup %5716 }
 0x330   :  { %5720 = vrsqrt.f32 %v9053_v4  ;;  %v4425_v48 = vmul.f32 %v4233_v41, %v4233_v41  ;;  %v4171_v54 = vsub.f32 0.5, %v8455_v42  ;;  %v9083_v55 = vsel %vm9026_vm2, %v8983_v46, %v3855_v39  ;;  %v2468_v41 = vpop.f32.mrf.mxu1 }
 0x331   :  { %v3856_v10 = vsub.f32 3.1415927, %v3728_v59  ;;  %v3857_v12 = vsub.f32 3.1415927, %v3729_v23  ;;  %v9087_v8 = vand.u32 2147483647, %v11649_v56  ;;  %v3510_v45 = vsel %vm3508_vm12, %v3509_v14, %v3507_v9  ;;  %v9101_v9 = vpop.permute.xlu1 %4016 }
 0x332   :  { %vm3515_vm8 = vcmp.eq.f32.partialorder %v8975_v32, 0.0  ;;  %v2773_v13 = vmul.f32 -0.0187293, %v9002_v60  ;;  %v4424_v42 = vmul.f32 %v4232_v5, %v4232_v5  ;;  %v4234_v63 = vmax.f32 %v4170_v11, 0.0 }
 0x333   :  { %v3090_v7 = vadd.f32 1.5707288, %v3026_v21  ;;  %v3091_v20 = vadd.f32 1.5707288, %v3027_v57  ;;  %v2153_v46 = vadd.f32 %v2152_v1, %v12169_v30  ;;  %v9094_v39 = vmax.f32 %v3158_v31, 0.0 }
 0x334   :  { %v3512_v2 = vmul.f32 %v5717_v16, %v8975_v32  ;;  %v2900_v56 = vmul.f32 %v2836_v19, %v8971_v35  ;;  %v4489_v40 = vsel %vm4105_vm13, 0.0, %v4425_v48  ;;  %v4235_v14 = vmax.f32 %v4171_v54, 0.0  ;;  %v2473_v16 = vpop.f32.mrf.mxu1 }
 0x335   :  { %v9105_v21 = vsel %vm9049_vm4, %v3728_v59, %v3856_v10  ;;  %v3730_v5 = vmul.f32 %v3510_v45, %v3090_v7  ;;  %v2774_v11 = vmul.f32 -0.0187293, %v9057_v62  ;;  %v3159_v57 = vsub.f32 1.0, %v9087_v8  ;;  %v9120_v59 = vpop.permute.xlu0 %4019 }
 0x336   :  { %vm4109_vm0 = vcmp.eq.s32.totalorder %v9101_v9, %v7555_v28  ;;  %v9113_v31 = vsel %vm9063_vm14, %v3729_v23, %v3857_v12  ;;  %v2837_v19 = vadd.f32 0.074261, %v2773_v13  ;;  %v4488_v1 = vsel %vm4104_vm5, 0.0, %v4424_v42  ;;  %v12173_v23 = vld [vmem:[#allocation75_spill] sm:$0xff] }
 0x337   :  { %v4426_v33 = vmul.f32 %v4234_v63, %v4234_v63  ;;  %vm4108_vm13 = vcmp.eq.s32.totalorder %v9101_v9, %v7546_v29  ;;  %v12170_v48 = vclamps-f32 %v8828_v15, 0.99999  ;;  %vm3520_vm1 = vcmp.eq.f32.partialorder %v9022_v43, inf  ;;  %v5719_v10 = vpop.eup %5718 }
 0x338   :  { %v9130_v34 = vadd.f32 %v2154_v47, %v12173_v23  ;;  %5722 = vrsqrt.f32 %v9094_v39  ;;  %v4819_v44 = vadd.f32 %v4489_v40, %v4488_v1  ;;  %vm4111_vm5 = vcmp.eq.s32.totalorder %v9120_v59, %v7555_v28 }
 0x339   :  { %vm9124_vm10 = vcmp.ge.f32.partialorder %v12170_v48, 0.0  ;;  %v3514_v15 = vsel %vm3513_vm3, %v8975_v32, %v3512_v2  ;;  %v2964_v12 = vadd.f32 -0.2121144, %v2900_v56  ;;  %v3523_v45 = vand.u32 2147483648, %v9022_v43  ;;  %v2159_v2 = vpop.f32.mrf.mxu0  ;;  %v12174_v32 = vld [vmem:[#allocation73_spill] sm:$0xff] }
 0x33a   :  { %v4427_v13 = vmul.f32 %v4235_v14, %v4235_v14  ;;  %vm4110_vm6 = vcmp.eq.s32.totalorder %v9120_v59, %v7546_v29  ;;  %v3858_v47 = vsub.f32 3.1415927, %v3730_v5  ;;  %vm3522_vm7 = vcmp.eq.f32.partialorder %v9022_v43, 0.0  ;;  %4820 = vadd.xlane.f32.xlu0 %v4819_v44 }
 0x33b   :  { %v2838_v42 = vadd.f32 0.074261, %v2774_v11  ;;  %v9142_v63 = vmax.f32 %v3159_v57, 0.0  ;;  %v9145_v7 = vadd.f32 %v2468_v41, %v9036_v36  ;;  %v2901_v30 = vmul.f32 %v2837_v19, %v9002_v60 }
 0x33c   :  { %v4490_v56 = vsel %vm4106_vm9, 0.0, %v4426_v33  ;;  %v4491_v40 = vsel %vm4107_vm15, 0.0, %v4427_v13  ;;  %v9154_v14 = vadd.f32 %v2473_v16, %v2153_v46  ;;  %v3517_v11 = vsel %vm3515_vm8, %v3516_v0, %v3514_v15 }
 0x33d   :  { %v3519_v36 = vmul.f32 %v5719_v10, %v9022_v43  ;;  %v2775_v41 = vmul.f32 -0.0187293, %v9087_v8  ;;  %v4822_v57 = vadd.f32 %v4491_v40, %v4490_v56  ;;  %v11653_v19 = vclamps-f32 %v9145_v7, 0.99999  ;;  %v5721_v33 = vpop.eup %5720 }
 0x33e   :  { %v11652_v1 = vclamps-f32 %v9154_v14, 0.99999  ;;  %v4300_v25 = vmul.f32 %v8474_v51, %v8474_v51  ;;  %v4301_v46 = vmul.f32 %v8605_v50, %v8605_v50  ;;  %v2902_v48 = vmul.f32 %v2838_v42, %v9057_v62 }
 0x33f   :  { %v2160_v0 = vadd.f32 %v2159_v2, %v12174_v32  ;;  %5724 = vrsqrt.f32 %v9142_v63  ;;  %4823 = vadd.xlane.f32.xlu1 %v4822_v57  ;;  %v4303_v23 = vmul.f32 %v8647_v18, %v8647_v18  ;;  %v3731_v44 = vmul.f32 %v3517_v11, %v3091_v20  ;;  %v2475_v57 = vpop.f32.mrf.mxu1 }
 0x340   :  { %v2965_v16 = vadd.f32 -0.2121144, %v2901_v30  ;;  %v9175_v10 = vand.u32 2147483647, %v11653_v19  ;;  %v4302_v15 = vmul.f32 %v8625_v58, %v8625_v58  ;;  %vm9181_vm15 = vcmp.ge.f32.partialorder %v5031_v17, 0.0 }
 0x341   :  { %v3028_v42 = vmul.f32 %v2964_v12, %v8971_v35  ;;  %v3521_v20 = vsel %vm3520_vm1, %v9022_v43, %v3519_v36  ;;  %v9191_v30 = vand.u32 2147483647, %v11652_v1  ;;  %v4365_v2 = vsel %vm4109_vm0, %v4301_v46, 0.0 }
 0x342   :  { %v9198_v52 = vsel %vm9124_vm10, %v3730_v5, %v3858_v47  ;;  %v3526_v17 = vmul.f32 %v5721_v33, %v9053_v4  ;;  %v2839_v56 = vadd.f32 0.074261, %v2775_v41  ;;  %v4364_v35 = vsel %vm4108_vm13, %v4300_v25, 0.0 }
 0x343   :  { %v2966_v12 = vadd.f32 -0.2121144, %v2902_v48  ;;  %v3160_v40 = vsub.f32 1.0, %v9175_v10  ;;  %v4599_v11 = vadd.f32 %v4365_v2, %v4364_v35  ;;  %v4367_v36 = vsel %vm4111_vm5, %v4303_v23, 0.0  ;;  %v2480_v2 = vpop.f32.mrf.mxu1 }
 0x344   :  { %v3524_v5 = vsel %vm3522_vm7, %v3523_v45, %v3521_v20  ;;  %v3029_v54 = vmul.f32 %v2965_v16, %v9002_v60  ;;  %vm3527_vm9 = vcmp.eq.f32.partialorder %v9053_v4, inf  ;;  %v4366_v47 = vsel %vm4110_vm6, %v4302_v15, 0.0 }
 0x345   :  { %v3092_v41 = vadd.f32 1.5707288, %v3028_v42  ;;  %vm3529_vm2 = vcmp.eq.f32.partialorder %v9053_v4, 0.0  ;;  %v3161_v25 = vsub.f32 1.0, %v9191_v30  ;;  %4600 = vadd.xlane.f32.xlu0 %v4599_v11  ;;  %v4602_v46 = vadd.f32 %v4367_v36, %v4366_v47  ;;  %v5723_v33 = vpop.eup %5722 }
 0x346   :  { %v3859_v48 = vsub.f32 3.1415927, %v3731_v44  ;;  %v3528_v43 = vsel %vm3527_vm9, %v9053_v4, %v3526_v17  ;;  %v2903_v45 = vmul.f32 %v2839_v56, %v9087_v8  ;;  %v9220_v60 = vadd.f32 %v2475_v57, %v9130_v34 }
 0x347   :  { %v3732_v32 = vmul.f32 %v3524_v5, %v3092_v41  ;;  %v3530_v23 = vand.u32 2147483648, %v9053_v4  ;;  %v3030_v16 = vmul.f32 %v2966_v12, %v9057_v62  ;;  %v9224_v15 = vmax.f32 %v3160_v40, 0.0  ;;  %4603 = vadd.xlane.f32.xlu1 %v4602_v46 }
 0x348   :  { %v3093_v42 = vadd.f32 1.5707288, %v3029_v54  ;;  %vm3534_vm11 = vcmp.eq.f32.partialorder %v9094_v39, inf  ;;  %vm3536_vm12 = vcmp.eq.f32.partialorder %v9094_v39, 0.0  ;;  %v3537_v20 = vand.u32 2147483648, %v9094_v39 }
 0x349   :  { %v12177_v17 = vclamps-f32 %v8942_v22, 0.99999  ;;  %v3531_v62 = vsel %vm3529_vm2, %v3530_v23, %v3528_v43  ;;  %v3533_v56 = vmul.f32 %v5723_v33, %v9094_v39  ;;  %v3544_v35 = vand.u32 2147483648, %v9142_v63  ;;  %v2161_v22 = vpop.f32.mrf.mxu0 }
 0x34a   :  { %v9239_v12 = vmax.f32 %v3161_v25, 0.0  ;;  %v9243_v40 = vsel %vm9181_vm15, %v3731_v44, %v3859_v48  ;;  %v2967_v11 = vadd.f32 -0.2121144, %v2903_v45  ;;  %vm3541_vm14 = vcmp.eq.f32.partialorder %v9142_v63, inf }
 0x34b   :  { %vm9231_vm4 = vcmp.ge.f32.partialorder %v12177_v17, 0.0  ;;  %v2776_v36 = vmul.f32 -0.0187293, %v9175_v10  ;;  %v11651_v57 = vclamps-f32 %v9220_v60, 0.99999  ;;  %5726 = vrsqrt.f32 %v9224_v15  ;;  %v2166_v43 = vpop.f32.mrf.mxu0 }
 0x34c   :  { %v3860_v4 = vsub.f32 3.1415927, %v3732_v32  ;;  %v3094_v5 = vadd.f32 1.5707288, %v3030_v16  ;;  %v9249_v54 = vadd.f32 %v2480_v2, %v2160_v0  ;;  %v5725_v47 = vpop.eup %5724  ;;  %v3733_v41 = vmul.f32 %v3531_v62, %v3093_v42 }
 0x34d   :  { %v2777_v13 = vmul.f32 -0.0187293, %v9191_v30  ;;  %v9254_v44 = vand.u32 2147483647, %v11651_v57  ;;  %v4172_v25 = vsub.f32 0.5, %v8474_v51  ;;  %v3535_v46 = vsel %vm3534_vm11, %v9094_v39, %v3533_v56 }
 0x34e   :  { %vm3543_vm3 = vcmp.eq.f32.partialorder %v9142_v63, 0.0  ;;  %5728 = vrsqrt.f32 %v9239_v12  ;;  %v11654_v0 = vclamps-f32 %v9249_v54, 0.99999  ;;  %v4173_v33 = vsub.f32 0.5, %v8605_v50 }
 0x34f   :  { %v2840_v48 = vadd.f32 0.074261, %v2776_v36  ;;  %v3162_v45 = vsub.f32 1.0, %v9254_v44  ;;  %v4236_v23 = vmax.f32 %v4172_v25, 0.0  ;;  %v4174_v16 = vsub.f32 0.5, %v8625_v58  ;;  %v12183_v36 = vld [vmem:[#allocation32_spill] sm:$0xff] }
 0x350   :  { %v12180_v51 = vclamps-f32 %v8960_v3, 0.99999  ;;  %v3540_v2 = vmul.f32 %v5725_v47, %v9142_v63  ;;  %v9275_v17 = vand.u32 2147483647, %v11654_v0  ;;  %v4237_v50 = vmax.f32 %v4173_v33, 0.0 }
 0x351   :  { %v4175_v62 = vsub.f32 0.5, %v8647_v18  ;;  %v3538_v56 = vsel %vm3536_vm12, %v3537_v20, %v3535_v46  ;;  %v3031_v58 = vmul.f32 %v2967_v11, %v9087_v8  ;;  %v2162_v3 = vadd.f32 %v2161_v22, %v12183_v36  ;;  %v2168_v18 = vpop.f32.mrf.mxu0 }
 0x352   :  { %vm9268_vm8 = vcmp.ge.f32.partialorder %v12180_v51, 0.0  ;;  %v9282_v25 = vmax.f32 %v3162_v45, 0.0  ;;  %v12184_v51 = vld [vmem:[#allocation34_spill] sm:$0xff]  ;;  %v2841_v1 = vadd.f32 0.074261, %v2777_v13  ;;  %v4429_v47 = vmul.f32 %v4237_v50, %v4237_v50  ;;  %v9296_v13 = vpop.permute.xlu1 %4022  ;;  %v12185_v45 = vld [vmem:[#allocation80_spill] sm:$0xff] }
 0x353   :  { %v2167_v57 = vadd.f32 %v2166_v43, %v12184_v51  ;;  %v4238_v19 = vmax.f32 %v4174_v16, 0.0  ;;  %v9287_v0 = vsel %vm9231_vm4, %v3732_v32, %v3860_v4  ;;  %v3861_v33 = vsub.f32 3.1415927, %v3733_v41 }
 0x354   :  { %v3163_v39 = vsub.f32 1.0, %v9275_v17  ;;  %v4428_v20 = vmul.f32 %v4236_v23, %v4236_v23  ;;  %v9290_v46 = vmul.f32 %v3538_v56, %v3094_v5  ;;  %v3542_v8 = vsel %vm3541_vm14, %v9142_v63, %v3540_v2  ;;  %v2482_v5 = vpop.f32.mrf.mxu1  ;;  %v9312_v2 = vpop.permute.xlu0 %4025 }
 0x355   :  { %v2904_v11 = vmul.f32 %v2840_v48, %v9175_v10  ;;  %v4239_v22 = vmax.f32 %v4175_v62, 0.0  ;;  %v2778_v34 = vmul.f32 -0.0187293, %v9254_v44  ;;  %5730 = vrsqrt.f32 %v9282_v25 }
 0x356   :  { %v2779_v32 = vmul.f32 -0.0187293, %v9275_v17  ;;  %v4493_v4 = vsel %vm4109_vm0, 0.0, %v4429_v47  ;;  %vm4112_vm10 = vcmp.eq.s32.totalorder %v9296_v13, %v7546_v29  ;;  %vm4113_vm1 = vcmp.eq.s32.totalorder %v9296_v13, %v7555_v28 }
 0x357   :  { %v3095_v48 = vadd.f32 1.5707288, %v3031_v58  ;;  %v2905_v43 = vmul.f32 %v2841_v1, %v9191_v30  ;;  %v9310_v23 = vadd.f32 %v2168_v18, %v12185_v45  ;;  %v4430_v16 = vmul.f32 %v4238_v19, %v4238_v19  ;;  %v2487_v18 = vpop.f32.mrf.mxu1 }
 0x358   :  { %v3545_v50 = vsel %vm3543_vm3, %v3544_v35, %v3542_v8  ;;  %vm3548_vm0 = vcmp.eq.f32.partialorder %v9224_v15, inf  ;;  %v9319_v62 = vmax.f32 %v3163_v39, 0.0  ;;  %v4492_v56 = vsel %vm4108_vm13, 0.0, %v4428_v20  ;;  %v5727_v35 = vpop.eup %5726 }
 0x359   :  { %vm4114_vm7 = vcmp.eq.s32.totalorder %v9312_v2, %v7546_v29  ;;  %vm4115_vm15 = vcmp.eq.s32.totalorder %v9312_v2, %v7555_v28  ;;  %v2968_v19 = vadd.f32 -0.2121144, %v2904_v11  ;;  %v3551_v1 = vand.u32 2147483648, %v9224_v15 }
 0x35a   :  { %v4825_v58 = vadd.f32 %v4493_v4, %v4492_v56  ;;  %v4431_v63 = vmul.f32 %v4239_v22, %v4239_v22  ;;  %v9331_v36 = vsel %vm9268_vm8, %v3733_v41, %v3861_v33  ;;  %v3862_v51 = vsub.f32 3.1415927, %v9290_v46  ;;  %v12201_v22 = vld [vmem:[#allocation83_spill] sm:$0xff] }
 0x35b   :  { %v2842_v9 = vadd.f32 0.074261, %v2778_v34  ;;  %v2843_v47 = vadd.f32 0.074261, %v2779_v32  ;;  %v12186_v39 = vclamps-f32 %v9004_v37, 0.99999  ;;  %v3735_v8 = vmul.f32 %v3545_v50, %v3095_v48  ;;  %v5729_v33 = vpop.eup %5728 }
 0x35c   :  { %vm3550_vm9 = vcmp.eq.f32.partialorder %v9224_v15, 0.0  ;;  %v2969_v11 = vadd.f32 -0.2121144, %v2905_v43  ;;  %4826 = vadd.xlane.f32.xlu0 %v4825_v58  ;;  %v4494_v41 = vsel %vm4110_vm6, 0.0, %v4430_v16  ;;  %v4495_v42 = vsel %vm4111_vm5, 0.0, %v4431_v63 }
 0x35d   :  { %vm9336_vm13 = vcmp.ge.f32.partialorder %v12186_v39, 0.0  ;;  %v12189_v37 = vclamps-f32 %v9045_v61, 0.99999  ;;  %vm3555_vm11 = vcmp.eq.f32.partialorder %v9239_v12, inf  ;;  %5732 = vrsqrt.f32 %v9319_v62 }
 0x35e   :  { %v4828_v34 = vadd.f32 %v4495_v42, %v4494_v41  ;;  %v9355_v32 = vadd.f32 %v2482_v5, %v2162_v3  ;;  %v3032_v4 = vmul.f32 %v2968_v19, %v9175_v10  ;;  %v3547_v48 = vmul.f32 %v5727_v35, %v9224_v15  ;;  %v2173_v41 = vpop.f32.mrf.mxu0 }
 0x35f   :  { %vm9349_vm2 = vcmp.ge.f32.partialorder %v12189_v37, 0.0  ;;  %vm3557_vm5 = vcmp.eq.f32.partialorder %v9239_v12, 0.0  ;;  %v9360_v59 = vadd.f32 %v2487_v18, %v2167_v57  ;;  %v4304_v61 = vmul.f32 %v8661_v6, %v8661_v6 }
 0x360   :  { %v2906_v43 = vmul.f32 %v2842_v9, %v9254_v44  ;;  %v2907_v45 = vmul.f32 %v2843_v47, %v9275_v17  ;;  %4829 = vadd.xlane.f32.xlu1 %v4828_v34  ;;  %v5040_v16 = vclamps-f32 %v9355_v32, 0.99999  ;;  %v4305_v3 = vmul.f32 %v8758_v26, %v8758_v26 }
 0x361   :  { %v3554_v10 = vmul.f32 %v5729_v33, %v9239_v12  ;;  %v5041_v5 = vclamps-f32 %v9360_v59, 0.99999  ;;  %v4306_v57 = vmul.f32 %v8767_v53, %v8767_v53  ;;  %v4307_v50 = vmul.f32 %v8841_v49, %v8841_v49 }
 0x362   :  { %v3863_v56 = vsub.f32 3.1415927, %v3735_v8  ;;  %v9377_v19 = vand.u32 2147483647, %v5040_v16  ;;  %v4368_v58 = vsel %vm4112_vm10, %v4304_v61, 0.0  ;;  %v4369_v63 = vsel %vm4113_vm1, %v4305_v3, 0.0  ;;  %v5731_v34 = vpop.eup %5730 }
 0x363   :  { %v3549_v35 = vsel %vm3548_vm0, %v9224_v15, %v3547_v48  ;;  %v3033_v9 = vmul.f32 %v2969_v11, %v9191_v30  ;;  %v9391_v47 = vand.u32 2147483647, %v5041_v5  ;;  %v4605_v18 = vadd.f32 %v4369_v63, %v4368_v58  ;;  %v12192_v63 = vld [vmem:[#allocation76_spill] sm:$0xff] }
 0x364   :  { %v2970_v39 = vadd.f32 -0.2121144, %v2906_v43  ;;  %v3164_v42 = vsub.f32 1.0, %v9377_v19  ;;  %v4370_v33 = vsel %vm4114_vm7, %v4306_v57, 0.0  ;;  %v4371_v37 = vsel %vm4115_vm15, %v4307_v50, 0.0  ;;  %v2489_v43 = vpop.f32.mrf.mxu1 }
 0x365   :  { %v3556_v30 = vsel %vm3555_vm11, %v9239_v12, %v3554_v10  ;;  %v2971_v11 = vadd.f32 -0.2121144, %v2907_v45  ;;  %v3165_v48 = vsub.f32 1.0, %v9391_v47  ;;  %4606 = vadd.xlane.f32.xlu0 %v4605_v18  ;;  %v4608_v61 = vadd.f32 %v4371_v37, %v4370_v33 }
 0x366   :  { %v9407_v3 = vsel %vm9336_vm13, %v9290_v46, %v3862_v51  ;;  %v3552_v57 = vsel %vm3550_vm9, %v3551_v1, %v3549_v35  ;;  %v3558_v50 = vand.u32 2147483648, %v9239_v12  ;;  %v9412_v58 = vmax.f32 %v3164_v42, 0.0  ;;  %v2175_v35 = vpop.f32.mrf.mxu0 }
 0x367   :  { %v9416_v45 = vsel %vm9349_vm2, %v3735_v8, %v3863_v56  ;;  %v3096_v10 = vadd.f32 1.5707288, %v3032_v4  ;;  %v2174_v18 = vadd.f32 %v2173_v41, %v12192_v63  ;;  %v9419_v33 = vmax.f32 %v3165_v48, 0.0  ;;  %4609 = vadd.xlane.f32.xlu1 %v4608_v61  ;;  %v12199_v48 = vld [vmem:[#allocation37_spill] sm:$0xff] }
 0x368   :  { %v3559_v46 = vsel %vm3557_vm5, %v3558_v50, %v3556_v30  ;;  %v3034_v15 = vmul.f32 %v2970_v39, %v9254_v44  ;;  %v3561_v1 = vmul.f32 %v5731_v34, %v9282_v25  ;;  %v9426_v51 = vadd.f32 %v2489_v43, %v9310_v23  ;;  %v2494_v44 = vpop.f32.mrf.mxu1  ;;  %v2180_v43 = vpop.f32.mrf.mxu0 }
 0x369   :  { %v3736_v20 = vmul.f32 %v3552_v57, %v3096_v10  ;;  %v12193_v8 = vclamps-f32 %v9145_v7, 0.99999  ;;  %v3097_v4 = vadd.f32 1.5707288, %v3033_v9  ;;  %v3035_v56 = vmul.f32 %v2971_v11, %v9275_v17 }
 0x36a   :  { %5734 = vrsqrt.f32 %v9412_v58  ;;  %vm3562_vm12 = vcmp.eq.f32.partialorder %v9282_v25, inf  ;;  %vm3564_vm4 = vcmp.eq.f32.partialorder %v9282_v25, 0.0  ;;  %v2780_v12 = vmul.f32 -0.0187293, %v9377_v19  ;;  %v5733_v7 = vpop.eup %5732 }
 0x36b   :  { %vm9430_vm6 = vcmp.ge.f32.partialorder %v12193_v8, 0.0  ;;  %5736 = vrsqrt.f32 %v9419_v33  ;;  %v3737_v23 = vmul.f32 %v3559_v46, %v3097_v4  ;;  %v12196_v39 = vclamps-f32 %v9154_v14, 0.99999 }
 0x36c   :  { %v3565_v17 = vand.u32 2147483648, %v9282_v25  ;;  %vm3569_vm3 = vcmp.eq.f32.partialorder %v9319_v62, inf  ;;  %v3572_v41 = vand.u32 2147483648, %v9319_v62  ;;  %v3098_v42 = vadd.f32 1.5707288, %v3034_v15 }
 0x36d   :  { %vm9442_vm14 = vcmp.ge.f32.partialorder %v12196_v39, 0.0  ;;  %v3563_v37 = vsel %vm3562_vm12, %v9282_v25, %v3561_v1  ;;  %vm3571_vm8 = vcmp.eq.f32.partialorder %v9319_v62, 0.0  ;;  %v2781_v34 = vmul.f32 -0.0187293, %v9391_v47  ;;  %v2182_v39 = vpop.f32.mrf.mxu0 }
 0x36e   :  { %v5042_v30 = vclamps-f32 %v9426_v51, 0.99999  ;;  %v3864_v14 = vsub.f32 3.1415927, %v3736_v20  ;;  %v3099_v11 = vadd.f32 1.5707288, %v3035_v56  ;;  %v9454_v61 = vadd.f32 %v2175_v35, %v12199_v48 }
 0x36f   :  { %v9456_v57 = vadd.f32 %v2494_v44, %v2174_v18  ;;  %v3568_v50 = vmul.f32 %v5733_v7, %v9319_v62  ;;  %v2844_v10 = vadd.f32 0.074261, %v2780_v12  ;;  %v4176_v46 = vsub.f32 0.5, %v8661_v6  ;;  %v12200_v44 = vld [vmem:[#allocation38_spill] sm:$0xff] }
 0x370   :  { %v9461_v63 = vand.u32 2147483647, %v5042_v30  ;;  %v3865_v15 = vsub.f32 3.1415927, %v3737_v23  ;;  %v3566_v1 = vsel %vm3564_vm4, %v3565_v17, %v3563_v37  ;;  %v4177_v4 = vsub.f32 0.5, %v8758_v26 }
 0x371   :  { %v5043_v8 = vclamps-f32 %v9456_v57, 0.99999  ;;  %v2845_v56 = vadd.f32 0.074261, %v2781_v34  ;;  %v4240_v35 = vmax.f32 %v4176_v46, 0.0  ;;  %v4178_v12 = vsub.f32 0.5, %v8767_v53 }
 0x372   :  { %v3166_v18 = vsub.f32 1.0, %v9461_v63  ;;  %v9471_v7 = vadd.f32 %v2180_v43, %v12200_v44  ;;  %v4241_v25 = vmax.f32 %v4177_v4, 0.0  ;;  %v4179_v17 = vsub.f32 0.5, %v8841_v49 }
 0x373   :  { %v9475_v6 = vand.u32 2147483647, %v5043_v8  ;;  %v9480_v26 = vsel %vm9430_vm6, %v3736_v20, %v3864_v14  ;;  %v3570_v37 = vsel %vm3569_vm3, %v9319_v62, %v3568_v50  ;;  %v2908_v53 = vmul.f32 %v2844_v10, %v9377_v19 }
 0x374   :  { %v9486_v34 = vmax.f32 %v3166_v18, 0.0  ;;  %v9488_v48 = vmul.f32 %v3566_v1, %v3098_v42  ;;  %v4433_v46 = vmul.f32 %v4241_v25, %v4241_v25  ;;  %v4242_v4 = vmax.f32 %v4178_v12, 0.0  ;;  %v9503_v12 = vpop.permute.xlu1 %4028  ;;  %v9519_v25 = vpop.permute.xlu0 %4031 }
 0x375   :  { %v3167_v43 = vsub.f32 1.0, %v9475_v6  ;;  %v9493_v49 = vsel %vm9442_vm14, %v3737_v23, %v3865_v15  ;;  %v2909_v20 = vmul.f32 %v2845_v56, %v9391_v47  ;;  %v9497_v14 = vadd.f32 %v2182_v39, %v12201_v22  ;;  %v2496_v56 = vpop.f32.mrf.mxu1 }
 0x376   :  { %v4432_v50 = vmul.f32 %v4240_v35, %v4240_v35  ;;  %v3573_v10 = vsel %vm3571_vm8, %v3572_v41, %v3570_v37  ;;  %vm3576_vm0 = vcmp.eq.f32.partialorder %v9412_v58, inf  ;;  %v2782_v42 = vmul.f32 -0.0187293, %v9461_v63 }
 0x377   :  { %v4243_v1 = vmax.f32 %v4179_v17, 0.0  ;;  %v5735_v18 = vpop.eup %5734  ;;  %v2972_v9 = vadd.f32 -0.2121144, %v2908_v53  ;;  %5738 = vrsqrt.f32 %v9486_v34  ;;  %v9506_v23 = vmax.f32 %v3167_v43, 0.0  ;;  %v2501_v13 = vpop.f32.mrf.mxu1 }
 0x378   :  { %v4497_v15 = vsel %vm4113_vm1, 0.0, %v4433_v46  ;;  %v5737_v62 = vpop.eup %5736  ;;  %vm4116_vm13 = vcmp.eq.s32.totalorder %v9503_v12, %v7546_v29  ;;  %vm4117_vm9 = vcmp.eq.s32.totalorder %v9503_v12, %v7555_v28  ;;  %v3866_v41 = vsub.f32 3.1415927, %v9488_v48 }
 0x379   :  { %vm3578_vm2 = vcmp.eq.f32.partialorder %v9412_v58, 0.0  ;;  %v3579_v35 = vand.u32 2147483648, %v9412_v58  ;;  %v2783_v44 = vmul.f32 -0.0187293, %v9475_v6  ;;  %v4434_v39 = vmul.f32 %v4242_v4, %v4242_v4 }
 0x37a   :  { %v9521_v17 = vmul.f32 %v3573_v10, %v3099_v11  ;;  %v2973_v37 = vadd.f32 -0.2121144, %v2909_v20  ;;  %vm3583_vm1 = vcmp.eq.f32.partialorder %v9419_v33, inf  ;;  %v4496_v53 = vsel %vm4112_vm10, 0.0, %v4432_v50 }
 0x37b   :  { %vm4118_vm11 = vcmp.eq.s32.totalorder %v9519_v25, %v7546_v29  ;;  %vm4119_vm5 = vcmp.eq.s32.totalorder %v9519_v25, %v7555_v28  ;;  %v3575_v43 = vmul.f32 %v5735_v18, %v9412_v58  ;;  %v2846_v46 = vadd.f32 0.074261, %v2782_v42 }
 0x37c   :  { %v4831_v4 = vadd.f32 %v4497_v15, %v4496_v53  ;;  %v4435_v22 = vmul.f32 %v4243_v1, %v4243_v1  ;;  %v3036_v11 = vmul.f32 %v2972_v9, %v9377_v19  ;;  %v3582_v20 = vmul.f32 %v5737_v62, %v9419_v33 }
 0x37d   :  { %vm3585_vm6 = vcmp.eq.f32.partialorder %v9419_v33, 0.0  ;;  %5740 = vrsqrt.f32 %v9506_v23  ;;  %v12202_v50 = vclamps-f32 %v9220_v60, 0.99999  ;;  %v3586_v18 = vand.u32 2147483648, %v9419_v33 }
 0x37e   :  { %v2847_v42 = vadd.f32 0.074261, %v2783_v44  ;;  %4832 = vadd.xlane.f32.xlu0 %v4831_v4  ;;  %v4498_v19 = vsel %vm4114_vm7, 0.0, %v4434_v39  ;;  %v4499_v1 = vsel %vm4115_vm15, 0.0, %v4435_v22  ;;  %v12205_v9 = vclamps-f32 %v9249_v54, 0.99999 }
 0x37f   :  { %vm9538_vm10 = vcmp.ge.f32.partialorder %v12202_v50, 0.0  ;;  %v3867_v15 = vsub.f32 3.1415927, %v9521_v17  ;;  %v3037_v62 = vmul.f32 %v2973_v37, %v9391_v47  ;;  %v4834_v44 = vadd.f32 %v4499_v1, %v4498_v19  ;;  %v12208_v4 = vld [vmem:[#allocation33_spill] sm:$0xff] }
 0x380   :  { %vm9551_vm12 = vcmp.ge.f32.partialorder %v12205_v9, 0.0  ;;  %v9558_v53 = vadd.f32 %v2496_v56, %v9454_v61  ;;  %v3577_v39 = vsel %vm3576_vm0, %v9412_v58, %v3575_v43  ;;  %v2910_v2 = vmul.f32 %v2846_v46, %v9461_v63 }
 0x381   :  { %v9565_v54 = vadd.f32 %v2501_v13, %v9471_v7  ;;  %v4308_v22 = vmul.f32 %v12208_v4, %v12208_v4  ;;  %v3100_v50 = vadd.f32 1.5707288, %v3036_v11  ;;  %v3584_v47 = vsel %vm3583_vm1, %v9419_v33, %v3582_v20  ;;  %4835 = vadd.xlane.f32.xlu1 %v4834_v44  ;;  %v2187_v20 = vpop.f32.mrf.mxu0 }
 0x382   :  { %v5044_v61 = vclamps-f32 %v9558_v53, 0.99999  ;;  %v4309_v56 = vmul.f32 %v8928_v38, %v8928_v38  ;;  %v2911_v37 = vmul.f32 %v2847_v42, %v9475_v6  ;;  %v4310_v7 = vmul.f32 %v8934_v24, %v8934_v24 }
 0x383   :  { %v11655_v43 = vclamps-f32 %v9565_v54, 0.99999  ;;  %v4311_v46 = vmul.f32 %v9008_v27, %v9008_v27  ;;  %v3580_v11 = vsel %vm3578_vm2, %v3579_v35, %v3577_v39  ;;  %v4372_v42 = vsel %vm4116_vm13, %v4308_v22, 0.0 }
 0x384   :  { %v9585_v13 = vand.u32 2147483647, %v5044_v61  ;;  %v4373_v19 = vsel %vm4117_vm9, %v4309_v56, 0.0  ;;  %v3587_v1 = vsel %vm3585_vm6, %v3586_v18, %v3584_v47  ;;  %v2974_v9 = vadd.f32 -0.2121144, %v2910_v2  ;;  %v5739_v2 = vpop.eup %5738 }
 0x385   :  { %v9597_v58 = vand.u32 2147483647, %v11655_v43  ;;  %v4611_v35 = vadd.f32 %v4373_v19, %v4372_v42  ;;  %vm9601_vm7 = vcmp.ge.f32.partialorder %v5040_v16, 0.0  ;;  %v3101_v39 = vadd.f32 1.5707288, %v3037_v62  ;;  %v2503_v42 = vpop.f32.mrf.mxu1  ;;  %v9669_v43 = vpop.permute.xlu1 %4034 }
 0x386   :  { %v3168_v22 = vsub.f32 1.0, %v9585_v13  ;;  %v4374_v33 = vsel %vm4118_vm11, %v4310_v7, 0.0  ;;  %v4375_v18 = vsel %vm4119_vm5, %v4311_v46, 0.0  ;;  %v3740_v47 = vmul.f32 %v3580_v11, %v3100_v50  ;;  %v12213_v46 = vld [vmem:[#allocation79_spill] sm:$0xff] }
 0x387   :  { %vm9614_vm15 = vcmp.ge.f32.partialorder %v5041_v5, 0.0  ;;  %v2975_v16 = vadd.f32 -0.2121144, %v2911_v37  ;;  %v3169_v62 = vsub.f32 1.0, %v9597_v58  ;;  %4612 = vadd.xlane.f32.xlu0 %v4611_v35  ;;  %v4614_v56 = vadd.f32 %v4375_v18, %v4374_v33  ;;  %v2189_v5 = vpop.f32.mrf.mxu0 }
 0x388   :  { %v9624_v7 = vsel %vm9538_vm10, %v9488_v48, %v3866_v41  ;;  %v3741_v50 = vmul.f32 %v3587_v1, %v3101_v39  ;;  %v2188_v59 = vadd.f32 %v2187_v20, %v12213_v46  ;;  %v9627_v11 = vmax.f32 %v3168_v22, 0.0  ;;  %v12216_v46 = vld [vmem:[#allocation30_spill] sm:$0xff] }
 0x389   :  { %v9632_v37 = vsel %vm9551_vm12, %v9521_v17, %v3867_v15  ;;  %v3038_v19 = vmul.f32 %v2974_v9, %v9461_v63  ;;  %v2784_v35 = vmul.f32 -0.0187293, %v9585_v13  ;;  %v9636_v33 = vmax.f32 %v3169_v62, 0.0  ;;  %4615 = vadd.xlane.f32.xlu1 %v4614_v56  ;;  %v2194_v20 = vpop.f32.mrf.mxu0  ;;  %v2508_v9 = vpop.f32.mrf.mxu1 }
 0x38a   :  { %v3589_v48 = vmul.f32 %v5739_v2, %v9486_v34  ;;  %vm3590_vm4 = vcmp.eq.f32.partialorder %v9486_v34, inf  ;;  %5742 = vrsqrt.f32 %v9627_v11  ;;  %v9642_v41 = vadd.f32 %v2503_v42, %v9497_v14  ;;  %v5741_v10 = vpop.eup %5740  ;;  %v12214_v2 = vld [vmem:[#allocation41_spill] sm:$0xff] }
 0x38b   :  { %v3868_v60 = vsub.f32 3.1415927, %v3740_v47  ;;  %vm3592_vm14 = vcmp.eq.f32.partialorder %v9486_v34, 0.0  ;;  %v3593_v63 = vand.u32 2147483648, %v9486_v34  ;;  %v3039_v17 = vmul.f32 %v2975_v16, %v9475_v6 }
 0x38c   :  { %v3869_v15 = vsub.f32 3.1415927, %v3741_v50  ;;  %vm3597_vm3 = vcmp.eq.f32.partialorder %v9506_v23, inf  ;;  %v2785_v1 = vmul.f32 -0.0187293, %v9597_v58  ;;  %5744 = vrsqrt.f32 %v9636_v33 }
 0x38d   :  { %v3102_v39 = vadd.f32 1.5707288, %v3038_v19  ;;  %vm3599_vm8 = vcmp.eq.f32.partialorder %v9506_v23, 0.0  ;;  %v3600_v14 = vand.u32 2147483648, %v9506_v23  ;;  %v2848_v22 = vadd.f32 0.074261, %v2784_v35 }
 0x38e   :  { %v3591_v18 = vsel %vm3590_vm4, %v9486_v34, %v3589_v48  ;;  %v3596_v6 = vmul.f32 %v5741_v10, %v9506_v23  ;;  %v9657_v16 = vadd.f32 %v2189_v5, %v12214_v2  ;;  %v11657_v62 = vclamps-f32 %v9642_v41, 0.99999  ;;  %v2196_v10 = vpop.f32.mrf.mxu0 }
 0x38f   :  { %v9662_v56 = vsel %vm9601_vm7, %v3740_v47, %v3868_v60  ;;  %v3103_v42 = vadd.f32 1.5707288, %v3039_v17  ;;  %v9665_v19 = vadd.f32 %v2194_v20, %v12216_v46  ;;  %v9667_v35 = vadd.f32 %v2508_v9, %v2188_v59 }
 0x390   :  { %12215 = vst [vmem:[#allocation91_spill] sm:$0xff] %v9662_v56  ;;  %v9673_v48 = vsel %vm9614_vm15, %v3741_v50, %v3869_v15  ;;  %v2849_v5 = vadd.f32 0.074261, %v2785_v1  ;;  %v9677_v2 = vand.u32 2147483647, %v11657_v62  ;;  %v4180_v44 = vsub.f32 0.5, %v12208_v4 }
 0x391   :  { %12217 = vst [vmem:[#allocation95_spill] sm:$0xff] %v9673_v48  ;;  %v3594_v47 = vsel %vm3592_vm14, %v3593_v63, %v3591_v18  ;;  %v2912_v59 = vmul.f32 %v2848_v22, %v9585_v13  ;;  %v11656_v60 = vclamps-f32 %v9667_v35, 0.99999  ;;  %v4181_v17 = vsub.f32 0.5, %v8928_v38  ;;  %v12220_v4 = vld [vmem:[#allocation42_spill] sm:$0xff] }
 0x392   :  { %v3598_v32 = vsel %vm3597_vm3, %v9506_v23, %v3596_v6  ;;  %v3170_v50 = vsub.f32 1.0, %v9677_v2  ;;  %v4244_v15 = vmax.f32 %v4180_v44, 0.0  ;;  %v4182_v20 = vsub.f32 0.5, %v8934_v24 }
 0x393   :  { %vm9692_vm0 = vcmp.ge.f32.partialorder %v5042_v30, 0.0  ;;  %v9697_v63 = vadd.f32 %v2196_v10, %v12220_v4  ;;  %v9701_v38 = vand.u32 2147483647, %v11656_v60  ;;  %v4245_v1 = vmax.f32 %v4181_v17, 0.0  ;;  %v9711_v10 = vpop.permute.xlu1 %4040  ;;  %v2510_v4 = vpop.f32.mrf.mxu1 }
 0x394   :  { %v4183_v9 = vsub.f32 0.5, %v9008_v27  ;;  %v3742_v22 = vmul.f32 %v3594_v47, %v3102_v39  ;;  %vm3604_vm2 = vcmp.eq.f32.partialorder %v9627_v11, inf  ;;  %v2913_v24 = vmul.f32 %v2849_v5, %v9597_v58 }
 0x395   :  { %v9706_v51 = vmax.f32 %v3170_v50, 0.0  ;;  %v3601_v30 = vsel %vm3599_vm8, %v3600_v14, %v3598_v32  ;;  %v3171_v18 = vsub.f32 1.0, %v9701_v38  ;;  %v4437_v6 = vmul.f32 %v4245_v1, %v4245_v1  ;;  %v9719_v14 = vpop.permute.xlu0 %4037 }
 0x396   :  { %v4246_v46 = vmax.f32 %v4182_v20, 0.0  ;;  %v2976_v44 = vadd.f32 -0.2121144, %v2912_v59  ;;  %v2786_v17 = vmul.f32 -0.0187293, %v9677_v2  ;;  %v4436_v27 = vmul.f32 %v4244_v15, %v4244_v15 }
 0x397   :  { %5746 = vrsqrt.f32 %v9706_v51  ;;  %v5743_v39 = vpop.eup %5742  ;;  %vm3606_vm1 = vcmp.eq.f32.partialorder %v9627_v11, 0.0  ;;  %v2787_v5 = vmul.f32 -0.0187293, %v9701_v38  ;;  %v9717_v47 = vmax.f32 %v3171_v18, 0.0 }
 0x398   :  { %v4247_v23 = vmax.f32 %v4183_v9, 0.0  ;;  %v3870_v32 = vsub.f32 3.1415927, %v3742_v22  ;;  %v3607_v50 = vand.u32 2147483648, %v9627_v11  ;;  %v2977_v20 = vadd.f32 -0.2121144, %v2913_v24 }
 0x399   :  { %v4501_v59 = vsel %vm4117_vm9, 0.0, %v4437_v6  ;;  %v5745_v15 = vpop.eup %5744  ;;  %vm4120_vm6 = vcmp.eq.s32.totalorder %v9669_v43, %v7546_v29  ;;  %vm4121_vm10 = vcmp.eq.s32.totalorder %v9669_v43, %v7555_v28  ;;  %v9729_v1 = vmul.f32 %v3601_v30, %v3103_v42  ;;  %v9768_v57 = vpop.permute.xlu0 %4043 }
 0x39a   :  { %v3603_v9 = vmul.f32 %v5743_v39, %v9627_v11  ;;  %vm3611_vm12 = vcmp.eq.f32.partialorder %v9636_v33, inf  ;;  %v4438_v18 = vmul.f32 %v4246_v46, %v4246_v46  ;;  %v3040_v24 = vmul.f32 %v2976_v44, %v9585_v13  ;;  %v9743_v39 = vpop.permute.xlu1 %4046 }
 0x39b   :  { %v3610_v60 = vmul.f32 %v5745_v15, %v9636_v33  ;;  %v2850_v6 = vadd.f32 0.074261, %v2786_v17  ;;  %v4500_v62 = vsel %vm4116_vm13, 0.0, %v4436_v27  ;;  %vm4122_vm9 = vcmp.eq.s32.totalorder %v9719_v14, %v7546_v29  ;;  %v2515_v17 = vpop.f32.mrf.mxu1 }
 0x39c   :  { %vm4123_vm7 = vcmp.eq.s32.totalorder %v9719_v14, %v7555_v28  ;;  %v2851_v42 = vadd.f32 0.074261, %v2787_v5  ;;  %5748 = vrsqrt.f32 %v9717_v47  ;;  %v4837_v30 = vadd.f32 %v4501_v59, %v4500_v62  ;;  %v2201_v59 = vpop.f32.mrf.mxu0 }
 0x39d   :  { %v4439_v46 = vmul.f32 %v4247_v23, %v4247_v23  ;;  %v9747_v13 = vsel %vm9692_vm0, %v3742_v22, %v3870_v32  ;;  %v3041_v12 = vmul.f32 %v2977_v20, %v9597_v58  ;;  %vm3613_vm13 = vcmp.eq.f32.partialorder %v9636_v33, 0.0 }
 0x39e   :  { %12221 = vst [vmem:[#allocation35_spill] sm:$0xff] %v9747_v13  ;;  %v3614_v44 = vand.u32 2147483648, %v9636_v33  ;;  %vm9754_vm15 = vcmp.ge.f32.partialorder %v5043_v8, 0.0  ;;  %v3871_v62 = vsub.f32 3.1415927, %v9729_v1  ;;  %v3605_v34 = vsel %vm3604_vm2, %v9627_v11, %v3603_v9  ;;  %4838 = vadd.xlane.f32.xlu0 %v4837_v30  ;;  %v9795_v11 = vpop.permute.xlu1 %4052  ;;  %v12232_v13 = vld [vmem:[#allocation88_spill] sm:$0xff] }
 0x39f   :  { %v4502_v58 = vsel %vm4118_vm11, 0.0, %v4438_v18  ;;  %v4503_v22 = vsel %vm4119_vm5, 0.0, %v4439_v46  ;;  %v3612_v8 = vsel %vm3611_vm12, %v9636_v33, %v3610_v60  ;;  %v2914_v5 = vmul.f32 %v2850_v6, %v9677_v2 }
 0x3a0   :  { %v4840_v23 = vadd.f32 %v4503_v22, %v4502_v58  ;;  %v9775_v32 = vadd.f32 %v2510_v4, %v9657_v16  ;;  %v3104_v20 = vadd.f32 1.5707288, %v3040_v24  ;;  %v2915_v15 = vmul.f32 %v2851_v42, %v9701_v38 }
 0x3a1   :  { %v9779_v9 = vadd.f32 %v2515_v17, %v9665_v19  ;;  %v4312_v25 = vmul.f32 %v9083_v55, %v9083_v55  ;;  %v3608_v18 = vsel %vm3606_vm1, %v3607_v50, %v3605_v34  ;;  %v3105_v60 = vadd.f32 1.5707288, %v3041_v12  ;;  %v2203_v34 = vpop.f32.mrf.mxu0 }
 0x3a2   :  { %4841 = vadd.xlane.f32.xlu1 %v4840_v23  ;;  %v11659_v6 = vclamps-f32 %v9775_v32, 0.99999  ;;  %v4313_v16 = vmul.f32 %v9105_v21, %v9105_v21  ;;  %v3615_v4 = vsel %vm3613_vm13, %v3614_v44, %v3612_v8  ;;  %v4314_v19 = vmul.f32 %v9113_v31, %v9113_v31  ;;  %v9811_v8 = vpop.permute.xlu0 %4049  ;;  %v9849_v27 = vpop.permute.xlu1 %4058 }
 0x3a3   :  { %v11658_v24 = vclamps-f32 %v9779_v9, 0.99999  ;;  %v4315_v42 = vmul.f32 %v9198_v52, %v9198_v52  ;;  %v2978_v50 = vadd.f32 -0.2121144, %v2914_v5  ;;  %v4376_v33 = vsel %vm4120_vm6, %v4312_v25, 0.0 }
 0x3a4   :  { %v9799_v30 = vand.u32 2147483647, %v11659_v6  ;;  %v4377_v46 = vsel %vm4121_vm10, %v4313_v16, 0.0  ;;  %v5747_v12 = vpop.eup %5746  ;;  %v3744_v44 = vmul.f32 %v3608_v18, %v3104_v20  ;;  %v2979_v17 = vadd.f32 -0.2121144, %v2915_v15 }
 0x3a5   :  { %v9809_v58 = vand.u32 2147483647, %v11658_v24  ;;  %v4617_v22 = vadd.f32 %v4377_v46, %v4376_v33  ;;  %vm9815_vm11 = vcmp.ge.f32.partialorder %v5044_v61, 0.0  ;;  %v3745_v23 = vmul.f32 %v3615_v4, %v3105_v60  ;;  %v2517_v4 = vpop.f32.mrf.mxu1  ;;  %v12230_v46 = vld [vmem:[#allocation84_spill] sm:$0xff] }
 0x3a6   :  { %v12226_v25 = vclamps-f32 %v9565_v54, 0.99999  ;;  %v3172_v15 = vsub.f32 1.0, %v9799_v30  ;;  %v4378_v18 = vsel %vm4122_vm9, %v4314_v19, 0.0  ;;  %v4379_v53 = vsel %vm4123_vm7, %v4315_v42, 0.0 }
 0x3a7   :  { %v3617_v61 = vmul.f32 %v5747_v12, %v9706_v51  ;;  %v2788_v60 = vmul.f32 -0.0187293, %v9799_v30  ;;  %v3173_v54 = vsub.f32 1.0, %v9809_v58  ;;  %4618 = vadd.xlane.f32.xlu0 %v4617_v22  ;;  %v4620_v16 = vadd.f32 %v4379_v53, %v4378_v18  ;;  %v2208_v22 = vpop.f32.mrf.mxu0 }
 0x3a8   :  { %vm9821_vm5 = vcmp.ge.f32.partialorder %v12226_v25, 0.0  ;;  %v9838_v33 = vsel %vm9754_vm15, %v9729_v1, %v3871_v62  ;;  %v2202_v19 = vadd.f32 %v2201_v59, %v12230_v46  ;;  %v9841_v25 = vmax.f32 %v3172_v15, 0.0 }
 0x3a9   :  { %12229 = vst [vmem:[#allocation97_spill] sm:$0xff] %v9838_v33  ;;  %v2789_v42 = vmul.f32 -0.0187293, %v9809_v58  ;;  %v3042_v12 = vmul.f32 %v2978_v50, %v9677_v2  ;;  %vm3618_vm4 = vcmp.eq.f32.partialorder %v9706_v51, inf  ;;  %vm3620_vm14 = vcmp.eq.f32.partialorder %v9706_v51, 0.0  ;;  %4621 = vadd.xlane.f32.xlu1 %v4620_v16  ;;  %v5749_v53 = vpop.eup %5748 }
 0x3aa   :  { %v9847_v18 = vmax.f32 %v3173_v54, 0.0  ;;  %v3621_v1 = vand.u32 2147483648, %v9706_v51  ;;  %v3043_v62 = vmul.f32 %v2979_v17, %v9701_v38  ;;  %5750 = vrsqrt.f32 %v9841_v25  ;;  %v9858_v54 = vpop.permute.xlu0 %4055  ;;  %v2522_v38 = vpop.f32.mrf.mxu1 }
 0x3ab   :  { %v9855_v59 = vadd.f32 %v2517_v4, %v9697_v63  ;;  %v3872_v2 = vsub.f32 3.1415927, %v3744_v44  ;;  %v3873_v50 = vsub.f32 3.1415927, %v3745_v23  ;;  %v3619_v15 = vsel %vm3618_vm4, %v9706_v51, %v3617_v61  ;;  %v12231_v4 = vld [vmem:[#allocation82_spill] sm:$0xff]  ;;  %v2210_v61 = vpop.f32.mrf.mxu0  ;;  %v9885_v51 = vpop.permute.xlu1 %4064 }
 0x3ac   :  { %v2852_v46 = vadd.f32 0.074261, %v2788_v60  ;;  %vm3625_vm3 = vcmp.eq.f32.partialorder %v9717_v47, inf  ;;  %vm3627_vm8 = vcmp.eq.f32.partialorder %v9717_v47, 0.0  ;;  %v2853_v16 = vadd.f32 0.074261, %v2789_v42 }
 0x3ad   :  { %5752 = vrsqrt.f32 %v9847_v18  ;;  %v3106_v17 = vadd.f32 1.5707288, %v3042_v12  ;;  %v3624_v24 = vmul.f32 %v5749_v53, %v9717_v47  ;;  %v3628_v63 = vand.u32 2147483648, %v9717_v47  ;;  %12235 = vst [vmem:[#allocation96_spill] sm:$0xff] %v9885_v51 }
 0x3ae   :  { %v9866_v6 = vadd.f32 %v2203_v34, %v12231_v4  ;;  %v3622_v60 = vsel %vm3620_vm14, %v3621_v1, %v3619_v15  ;;  %v3107_v33 = vadd.f32 1.5707288, %v3043_v62  ;;  %v9871_v48 = vadd.f32 %v2208_v22, %v12232_v13  ;;  %v12236_v13 = vld [vmem:[#allocation85_spill] sm:$0xff] }
 0x3af   :  { %v11663_v42 = vclamps-f32 %v9855_v59, 0.99999  ;;  %v9876_v12 = vsel %vm9815_vm11, %v3744_v44, %v3872_v2  ;;  %v9880_v53 = vsel %vm9821_vm5, %v3745_v23, %v3873_v50  ;;  %v2916_v34 = vmul.f32 %v2852_v46, %v9799_v30  ;;  %v9903_v2 = vpop.permute.xlu0 %4061  ;;  %v9919_v51 = vpop.permute.xlu1 %4070 }
 0x3b0   :  { %12233 = vst [vmem:[#allocation94_spill] sm:$0xff] %v9876_v12  ;;  %12234 = vst [vmem:[#allocation98_spill] sm:$0xff] %v9880_v53  ;;  %v9883_v4 = vadd.f32 %v2522_v38, %v2202_v19  ;;  %v2917_v1 = vmul.f32 %v2853_v16, %v9809_v58  ;;  %v9889_v22 = vadd.f32 %v2210_v61, %v12236_v13  ;;  %v4184_v44 = vsub.f32 0.5, %v9083_v55 }
 0x3b1   :  { %v9893_v5 = vand.u32 2147483647, %v11663_v42  ;;  %v9896_v20 = vmul.f32 %v3622_v60, %v3106_v17  ;;  %v3626_v23 = vsel %vm3625_vm3, %v9717_v47, %v3624_v24  ;;  %v4185_v62 = vsub.f32 0.5, %v9105_v21  ;;  %12237 = vst [vmem:[#allocation101_spill] sm:$0xff] %v9919_v51 }
 0x3b2   :  { %v11665_v19 = vclamps-f32 %v9883_v4, 0.99999  ;;  %v4248_v46 = vmax.f32 %v4184_v44, 0.0  ;;  %v4186_v16 = vsub.f32 0.5, %v9113_v31  ;;  %v2980_v55 = vadd.f32 -0.2121144, %v2916_v34 }
 0x3b3   :  { %v2790_v50 = vmul.f32 -0.0187293, %v9893_v5  ;;  %v3174_v15 = vsub.f32 1.0, %v9893_v5  ;;  %v4249_v17 = vmax.f32 %v4185_v62, 0.0  ;;  %v4187_v24 = vsub.f32 0.5, %v9198_v52 }
 0x3b4   :  { %v9910_v38 = vand.u32 2147483647, %v11665_v19  ;;  %v3629_v21 = vsel %vm3627_vm8, %v3628_v63, %v3626_v23  ;;  %v2981_v61 = vadd.f32 -0.2121144, %v2917_v1  ;;  %v4250_v34 = vmax.f32 %v4186_v16, 0.0  ;;  %v9955_v16 = vpop.permute.xlu1 %4076 }
 0x3b5   :  { %v2854_v60 = vadd.f32 0.074261, %v2790_v50  ;;  %v9915_v13 = vmax.f32 %v3174_v15, 0.0  ;;  %v4441_v31 = vmul.f32 %v4249_v17, %v4249_v17  ;;  %vm3632_vm0 = vcmp.eq.f32.partialorder %v9841_v25, inf  ;;  %v9933_v15 = vpop.permute.xlu0 %4067 }
 0x3b6   :  { %v2791_v42 = vmul.f32 -0.0187293, %v9910_v38  ;;  %v3175_v44 = vsub.f32 1.0, %v9910_v38  ;;  %v4440_v52 = vmul.f32 %v4248_v46, %v4248_v46  ;;  %v9924_v63 = vmul.f32 %v3629_v21, %v3107_v33  ;;  %12238 = vst [vmem:[#allocation99_spill] sm:$0xff] %v9933_v15  ;;  %v2524_v21 = vpop.f32.mrf.mxu1  ;;  %v12239_v15 = vld [vmem:[#allocation90_spill] sm:$0xff] }
 0x3b7   :  { %5754 = vrsqrt.f32 %v9915_v13  ;;  %v5751_v47 = vpop.eup %5750  ;;  %v2918_v1 = vmul.f32 %v2854_v60, %v9893_v5  ;;  %v4251_v50 = vmax.f32 %v4187_v24, 0.0  ;;  %vm4124_vm2 = vcmp.eq.s32.totalorder %v9711_v10, %v7546_v29 }
 0x3b8   :  { %v9927_v23 = vmax.f32 %v3175_v44, 0.0  ;;  %vm4125_vm1 = vcmp.eq.s32.totalorder %v9711_v10, %v7555_v28  ;;  %v3044_v46 = vmul.f32 %v2980_v55, %v9799_v30  ;;  %v2855_v17 = vadd.f32 0.074261, %v2791_v42  ;;  %v2215_v44 = vpop.f32.mrf.mxu0  ;;  %v2529_v12 = vpop.f32.mrf.mxu1 }
 0x3b9   :  { %v4505_v33 = vsel %vm4121_vm10, 0.0, %v4441_v31  ;;  %vm3634_vm12 = vcmp.eq.f32.partialorder %v9841_v25, 0.0  ;;  %v3045_v24 = vmul.f32 %v2981_v61, %v9809_v58  ;;  %vm3639_vm13 = vcmp.eq.f32.partialorder %v9847_v18, inf }
 0x3ba   :  { %v5753_v60 = vpop.eup %5752  ;;  %5756 = vrsqrt.f32 %v9927_v23  ;;  %v4442_v19 = vmul.f32 %v4250_v34, %v4250_v34  ;;  %vm4126_vm15 = vcmp.eq.s32.totalorder %v9768_v57, %v7546_v29  ;;  %vm4127_vm11 = vcmp.eq.s32.totalorder %v9768_v57, %v7555_v28 }
 0x3bb   :  { %v3631_v30 = vmul.f32 %v5751_v47, %v9841_v25  ;;  %vm3641_vm10 = vcmp.eq.f32.partialorder %v9847_v18, 0.0  ;;  %v3642_v42 = vand.u32 2147483648, %v9847_v18  ;;  %v4504_v58 = vsel %vm4120_vm6, 0.0, %v4440_v52 }
 0x3bc   :  { %v2982_v61 = vadd.f32 -0.2121144, %v2918_v1  ;;  %v4843_v31 = vadd.f32 %v4505_v33, %v4504_v58  ;;  %v4443_v34 = vmul.f32 %v4251_v50, %v4251_v50  ;;  %v3108_v62 = vadd.f32 1.5707288, %v3044_v46  ;;  %v9969_v1 = vpop.permute.xlu0 %4073 }
 0x3bd   :  { %v3638_v51 = vmul.f32 %v5753_v60, %v9847_v18  ;;  %v9959_v47 = vadd.f32 %v2215_v44, %v12239_v15  ;;  %v2919_v53 = vmul.f32 %v2855_v17, %v9910_v38  ;;  %v3109_v56 = vadd.f32 1.5707288, %v3045_v24 }
 0x3be   :  { %vm3646_vm5 = vcmp.eq.f32.partialorder %v9915_v13, inf  ;;  %4844 = vadd.xlane.f32.xlu0 %v4843_v31  ;;  %v4506_v43 = vsel %vm4122_vm9, 0.0, %v4442_v19  ;;  %v4507_v52 = vsel %vm4123_vm7, 0.0, %v4443_v34  ;;  %v3633_v50 = vsel %vm3632_vm0, %v9841_v25, %v3631_v30  ;;  %v2531_v30 = vpop.f32.mrf.mxu1 }
 0x3bf   :  { %v3649_v15 = vand.u32 2147483648, %v9915_v13  ;;  %v4846_v46 = vadd.f32 %v4507_v52, %v4506_v43  ;;  %v9976_v17 = vadd.f32 %v2524_v21, %v9866_v6  ;;  %v3046_v33 = vmul.f32 %v2982_v61, %v9893_v5 }
 0x3c0   :  { %vm3648_vm6 = vcmp.eq.f32.partialorder %v9915_v13, 0.0  ;;  %v9981_v19 = vadd.f32 %v2529_v12, %v9871_v48  ;;  %v4316_v14 = vmul.f32 %v9243_v40, %v9243_v40  ;;  %v4317_v60 = vmul.f32 %v9287_v0, %v9287_v0  ;;  %v9994_v12 = vpop.xlane.xlu1 %4570 }
 0x3c1   :  { %v3640_v24 = vsel %vm3639_vm13, %v9847_v18, %v3638_v51  ;;  %v2983_v44 = vadd.f32 -0.2121144, %v2919_v53  ;;  %vm3653_vm9 = vcmp.eq.f32.partialorder %v9927_v23, inf  ;;  %4847 = vadd.xlane.f32.xlu1 %v4846_v46  ;;  %v11672_v6 = vclamps-f32 %v9976_v17, 0.99999  ;;  %12240 = vst [vmem:[#allocation103_spill] sm:$0xff] %v9994_v12 }
 0x3c2   :  { %v4318_v48 = vmul.f32 %v9331_v36, %v9331_v36  ;;  %vm3655_vm7 = vcmp.eq.f32.partialorder %v9927_v23, 0.0  ;;  %v11671_v5 = vclamps-f32 %v9981_v19, 0.99999  ;;  %v4380_v21 = vsel %vm4124_vm2, %v4316_v14, 0.0  ;;  %v10021_v14 = vpop.xlane.xlu0 %4567 }
 0x3c3   :  { %v4381_v53 = vsel %vm4125_vm1, %v4317_v60, 0.0  ;;  %v4319_v51 = vmul.f32 %v9407_v3, %v9407_v3  ;;  %v12241_v58 = vclamps-f32 %v9642_v41, 0.99999  ;;  %v12244_v31 = vand.u32 2147483648, %v9841_v25 }
 0x3c4   :  { %v3656_v43 = vand.u32 2147483648, %v9927_v23  ;;  %v10019_v52 = vand.u32 2147483647, %v11672_v6  ;;  %v4623_v46 = vadd.f32 %v4381_v53, %v4380_v21  ;;  %v5755_v60 = vpop.eup %5754  ;;  %v12245_v41 = vclamps-f32 %v9667_v35, 0.99999 }
 0x3c5   :  { %vm10008_vm4 = vcmp.ge.f32.partialorder %v12241_v58, 0.0  ;;  %v3636_v34 = vsel %vm3634_vm12, %v12244_v31, %v3633_v50  ;;  %v3643_v25 = vsel %vm3641_vm10, %v3642_v42, %v3640_v24  ;;  %v10033_v50 = vand.u32 2147483647, %v11671_v5 }
 0x3c6   :  { %vm10025_vm14 = vcmp.ge.f32.partialorder %v12245_v41, 0.0  ;;  %v4382_v21 = vsel %vm4126_vm15, %v4318_v48, 0.0  ;;  %v4383_v53 = vsel %vm4127_vm11, %v4319_v51, 0.0  ;;  %v12248_v35 = vclamps-f32 %v9775_v32, 0.99999  ;;  %4624 = vadd.xlane.f32.xlu0 %v4623_v46 }
 0x3c7   :  { %v3645_v18 = vmul.f32 %v5755_v60, %v9915_v13  ;;  %v2792_v42 = vmul.f32 -0.0187293, %v10019_v52  ;;  %v3176_v24 = vsub.f32 1.0, %v10019_v52  ;;  %v4626_v41 = vadd.f32 %v4383_v53, %v4382_v21  ;;  %v2536_v60 = vpop.f32.mrf.mxu1  ;;  %v5757_v55 = vpop.eup %5756 }
 0x3c8   :  { %vm10043_vm3 = vcmp.ge.f32.partialorder %v12248_v35, 0.0  ;;  %v3748_v5 = vmul.f32 %v3636_v34, %v3108_v62  ;;  %v12251_v48 = vclamps-f32 %v9779_v9, 0.99999  ;;  %v3047_v32 = vmul.f32 %v2983_v44, %v9910_v38  ;;  %v10064_v9 = vpop.xlane.xlu0 %4573  ;;  %v10066_v21 = vpop.xlane.xlu1 %4793 }
 0x3c9   :  { %v2793_v51 = vmul.f32 -0.0187293, %v10033_v50  ;;  %v3177_v35 = vsub.f32 1.0, %v10033_v50  ;;  %v3749_v12 = vmul.f32 %v3643_v25, %v3109_v56  ;;  %v3647_v46 = vsel %vm3646_vm5, %v9915_v13, %v3645_v18  ;;  %4627 = vadd.xlane.f32.xlu1 %v4626_v41 }
 0x3ca   :  { %vm10052_vm8 = vcmp.ge.f32.partialorder %v12251_v48, 0.0  ;;  %v2856_v62 = vadd.f32 0.074261, %v2792_v42  ;;  %v10062_v34 = vmax.f32 %v3176_v24, 0.0  ;;  %v3110_v38 = vadd.f32 1.5707288, %v3046_v33 }
 0x3cb   :  { %v3652_v44 = vmul.f32 %v5757_v55, %v9927_v23  ;;  %v2857_v53 = vadd.f32 0.074261, %v2793_v51  ;;  %v10069_v48 = vmax.f32 %v3177_v35, 0.0  ;;  %v3650_v56 = vsel %vm3648_vm6, %v3649_v15, %v3647_v46  ;;  %v2217_v15 = vpop.f32.mrf.mxu0 }
 0x3cc   :  { %v2920_v25 = vmul.f32 %v2856_v62, %v10019_v52  ;;  %5758 = vrsqrt.f32 %v10062_v34  ;;  %v10076_v18 = vadd.f32 %v2531_v30, %v9889_v22  ;;  %v3876_v42 = vsub.f32 3.1415927, %v3748_v5  ;;  %v10110_v46 = vpop.xlane.xlu0 %4796  ;;  %v10112_v62 = vpop.xlane.xlu1 %4799 }
 0x3cd   :  { %v3111_v24 = vadd.f32 1.5707288, %v3047_v32  ;;  %v3654_v33 = vsel %vm3653_vm9, %v9927_v23, %v3652_v44  ;;  %v10082_v55 = vadd.f32 %v2536_v60, %v9959_v47  ;;  %v3877_v41 = vsub.f32 3.1415927, %v3749_v12  ;;  %12259 = vst [vmem:[#allocation100_spill] sm:$0xff] %v10112_v62 }
 0x3ce   :  { %v3657_v13 = vsel %vm3655_vm7, %v3656_v43, %v3654_v33  ;;  %5760 = vrsqrt.f32 %v10069_v48  ;;  %v4188_v51 = vsub.f32 0.5, %v9243_v40  ;;  %v12254_v22 = vsub.f32 3.1415927, %v9896_v20 }
 0x3cf   :  { %v3750_v32 = vmul.f32 %v3650_v56, %v3110_v38  ;;  %v2984_v35 = vadd.f32 -0.2121144, %v2920_v25  ;;  %v2921_v47 = vmul.f32 %v2857_v53, %v10033_v50  ;;  %v12255_v60 = vsub.f32 3.1415927, %v9924_v63 }
 0x3d0   :  { %v10093_v30 = vsel %vm10008_vm4, %v9896_v20, %v12254_v22  ;;  %v12256_v40 = vclamps-f32 %v9855_v59, 0.99999  ;;  %v3751_v61 = vmul.f32 %v3657_v13, %v3111_v24  ;;  %v11674_v20 = vclamps-f32 %v10076_v18, 0.99999  ;;  %v12263_v59 = vld [vmem:[#allocation87_spill] sm:$0xff] }
 0x3d1   :  { %v10101_v23 = vsel %vm10025_vm14, %v9924_v63, %v12255_v60  ;;  %v10116_v38 = vsel %vm10043_vm3, %v3748_v5, %v3876_v42  ;;  %v12260_v63 = vclamps-f32 %v9883_v4, 0.99999  ;;  %v10125_v44 = vadd.f32 %v2217_v15, %v12263_v59  ;;  %v10149_v59 = vpop.xlane.xlu1 %4579 }
 0x3d2   :  { %vm10105_vm0 = vcmp.ge.f32.partialorder %v12256_v40, 0.0  ;;  %v11673_v53 = vclamps-f32 %v10082_v55, 0.99999  ;;  %v4189_v56 = vsub.f32 0.5, %v9287_v0  ;;  %v10131_v25 = vsel %vm10052_vm8, %v3749_v12, %v3877_v41 }
 0x3d3   :  { %vm10120_vm12 = vcmp.ge.f32.partialorder %v12260_v63, 0.0  ;;  %v3663_v5 = vand.u32 2147483648, %v10062_v34  ;;  %v2730_v4 = vand.u32 2147483647, %v11674_v20  ;;  %v4252_v31 = vmax.f32 %v4188_v51, 0.0  ;;  %v10147_v63 = vpop.xlane.xlu0 %4576 }
 0x3d4   :  { %v3878_v42 = vsub.f32 3.1415927, %v3750_v32  ;;  %v3048_v24 = vmul.f32 %v2984_v35, %v10019_v52  ;;  %vm3660_vm13 = vcmp.eq.f32.partialorder %v10062_v34, inf  ;;  %v2985_v33 = vadd.f32 -0.2121144, %v2921_v47 }
 0x3d5   :  { %v2731_v13 = vand.u32 2147483647, %v11673_v53  ;;  %v3879_v0 = vsub.f32 3.1415927, %v3751_v61  ;;  %vm3662_vm10 = vcmp.eq.f32.partialorder %v10062_v34, 0.0  ;;  %v3178_v12 = vsub.f32 1.0, %v2730_v4 }
 0x3d6   :  { %v2794_v6 = vmul.f32 -0.0187293, %v2730_v4  ;;  %v4253_v41 = vmax.f32 %v4189_v56, 0.0  ;;  %vm3667_vm5 = vcmp.eq.f32.partialorder %v10069_v48, inf  ;;  %v4190_v51 = vsub.f32 0.5, %v9331_v36 }
 0x3d7   :  { %v2795_v15 = vmul.f32 -0.0187293, %v2731_v13  ;;  %v3179_v22 = vsub.f32 1.0, %v2731_v13  ;;  %v4191_v52 = vsub.f32 0.5, %v9407_v3  ;;  %vm3669_vm6 = vcmp.eq.f32.partialorder %v10069_v48, 0.0 }
 0x3d8   :  { %v2858_v35 = vadd.f32 0.074261, %v2794_v6  ;;  %v10145_v47 = vmax.f32 %v3178_v12, 0.0  ;;  %v4444_v60 = vmul.f32 %v4252_v31, %v4252_v31  ;;  %v4445_v40 = vmul.f32 %v4253_v41, %v4253_v41 }
 0x3d9   :  { %v2859_v56 = vadd.f32 0.074261, %v2795_v15  ;;  %v10151_v53 = vmax.f32 %v3179_v22, 0.0  ;;  %v4254_v20 = vmax.f32 %v4190_v51, 0.0  ;;  %v4255_v62 = vmax.f32 %v4191_v52, 0.0  ;;  %v5759_v31 = vpop.eup %5758  ;;  %v2538_v52 = vpop.f32.mrf.mxu1 }
 0x3da   :  { %v10155_v36 = vsel %vm10105_vm0, %v3750_v32, %v3878_v42  ;;  %v3049_v3 = vmul.f32 %v2985_v33, %v10033_v50  ;;  %v2922_v6 = vmul.f32 %v2858_v35, %v2730_v4  ;;  %5762 = vrsqrt.f32 %v10145_v47 }
 0x3db   :  { %vm4128_vm9 = vcmp.eq.s32.totalorder %v9743_v39, %v7546_v29  ;;  %vm4129_vm7 = vcmp.eq.s32.totalorder %v9743_v39, %v7555_v28  ;;  %v3112_v12 = vadd.f32 1.5707288, %v3048_v24  ;;  %v3670_v41 = vand.u32 2147483648, %v10069_v48  ;;  %v5761_v24 = vpop.eup %5760 }
 0x3dc   :  { %v2923_v15 = vmul.f32 %v2859_v56, %v2731_v13  ;;  %5764 = vrsqrt.f32 %v10151_v53  ;;  %vm4130_vm4 = vcmp.eq.s32.totalorder %v9811_v8, %v7546_v29  ;;  %vm4131_vm14 = vcmp.eq.s32.totalorder %v9811_v8, %v7555_v28 }
 0x3dd   :  { %v10171_v50 = vsel %vm10120_vm12, %v3751_v61, %v3879_v0  ;;  %v3659_v32 = vmul.f32 %v5759_v31, %v10062_v34  ;;  %v2986_v43 = vadd.f32 -0.2121144, %v2922_v6  ;;  %v4508_v42 = vsel %vm4124_vm2, 0.0, %v4444_v60  ;;  %v10190_v6 = vpop.xlane.xlu0 %4802  ;;  %v10192_v31 = vpop.xlane.xlu1 %4805 }
 0x3de   :  { %v12264_v33 = vclamps-f32 %v9976_v17, 0.99999  ;;  %v2987_v51 = vadd.f32 -0.2121144, %v2923_v15  ;;  %v4509_v61 = vsel %vm4125_vm1, 0.0, %v4445_v40  ;;  %v4446_v58 = vmul.f32 %v4254_v20, %v4254_v20 }
 0x3df   :  { %v4447_v0 = vmul.f32 %v4255_v62, %v4255_v62  ;;  %v3661_v35 = vsel %vm3660_vm13, %v10062_v34, %v3659_v32  ;;  %v3113_v60 = vadd.f32 1.5707288, %v3049_v3  ;;  %v3666_v56 = vmul.f32 %v5761_v24, %v10069_v48 }
 0x3e0   :  { %vm10179_vm3 = vcmp.ge.f32.partialorder %v12264_v33, 0.0  ;;  %v4849_v17 = vadd.f32 %v4509_v61, %v4508_v42  ;;  %v3664_v15 = vsel %vm3662_vm10, %v3663_v5, %v3661_v35  ;;  %v3050_v10 = vmul.f32 %v2986_v43, %v2730_v4 }
 0x3e1   :  { %v4510_v20 = vsel %vm4126_vm15, 0.0, %v4446_v58  ;;  %v4511_v62 = vsel %vm4127_vm11, 0.0, %v4447_v0  ;;  %v3752_v40 = vmul.f32 %v3664_v15, %v3112_v12  ;;  %v3668_v3 = vsel %vm3667_vm5, %v10069_v48, %v3666_v56  ;;  %v10238_v35 = vpop.xlane.xlu0 %4582  ;;  %v10240_v56 = vpop.xlane.xlu1 %4585 }
 0x3e2   :  { %v3051_v32 = vmul.f32 %v2987_v51, %v2731_v13  ;;  %4850 = vadd.xlane.f32.xlu0 %v4849_v17  ;;  %v4852_v42 = vadd.f32 %v4511_v62, %v4510_v20  ;;  %v3671_v34 = vsel %vm3669_vm6, %v3670_v41, %v3668_v3  ;;  %vm3674_vm2 = vcmp.eq.f32.partialorder %v10145_v47, inf }
 0x3e3   :  { %v3677_v5 = vand.u32 2147483648, %v10145_v47  ;;  %v10210_v4 = vadd.f32 %v2538_v52, %v10125_v44  ;;  %v4320_v57 = vmul.f32 %v9416_v45, %v9416_v45  ;;  %v3880_v12 = vsub.f32 3.1415927, %v3752_v40 }
 0x3e4   :  { %vm3676_vm1 = vcmp.eq.f32.partialorder %v10145_v47, 0.0  ;;  %vm3681_vm15 = vcmp.eq.f32.partialorder %v10151_v53, inf  ;;  %v3684_v13 = vand.u32 2147483648, %v10151_v53  ;;  %4853 = vadd.xlane.f32.xlu1 %v4852_v42  ;;  %v4321_v48 = vmul.f32 %v9480_v26, %v9480_v26 }
 0x3e5   :  { %v4322_v41 = vmul.f32 %v9493_v49, %v9493_v49  ;;  %v12267_v44 = vclamps-f32 %v9981_v19, 0.99999  ;;  %v3114_v24 = vadd.f32 1.5707288, %v3050_v10  ;;  %vm3683_vm8 = vcmp.eq.f32.partialorder %v10151_v53, 0.0 }
 0x3e6   :  { %v5056_v33 = vclamps-f32 %v10210_v4, 0.99999  ;;  %v4323_v51 = vmul.f32 %v9624_v7, %v9624_v7  ;;  %v4192_v61 = vsub.f32 0.5, %v9416_v45  ;;  %v3753_v58 = vmul.f32 %v3671_v34, %v3113_v60 }
 0x3e7   :  { %vm10223_vm11 = vcmp.ge.f32.partialorder %v12267_v44, 0.0  ;;  %v3115_v0 = vadd.f32 1.5707288, %v3051_v32  ;;  %v4384_v19 = vsel %vm4128_vm9, %v4320_v57, 0.0  ;;  %v4385_v52 = vsel %vm4129_vm7, %v4321_v48, 0.0  ;;  %v5763_v32 = vpop.eup %5762 }
 0x3e8   :  { %v2732_v17 = vand.u32 2147483647, %v5056_v33  ;;  %v4629_v15 = vadd.f32 %v4385_v52, %v4384_v19  ;;  %v4386_v45 = vsel %vm4130_vm4, %v4322_v41, 0.0  ;;  %v4387_v60 = vsel %vm4131_vm14, %v4323_v51, 0.0 }
 0x3e9   :  { %vm4132_vm0 = vcmp.eq.s32.totalorder %v9795_v11, %v7546_v29  ;;  %v10254_v10 = vsel %vm10179_vm3, %v3752_v40, %v3880_v12  ;;  %v4632_v20 = vadd.f32 %v4387_v60, %v4386_v45  ;;  %v4193_v62 = vsub.f32 0.5, %v9480_v26  ;;  %v5765_v40 = vpop.eup %5764 }
 0x3ea   :  { %v4256_v3 = vmax.f32 %v4192_v61, 0.0  ;;  %v12270_v42 = vclamps-f32 %v10076_v18, 0.99999  ;;  %v2796_v57 = vmul.f32 -0.0187293, %v2732_v17  ;;  %v3180_v48 = vsub.f32 1.0, %v2732_v17  ;;  %4630 = vadd.xlane.f32.xlu0 %v4629_v15 }
 0x3eb   :  { %v4194_v41 = vsub.f32 0.5, %v9493_v49  ;;  %v4195_v22 = vsub.f32 0.5, %v9624_v7  ;;  %vm4133_vm13 = vcmp.eq.s32.totalorder %v9795_v11, %v7555_v28  ;;  %v3881_v26 = vsub.f32 3.1415927, %v3753_v58  ;;  %4633 = vadd.xlane.f32.xlu1 %v4632_v20  ;;  %v10284_v20 = vpop.xlane.xlu0 %4808 }
 0x3ec   :  { %vm10259_vm12 = vcmp.ge.f32.partialorder %v12270_v42, 0.0  ;;  %v3673_v12 = vmul.f32 %v5763_v32, %v10145_v47  ;;  %v12273_v18 = vclamps-f32 %v10082_v55, 0.99999  ;;  %v4257_v51 = vmax.f32 %v4193_v62, 0.0  ;;  %v10286_v62 = vpop.xlane.xlu1 %4811 }
 0x3ed   :  { %v4448_v61 = vmul.f32 %v4256_v3, %v4256_v3  ;;  %vm4134_vm5 = vcmp.eq.s32.totalorder %v9858_v54, %v7546_v29  ;;  %v3680_v49 = vmul.f32 %v5765_v40, %v10151_v53  ;;  %v2860_v7 = vadd.f32 0.074261, %v2796_v57 }
 0x3ee   :  { %vm10270_vm10 = vcmp.ge.f32.partialorder %v12273_v18, 0.0  ;;  %v10277_v19 = vmax.f32 %v3180_v48, 0.0  ;;  %v4324_v52 = vmul.f32 %v9632_v37, %v9632_v37  ;;  %v3675_v55 = vsel %vm3674_vm2, %v10145_v47, %v3673_v12 }
 0x3ef   :  { %v4449_v15 = vmul.f32 %v4257_v51, %v4257_v51  ;;  %v4258_v45 = vmax.f32 %v4194_v41, 0.0  ;;  %v4259_v60 = vmax.f32 %v4195_v22, 0.0  ;;  %vm4135_vm6 = vcmp.eq.s32.totalorder %v9858_v54, %v7555_v28 }
 0x3f0   :  { %v3678_v3 = vsel %vm3676_vm1, %v3677_v5, %v3675_v55  ;;  %v3682_v32 = vsel %vm3681_vm15, %v10151_v53, %v3680_v49  ;;  %v2924_v42 = vmul.f32 %v2860_v7, %v2732_v17  ;;  %5766 = vrsqrt.f32 %v10277_v19  ;;  %v12277_v49 = vld [vmem:[#allocation95_spill] sm:$0xff]  ;;  %v10334_v55 = vpop.xlane.xlu0 %4588 }
 0x3f1   :  { %v10298_v57 = vsel %vm10223_vm11, %v3753_v58, %v3881_v26  ;;  %v3754_v48 = vmul.f32 %v3678_v3, %v3114_v24  ;;  %v3685_v41 = vsel %vm3683_vm8, %v3684_v13, %v3682_v32  ;;  %v4512_v47 = vsel %vm4128_vm9, 0.0, %v4448_v61  ;;  %v12278_v3 = vld [vmem:[#allocation35_spill] sm:$0xff] }
 0x3f2   :  { %vm4136_vm3 = vcmp.eq.s32.totalorder %v9849_v27, %v7546_v29  ;;  %vm4137_vm2 = vcmp.eq.s32.totalorder %v9849_v27, %v7555_v28  ;;  %v3755_v5 = vmul.f32 %v3685_v41, %v3115_v0  ;;  %v2988_v22 = vadd.f32 -0.2121144, %v2924_v42  ;;  %v12276_v0 = vld [vmem:[#allocation91_spill] sm:$0xff] }
 0x3f3   :  { %v3691_v43 = vand.u32 2147483648, %v10277_v19  ;;  %v4513_v24 = vsel %vm4129_vm7, 0.0, %v4449_v15  ;;  %v3882_v53 = vsub.f32 3.1415927, %v3754_v48  ;;  %v4450_v58 = vmul.f32 %v4258_v45, %v4258_v45  ;;  %v10336_v15 = vpop.xlane.xlu1 %4591 }
 0x3f4   :  { %v4855_v13 = vadd.f32 %v4513_v24, %v4512_v47  ;;  %v4451_v40 = vmul.f32 %v4259_v60, %v4259_v60  ;;  %vm4138_vm9 = vcmp.eq.s32.totalorder %v9903_v2, %v7546_v29  ;;  %vm4139_vm1 = vcmp.eq.s32.totalorder %v9903_v2, %v7555_v28 }
 0x3f5   :  { %v3883_v26 = vsub.f32 3.1415927, %v3755_v5  ;;  %v3052_v12 = vmul.f32 %v2988_v22, %v2732_v17  ;;  %v4325_v18 = vmul.f32 %v12276_v0, %v12276_v0  ;;  %v4388_v39 = vsel %vm4132_vm0, %v4324_v52, 0.0 }
 0x3f6   :  { %v10324_v51 = vsel %vm10259_vm12, %v3754_v48, %v3882_v53  ;;  %4856 = vadd.xlane.f32.xlu0 %v4855_v13  ;;  %v4514_v61 = vsel %vm4130_vm4, 0.0, %v4450_v58  ;;  %v4515_v17 = vsel %vm4131_vm14, 0.0, %v4451_v40  ;;  %v4326_v7 = vmul.f32 %v12277_v49, %v12277_v49  ;;  %v12280_v13 = vld [vmem:[#allocation94_spill] sm:$0xff] }
 0x3f7   :  { %v10340_v34 = vsel %vm10270_vm10, %v3755_v5, %v3883_v26  ;;  %v10342_v52 = vadd.f32 1.5707288, %v3052_v12  ;;  %v4858_v45 = vadd.f32 %v4515_v17, %v4514_v61  ;;  %v4389_v60 = vsel %vm4133_vm13, %v4325_v18, 0.0  ;;  %v12279_v5 = vld [vmem:[#allocation97_spill] sm:$0xff]  ;;  %v12281_v58 = vld [vmem:[#allocation98_spill] sm:$0xff]  ;;  %v12282_v26 = vld [vmem:[#allocation96_spill] sm:$0xff] }
 0x3f8   :  { %vm3688_vm7 = vcmp.eq.f32.partialorder %v10277_v19, inf  ;;  %v4635_v8 = vadd.f32 %v4389_v60, %v4388_v39  ;;  %v4327_v32 = vmul.f32 %v12278_v3, %v12278_v3  ;;  %v4390_v42 = vsel %vm4134_vm5, %v4326_v7, 0.0  ;;  %v10381_v60 = vpop.xlane.xlu1 %4817 }
 0x3f9   :  { %v4196_v44 = vsub.f32 0.5, %v9632_v37  ;;  %vm3690_vm4 = vcmp.eq.f32.partialorder %v10277_v19, 0.0  ;;  %4859 = vadd.xlane.f32.xlu1 %v4858_v45  ;;  %v4197_v48 = vsub.f32 0.5, %v12276_v0  ;;  %v4198_v41 = vsub.f32 0.5, %v12277_v49  ;;  %v10379_v45 = vpop.xlane.xlu0 %4814 }
 0x3fa   :  { %v4199_v47 = vsub.f32 0.5, %v12278_v3  ;;  %v4328_v22 = vmul.f32 %v12279_v5, %v12279_v5  ;;  %4636 = vadd.xlane.f32.xlu0 %v4635_v8  ;;  %v4391_v24 = vsel %vm4135_vm6, %v4327_v32, 0.0  ;;  %v4329_v37 = vmul.f32 %v12280_v13, %v12280_v13  ;;  %v12283_v8 = vld [vmem:[#allocation99_spill] sm:$0xff] }
 0x3fb   :  { %v4260_v53 = vmax.f32 %v4196_v44, 0.0  ;;  %v4330_v40 = vmul.f32 %v12281_v58, %v12281_v58  ;;  %vm4140_vm14 = vcmp.eq.s32.totalorder %v12282_v26, %v7546_v29  ;;  %vm4141_vm15 = vcmp.eq.s32.totalorder %v12282_v26, %v7555_v28 }
 0x3fc   :  { %v4638_v12 = vadd.f32 %v4391_v24, %v4390_v42  ;;  %v4261_v0 = vmax.f32 %v4197_v48, 0.0  ;;  %v4262_v18 = vmax.f32 %v4198_v41, 0.0  ;;  %v4263_v39 = vmax.f32 %v4199_v47, 0.0 }
 0x3fd   :  { %v4452_v61 = vmul.f32 %v4260_v53, %v4260_v53  ;;  %v4392_v17 = vsel %vm4136_vm3, %v4328_v22, 0.0  ;;  %v4393_v49 = vsel %vm4137_vm2, %v4329_v37, 0.0  ;;  %v4331_v7 = vmul.f32 %v10093_v30, %v10093_v30  ;;  %v5767_v48 = vpop.eup %5766 }
 0x3fe   :  { %vm4142_vm11 = vcmp.eq.s32.totalorder %v12283_v8, %v7546_v29  ;;  %4639 = vadd.xlane.f32.xlu1 %v4638_v12  ;;  %v4453_v3 = vmul.f32 %v4261_v0, %v4261_v0  ;;  %v4454_v32 = vmul.f32 %v4262_v18, %v4262_v18  ;;  %v4455_v42 = vmul.f32 %v4263_v39, %v4263_v39 }
 0x3ff   :  { %v4641_v44 = vadd.f32 %v4393_v49, %v4392_v17  ;;  %vm10387_vm8 = vcmp.ge.f32.partialorder %v5056_v33, 0.0  ;;  %v4516_v47 = vsel %vm4132_vm0, 0.0, %v4452_v61  ;;  %v4394_v22 = vsel %vm4138_vm9, %v4330_v40, 0.0  ;;  %v12286_v49 = vld [vmem:[#allocation101_spill] sm:$0xff] }
 0x400   :  { %v4395_v24 = vsel %vm4139_vm1, %v4331_v7, 0.0  ;;  %v4200_v53 = vsub.f32 0.5, %v12279_v5  ;;  %vm4143_vm12 = vcmp.eq.s32.totalorder %v12283_v8, %v7555_v28  ;;  %v3687_v4 = vmul.f32 %v5767_v48, %v10277_v19 }
 0x401   :  { %v4517_v33 = vsel %vm4133_vm13, 0.0, %v4453_v3  ;;  %v4518_v37 = vsel %vm4134_vm5, 0.0, %v4454_v32  ;;  %v4519_v40 = vsel %vm4135_vm6, 0.0, %v4455_v42  ;;  %v4644_v5 = vadd.f32 %v4395_v24, %v4394_v22 }
 0x402   :  { %v4861_v12 = vadd.f32 %v4517_v33, %v4516_v47  ;;  %v4864_v0 = vadd.f32 %v4519_v40, %v4518_v37  ;;  %v4201_v18 = vsub.f32 0.5, %v12280_v13  ;;  %v3689_v39 = vsel %vm3688_vm7, %v10277_v19, %v3687_v4 }
 0x403   :  { %v4264_v61 = vmax.f32 %v4200_v53, 0.0  ;;  %v4202_v11 = vsub.f32 0.5, %v12281_v58  ;;  %v4203_v17 = vsub.f32 0.5, %v10093_v30  ;;  %vm4144_vm0 = vcmp.eq.s32.totalorder %v12286_v49, %v7546_v29  ;;  %v10429_v58 = vpop.xlane.xlu0 %4594  ;;  %v10431_v30 = vpop.xlane.xlu1 %4597 }
 0x404   :  { %v3692_v54 = vsel %vm3690_vm4, %v3691_v43, %v3689_v39  ;;  %4862 = vadd.xlane.f32.xlu0 %v4861_v12  ;;  %4865 = vadd.xlane.f32.xlu1 %v4864_v0  ;;  %v4265_v13 = vmax.f32 %v4201_v18, 0.0  ;;  %v4332_v7 = vmul.f32 %v10101_v23, %v10101_v23  ;;  %v4333_v3 = vmul.f32 %v10116_v38, %v10116_v38 }
 0x405   :  { %vm4145_vm13 = vcmp.eq.s32.totalorder %v12286_v49, %v7555_v28  ;;  %vm4146_vm10 = vcmp.eq.s32.totalorder %v9969_v1, %v7546_v29  ;;  %v3756_v19 = vmul.f32 %v3692_v54, %v10342_v52  ;;  %v4456_v43 = vmul.f32 %v4264_v61, %v4264_v61 }
 0x406   :  { %v4266_v32 = vmax.f32 %v4202_v11, 0.0  ;;  %v4267_v42 = vmax.f32 %v4203_v17, 0.0  ;;  %vm4147_vm5 = vcmp.eq.s32.totalorder %v9969_v1, %v7555_v28  ;;  %v4457_v48 = vmul.f32 %v4265_v13, %v4265_v13 }
 0x407   :  { %v4396_v47 = vsel %vm4140_vm14, %v4332_v7, 0.0  ;;  %v4397_v22 = vsel %vm4141_vm15, %v4333_v3, 0.0  ;;  %v4334_v24 = vmul.f32 %v10131_v25, %v10131_v25  ;;  %v3884_v53 = vsub.f32 3.1415927, %v3756_v19  ;;  %v10474_v17 = vpop.xlane.xlu0 %4820  ;;  %v10476_v54 = vpop.xlane.xlu1 %4823 }
 0x408   :  { %v4520_v52 = vsel %vm4136_vm3, 0.0, %v4456_v43  ;;  %v4458_v4 = vmul.f32 %v4266_v32, %v4266_v32  ;;  %v4459_v33 = vmul.f32 %v4267_v42, %v4267_v42  ;;  %4642 = vadd.xlane.f32.xlu0 %v4641_v44  ;;  %4645 = vadd.xlane.f32.xlu1 %v4644_v5  ;;  %v4521_v37 = vsel %vm4137_vm2, 0.0, %v4457_v48 }
 0x409   :  { %v4647_v40 = vadd.f32 %v4397_v22, %v4396_v47  ;;  %v4335_v12 = vmul.f32 %v10155_v36, %v10155_v36  ;;  %v4398_v0 = vsel %vm4142_vm11, %v4334_v24, 0.0  ;;  %v10461_v18 = vsel %vm10387_vm8, %v3756_v19, %v3884_v53 }
 0x40a   :  { %v4867_v39 = vadd.f32 %v4521_v37, %v4520_v52  ;;  %v4522_v44 = vsel %vm4138_vm9, 0.0, %v4458_v4  ;;  %v4523_v27 = vsel %vm4139_vm1, 0.0, %v4459_v33  ;;  %v4204_v11 = vsub.f32 0.5, %v10101_v23 }
 0x40b   :  { %v4870_v5 = vadd.f32 %v4523_v27, %v4522_v44  ;;  %v4399_v61 = vsel %vm4143_vm12, %v4335_v12, 0.0  ;;  %v4205_v41 = vsub.f32 0.5, %v10116_v38  ;;  %v4206_v7 = vsub.f32 0.5, %v10131_v25  ;;  %v10511_v44 = vpop.xlane.xlu0 %4600  ;;  %v10513_v27 = vpop.xlane.xlu1 %4603 }
 0x40c   :  { %v4650_v13 = vadd.f32 %v4399_v61, %v4398_v0  ;;  %v4207_v3 = vsub.f32 0.5, %v10155_v36  ;;  %v4336_v2 = vmul.f32 %v10171_v50, %v10171_v50  ;;  %vm4148_vm6 = vcmp.eq.s32.totalorder %v9955_v16, %v7546_v29  ;;  %4868 = vadd.xlane.f32.xlu0 %v4867_v39 }
 0x40d   :  { %vm4149_vm3 = vcmp.eq.s32.totalorder %v9955_v16, %v7555_v28  ;;  %4871 = vadd.xlane.f32.xlu1 %v4870_v5  ;;  %v4268_v23 = vmax.f32 %v4204_v11, 0.0  ;;  %v4269_v38 = vmax.f32 %v4205_v41, 0.0  ;;  %v4337_v19 = vmul.f32 %v10254_v10, %v10254_v10 }
 0x40e   :  { %v4338_v25 = vmul.f32 %v10298_v57, %v10298_v57  ;;  %v4270_v36 = vmax.f32 %v4206_v7, 0.0  ;;  %v4271_v43 = vmax.f32 %v4207_v3, 0.0  ;;  %v4400_v32 = vsel %vm4144_vm0, %v4336_v2, 0.0 }
 0x40f   :  { %v4339_v42 = vmul.f32 %v10324_v51, %v10324_v51  ;;  %v4460_v48 = vmul.f32 %v4268_v23, %v4268_v23  ;;  %v4461_v47 = vmul.f32 %v4269_v38, %v4269_v38  ;;  %v4401_v22 = vsel %vm4145_vm13, %v4337_v19, 0.0 }
 0x410   :  { %v4402_v24 = vsel %vm4146_vm10, %v4338_v25, 0.0  ;;  %v4462_v53 = vmul.f32 %v4270_v36, %v4270_v36  ;;  %v4463_v52 = vmul.f32 %v4271_v43, %v4271_v43  ;;  %v4653_v4 = vadd.f32 %v4401_v22, %v4400_v32  ;;  %4648 = vadd.xlane.f32.xlu0 %v4647_v40 }
 0x411   :  { %v4403_v33 = vsel %vm4147_vm5, %v4339_v42, 0.0  ;;  %4651 = vadd.xlane.f32.xlu1 %v4650_v13  ;;  %v4524_v37 = vsel %vm4140_vm14, 0.0, %v4460_v48  ;;  %v4525_v12 = vsel %vm4141_vm15, 0.0, %v4461_v47  ;;  %v4208_v39 = vsub.f32 0.5, %v10171_v50  ;;  %v10541_v48 = vpop.xlane.xlu0 %4826 }
 0x412   :  { %v4656_v0 = vadd.f32 %v4403_v33, %v4402_v24  ;;  %v4873_v5 = vadd.f32 %v4525_v12, %v4524_v37  ;;  %v4526_v40 = vsel %vm4142_vm11, 0.0, %v4462_v53  ;;  %v4527_v61 = vsel %vm4143_vm12, 0.0, %v4463_v52 }
 0x413   :  { %v4209_v11 = vsub.f32 0.5, %v10254_v10  ;;  %v4876_v26 = vadd.f32 %v4527_v61, %v4526_v40  ;;  %v4272_v41 = vmax.f32 %v4208_v39, 0.0  ;;  %v4210_v13 = vsub.f32 0.5, %v10298_v57  ;;  %v12287_v61 = vld [vmem:[#allocation103_spill] sm:$0xff] }
 0x414   :  { %v4211_v50 = vsub.f32 0.5, %v10324_v51  ;;  %v4340_v3 = vmul.f32 %v10340_v34, %v10340_v34  ;;  %v4341_v2 = vmul.f32 %v10461_v18, %v10461_v18  ;;  %v4212_v23 = vsub.f32 0.5, %v10340_v34  ;;  %4874 = vadd.xlane.f32.xlu0 %v4873_v5 }
 0x415   :  { %v4273_v7 = vmax.f32 %v4209_v11, 0.0  ;;  %4877 = vadd.xlane.f32.xlu1 %v4876_v26  ;;  %v4464_v8 = vmul.f32 %v4272_v41, %v4272_v41  ;;  %v4274_v38 = vmax.f32 %v4210_v13, 0.0  ;;  %v4213_v19 = vsub.f32 0.5, %v10461_v18  ;;  %v10543_v18 = vpop.xlane.xlu1 %4829  ;;  %v10892_v39 = vpop.xlane.xlu0 %4606 }
 0x416   :  { %v4275_v10 = vmax.f32 %v4211_v50, 0.0  ;;  %v4404_v57 = vsel %vm4148_vm6, %v4340_v3, 0.0  ;;  %v4405_v51 = vsel %vm4149_vm3, %v4341_v2, 0.0  ;;  %v4276_v36 = vmax.f32 %v4212_v23, 0.0  ;;  %v12288_v3 = vld [vmem:[#allocation100_spill] sm:$0xff] }
 0x417   :  { %v4465_v25 = vmul.f32 %v4273_v7, %v4273_v7  ;;  %v4528_v34 = vsel %vm4144_vm0, 0.0, %v4464_v8  ;;  %v4466_v43 = vmul.f32 %v4274_v38, %v4274_v38  ;;  %v10539_v42 = vadd.f32 %v4405_v51, %v4404_v57 }
 0x418   :  { %v4467_v32 = vmul.f32 %v4275_v10, %v4275_v10  ;;  %v4277_v22 = vmax.f32 %v4213_v19, 0.0  ;;  %v10548_v24 = vmul.f32 %v4276_v36, %v4276_v36  ;;  %vm37_vm2 = vcmask 7168   ;;  %4654 = vadd.xlane.f32.xlu0 %v4653_v4 }
 0x419   :  { %v4529_v47 = vsel %vm4145_vm13, 0.0, %v4465_v25  ;;  %4657 = vadd.xlane.f32.xlu1 %v4656_v0  ;;  %v4530_v52 = vsel %vm4146_vm10, 0.0, %v4466_v43  ;;  %v5794_v12 = vmov 0.0   ;;  %v10894_v5 = vpop.xlane.xlu1 %4609  ;;  %v10930_v38 = vpop.xlane.xlu0 %4832 }
 0x41a   :  { %v10550_v53 = vadd.f32 %v4529_v47, %v4528_v34  ;;  %v4531_v33 = vsel %vm4147_vm5, 0.0, %v4467_v32  ;;  %v10560_v49 = vmul.f32 %v4277_v22, %v4277_v22  ;;  %38 = vst.msk [vmem:[%s11383_s4] sm:$0xff] %vm37_vm2, %v5794_v12  ;;  %39 = vst.msk [vmem:[%s11383_s4 + $0x8] sm:$0xff] %vm37_vm2, %v5794_v12  ;;  %v4532_v1 = vsel %vm4148_vm6, 0.0, %v10548_v24 }
 0x41b   :  { %v10558_v37 = vadd.f32 %v4531_v33, %v4530_v52  ;;  %40 = vst.msk [vmem:[%s11383_s4 + $0x10] sm:$0xff] %vm37_vm2, %v5794_v12  ;;  %41 = vst.msk [vmem:[%s11383_s4 + $0x18] sm:$0xff] %vm37_vm2, %v5794_v12 }
 0x41c   :  { %42 = vst.msk [vmem:[%s11383_s4 + $0x20] sm:$0xff] %vm37_vm2, %v5794_v12  ;;  %43 = vst.msk [vmem:[%s11383_s4 + $0x28] sm:$0xff] %vm37_vm2, %v5794_v12  ;;  %v4533_v4 = vsel %vm4149_vm3, 0.0, %v10560_v49  ;;  %4880 = vadd.xlane.f32.xlu0 %v10550_v53 }
 0x41d   :  { %44 = vst.msk [vmem:[%s11383_s4 + $0x30] sm:$0xff] %vm37_vm2, %v5794_v12  ;;  %45 = vst.msk [vmem:[%s11383_s4 + $0x38] sm:$0xff] %vm37_vm2, %v5794_v12  ;;  %4883 = vadd.xlane.f32.xlu1 %v10558_v37  ;;  %v4885_v0 = vadd.f32 %v4533_v4, %v4532_v1  ;;  %v10932_v10 = vpop.xlane.xlu1 %4835  ;;  %v4613_v4 = vpop.xlane.xlu0 %4612 }
 0x41e   :  { %46 = vst.msk [vmem:[%s11383_s4 + $0x40] sm:$0xff] %vm37_vm2, %v5794_v12  ;;  %47 = vst.msk [vmem:[%s11383_s4 + $0x48] sm:$0xff] %vm37_vm2, %v5794_v12 }
 0x41f   :  { %48 = vst.msk [vmem:[%s11383_s4 + $0x50] sm:$0xff] %vm37_vm2, %v5794_v12  ;;  %49 = vst.msk [vmem:[%s11383_s4 + $0x58] sm:$0xff] %vm37_vm2, %v5794_v12 }
 0x420   :  { %50 = vst.msk [vmem:[%s11383_s4 + $0x60] sm:$0xff] %vm37_vm2, %v5794_v12  ;;  %51 = vst.msk [vmem:[%s11383_s4 + $0x68] sm:$0xff] %vm37_vm2, %v5794_v12  ;;  %4660 = vadd.xlane.f32.xlu0 %v10539_v42 }
 0x421   :  { %52 = vst.msk [vmem:[%s11383_s4 + $0x70] sm:$0xff] %vm37_vm2, %v5794_v12  ;;  %53 = vst.msk [vmem:[%s11383_s4 + $0x78] sm:$0xff] %vm37_vm2, %v5794_v12  ;;  %v4534_v29 = vld [vmem:[%s11383_s4] sm:$0xff]  ;;  %v4535_v28 = vld [vmem:[%s11383_s4 + $0x8] sm:$0xff] }
 0x422   :  { %54 = vst.msk [vmem:[%s11383_s4 + $0x80] sm:$0xff] %vm37_vm2, %v5794_v12  ;;  %55 = vst.msk [vmem:[%s11383_s4 + $0x88] sm:$0xff] %vm37_vm2, %v5794_v12  ;;  %v4536_v16 = vld [vmem:[%s11383_s4 + $0x10] sm:$0xff]  ;;  %v4695_v40 = vadd.f32 %v10021_v14, %v4534_v29  ;;  %v4696_v11 = vadd.f32 %v12287_v61, %v4535_v28 }
 0x423   :  { %56 = vst.msk [vmem:[%s11383_s4 + $0x90] sm:$0xff] %vm37_vm2, %v5794_v12  ;;  %57 = vst.msk [vmem:[%s11383_s4 + $0x98] sm:$0xff] %vm37_vm2, %v5794_v12  ;;  %v4697_v26 = vadd.f32 %v10064_v9, %v4536_v16  ;;  %v4537_v9 = vld [vmem:[%s11383_s4 + $0x18] sm:$0xff]  ;;  %v4538_v23 = vld [vmem:[%s11383_s4 + $0x20] sm:$0xff] }
 0x424   :  { %58 = vst.msk [vmem:[%s11383_s4 + $0xa0] sm:$0xff] %vm37_vm2, %v5794_v12  ;;  %59 = vst.msk [vmem:[%s11383_s4 + $0xa8] sm:$0xff] %vm37_vm2, %v5794_v12  ;;  %v4539_v57 = vld [vmem:[%s11383_s4 + $0x28] sm:$0xff]  ;;  %v4540_v51 = vld [vmem:[%s11383_s4 + $0x30] sm:$0xff]  ;;  %4886 = vadd.xlane.f32.xlu0 %v4885_v0  ;;  %v4616_v0 = vpop.xlane.xlu1 %4615 }
 0x425   :  { %60 = vst.msk [vmem:[%s11383_s4 + $0xb0] sm:$0xff] %vm37_vm2, %v5794_v12  ;;  %61 = vst.msk [vmem:[%s11383_s4 + $0xb8] sm:$0xff] %vm37_vm2, %v5794_v12  ;;  %v4541_v43 = vld [vmem:[%s11383_s4 + $0x38] sm:$0xff]  ;;  %v4542_v32 = vld [vmem:[%s11383_s4 + $0x40] sm:$0xff] }
 0x426   :  { %62 = vst.msk [vmem:[%s11383_s4 + $0xc0] sm:$0xff] %vm37_vm2, %v5794_v12  ;;  %63 = vst.msk [vmem:[%s11383_s4 + $0xc8] sm:$0xff] %vm37_vm2, %v5794_v12  ;;  %v4543_v22 = vld [vmem:[%s11383_s4 + $0x48] sm:$0xff]  ;;  %v4544_v24 = vld [vmem:[%s11383_s4 + $0x50] sm:$0xff] }
 0x427   :  { %64 = vst.msk [vmem:[%s11383_s4 + $0xd0] sm:$0xff] %vm37_vm2, %v5794_v12  ;;  %65 = vst.msk [vmem:[%s11383_s4 + $0xd8] sm:$0xff] %vm37_vm2, %v5794_v12  ;;  %v4545_v33 = vld [vmem:[%s11383_s4 + $0x58] sm:$0xff]  ;;  %v4546_v37 = vld [vmem:[%s11383_s4 + $0x60] sm:$0xff] }
 0x428   :  { %66 = vst.msk [vmem:[%s11383_s4 + $0xe0] sm:$0xff] %vm37_vm2, %v5794_v12  ;;  %67 = vst.msk [vmem:[%s11383_s4 + $0xe8] sm:$0xff] %vm37_vm2, %v5794_v12  ;;  %v4547_v1 = vld [vmem:[%s11383_s4 + $0x68] sm:$0xff]  ;;  %v4548_v29 = vld [vmem:[%s11383_s4 + $0x70] sm:$0xff] }
 0x429   :  { %68 = vst.msk [vmem:[%s11383_s4 + $0xf0] sm:$0xff] %vm37_vm2, %v5794_v12  ;;  %69 = vst.msk [vmem:[%s11383_s4 + $0xf8] sm:$0xff] %vm37_vm2, %v5794_v12  ;;  %v4550_v61 = vld [vmem:[%s11383_s4 + $0x80] sm:$0xff] }
 0x42a   :  { %70 = vst.msk [vmem:[%s11384_s5] sm:$0xff] %vm37_vm2, %v5794_v12  ;;  %71 = vst.msk [vmem:[%s11384_s5 + $0x8] sm:$0xff] %vm37_vm2, %v5794_v12 }
 0x42b   :  { %72 = vst.msk [vmem:[%s11384_s5 + $0x10] sm:$0xff] %vm37_vm2, %v5794_v12  ;;  %73 = vst.msk [vmem:[%s11384_s5 + $0x18] sm:$0xff] %vm37_vm2, %v5794_v12 }
 0x42c   :  { %74 = vst.msk [vmem:[%s11384_s5 + $0x20] sm:$0xff] %vm37_vm2, %v5794_v12  ;;  %75 = vst.msk [vmem:[%s11384_s5 + $0x28] sm:$0xff] %vm37_vm2, %v5794_v12 }
 0x42d   :  { %76 = vst.msk [vmem:[%s11384_s5 + $0x30] sm:$0xff] %vm37_vm2, %v5794_v12  ;;  %77 = vst.msk [vmem:[%s11384_s5 + $0x38] sm:$0xff] %vm37_vm2, %v5794_v12 }
 0x42e   :  { %78 = vst.msk [vmem:[%s11384_s5 + $0x40] sm:$0xff] %vm37_vm2, %v5794_v12  ;;  %79 = vst.msk [vmem:[%s11384_s5 + $0x48] sm:$0xff] %vm37_vm2, %v5794_v12 }
 0x42f   :  { %80 = vst.msk [vmem:[%s11384_s5 + $0x50] sm:$0xff] %vm37_vm2, %v5794_v12  ;;  %81 = vst.msk [vmem:[%s11384_s5 + $0x58] sm:$0xff] %vm37_vm2, %v5794_v12 }
 0x430   :  { %82 = vst.msk [vmem:[%s11384_s5 + $0x60] sm:$0xff] %vm37_vm2, %v5794_v12  ;;  %83 = vst.msk [vmem:[%s11384_s5 + $0x68] sm:$0xff] %vm37_vm2, %v5794_v12 }
 0x431   :  { %84 = vst.msk [vmem:[%s11384_s5 + $0x70] sm:$0xff] %vm37_vm2, %v5794_v12  ;;  %85 = vst.msk [vmem:[%s11384_s5 + $0x78] sm:$0xff] %vm37_vm2, %v5794_v12  ;;  %v4760_v41 = vld [vmem:[%s11384_s5] sm:$0xff]  ;;  %v4761_v13 = vld [vmem:[%s11384_s5 + $0x8] sm:$0xff] }
 0x432   :  { %86 = vst.msk [vmem:[%s11384_s5 + $0x80] sm:$0xff] %vm37_vm2, %v5794_v12  ;;  %87 = vst.msk [vmem:[%s11384_s5 + $0x88] sm:$0xff] %vm37_vm2, %v5794_v12  ;;  %v4762_v50 = vld [vmem:[%s11384_s5 + $0x10] sm:$0xff]  ;;  %v4920_v7 = vadd.f32 %v10066_v21, %v4760_v41  ;;  %v4921_v14 = vadd.f32 %v10110_v46, %v4761_v13  ;;  %v4763_v8 = vld [vmem:[%s11384_s5 + $0x18] sm:$0xff]  ;;  %v4698_v21 = vadd.f32 %v10147_v63, %v4537_v9  ;;  %v4839_v41 = vpop.xlane.xlu0 %4838 }
 0x433   :  { %88 = vst.msk [vmem:[%s11384_s5 + $0x90] sm:$0xff] %vm37_vm2, %v5794_v12  ;;  %89 = vst.msk [vmem:[%s11384_s5 + $0x98] sm:$0xff] %vm37_vm2, %v5794_v12  ;;  %v4922_v2 = vadd.f32 %v12288_v3, %v4762_v50  ;;  %v4699_v46 = vadd.f32 %v10149_v59, %v4538_v23  ;;  %v4923_v19 = vadd.f32 %v10190_v6, %v4763_v8  ;;  %v4764_v25 = vld [vmem:[%s11384_s5 + $0x20] sm:$0xff]  ;;  %v4765_v36 = vld [vmem:[%s11384_s5 + $0x28] sm:$0xff] }
 0x434   :  { %90 = vst.msk [vmem:[%s11384_s5 + $0xa0] sm:$0xff] %vm37_vm2, %v5794_v12  ;;  %91 = vst.msk [vmem:[%s11384_s5 + $0xa8] sm:$0xff] %vm37_vm2, %v5794_v12  ;;  %v4924_v63 = vadd.f32 %v10192_v31, %v4764_v25  ;;  %v4700_v59 = vadd.f32 %v10238_v35, %v4539_v57  ;;  %v4701_v6 = vadd.f32 %v10240_v56, %v4540_v51  ;;  %v4766_v34 = vld [vmem:[%s11384_s5 + $0x30] sm:$0xff]  ;;  %v4767_v42 = vld [vmem:[%s11384_s5 + $0x38] sm:$0xff] }
 0x435   :  { %92 = vst.msk [vmem:[%s11384_s5 + $0xb0] sm:$0xff] %vm37_vm2, %v5794_v12  ;;  %93 = vst.msk [vmem:[%s11384_s5 + $0xb8] sm:$0xff] %vm37_vm2, %v5794_v12  ;;  %v4925_v31 = vadd.f32 %v10284_v20, %v4765_v36  ;;  %v4926_v35 = vadd.f32 %v10286_v62, %v4766_v34  ;;  %v4702_v56 = vadd.f32 %v10334_v55, %v4541_v43  ;;  %v4768_v47 = vld [vmem:[%s11384_s5 + $0x40] sm:$0xff]  ;;  %v4769_v53 = vld [vmem:[%s11384_s5 + $0x48] sm:$0xff] }
 0x436   :  { %94 = vst.msk [vmem:[%s11384_s5 + $0xc0] sm:$0xff] %vm37_vm2, %v5794_v12  ;;  %95 = vst.msk [vmem:[%s11384_s5 + $0xc8] sm:$0xff] %vm37_vm2, %v5794_v12  ;;  %v4703_v20 = vadd.f32 %v10336_v15, %v4542_v32  ;;  %v4927_v62 = vadd.f32 %v10379_v45, %v4767_v42  ;;  %v4928_v55 = vadd.f32 %v10381_v60, %v4768_v47  ;;  %v4770_v52 = vld [vmem:[%s11384_s5 + $0x50] sm:$0xff]  ;;  %v4771_v49 = vld [vmem:[%s11384_s5 + $0x58] sm:$0xff] }
 0x437   :  { %96 = vst.msk [vmem:[%s11384_s5 + $0xd0] sm:$0xff] %vm37_vm2, %v5794_v12  ;;  %97 = vst.msk [vmem:[%s11384_s5 + $0xd8] sm:$0xff] %vm37_vm2, %v5794_v12  ;;  %v4704_v15 = vadd.f32 %v10429_v58, %v4543_v22  ;;  %v4705_v45 = vadd.f32 %v10431_v30, %v4544_v24  ;;  %v4929_v60 = vadd.f32 %v10474_v17, %v4769_v53  ;;  %v4773_v28 = vld [vmem:[%s11384_s5 + $0x68] sm:$0xff]  ;;  %v4552_v9 = vld [vmem:[%s11383_s4 + $0x90] sm:$0xff] }
 0x438   :  { %98 = vst.msk [vmem:[%s11384_s5 + $0xe0] sm:$0xff] %vm37_vm2, %v5794_v12  ;;  %99 = vst.msk [vmem:[%s11384_s5 + $0xe8] sm:$0xff] %vm37_vm2, %v5794_v12  ;;  %v4930_v58 = vadd.f32 %v10476_v54, %v4770_v52  ;;  %v4706_v30 = vadd.f32 %v10511_v44, %v4545_v33  ;;  %v4707_v17 = vadd.f32 %v10513_v27, %v4546_v37  ;;  %v4774_v16 = vld [vmem:[%s11384_s5 + $0x70] sm:$0xff]  ;;  %v4551_v3 = vld [vmem:[%s11383_s4 + $0x88] sm:$0xff] }
 0x439   :  { %100 = vst.msk [vmem:[%s11384_s5 + $0xf0] sm:$0xff] %vm37_vm2, %v5794_v12  ;;  %101 = vst.msk [vmem:[%s11384_s5 + $0xf8] sm:$0xff] %vm37_vm2, %v5794_v12  ;;  %v4772_v12 = vld [vmem:[%s11384_s5 + $0x60] sm:$0xff]  ;;  %v4931_v54 = vadd.f32 %v10541_v48, %v4771_v49  ;;  %v4708_v27 = vadd.f32 %v10892_v39, %v4547_v1  ;;  %v4709_v48 = vadd.f32 %v10894_v5, %v4548_v29  ;;  %v4553_v51 = vld [vmem:[%s11383_s4 + $0x98] sm:$0xff] }
 0x43a   :  { %4728 = vst.msk [vmem:[%s11383_s4] sm:$0xff] %vm37_vm2, %v4695_v40  ;;  %4729 = vst.msk [vmem:[%s11383_s4 + $0x8] sm:$0xff] %vm37_vm2, %v4696_v11  ;;  %v4932_v44 = vadd.f32 %v10543_v18, %v4772_v12  ;;  %v4933_v18 = vadd.f32 %v10930_v38, %v4773_v28  ;;  %v4934_v39 = vadd.f32 %v10932_v10, %v4774_v16  ;;  %v4549_v40 = vld [vmem:[%s11383_s4 + $0x78] sm:$0xff]  ;;  %v4776_v50 = vld [vmem:[%s11384_s5 + $0x80] sm:$0xff] }
 0x43b   :  { %4730 = vst.msk [vmem:[%s11383_s4 + $0x10] sm:$0xff] %vm37_vm2, %v4697_v26  ;;  %4952 = vst.msk [vmem:[%s11384_s5] sm:$0xff] %vm37_vm2, %v4920_v7  ;;  %v4710_v5 = vadd.f32 %v4613_v4, %v4549_v40  ;;  %v4711_v11 = vadd.f32 %v4616_v0, %v4550_v61  ;;  %v4775_v26 = vld [vmem:[%s11384_s5 + $0x78] sm:$0xff]  ;;  %v4842_v7 = vpop.xlane.xlu1 %4841  ;;  %v4777_v10 = vld [vmem:[%s11384_s5 + $0x88] sm:$0xff] }
 0x43c   :  { %4953 = vst.msk [vmem:[%s11384_s5 + $0x8] sm:$0xff] %vm37_vm2, %v4921_v14  ;;  %4954 = vst.msk [vmem:[%s11384_s5 + $0x10] sm:$0xff] %vm37_vm2, %v4922_v2  ;;  %v4935_v13 = vadd.f32 %v4839_v41, %v4775_v26  ;;  %v4936_v14 = vadd.f32 %v4842_v7, %v4776_v50  ;;  %v4619_v2 = vpop.xlane.xlu0 %4618  ;;  %v4779_v43 = vld [vmem:[%s11384_s5 + $0x98] sm:$0xff]  ;;  %v4555_v47 = vld [vmem:[%s11383_s4 + $0xa8] sm:$0xff] }
 0x43d   :  { %4731 = vst.msk [vmem:[%s11383_s4 + $0x18] sm:$0xff] %vm37_vm2, %v4698_v21  ;;  %4732 = vst.msk [vmem:[%s11383_s4 + $0x20] sm:$0xff] %vm37_vm2, %v4699_v46  ;;  %v4712_v23 = vadd.f32 %v4619_v2, %v4551_v3  ;;  %v4781_v53 = vld [vmem:[%s11384_s5 + $0xa8] sm:$0xff]  ;;  %v4557_v52 = vld [vmem:[%s11383_s4 + $0xb8] sm:$0xff] }
 0x43e   :  { %4955 = vst.msk [vmem:[%s11384_s5 + $0x18] sm:$0xff] %vm37_vm2, %v4923_v19  ;;  %4956 = vst.msk [vmem:[%s11384_s5 + $0x20] sm:$0xff] %vm37_vm2, %v4924_v63  ;;  %v4778_v19 = vld [vmem:[%s11384_s5 + $0x90] sm:$0xff]  ;;  %v4783_v1 = vld [vmem:[%s11384_s5 + $0xb8] sm:$0xff] }
 0x43f   :  { %4733 = vst.msk [vmem:[%s11383_s4 + $0x28] sm:$0xff] %vm37_vm2, %v4700_v59  ;;  %4734 = vst.msk [vmem:[%s11383_s4 + $0x30] sm:$0xff] %vm37_vm2, %v4701_v6  ;;  %v4622_v8 = vpop.xlane.xlu1 %4621  ;;  %v4554_v59 = vld [vmem:[%s11383_s4 + $0xa0] sm:$0xff]  ;;  %v4559_v29 = vld [vmem:[%s11383_s4 + $0xc8] sm:$0xff] }
 0x440   :  { %4957 = vst.msk [vmem:[%s11384_s5 + $0x28] sm:$0xff] %vm37_vm2, %v4925_v31  ;;  %4958 = vst.msk [vmem:[%s11384_s5 + $0x30] sm:$0xff] %vm37_vm2, %v4926_v35  ;;  %v4713_v38 = vadd.f32 %v4622_v8, %v4552_v9  ;;  %v4780_v35 = vld [vmem:[%s11384_s5 + $0xa0] sm:$0xff]  ;;  %v4560_v28 = vld [vmem:[%s11383_s4 + $0xd0] sm:$0xff] }
 0x441   :  { %4735 = vst.msk [vmem:[%s11383_s4 + $0x38] sm:$0xff] %vm37_vm2, %v4702_v56  ;;  %4736 = vst.msk [vmem:[%s11383_s4 + $0x40] sm:$0xff] %vm37_vm2, %v4703_v20  ;;  %v4556_v20 = vld [vmem:[%s11383_s4 + $0xb0] sm:$0xff]  ;;  %v4784_v4 = vld [vmem:[%s11384_s5 + $0xc0] sm:$0xff] }
 0x442   :  { %4959 = vst.msk [vmem:[%s11384_s5 + $0x38] sm:$0xff] %vm37_vm2, %v4927_v62  ;;  %4960 = vst.msk [vmem:[%s11384_s5 + $0x40] sm:$0xff] %vm37_vm2, %v4928_v55  ;;  %v4785_v40 = vld [vmem:[%s11384_s5 + $0xc8] sm:$0xff]  ;;  %v4786_v61 = vld [vmem:[%s11384_s5 + $0xd0] sm:$0xff] }
 0x443   :  { %4737 = vst.msk [vmem:[%s11383_s4 + $0x48] sm:$0xff] %vm37_vm2, %v4704_v15  ;;  %4738 = vst.msk [vmem:[%s11383_s4 + $0x50] sm:$0xff] %vm37_vm2, %v4705_v45  ;;  %v4562_v50 = vld [vmem:[%s11383_s4 + $0xe0] sm:$0xff]  ;;  %v4787_v9 = vld [vmem:[%s11384_s5 + $0xd8] sm:$0xff] }
 0x444   :  { %4961 = vst.msk [vmem:[%s11384_s5 + $0x48] sm:$0xff] %vm37_vm2, %v4929_v60  ;;  %4962 = vst.msk [vmem:[%s11384_s5 + $0x50] sm:$0xff] %vm37_vm2, %v4930_v58  ;;  %v4782_v60 = vld [vmem:[%s11384_s5 + $0xb0] sm:$0xff] }
 0x445   :  { %4739 = vst.msk [vmem:[%s11383_s4 + $0x58] sm:$0xff] %vm37_vm2, %v4706_v30  ;;  %4740 = vst.msk [vmem:[%s11383_s4 + $0x60] sm:$0xff] %vm37_vm2, %v4707_v17  ;;  %v4558_v17 = vld [vmem:[%s11383_s4 + $0xc0] sm:$0xff] }
 0x446   :  { %4963 = vst.msk [vmem:[%s11384_s5 + $0x58] sm:$0xff] %vm37_vm2, %v4931_v54  ;;  %4964 = vst.msk [vmem:[%s11384_s5 + $0x60] sm:$0xff] %vm37_vm2, %v4932_v44 }
 0x447   :  { %4741 = vst.msk [vmem:[%s11383_s4 + $0x68] sm:$0xff] %vm37_vm2, %v4708_v27  ;;  %4742 = vst.msk [vmem:[%s11383_s4 + $0x70] sm:$0xff] %vm37_vm2, %v4709_v48  ;;  %v4845_v21 = vpop.xlane.xlu0 %4844 }
 0x448   :  { %4965 = vst.msk [vmem:[%s11384_s5 + $0x68] sm:$0xff] %vm37_vm2, %v4933_v18  ;;  %4966 = vst.msk [vmem:[%s11384_s5 + $0x70] sm:$0xff] %vm37_vm2, %v4934_v39  ;;  %v4937_v46 = vadd.f32 %v4845_v21, %v4777_v10 }
 0x449   :  { %4743 = vst.msk [vmem:[%s11383_s4 + $0x78] sm:$0xff] %vm37_vm2, %v4710_v5  ;;  %4744 = vst.msk [vmem:[%s11383_s4 + $0x80] sm:$0xff] %vm37_vm2, %v4711_v11 }
 0x44a   :  { %4967 = vst.msk [vmem:[%s11384_s5 + $0x78] sm:$0xff] %vm37_vm2, %v4935_v13  ;;  %4968 = vst.msk [vmem:[%s11384_s5 + $0x80] sm:$0xff] %vm37_vm2, %v4936_v14  ;;  %v4848_v25 = vpop.xlane.xlu1 %4847  ;;  %v4561_v13 = vld [vmem:[%s11383_s4 + $0xd8] sm:$0xff] }
 0x44b   :  { %4745 = vst.msk [vmem:[%s11383_s4 + $0x88] sm:$0xff] %vm37_vm2, %v4712_v23  ;;  %4746 = vst.msk [vmem:[%s11383_s4 + $0x90] sm:$0xff] %vm37_vm2, %v4713_v38  ;;  %v4938_v57 = vadd.f32 %v4848_v25, %v4778_v19  ;;  %v4788_v23 = vld [vmem:[%s11384_s5 + $0xe0] sm:$0xff]  ;;  %v4564_v19 = vld [vmem:[%s11383_s4 + $0xf0] sm:$0xff] }
 0x44c   :  { %4969 = vst.msk [vmem:[%s11384_s5 + $0x88] sm:$0xff] %vm37_vm2, %v4937_v46  ;;  %v4563_v46 = vld [vmem:[%s11383_s4 + $0xe8] sm:$0xff] }
 0x44d   :  { %4970 = vst.msk [vmem:[%s11384_s5 + $0x90] sm:$0xff] %vm37_vm2, %v4938_v57 }
 0x44f   :  { %v4625_v63 = vpop.xlane.xlu0 %4624 }
 0x450   :  { %v4714_v6 = vadd.f32 %v4625_v63, %v4553_v51 }
 0x452   :  { %v4628_v36 = vpop.xlane.xlu1 %4627  ;;  %4747 = vst.msk [vmem:[%s11383_s4 + $0x98] sm:$0xff] %vm37_vm2, %v4714_v6  ;;  %v4790_v6 = vld [vmem:[%s11384_s5 + $0xf0] sm:$0xff] }
 0x453   :  { %v4715_v34 = vadd.f32 %v4628_v36, %v4554_v59  ;;  %v4789_v59 = vld [vmem:[%s11384_s5 + $0xe8] sm:$0xff] }
 0x455   :  { %4748 = vst.msk [vmem:[%s11383_s4 + $0xa0] sm:$0xff] %vm37_vm2, %v4715_v34 }
 0x46b   :  { %v4851_v31 = vpop.xlane.xlu0 %4850 }
 0x46c   :  { %v4939_v56 = vadd.f32 %v4851_v31, %v4779_v43 }
 0x46d   :  { %v4854_v32 = vpop.xlane.xlu1 %4853 }
 0x46e   :  { %4971 = vst.msk [vmem:[%s11384_s5 + $0x98] sm:$0xff] %vm37_vm2, %v4939_v56  ;;  %v4940_v42 = vadd.f32 %v4854_v32, %v4780_v35  ;;  %v4565_v35 = vld [vmem:[%s11383_s4 + $0xf8] sm:$0xff] }
 0x470   :  { %4972 = vst.msk [vmem:[%s11384_s5 + $0xa0] sm:$0xff] %vm37_vm2, %v4940_v42  ;;  %v4791_v42 = vld [vmem:[%s11384_s5 + $0xf8] sm:$0xff] }
 0x473   :  { %v4631_v62 = vpop.xlane.xlu0 %4630 }
 0x474   :  { %v4716_v55 = vadd.f32 %v4631_v62, %v4555_v47  ;;  %v4634_v22 = vpop.xlane.xlu1 %4633 }
 0x475   :  { %v4717_v24 = vadd.f32 %v4634_v22, %v4556_v20 }
 0x476   :  { %4749 = vst.msk [vmem:[%s11383_s4 + $0xa8] sm:$0xff] %vm37_vm2, %v4716_v55 }
 0x477   :  { %4750 = vst.msk [vmem:[%s11383_s4 + $0xb0] sm:$0xff] %vm37_vm2, %v4717_v24 }
 0x47f   :  { %v4857_v15 = vpop.xlane.xlu0 %4856 }
 0x480   :  { %v4941_v45 = vadd.f32 %v4857_v15, %v4781_v53 }
 0x482   :  { %4973 = vst.msk [vmem:[%s11384_s5 + $0xa8] sm:$0xff] %vm37_vm2, %v4941_v45  ;;  %v4860_v33 = vpop.xlane.xlu1 %4859 }
 0x483   :  { %v4942_v37 = vadd.f32 %v4860_v33, %v4782_v60  ;;  %v4637_v58 = vpop.xlane.xlu0 %4636 }
 0x484   :  { %v4718_v30 = vadd.f32 %v4637_v58, %v4557_v52 }
 0x485   :  { %4974 = vst.msk [vmem:[%s11384_s5 + $0xb0] sm:$0xff] %vm37_vm2, %v4942_v37 }
 0x486   :  { %4751 = vst.msk [vmem:[%s11383_s4 + $0xb8] sm:$0xff] %vm37_vm2, %v4718_v30 }
 0x487   :  { %v4640_v49 = vpop.xlane.xlu1 %4639 }
 0x488   :  { %v4719_v12 = vadd.f32 %v4640_v49, %v4558_v17 }
 0x48a   :  { %4752 = vst.msk [vmem:[%s11383_s4 + $0xc0] sm:$0xff] %vm37_vm2, %v4719_v12 }
 0x48d   :  { %v4863_v0 = vpop.xlane.xlu0 %4862  ;;  %v4866_v54 = vpop.xlane.xlu1 %4865 }
 0x48e   :  { %v4943_v44 = vadd.f32 %v4863_v0, %v4783_v1  ;;  %v4944_v27 = vadd.f32 %v4866_v54, %v4784_v4 }
 0x490   :  { %4975 = vst.msk [vmem:[%s11384_s5 + $0xb8] sm:$0xff] %vm37_vm2, %v4943_v44  ;;  %4976 = vst.msk [vmem:[%s11384_s5 + $0xc0] sm:$0xff] %vm37_vm2, %v4944_v27 }
 0x491   :  { %v4643_v16 = vpop.xlane.xlu0 %4642  ;;  %v4646_v48 = vpop.xlane.xlu1 %4645 }
 0x492   :  { %v4720_v18 = vadd.f32 %v4643_v16, %v4559_v29  ;;  %v4721_v39 = vadd.f32 %v4646_v48, %v4560_v28 }
 0x494   :  { %4753 = vst.msk [vmem:[%s11383_s4 + $0xc8] sm:$0xff] %vm37_vm2, %v4720_v18  ;;  %4754 = vst.msk [vmem:[%s11383_s4 + $0xd0] sm:$0xff] %vm37_vm2, %v4721_v39 }
 0x495   :  { %v4869_v5 = vpop.xlane.xlu0 %4868 }
 0x496   :  { %v4872_v11 = vpop.xlane.xlu1 %4871  ;;  %v4945_v26 = vadd.f32 %v4869_v5, %v4785_v40 }
 0x497   :  { %v4946_v41 = vadd.f32 %v4872_v11, %v4786_v61 }
 0x498   :  { %4977 = vst.msk [vmem:[%s11384_s5 + $0xc8] sm:$0xff] %vm37_vm2, %v4945_v26 }
 0x499   :  { %4978 = vst.msk [vmem:[%s11384_s5 + $0xd0] sm:$0xff] %vm37_vm2, %v4946_v41  ;;  %v4649_v7 = vpop.xlane.xlu0 %4648 }
 0x49a   :  { %v4652_v14 = vpop.xlane.xlu1 %4651  ;;  %v4722_v3 = vadd.f32 %v4649_v7, %v4561_v13 }
 0x49b   :  { %v4723_v2 = vadd.f32 %v4652_v14, %v4562_v50 }
 0x49c   :  { %4755 = vst.msk [vmem:[%s11383_s4 + $0xd8] sm:$0xff] %vm37_vm2, %v4722_v3 }
 0x49d   :  { %4756 = vst.msk [vmem:[%s11383_s4 + $0xe0] sm:$0xff] %vm37_vm2, %v4723_v2  ;;  %v4875_v8 = vpop.xlane.xlu0 %4874 }
 0x49e   :  { %v4878_v38 = vpop.xlane.xlu1 %4877  ;;  %v4947_v10 = vadd.f32 %v4875_v8, %v4787_v9 }
 0x49f   :  { %v4948_v21 = vadd.f32 %v4878_v38, %v4788_v23 }
 0x4a0   :  { %4979 = vst.msk [vmem:[%s11384_s5 + $0xd8] sm:$0xff] %vm37_vm2, %v4947_v10 }
 0x4a1   :  { %4980 = vst.msk [vmem:[%s11384_s5 + $0xe0] sm:$0xff] %vm37_vm2, %v4948_v21  ;;  %v4655_v25 = vpop.xlane.xlu0 %4654 }
 0x4a2   :  { %v4658_v57 = vpop.xlane.xlu1 %4657  ;;  %v4724_v51 = vadd.f32 %v4655_v25, %v4563_v46 }
 0x4a3   :  { %v4725_v63 = vadd.f32 %v4658_v57, %v4564_v19 }
 0x4a4   :  { %4757 = vst.msk [vmem:[%s11383_s4 + $0xe8] sm:$0xff] %vm37_vm2, %v4724_v51 }
 0x4a5   :  { %4758 = vst.msk [vmem:[%s11383_s4 + $0xf0] sm:$0xff] %vm37_vm2, %v4725_v63  ;;  %v4881_v36 = vpop.xlane.xlu0 %4880 }
 0x4a6   :  { %v4884_v34 = vpop.xlane.xlu1 %4883  ;;  %v4949_v43 = vadd.f32 %v4881_v36, %v4789_v59 }
 0x4a7   :  { %v4950_v31 = vadd.f32 %v4884_v34, %v4790_v6 }
 0x4a8   :  { %4981 = vst.msk [vmem:[%s11384_s5 + $0xe8] sm:$0xff] %vm37_vm2, %v4949_v43 }
 0x4a9   :  { %4982 = vst.msk [vmem:[%s11384_s5 + $0xf0] sm:$0xff] %vm37_vm2, %v4950_v31  ;;  %v4661_v56 = vpop.xlane.xlu0 %4660 }
 0x4aa   :  { %v4726_v32 = vadd.f32 %v4661_v56, %v4565_v35 }
 0x4ac   :  { %4759 = vst.msk [vmem:[%s11383_s4 + $0xf8] sm:$0xff] %vm37_vm2, %v4726_v32 }
 0x4ad   :  { %v4887_v47 = vpop.xlane.xlu0 %4886 }
 0x4ae   :  { %v4951_v20 = vadd.f32 %v4887_v47, %v4791_v42 }
 0x4b0   :  { %4983 = vst.msk [vmem:[%s11384_s5 + $0xf8] sm:$0xff] %vm37_vm2, %v4951_v20 }
 0x4b1   :  { %4992 = vsyncpa [#allocation3], 1 }

</bundles_post_ra>
